<compile_context>
chip_gen: v7x
topology: tpu7x:2x2x1
jax: 0.10.0
libtpu: 0.0.40
codegen_flags: <defaults>
</compile_context>

<pallas_src>
import math
import functools

import jax
import jax.numpy as jnp
from jax import lax
from jax.experimental import pallas as pl
from jax.experimental.pallas import tpu as pltpu


def _layer_norm(x, gamma, beta, eps=1e-5):
    # x: (T, D) f32; gamma/beta: (1, D) f32  (matches PyTorch LayerNorm eps)
    mean = jnp.mean(x, axis=-1, keepdims=True)
    var = jnp.mean((x - mean) ** 2, axis=-1, keepdims=True)
    inv = lax.rsqrt(var + eps)
    return (x - mean) * inv * gamma + beta


def _transformer_block_kernel(
    # inputs
    xq_ref, xf_ref,
    wq_ref, bq_ref, wkv_ref, bkv_ref, wo_ref, bo_ref,
    ln1_g_ref, ln1_b_ref,
    w1_ref, b1_ref, w2_ref, b2_ref,
    ln2_g_ref, ln2_b_ref,
    # outputs
    out_ref,
    *, n_heads: int, d_k: int,
):
    d_model = n_heads * d_k

    xq = xq_ref[0]                       # (TQ, D) f32 — residual path stays f32
    xf = xf_ref[0]                       # (S,  D) f32 — full sequence for K/V
    xq_b = xq.astype(jnp.bfloat16)
    xf_b = xf.astype(jnp.bfloat16)

    # --- hoisted parameter reads (no re-broadcast inside loops) --------------
    wq = wq_ref[...]                     # (D, D)    bf16
    wkv = wkv_ref[...]                   # (D, 2D)   bf16 (K|V fused)
    wo = wo_ref[...]                     # (D, D)    bf16
    w1 = w1_ref[...]                     # (D, FF)   bf16
    w2 = w2_ref[...]                     # (FF, D)   bf16
    bq = bq_ref[...]                     # (1, D)    f32
    bkv = bkv_ref[...]                   # (1, 2D)   f32
    bo = bo_ref[...]                     # (1, D)    f32
    b1 = b1_ref[...]                     # (1, FF)   f32
    b2 = b2_ref[...]                     # (1, D)    f32
    ln1_g = ln1_g_ref[...]; ln1_b = ln1_b_ref[...]
    ln2_g = ln2_g_ref[...]; ln2_b = ln2_b_ref[...]

    # --- projections (bf16 inputs, f32 accumulation) --------------------------
    scale = 1.0 / math.sqrt(d_k)
    q = jnp.dot(xq_b, wq, preferred_element_type=jnp.float32) + bq       # (TQ, D)
    q_b = (q * scale).astype(jnp.bfloat16)          # fold 1/sqrt(d_k) into q
    kv = jnp.dot(xf_b, wkv, preferred_element_type=jnp.float32) + bkv    # (S, 2D)
    k_b = kv[:, :d_model].astype(jnp.bfloat16)
    v_b = kv[:, d_model:].astype(jnp.bfloat16)

    # --- multi-head attention: per-head, accumulate through Wo (no concat) ----
    tq = q.shape[0]
    acc = jnp.zeros((tq, d_model), jnp.float32)
    for h in range(n_heads):             # small static head count; accumulation
        lo = h * d_k                     # bounds the live ranges per head
        qh = q_b[:, lo:lo + d_k]                            # (TQ, dk)
        kh = k_b[:, lo:lo + d_k]                            # (S,  dk)
        vh = v_b[:, lo:lo + d_k]                            # (S,  dk)
        scores = lax.dot_general(                           # (TQ, S), f32
            qh, kh, (((1,), (1,)), ((), ())),
            preferred_element_type=jnp.float32)
        scores = scores - jnp.max(scores, axis=-1, keepdims=True)
        p = jnp.exp(scores)
        p = p * pl.reciprocal(jnp.sum(p, axis=-1, keepdims=True), approx=True)
        ctx = jnp.dot(p.astype(jnp.bfloat16), vh,
                      preferred_element_type=jnp.float32)   # (TQ, dk)
        acc = acc + jnp.dot(ctx.astype(jnp.bfloat16), wo[lo:lo + d_k, :],
                            preferred_element_type=jnp.float32)  # (TQ, D)
    attn_out = acc + bo

    # --- residual + LayerNorm 1 ------------------------------------------------
    h1 = _layer_norm(xq + attn_out, ln1_g, ln1_b)

    # --- feed-forward (ReLU) ----------------------------------------------------
    ff = jnp.dot(h1.astype(jnp.bfloat16), w1, preferred_element_type=jnp.float32) + b1
    ff = jnp.maximum(ff, 0.0)
    ff = jnp.dot(ff.astype(jnp.bfloat16), w2, preferred_element_type=jnp.float32) + b2

    # --- residual + LayerNorm 2 --------------------------------------------------
    out_ref[0] = _layer_norm(h1 + ff, ln2_g, ln2_b)


def transformer_block(x, params, *, n_heads: int):
    """x: (B, S, D) float32. params: dict of pre-transposed weights/biases."""
    B, S, D = x.shape
    d_ff = params["w1"].shape[1]
    assert D % n_heads == 0
    d_k = D // n_heads

    # Lane/sublane-friendly shape guards: lane-dense (unmasked) stores need the
    # last dim to be a multiple of 128; sublane dims multiples of 8.
    assert D % 128 == 0, "d_model must be a multiple of 128 for TPU lane density"
    assert d_ff % 128 == 0, "d_ff must be a multiple of 128 for TPU lane density"
    assert S % 8 == 0, "sequence length must be a multiple of 8"
    assert d_k % 8 == 0, "d_k must be a multiple of 8"

    # Query-tile size: bounds (TQ, S) score memory and creates parallel grid steps.
    TQ = 128 if S % 128 == 0 else S
    n_q = S // TQ

    # Fuse K|V weights into one wide matmul and cast matmul weights to bf16;
    # biases / LN params stay f32 (they are added to f32 accumulators).
    wq = params["wq"].astype(jnp.bfloat16)
    wkv = jnp.concatenate([params["wk"], params["wv"]], axis=1).astype(jnp.bfloat16)
    bkv = jnp.concatenate([params["bk"], params["bv"]], axis=1)
    wo = params["wo"].astype(jnp.bfloat16)
    w1 = params["w1"].astype(jnp.bfloat16)
    w2 = params["w2"].astype(jnp.bfloat16)

    kernel = functools.partial(_transformer_block_kernel, n_heads=n_heads, d_k=d_k)

    def full(shape):
        # whole-array block, same (grid-invariant) block for every grid step
        nd = len(shape)
        return pl.BlockSpec(shape, lambda b, qi: (0,) * nd)

    in_specs = [
        pl.BlockSpec((1, TQ, D), lambda b, qi: (b, qi, 0)),   # x, query-row tile
        pl.BlockSpec((1, S, D), lambda b, qi: (b, 0, 0)),     # x, full seq (K/V)
        full((D, D)), full((1, D)),                           # Wq, bq
        full((D, 2 * D)), full((1, 2 * D)),                   # W_kv, b_kv (fused)
        full((D, D)), full((1, D)),                           # Wo, bo
        full((1, D)), full((1, D)),                           # ln1 gamma, beta
        full((D, d_ff)), full((1, d_ff)),                     # W1, b1
        full((d_ff, D)), full((1, D)),                        # W2, b2
        full((1, D)), full((1, D)),                           # ln2 gamma, beta
    ]

    return pl.pallas_call(
        kernel,
        out_shape=jax.ShapeDtypeStruct((B, S, D), jnp.float32),
        grid_spec=pltpu.PrefetchScalarGridSpec(
            num_scalar_prefetch=0,
            grid=(B, n_q),
            in_specs=in_specs,
            out_specs=pl.BlockSpec((1, TQ, D), lambda b, qi: (b, qi, 0)),
        ),
        compiler_params=pltpu.CompilerParams(
            # both axes are independent -> parallel (megacore / v7x 2-TC friendly)
            dimension_semantics=("parallel", "parallel"),
            # explicit scoped-VMEM budget (bf16 weights + activation tiles fit
            # comfortably; re-derive per chip for realistic d_model/d_ff).
            vmem_limit_bytes=64 * 1024 * 1024,
        ),
    )(
        x, x,
        wq, params["bq"], wkv, bkv, wo, params["bo"],
        params["ln1_g"], params["ln1_b"],
        w1, params["b1"], w2, params["b2"],
        params["ln2_g"], params["ln2_b"],
    )


def _init_params(key, d_model, d_ff):
    """Deterministic synthetic parameters (PyTorch LN defaults: gamma=1, beta=0)."""
    ks = jax.random.split(key, 12)
    s = 0.05
    return {
        "wq": s * jax.random.normal(ks[0], (d_model, d_model), jnp.float32),
        "bq": s * jax.random.normal(ks[1], (1, d_model), jnp.float32),
        "wk": s * jax.random.normal(ks[2], (d_model, d_model), jnp.float32),
        "bk": s * jax.random.normal(ks[3], (1, d_model), jnp.float32),
        "wv": s * jax.random.normal(ks[4], (d_model, d_model), jnp.float32),
        "bv": s * jax.random.normal(ks[5], (1, d_model), jnp.float32),
        "wo": s * jax.random.normal(ks[6], (d_model, d_model), jnp.float32),
        "bo": s * jax.random.normal(ks[7], (1, d_model), jnp.float32),
        "ln1_g": jnp.ones((1, d_model), jnp.float32),
        "ln1_b": jnp.zeros((1, d_model), jnp.float32),
        "w1": s * jax.random.normal(ks[8], (d_model, d_ff), jnp.float32),
        "b1": s * jax.random.normal(ks[9], (1, d_ff), jnp.float32),
        "w2": s * jax.random.normal(ks[10], (d_ff, d_model), jnp.float32),
        "b2": s * jax.random.normal(ks[11], (1, d_model), jnp.float32),
        "ln2_g": jnp.ones((1, d_model), jnp.float32),
        "ln2_b": jnp.zeros((1, d_model), jnp.float32),
    }


def _reference(x, p, n_heads):
    """Pure-JAX f32 reference matching the PyTorch forward (eval mode, mask=None)."""
    B, S, D = x.shape
    d_k = D // n_heads

    def ln(y, g, b, eps=1e-5):
        m = jnp.mean(y, -1, keepdims=True)
        v = jnp.mean((y - m) ** 2, -1, keepdims=True)
        return (y - m) / jnp.sqrt(v + eps) * g + b

    q = x @ p["wq"] + p["bq"]
    k = x @ p["wk"] + p["bk"]
    v = x @ p["wv"] + p["bv"]
    q = q.reshape(B, S, n_heads, d_k).transpose(0, 2, 1, 3)
    k = k.reshape(B, S, n_heads, d_k).transpose(0, 2, 1, 3)
    v = v.reshape(B, S, n_heads, d_k).transpose(0, 2, 1, 3)
    scores = jnp.einsum("bhqd,bhkd->bhqk", q, k) / math.sqrt(d_k)
    attn = jax.nn.softmax(scores, axis=-1)
    ctx = jnp.einsum("bhqk,bhkd->bhqd", attn, v)
    ctx = ctx.transpose(0, 2, 1, 3).reshape(B, S, D)
    attn_out = ctx @ p["wo"] + p["bo"]
    h1 = ln(x + attn_out, p["ln1_g"], p["ln1_b"])
    ff = jnp.maximum(h1 @ p["w1"] + p["b1"], 0.0) @ p["w2"] + p["b2"]
    return ln(h1 + ff, p["ln2_g"], p["ln2_b"])


if __name__ == "__main__":
    # Small but TPU-friendly shapes: D multiple of 128 (lane-dense stores),
    # S = 256 so the 128-row query tile gives a (B=2, n_q=2) = 4-step grid.
    B, S, D, H, FF = 2, 256, 128, 4, 512
    key = jax.random.PRNGKey(0)
    kx, kp = jax.random.split(key)
    x = jax.random.normal(kx, (B, S, D), jnp.float32)
    params = _init_params(kp, D, FF)

    out = transformer_block(x, params, n_heads=H)
    out = jax.block_until_ready(out)

    ref = _reference(x, params, H)
    assert out.shape == (B, S, D)
    max_err = float(jnp.max(jnp.abs(out - ref)))
    # bf16 matmul inputs (f32 accumulation) + approx reciprocal -> loosened tol.
    assert jnp.allclose(out, ref, atol=5e-2, rtol=5e-2), (
        f"mismatch vs reference (max abs err {max_err})")
    print("KERNEL_OK")
</pallas_src>

<mosaic_0001>
module attributes {stable_mosaic.version = 11 : i64} {
  func.func @_transformer_block_kernel(%arg0: i32, %arg1: i32, %arg2: memref<1x128x128xf32, #tpu.memory_space<vmem>>, %arg3: memref<1x256x128xf32, #tpu.memory_space<vmem>>, %arg4: memref<128x128xbf16, #tpu.memory_space<vmem>>, %arg5: memref<1x128xf32, #tpu.memory_space<vmem>>, %arg6: memref<128x256xbf16, #tpu.memory_space<vmem>>, %arg7: memref<1x256xf32, #tpu.memory_space<vmem>>, %arg8: memref<128x128xbf16, #tpu.memory_space<vmem>>, %arg9: memref<1x128xf32, #tpu.memory_space<vmem>>, %arg10: memref<1x128xf32, #tpu.memory_space<vmem>>, %arg11: memref<1x128xf32, #tpu.memory_space<vmem>>, %arg12: memref<128x512xbf16, #tpu.memory_space<vmem>>, %arg13: memref<1x512xf32, #tpu.memory_space<vmem>>, %arg14: memref<512x128xbf16, #tpu.memory_space<vmem>>, %arg15: memref<1x128xf32, #tpu.memory_space<vmem>>, %arg16: memref<1x128xf32, #tpu.memory_space<vmem>>, %arg17: memref<1x128xf32, #tpu.memory_space<vmem>>, %arg18: memref<1x128x128xf32, #tpu.memory_space<vmem>>) attributes {dimension_semantics = [#tpu.dimension_semantics<parallel>, #tpu.dimension_semantics<parallel>], iteration_bounds = array<i64: 2, 2>, scalar_prefetch = 0 : i64, scratch_operands = 0 : i64, tpu.core_type = #tpu.core_type<tc>, window_params = [{transform_indices = @transform_0, window_bounds = array<i64: 1, 128, 128>}, {transform_indices = @transform_1, window_bounds = array<i64: 1, 256, 128>}, {pipeline_mode = #tpu.pipeline_mode<synchronous>, transform_indices = @transform_2, window_bounds = array<i64: 128, 128>}, {pipeline_mode = #tpu.pipeline_mode<synchronous>, transform_indices = @transform_3, window_bounds = array<i64: 1, 128>}, {pipeline_mode = #tpu.pipeline_mode<synchronous>, transform_indices = @transform_4, window_bounds = array<i64: 128, 256>}, {pipeline_mode = #tpu.pipeline_mode<synchronous>, transform_indices = @transform_5, window_bounds = array<i64: 1, 256>}, {pipeline_mode = #tpu.pipeline_mode<synchronous>, transform_indices = @transform_6, window_bounds = array<i64: 128, 128>}, {pipeline_mode = #tpu.pipeline_mode<synchronous>, transform_indices = @transform_7, window_bounds = array<i64: 1, 128>}, {pipeline_mode = #tpu.pipeline_mode<synchronous>, transform_indices = @transform_8, window_bounds = array<i64: 1, 128>}, {pipeline_mode = #tpu.pipeline_mode<synchronous>, transform_indices = @transform_9, window_bounds = array<i64: 1, 128>}, {pipeline_mode = #tpu.pipeline_mode<synchronous>, transform_indices = @transform_10, window_bounds = array<i64: 128, 512>}, {pipeline_mode = #tpu.pipeline_mode<synchronous>, transform_indices = @transform_11, window_bounds = array<i64: 1, 512>}, {pipeline_mode = #tpu.pipeline_mode<synchronous>, transform_indices = @transform_12, window_bounds = array<i64: 512, 128>}, {pipeline_mode = #tpu.pipeline_mode<synchronous>, transform_indices = @transform_13, window_bounds = array<i64: 1, 128>}, {pipeline_mode = #tpu.pipeline_mode<synchronous>, transform_indices = @transform_14, window_bounds = array<i64: 1, 128>}, {pipeline_mode = #tpu.pipeline_mode<synchronous>, transform_indices = @transform_15, window_bounds = array<i64: 1, 128>}, {transform_indices = @transform_16, window_bounds = array<i64: 1, 128, 128>}]} {
    %c0 = arith.constant 0 : index
    %c0_0 = arith.constant 0 : index
    %c0_1 = arith.constant 0 : index
    %0 = vector.load %arg2[%c0, %c0_0, %c0_1] : memref<1x128x128xf32, #tpu.memory_space<vmem>>, vector<1x128x128xf32>
    %1 = vector.shape_cast %0 : vector<1x128x128xf32> to vector<128x128xf32>
    %c0_2 = arith.constant 0 : index
    %c0_3 = arith.constant 0 : index
    %c0_4 = arith.constant 0 : index
    %2 = vector.load %arg3[%c0_2, %c0_3, %c0_4] : memref<1x256x128xf32, #tpu.memory_space<vmem>>, vector<1x256x128xf32>
    %3 = vector.shape_cast %2 : vector<1x256x128xf32> to vector<256x128xf32>
    %4 = arith.truncf %1 : vector<128x128xf32> to vector<128x128xbf16>
    %5 = arith.truncf %3 : vector<256x128xf32> to vector<256x128xbf16>
    %c0_5 = arith.constant 0 : index
    %c0_6 = arith.constant 0 : index
    %6 = vector.load %arg4[%c0_5, %c0_6] : memref<128x128xbf16, #tpu.memory_space<vmem>>, vector<128x128xbf16>
    %c0_7 = arith.constant 0 : index
    %c0_8 = arith.constant 0 : index
    %7 = vector.load %arg6[%c0_7, %c0_8] : memref<128x256xbf16, #tpu.memory_space<vmem>>, vector<128x256xbf16>
    %c0_9 = arith.constant 0 : index
    %c0_10 = arith.constant 0 : index
    %8 = vector.load %arg8[%c0_9, %c0_10] : memref<128x128xbf16, #tpu.memory_space<vmem>>, vector<128x128xbf16>
    %c0_11 = arith.constant 0 : index
    %c0_12 = arith.constant 0 : index
    %9 = vector.load %arg12[%c0_11, %c0_12] : memref<128x512xbf16, #tpu.memory_space<vmem>>, vector<128x512xbf16>
    %c0_13 = arith.constant 0 : index
    %c0_14 = arith.constant 0 : index
    %10 = vector.load %arg14[%c0_13, %c0_14] : memref<512x128xbf16, #tpu.memory_space<vmem>>, vector<512x128xbf16>
    %c0_15 = arith.constant 0 : index
    %c0_16 = arith.constant 0 : index
    %11 = vector.load %arg5[%c0_15, %c0_16] : memref<1x128xf32, #tpu.memory_space<vmem>>, vector<1x128xf32>
    %c0_17 = arith.constant 0 : index
    %c0_18 = arith.constant 0 : index
    %12 = vector.load %arg7[%c0_17, %c0_18] : memref<1x256xf32, #tpu.memory_space<vmem>>, vector<1x256xf32>
    %c0_19 = arith.constant 0 : index
    %c0_20 = arith.constant 0 : index
    %13 = vector.load %arg9[%c0_19, %c0_20] : memref<1x128xf32, #tpu.memory_space<vmem>>, vector<1x128xf32>
    %c0_21 = arith.constant 0 : index
    %c0_22 = arith.constant 0 : index
    %14 = vector.load %arg13[%c0_21, %c0_22] : memref<1x512xf32, #tpu.memory_space<vmem>>, vector<1x512xf32>
    %c0_23 = arith.constant 0 : index
    %c0_24 = arith.constant 0 : index
    %15 = vector.load %arg15[%c0_23, %c0_24] : memref<1x128xf32, #tpu.memory_space<vmem>>, vector<1x128xf32>
    %c0_25 = arith.constant 0 : index
    %c0_26 = arith.constant 0 : index
    %16 = vector.load %arg10[%c0_25, %c0_26] : memref<1x128xf32, #tpu.memory_space<vmem>>, vector<1x128xf32>
    %c0_27 = arith.constant 0 : index
    %c0_28 = arith.constant 0 : index
    %17 = vector.load %arg11[%c0_27, %c0_28] : memref<1x128xf32, #tpu.memory_space<vmem>>, vector<1x128xf32>
    %c0_29 = arith.constant 0 : index
    %c0_30 = arith.constant 0 : index
    %18 = vector.load %arg16[%c0_29, %c0_30] : memref<1x128xf32, #tpu.memory_space<vmem>>, vector<1x128xf32>
    %c0_31 = arith.constant 0 : index
    %c0_32 = arith.constant 0 : index
    %19 = vector.load %arg17[%c0_31, %c0_32] : memref<1x128xf32, #tpu.memory_space<vmem>>, vector<1x128xf32>
    %cst = arith.constant dense<0.000000e+00> : vector<128x128xf32>
    %20 = tpu.matmul %4, %6, %cst {dimension_numbers = #tpu.dot_dimension_numbers<[1], [0], [0], [1], [0, 0, 1, 1], [], []>} : vector<128x128xbf16>, vector<128x128xbf16>, vector<128x128xf32> -> vector<128x128xf32>
    %21 = vector.broadcast %11 : vector<1x128xf32> to vector<128x128xf32>
    %22 = arith.addf %20, %21 : vector<128x128xf32>
    %cst_33 = arith.constant 0.176776692 : f32
    %23 = vector.broadcast %cst_33 : f32 to vector<128x128xf32>
    %24 = arith.mulf %22, %23 : vector<128x128xf32>
    %25 = arith.truncf %24 : vector<128x128xf32> to vector<128x128xbf16>
    %cst_34 = arith.constant dense<0.000000e+00> : vector<256x256xf32>
    %26 = tpu.matmul %5, %7, %cst_34 {dimension_numbers = #tpu.dot_dimension_numbers<[1], [0], [0], [1], [0, 0, 1, 1], [], []>} : vector<256x128xbf16>, vector<128x256xbf16>, vector<256x256xf32> -> vector<256x256xf32>
    %27 = vector.broadcast %12 : vector<1x256xf32> to vector<256x256xf32>
    %28 = arith.addf %26, %27 : vector<256x256xf32>
    %29 = vector.extract_strided_slice %28 {offsets = [0, 0], sizes = [256, 128], strides = [1, 1]} : vector<256x256xf32> to vector<256x128xf32>
    %30 = arith.truncf %29 : vector<256x128xf32> to vector<256x128xbf16>
    %31 = vector.extract_strided_slice %28 {offsets = [0, 128], sizes = [256, 128], strides = [1, 1]} : vector<256x256xf32> to vector<256x128xf32>
    %32 = arith.truncf %31 : vector<256x128xf32> to vector<256x128xbf16>
    %cst_35 = arith.constant 0.000000e+00 : f32
    %33 = vector.broadcast %cst_35 : f32 to vector<128x128xf32>
    %34 = vector.extract_strided_slice %25 {offsets = [0, 0], sizes = [128, 32], strides = [1, 1]} : vector<128x128xbf16> to vector<128x32xbf16>
    %35 = vector.extract_strided_slice %30 {offsets = [0, 0], sizes = [256, 32], strides = [1, 1]} : vector<256x128xbf16> to vector<256x32xbf16>
    %36 = vector.extract_strided_slice %32 {offsets = [0, 0], sizes = [256, 32], strides = [1, 1]} : vector<256x128xbf16> to vector<256x32xbf16>
    %cst_36 = arith.constant dense<0.000000e+00> : vector<128x256xf32>
    %37 = tpu.matmul %34, %35, %cst_36 {dimension_numbers = #tpu.dot_dimension_numbers<[1], [1], [0], [0], [0, 0, 1, 0], [], []>} : vector<128x32xbf16>, vector<256x32xbf16>, vector<128x256xf32> -> vector<128x256xf32>
    %cst_37 = arith.constant dense<0xFF800000> : vector<128xf32>
    %38 = vector.multi_reduction <maximumf>, %37, %cst_37 [1] : vector<128x256xf32> to vector<128xf32>
    %39 = vector.shape_cast %38 : vector<128xf32> to vector<128x1xf32>
    %40 = vector.broadcast %39 : vector<128x1xf32> to vector<128x256xf32>
    %41 = arith.subf %37, %40 : vector<128x256xf32>
    %42 = math.exp %41 : vector<128x256xf32>
    %cst_38 = arith.constant dense<0.000000e+00> : vector<128xf32>
    %43 = vector.multi_reduction <add>, %42, %cst_38 [1] : vector<128x256xf32> to vector<128xf32>
    %44 = vector.shape_cast %43 : vector<128xf32> to vector<128x1xf32>
    %45 = tpu.reciprocal %44 {approx = true} : vector<128x1xf32> -> vector<128x1xf32>
    %46 = vector.broadcast %45 : vector<128x1xf32> to vector<128x256xf32>
    %47 = arith.mulf %42, %46 : vector<128x256xf32>
    %48 = arith.truncf %47 : vector<128x256xf32> to vector<128x256xbf16>
    %cst_39 = arith.constant dense<0.000000e+00> : vector<128x32xf32>
    %49 = tpu.matmul %48, %36, %cst_39 {dimension_numbers = #tpu.dot_dimension_numbers<[1], [0], [0], [1], [0, 0, 1, 1], [], []>} : vector<128x256xbf16>, vector<256x32xbf16>, vector<128x32xf32> -> vector<128x32xf32>
    %50 = arith.truncf %49 : vector<128x32xf32> to vector<128x32xbf16>
    %51 = vector.extract_strided_slice %8 {offsets = [0, 0], sizes = [32, 128], strides = [1, 1]} : vector<128x128xbf16> to vector<32x128xbf16>
    %cst_40 = arith.constant dense<0.000000e+00> : vector<128x128xf32>
    %52 = tpu.matmul %50, %51, %cst_40 {dimension_numbers = #tpu.dot_dimension_numbers<[1], [0], [0], [1], [0, 0, 1, 1], [], []>} : vector<128x32xbf16>, vector<32x128xbf16>, vector<128x128xf32> -> vector<128x128xf32>
    %53 = arith.addf %33, %52 : vector<128x128xf32>
    %54 = vector.extract_strided_slice %25 {offsets = [0, 32], sizes = [128, 32], strides = [1, 1]} : vector<128x128xbf16> to vector<128x32xbf16>
    %55 = vector.extract_strided_slice %30 {offsets = [0, 32], sizes = [256, 32], strides = [1, 1]} : vector<256x128xbf16> to vector<256x32xbf16>
    %56 = vector.extract_strided_slice %32 {offsets = [0, 32], sizes = [256, 32], strides = [1, 1]} : vector<256x128xbf16> to vector<256x32xbf16>
    %cst_41 = arith.constant dense<0.000000e+00> : vector<128x256xf32>
    %57 = tpu.matmul %54, %55, %cst_41 {dimension_numbers = #tpu.dot_dimension_numbers<[1], [1], [0], [0], [0, 0, 1, 0], [], []>} : vector<128x32xbf16>, vector<256x32xbf16>, vector<128x256xf32> -> vector<128x256xf32>
    %cst_42 = arith.constant dense<0xFF800000> : vector<128xf32>
    %58 = vector.multi_reduction <maximumf>, %57, %cst_42 [1] : vector<128x256xf32> to vector<128xf32>
    %59 = vector.shape_cast %58 : vector<128xf32> to vector<128x1xf32>
    %60 = vector.broadcast %59 : vector<128x1xf32> to vector<128x256xf32>
    %61 = arith.subf %57, %60 : vector<128x256xf32>
    %62 = math.exp %61 : vector<128x256xf32>
    %cst_43 = arith.constant dense<0.000000e+00> : vector<128xf32>
    %63 = vector.multi_reduction <add>, %62, %cst_43 [1] : vector<128x256xf32> to vector<128xf32>
    %64 = vector.shape_cast %63 : vector<128xf32> to vector<128x1xf32>
    %65 = tpu.reciprocal %64 {approx = true} : vector<128x1xf32> -> vector<128x1xf32>
    %66 = vector.broadcast %65 : vector<128x1xf32> to vector<128x256xf32>
    %67 = arith.mulf %62, %66 : vector<128x256xf32>
    %68 = arith.truncf %67 : vector<128x256xf32> to vector<128x256xbf16>
    %cst_44 = arith.constant dense<0.000000e+00> : vector<128x32xf32>
    %69 = tpu.matmul %68, %56, %cst_44 {dimension_numbers = #tpu.dot_dimension_numbers<[1], [0], [0], [1], [0, 0, 1, 1], [], []>} : vector<128x256xbf16>, vector<256x32xbf16>, vector<128x32xf32> -> vector<128x32xf32>
    %70 = arith.truncf %69 : vector<128x32xf32> to vector<128x32xbf16>
    %71 = vector.extract_strided_slice %8 {offsets = [32, 0], sizes = [32, 128], strides = [1, 1]} : vector<128x128xbf16> to vector<32x128xbf16>
    %cst_45 = arith.constant dense<0.000000e+00> : vector<128x128xf32>
    %72 = tpu.matmul %70, %71, %cst_45 {dimension_numbers = #tpu.dot_dimension_numbers<[1], [0], [0], [1], [0, 0, 1, 1], [], []>} : vector<128x32xbf16>, vector<32x128xbf16>, vector<128x128xf32> -> vector<128x128xf32>
    %73 = arith.addf %53, %72 : vector<128x128xf32>
    %74 = vector.extract_strided_slice %25 {offsets = [0, 64], sizes = [128, 32], strides = [1, 1]} : vector<128x128xbf16> to vector<128x32xbf16>
    %75 = vector.extract_strided_slice %30 {offsets = [0, 64], sizes = [256, 32], strides = [1, 1]} : vector<256x128xbf16> to vector<256x32xbf16>
    %76 = vector.extract_strided_slice %32 {offsets = [0, 64], sizes = [256, 32], strides = [1, 1]} : vector<256x128xbf16> to vector<256x32xbf16>
    %cst_46 = arith.constant dense<0.000000e+00> : vector<128x256xf32>
    %77 = tpu.matmul %74, %75, %cst_46 {dimension_numbers = #tpu.dot_dimension_numbers<[1], [1], [0], [0], [0, 0, 1, 0], [], []>} : vector<128x32xbf16>, vector<256x32xbf16>, vector<128x256xf32> -> vector<128x256xf32>
    %cst_47 = arith.constant dense<0xFF800000> : vector<128xf32>
    %78 = vector.multi_reduction <maximumf>, %77, %cst_47 [1] : vector<128x256xf32> to vector<128xf32>
    %79 = vector.shape_cast %78 : vector<128xf32> to vector<128x1xf32>
    %80 = vector.broadcast %79 : vector<128x1xf32> to vector<128x256xf32>
    %81 = arith.subf %77, %80 : vector<128x256xf32>
    %82 = math.exp %81 : vector<128x256xf32>
    %cst_48 = arith.constant dense<0.000000e+00> : vector<128xf32>
    %83 = vector.multi_reduction <add>, %82, %cst_48 [1] : vector<128x256xf32> to vector<128xf32>
    %84 = vector.shape_cast %83 : vector<128xf32> to vector<128x1xf32>
    %85 = tpu.reciprocal %84 {approx = true} : vector<128x1xf32> -> vector<128x1xf32>
    %86 = vector.broadcast %85 : vector<128x1xf32> to vector<128x256xf32>
    %87 = arith.mulf %82, %86 : vector<128x256xf32>
    %88 = arith.truncf %87 : vector<128x256xf32> to vector<128x256xbf16>
    %cst_49 = arith.constant dense<0.000000e+00> : vector<128x32xf32>
    %89 = tpu.matmul %88, %76, %cst_49 {dimension_numbers = #tpu.dot_dimension_numbers<[1], [0], [0], [1], [0, 0, 1, 1], [], []>} : vector<128x256xbf16>, vector<256x32xbf16>, vector<128x32xf32> -> vector<128x32xf32>
    %90 = arith.truncf %89 : vector<128x32xf32> to vector<128x32xbf16>
    %91 = vector.extract_strided_slice %8 {offsets = [64, 0], sizes = [32, 128], strides = [1, 1]} : vector<128x128xbf16> to vector<32x128xbf16>
    %cst_50 = arith.constant dense<0.000000e+00> : vector<128x128xf32>
    %92 = tpu.matmul %90, %91, %cst_50 {dimension_numbers = #tpu.dot_dimension_numbers<[1], [0], [0], [1], [0, 0, 1, 1], [], []>} : vector<128x32xbf16>, vector<32x128xbf16>, vector<128x128xf32> -> vector<128x128xf32>
    %93 = arith.addf %73, %92 : vector<128x128xf32>
    %94 = vector.extract_strided_slice %25 {offsets = [0, 96], sizes = [128, 32], strides = [1, 1]} : vector<128x128xbf16> to vector<128x32xbf16>
    %95 = vector.extract_strided_slice %30 {offsets = [0, 96], sizes = [256, 32], strides = [1, 1]} : vector<256x128xbf16> to vector<256x32xbf16>
    %96 = vector.extract_strided_slice %32 {offsets = [0, 96], sizes = [256, 32], strides = [1, 1]} : vector<256x128xbf16> to vector<256x32xbf16>
    %cst_51 = arith.constant dense<0.000000e+00> : vector<128x256xf32>
    %97 = tpu.matmul %94, %95, %cst_51 {dimension_numbers = #tpu.dot_dimension_numbers<[1], [1], [0], [0], [0, 0, 1, 0], [], []>} : vector<128x32xbf16>, vector<256x32xbf16>, vector<128x256xf32> -> vector<128x256xf32>
    %cst_52 = arith.constant dense<0xFF800000> : vector<128xf32>
    %98 = vector.multi_reduction <maximumf>, %97, %cst_52 [1] : vector<128x256xf32> to vector<128xf32>
    %99 = vector.shape_cast %98 : vector<128xf32> to vector<128x1xf32>
    %100 = vector.broadcast %99 : vector<128x1xf32> to vector<128x256xf32>
    %101 = arith.subf %97, %100 : vector<128x256xf32>
    %102 = math.exp %101 : vector<128x256xf32>
    %cst_53 = arith.constant dense<0.000000e+00> : vector<128xf32>
    %103 = vector.multi_reduction <add>, %102, %cst_53 [1] : vector<128x256xf32> to vector<128xf32>
    %104 = vector.shape_cast %103 : vector<128xf32> to vector<128x1xf32>
    %105 = tpu.reciprocal %104 {approx = true} : vector<128x1xf32> -> vector<128x1xf32>
    %106 = vector.broadcast %105 : vector<128x1xf32> to vector<128x256xf32>
    %107 = arith.mulf %102, %106 : vector<128x256xf32>
    %108 = arith.truncf %107 : vector<128x256xf32> to vector<128x256xbf16>
    %cst_54 = arith.constant dense<0.000000e+00> : vector<128x32xf32>
    %109 = tpu.matmul %108, %96, %cst_54 {dimension_numbers = #tpu.dot_dimension_numbers<[1], [0], [0], [1], [0, 0, 1, 1], [], []>} : vector<128x256xbf16>, vector<256x32xbf16>, vector<128x32xf32> -> vector<128x32xf32>
    %110 = arith.truncf %109 : vector<128x32xf32> to vector<128x32xbf16>
    %111 = vector.extract_strided_slice %8 {offsets = [96, 0], sizes = [32, 128], strides = [1, 1]} : vector<128x128xbf16> to vector<32x128xbf16>
    %cst_55 = arith.constant dense<0.000000e+00> : vector<128x128xf32>
    %112 = tpu.matmul %110, %111, %cst_55 {dimension_numbers = #tpu.dot_dimension_numbers<[1], [0], [0], [1], [0, 0, 1, 1], [], []>} : vector<128x32xbf16>, vector<32x128xbf16>, vector<128x128xf32> -> vector<128x128xf32>
    %113 = arith.addf %93, %112 : vector<128x128xf32>
    %114 = vector.broadcast %13 : vector<1x128xf32> to vector<128x128xf32>
    %115 = arith.addf %113, %114 : vector<128x128xf32>
    %116 = arith.addf %1, %115 : vector<128x128xf32>
    %cst_56 = arith.constant dense<0.000000e+00> : vector<128xf32>
    %117 = vector.multi_reduction <add>, %116, %cst_56 [1] : vector<128x128xf32> to vector<128xf32>
    %118 = vector.shape_cast %117 : vector<128xf32> to vector<128x1xf32>
    %cst_57 = arith.constant 1.280000e+02 : f32
    %119 = vector.broadcast %cst_57 : f32 to vector<128x1xf32>
    %120 = arith.divf %118, %119 : vector<128x1xf32>
    %121 = vector.broadcast %120 : vector<128x1xf32> to vector<128x128xf32>
    %122 = arith.subf %116, %121 : vector<128x128xf32>
    %123 = arith.mulf %122, %122 : vector<128x128xf32>
    %cst_58 = arith.constant dense<0.000000e+00> : vector<128xf32>
    %124 = vector.multi_reduction <add>, %123, %cst_58 [1] : vector<128x128xf32> to vector<128xf32>
    %125 = vector.shape_cast %124 : vector<128xf32> to vector<128x1xf32>
    %cst_59 = arith.constant 1.280000e+02 : f32
    %126 = vector.broadcast %cst_59 : f32 to vector<128x1xf32>
    %127 = arith.divf %125, %126 : vector<128x1xf32>
    %cst_60 = arith.constant 9.99999974E-6 : f32
    %128 = vector.broadcast %cst_60 : f32 to vector<128x1xf32>
    %129 = arith.addf %127, %128 : vector<128x1xf32>
    %130 = math.rsqrt %129 : vector<128x1xf32>
    %131 = vector.broadcast %120 : vector<128x1xf32> to vector<128x128xf32>
    %132 = arith.subf %116, %131 : vector<128x128xf32>
    %133 = vector.broadcast %130 : vector<128x1xf32> to vector<128x128xf32>
    %134 = arith.mulf %132, %133 : vector<128x128xf32>
    %135 = vector.broadcast %16 : vector<1x128xf32> to vector<128x128xf32>
    %136 = arith.mulf %134, %135 : vector<128x128xf32>
    %137 = vector.broadcast %17 : vector<1x128xf32> to vector<128x128xf32>
    %138 = arith.addf %136, %137 : vector<128x128xf32>
    %139 = arith.truncf %138 : vector<128x128xf32> to vector<128x128xbf16>
    %cst_61 = arith.constant dense<0.000000e+00> : vector<128x512xf32>
    %140 = tpu.matmul %139, %9, %cst_61 {dimension_numbers = #tpu.dot_dimension_numbers<[1], [0], [0], [1], [0, 0, 1, 1], [], []>} : vector<128x128xbf16>, vector<128x512xbf16>, vector<128x512xf32> -> vector<128x512xf32>
    %141 = vector.broadcast %14 : vector<1x512xf32> to vector<128x512xf32>
    %142 = arith.addf %140, %141 : vector<128x512xf32>
    %cst_62 = arith.constant 0.000000e+00 : f32
    %143 = vector.broadcast %cst_62 : f32 to vector<128x512xf32>
    %144 = arith.maximumf %142, %143 : vector<128x512xf32>
    %145 = arith.truncf %144 : vector<128x512xf32> to vector<128x512xbf16>
    %cst_63 = arith.constant dense<0.000000e+00> : vector<128x128xf32>
    %146 = tpu.matmul %145, %10, %cst_63 {dimension_numbers = #tpu.dot_dimension_numbers<[1], [0], [0], [1], [0, 0, 1, 1], [], []>} : vector<128x512xbf16>, vector<512x128xbf16>, vector<128x128xf32> -> vector<128x128xf32>
    %147 = vector.broadcast %15 : vector<1x128xf32> to vector<128x128xf32>
    %148 = arith.addf %146, %147 : vector<128x128xf32>
    %149 = arith.addf %138, %148 : vector<128x128xf32>
    %cst_64 = arith.constant dense<0.000000e+00> : vector<128xf32>
    %150 = vector.multi_reduction <add>, %149, %cst_64 [1] : vector<128x128xf32> to vector<128xf32>
    %151 = vector.shape_cast %150 : vector<128xf32> to vector<128x1xf32>
    %cst_65 = arith.constant 1.280000e+02 : f32
    %152 = vector.broadcast %cst_65 : f32 to vector<128x1xf32>
    %153 = arith.divf %151, %152 : vector<128x1xf32>
    %154 = vector.broadcast %153 : vector<128x1xf32> to vector<128x128xf32>
    %155 = arith.subf %149, %154 : vector<128x128xf32>
    %156 = arith.mulf %155, %155 : vector<128x128xf32>
    %cst_66 = arith.constant dense<0.000000e+00> : vector<128xf32>
    %157 = vector.multi_reduction <add>, %156, %cst_66 [1] : vector<128x128xf32> to vector<128xf32>
    %158 = vector.shape_cast %157 : vector<128xf32> to vector<128x1xf32>
    %cst_67 = arith.constant 1.280000e+02 : f32
    %159 = vector.broadcast %cst_67 : f32 to vector<128x1xf32>
    %160 = arith.divf %158, %159 : vector<128x1xf32>
    %cst_68 = arith.constant 9.99999974E-6 : f32
    %161 = vector.broadcast %cst_68 : f32 to vector<128x1xf32>
    %162 = arith.addf %160, %161 : vector<128x1xf32>
    %163 = math.rsqrt %162 : vector<128x1xf32>
    %164 = vector.broadcast %153 : vector<128x1xf32> to vector<128x128xf32>
    %165 = arith.subf %149, %164 : vector<128x128xf32>
    %166 = vector.broadcast %163 : vector<128x1xf32> to vector<128x128xf32>
    %167 = arith.mulf %165, %166 : vector<128x128xf32>
    %168 = vector.broadcast %18 : vector<1x128xf32> to vector<128x128xf32>
    %169 = arith.mulf %167, %168 : vector<128x128xf32>
    %170 = vector.broadcast %19 : vector<1x128xf32> to vector<128x128xf32>
    %171 = arith.addf %169, %170 : vector<128x128xf32>
    %c0_69 = arith.constant 0 : index
    %c0_70 = arith.constant 0 : index
    %c0_71 = arith.constant 0 : index
    %172 = vector.load %arg18[%c0_69, %c0_70, %c0_71] : memref<1x128x128xf32, #tpu.memory_space<vmem>>, vector<1x128x128xf32>
    %173 = vector.shape_cast %172 : vector<1x128x128xf32> to vector<128x128xf32>
    %174 = vector.shape_cast %171 : vector<128x128xf32> to vector<1x128x128xf32>
    tpu.vector_store %arg18[%c0_69, %c0_70, %c0_71], %174 {strides = array<i32>} : memref<1x128x128xf32, #tpu.memory_space<vmem>>, vector<1x128x128xf32>,
    return
  }
  func.func @transform_0(%arg0: i32, %arg1: i32) -> (i32, i32, i32) {
    %c0_i32 = arith.constant 0 : i32
    %c0_i32_0 = arith.constant 0 : i32
    return %arg0, %arg1, %c0_i32 : i32, i32, i32
  }
  func.func @transform_1(%arg0: i32, %arg1: i32) -> (i32, i32, i32) {
    %c0_i32 = arith.constant 0 : i32
    %c0_i32_0 = arith.constant 0 : i32
    %c0_i32_1 = arith.constant 0 : i32
    return %arg0, %c0_i32, %c0_i32_0 : i32, i32, i32
  }
  func.func @transform_2(%arg0: i32, %arg1: i32) -> (i32, i32) {
    %c0_i32 = arith.constant 0 : i32
    %c0_i32_0 = arith.constant 0 : i32
    %c0_i32_1 = arith.constant 0 : i32
    return %c0_i32, %c0_i32_0 : i32, i32
  }
  func.func @transform_3(%arg0: i32, %arg1: i32) -> (i32, i32) {
    %c0_i32 = arith.constant 0 : i32
    %c0_i32_0 = arith.constant 0 : i32
    %c0_i32_1 = arith.constant 0 : i32
    return %c0_i32, %c0_i32_0 : i32, i32
  }
  func.func @transform_4(%arg0: i32, %arg1: i32) -> (i32, i32) {
    %c0_i32 = arith.constant 0 : i32
    %c0_i32_0 = arith.constant 0 : i32
    %c0_i32_1 = arith.constant 0 : i32
    return %c0_i32, %c0_i32_0 : i32, i32
  }
  func.func @transform_5(%arg0: i32, %arg1: i32) -> (i32, i32) {
    %c0_i32 = arith.constant 0 : i32
    %c0_i32_0 = arith.constant 0 : i32
    %c0_i32_1 = arith.constant 0 : i32
    return %c0_i32, %c0_i32_0 : i32, i32
  }
  func.func @transform_6(%arg0: i32, %arg1: i32) -> (i32, i32) {
    %c0_i32 = arith.constant 0 : i32
    %c0_i32_0 = arith.constant 0 : i32
    %c0_i32_1 = arith.constant 0 : i32
    return %c0_i32, %c0_i32_0 : i32, i32
  }
  func.func @transform_7(%arg0: i32, %arg1: i32) -> (i32, i32) {
    %c0_i32 = arith.constant 0 : i32
    %c0_i32_0 = arith.constant 0 : i32
    %c0_i32_1 = arith.constant 0 : i32
    return %c0_i32, %c0_i32_0 : i32, i32
  }
  func.func @transform_8(%arg0: i32, %arg1: i32) -> (i32, i32) {
    %c0_i32 = arith.constant 0 : i32
    %c0_i32_0 = arith.constant 0 : i32
    %c0_i32_1 = arith.constant 0 : i32
    return %c0_i32, %c0_i32_0 : i32, i32
  }
  func.func @transform_9(%arg0: i32, %arg1: i32) -> (i32, i32) {
    %c0_i32 = arith.constant 0 : i32
    %c0_i32_0 = arith.constant 0 : i32
    %c0_i32_1 = arith.constant 0 : i32
    return %c0_i32, %c0_i32_0 : i32, i32
  }
  func.func @transform_10(%arg0: i32, %arg1: i32) -> (i32, i32) {
    %c0_i32 = arith.constant 0 : i32
    %c0_i32_0 = arith.constant 0 : i32
    %c0_i32_1 = arith.constant 0 : i32
    return %c0_i32, %c0_i32_0 : i32, i32
  }
  func.func @transform_11(%arg0: i32, %arg1: i32) -> (i32, i32) {
    %c0_i32 = arith.constant 0 : i32
    %c0_i32_0 = arith.constant 0 : i32
    %c0_i32_1 = arith.constant 0 : i32
    return %c0_i32, %c0_i32_0 : i32, i32
  }
  func.func @transform_12(%arg0: i32, %arg1: i32) -> (i32, i32) {
    %c0_i32 = arith.constant 0 : i32
    %c0_i32_0 = arith.constant 0 : i32
    %c0_i32_1 = arith.constant 0 : i32
    return %c0_i32, %c0_i32_0 : i32, i32
  }
  func.func @transform_13(%arg0: i32, %arg1: i32) -> (i32, i32) {
    %c0_i32 = arith.constant 0 : i32
    %c0_i32_0 = arith.constant 0 : i32
    %c0_i32_1 = arith.constant 0 : i32
    return %c0_i32, %c0_i32_0 : i32, i32
  }
  func.func @transform_14(%arg0: i32, %arg1: i32) -> (i32, i32) {
    %c0_i32 = arith.constant 0 : i32
    %c0_i32_0 = arith.constant 0 : i32
    %c0_i32_1 = arith.constant 0 : i32
    return %c0_i32, %c0_i32_0 : i32, i32
  }
  func.func @transform_15(%arg0: i32, %arg1: i32) -> (i32, i32) {
    %c0_i32 = arith.constant 0 : i32
    %c0_i32_0 = arith.constant 0 : i32
    %c0_i32_1 = arith.constant 0 : i32
    return %c0_i32, %c0_i32_0 : i32, i32
  }
  func.func @transform_16(%arg0: i32, %arg1: i32) -> (i32, i32, i32) {
    %c0_i32 = arith.constant 0 : i32
    %c0_i32_0 = arith.constant 0 : i32
    return %arg0, %arg1, %c0_i32 : i32, i32, i32
  }
}

</mosaic_0001>

<bundles_post_ra>
// kernel: tpu_custom_call.1
= control target key start
LH: loop header
LB: loop body
LE: loop exit
PB: predicated region body
PF: predicated region fallthrough
CT: control target
= control target key end

     0   :  { %s12076_s0 = inlined_call_operand.hbm [shape: f32[2,256,128], index: 0, kind: input, shape index: {}]   ;;  %s12077_s1 = inlined_call_operand.hbm [shape: f32[2,256,128], index: 1, kind: input, shape index: {}]   ;;  %s12078_s2 = inlined_call_operand.hbm [shape: bf16[128,128], index: 2, kind: input, shape index: {}]   ;;  %s12079_s3 = inlined_call_operand.hbm [shape: f32[1,128], index: 3, kind: input, shape index: {}]   ;;  %s12080_s4 = inlined_call_operand.hbm [shape: bf16[128,256], index: 4, kind: input, shape index: {}]   ;;  %s12081_s5 = inlined_call_operand.hbm [shape: f32[1,256], index: 5, kind: input, shape index: {}]   ;;  %s12082_s6 = inlined_call_operand.hbm [shape: bf16[128,128], index: 6, kind: input, shape index: {}]   ;;  %s12083_s7 = inlined_call_operand.hbm [shape: f32[1,128], index: 7, kind: input, shape index: {}]   ;;  %s12084_s8 = inlined_call_operand.hbm [shape: f32[1,128], index: 8, kind: input, shape index: {}]   ;;  %s12085_s9 = inlined_call_operand.hbm [shape: f32[1,128], index: 9, kind: input, shape index: {}]   ;;  %s12086_s10 = inlined_call_operand.hbm [shape: bf16[128,512], index: 10, kind: input, shape index: {}]   ;;  %s12087_s11 = inlined_call_operand.hbm [shape: f32[1,512], index: 11, kind: input, shape index: {}]   ;;  %s12088_s12 = inlined_call_operand.hbm [shape: bf16[512,128], index: 12, kind: input, shape index: {}]   ;;  %s12089_s13 = inlined_call_operand.hbm [shape: f32[1,128], index: 13, kind: input, shape index: {}]   ;;  %s12090_s14 = inlined_call_operand.hbm [shape: f32[1,128], index: 14, kind: input, shape index: {}]   ;;  %s12091_s15 = inlined_call_operand.hbm [shape: f32[1,128], index: 15, kind: input, shape index: {}]   ;;  %s12092_s16 = inlined_call_operand.hbm [shape: f32[2,256,128], index: 16, kind: output, shape index: {}]  }
   0x1   :  { %12253 = sst [smem:[#allocation134_spill]] %s12076_s0 }
   0x2   :  { %12254 = sst [smem:[#allocation135_spill]] %s12077_s1 }
   0x3   :  { %12255 = sst [smem:[#allocation136_spill]] %s12078_s2 }
   0x4   :  { %12256 = sst [smem:[#allocation137_spill]] %s12079_s3 }
   0x5   :  { %12257 = sst [smem:[#allocation138_spill]] %s12080_s4 }
   0x6   :  { %12258 = sst [smem:[#allocation139_spill]] %s12081_s5 }
   0x7   :  { %12259 = sst [smem:[#allocation140_spill]] %s12082_s6 }
   0x8   :  { %12260 = sst [smem:[#allocation141_spill]] %s12083_s7 }
   0x9   :  { %12261 = sst [smem:[#allocation142_spill]] %s12084_s8 }
   0xa   :  { %12262 = sst [smem:[#allocation143_spill]] %s12085_s9 }
   0xb   :  { %12263 = sst [smem:[#allocation144_spill]] %s12086_s10 }
   0xc   :  { %12264 = sst [smem:[#allocation145_spill]] %s12087_s11 }
   0xd   :  { %12265 = sst [smem:[#allocation146_spill]] %s12092_s16 }
   0xe   :  { %21 = vsyncpa [#allocation3], 0 }
   0xf   :  { %23 = vsyncpa [#allocation3 + $0x1], 0 }
  0x10   :  { %24 = vsyncpa [#allocation6], 0 }
  0x11   :  { %26 = vsyncpa [#allocation6 + $0x1], 0 }
  0x12   :  { %27 = vsyncpa [#allocation9], 0 }
  0x13   :  { %28 = vsyncpa [#allocation12], 0 }
  0x14   :  { %29 = vsyncpa [#allocation15], 0 }
  0x15   :  { %30 = vsyncpa [#allocation18], 0 }
  0x16   :  { %31 = vsyncpa [#allocation21], 0 }
  0x17   :  { %32 = vsyncpa [#allocation24], 0 }
  0x18   :  { %33 = vsyncpa [#allocation27], 0 }
  0x19   :  { %34 = vsyncpa [#allocation4], 0 }
  0x1a   :  { %36 = vsyncpa [#allocation4 + $0x1], 0  ;;  %s8802_s21 = smov 0   ;;  %s8804_s22 = smov 0  }
  0x1b   :  { %s8806_s23 = smov 0   ;;  %s8808_s24 = smov 0  }
  0x1c   :  { %s8810_s25 = smov 0   ;;  %s8812_s26 = smov 0  }
  0x1d   :  { %s8814_s27 = smov 0   ;;  %s8816_s28 = smov 0  }
  0x1e   :  { %s8818_s29 = smov 0   ;;  %s8820_s30 = smov 0  }
  0x1f   :  { %s8822_s0 = smov 0  }
  0x20 LB: > { %12266 = sst [smem:[#allocation40_spill]] %s8646_s21  ;;  %s8858_s17 = sadd.s32 4294967295, %s8686_s0   ;;  %s8686_s0 = sphi %s8822_s0, %s42_s0   ;;  %s8682_s30 = sphi %s8820_s30, %s12626_s30   ;;  %s8678_s29 = sphi %s8818_s29, %s12625_s29   ;;  %s8674_s28 = sphi %s8816_s28, %s12618_s28   ;;  %s8670_s27 = sphi %s8814_s27, %s12624_s27   ;;  %s8666_s26 = sphi %s8812_s26, %s12623_s26   ;;  %s8662_s25 = sphi %s8810_s25, %s12615_s25   ;;  %s8658_s24 = sphi %s8808_s24, %s12622_s24   ;;  %s8654_s23 = sphi %s8806_s23, %s12621_s23   ;;  %s8650_s22 = sphi %s8804_s22, %s12620_s22   ;;  %s8646_s21 = sphi %s8802_s21, %s12611_s21  }
  0x21   : > { %12267 = sst [smem:[#allocation41_spill]] %s8650_s22  ;;  %p6257_p0 = scmp.ge.s32.totalorder %s8686_s0, 1 }
  0x22   : > { %12268 = sst [smem:[#allocation42_spill]] %s8654_s23  ;;  %p12106_p1 = scmp.eq.s32.totalorder %s8858_s17, 0 }
  0x23   : > { %12269 = sst [smem:[#allocation43_spill]] %s8658_s24  ;;  %p435_p2 = scmp.lt.s32.totalorder %s8686_s0, 5 }
  0x24   : > { %12270 = sst [smem:[#allocation44_spill]] %s8662_s25  ;;  %s8688_s19 = smov [#allocation7]  }
  0x25   : > { %12271 = sst [smem:[#allocation45_spill]] %s8666_s26  ;;  %p8863_p3 = pnand %p6257_p0, %p435_p2 }
  0x26   : > { %12272 = sst [smem:[#allocation46_spill]] %s8670_s27  ;;  %s447_s20 = sshll.u32 %s8688_s19, 4  ;;  %s8867_s20 = int_to_ptr.vmem [resolvable:$true] %s447_s20 }
  0x27   : > { %12273 = sst [smem:[#allocation47_spill]] %s8674_s28  ;;  %p7294_p4 = pneg %p8863_p3 }
  0x28   : > { %12274 = sst [smem:[#allocation48_spill]] %s8678_s29  ;;  %s8689_s28 = smov [#allocation8]  }
  0x29   : > { %12275 = sst [smem:[#allocation49_spill]] %s8682_s30  ;;  %p8873_p5 = pnand %p7294_p4, %p12106_p1 }
  0x2a   : > { %12276 = sst [smem:[#allocation50_spill]] %s8858_s17  ;;  %s461_s27 = sshll.u32 %s8689_s28, 4  ;;  %s8877_s27 = int_to_ptr.vmem [resolvable:$true] %s461_s27 }
  0x2b   : > { %s12277_s18 = scalar_select %p8863_p3, 1, 0 }
  0x2c   : > { %s8690_s1 = smov [#allocation11]   ;;  %s12280_s2 = sld [smem:[#allocation136_spill]] }
  0x2d   : > { %12278 = sst [smem:[#allocation51_spill]] %s12277_s18  ;;  %s8879_s21 = sshll.u32 %s8690_s1, 4  ;;  %s486_s21 = int_to_ptr.vmem [resolvable:$true] %s8879_s21 }
  0x2e   : > { %p8889_p7 = pneg %p8873_p5 }
  0x32   : > { %s8076_s19 = scalar_lea.hbm %s12280_s2, 1024 }
  0x33   : > { %p8077_p6 = scmp.ne.s32.totalorder %s12280_s2, %s8076_s19  ;;  %p8083_p10 = scmp.lt.u32.totalorder %s8076_s19, %s12280_s2 }
  0x35   : > { %p8079_p8 = pnand %p8889_p7, %p8077_p6 }
  0x37   : > { %p8080_p9 = pneg %p8079_p8 }
  0x39   : > { %p8085_p11 = pnand %p8083_p10, %p8080_p9 }
  0x3b   : > { %8088 = shalt.err (!%p8085_p11)
}
  0x3c   : > { %s8089_s22 = scalar_lea.vmem %s8867_s20, 1024  ;;  %p8097_p2 = scmp.lt.s32.totalorder %s8867_s20, %s8867_s20 }
  0x3d   : > { %p8090_p12 = scmp.ne.s32.totalorder %s8867_s20, %s8089_s22  ;;  %p8098_p4 = scmp.lt.s32.totalorder %s8089_s22, %s8089_s22 }
  0x3f   : > { %p8092_p13 = pnand %p8090_p12, %p8889_p7  ;;  %p8099_p6 = por %p8098_p4, %p8097_p2 }
  0x41   : > { %p8093_p0 = pneg %p8092_p13 }
  0x43   : > { %p8100_p8 = pnand %p8099_p6, %p8093_p0 }
  0x45   : > { %8103 = shalt.err (!%p8100_p8)
}
  0x46   : > { %s12108_s23 = smov 64   ;;  %s12110_s24 = smov 4  }
  0x47   : > { %7297 = dma.hbm_to_vmem [thread:$0]  (!%p8873_p5), %s12280_s2, 1024, %s8867_s20, [#allocation6], %s12108_s23, %s12108_s23, %s12110_s24  }
  0x48   : > { %s12282_s3 = sld [smem:[#allocation137_spill]] }
  0x4e   : > { %s8104_s22 = scalar_lea.hbm %s12282_s3, 16 }
  0x4f   : > { %p8105_p9 = scmp.ne.s32.totalorder %s12282_s3, %s8104_s22  ;;  %p8111_p12 = scmp.lt.u32.totalorder %s8104_s22, %s12282_s3 }
  0x51   : > { %p8107_p10 = pnand %p8105_p9, %p8889_p7 }
  0x53   : > { %p8108_p11 = pneg %p8107_p10 }
  0x55   : > { %p8113_p13 = pnand %p8111_p12, %p8108_p11 }
  0x57   : > { %8116 = shalt.err (!%p8113_p13)
}
  0x58   : > { %s8117_s20 = scalar_lea.vmem %s8877_s27, 16  ;;  %s8124_s25 = scalar_lea.vmem %s8877_s27, 32 }
  0x59   : > { %p8118_p0 = scmp.ne.s32.totalorder %s8877_s27, %s8117_s20  ;;  %p8125_p6 = scmp.lt.s32.totalorder %s8877_s27, %s8877_s27 }
  0x5a   : > { %p8126_p8 = scmp.lt.s32.totalorder %s8124_s25, %s8117_s20 }
  0x5b   : > { %p8120_p2 = pnand %p8118_p0, %p8889_p7 }
  0x5c   : > { %p8127_p9 = por %p8126_p8, %p8125_p6 }
  0x5d   : > { %p8121_p4 = pneg %p8120_p2 }
  0x5f   : > { %p8128_p10 = pnand %p8127_p9, %p8121_p4 }
  0x61   : > { %8131 = shalt.err (!%p8128_p10)
}
  0x62   : > { %7300 = dma.hbm_to_vmem [thread:$0]  (!%p8873_p5), %s12282_s3, 16, %s8877_s27, [#allocation9]  }
  0x63   : > { %s12283_s5 = sld [smem:[#allocation139_spill]] }
  0x69   : > { %s8132_s19 = scalar_lea.hbm %s12283_s5, 32 }
  0x6a   : > { %p8133_p11 = scmp.ne.s32.totalorder %s12283_s5, %s8132_s19  ;;  %p8139_p0 = scmp.lt.u32.totalorder %s8132_s19, %s12283_s5 }
  0x6c   : > { %p8135_p12 = pnand %p8133_p11, %p8889_p7 }
  0x6e   : > { %p8136_p13 = pneg %p8135_p12 }
  0x70   : > { %p8141_p2 = pnand %p8139_p0, %p8136_p13 }
  0x72   : > { %8144 = shalt.err (!%p8141_p2)
}
  0x73   : > { %s8145_s25 = scalar_lea.vmem %s486_s21, 32  ;;  %p8153_p9 = scmp.lt.s32.totalorder %s486_s21, %s486_s21 }
  0x74   : > { %p8146_p4 = scmp.ne.s32.totalorder %s486_s21, %s8145_s25  ;;  %p8154_p10 = scmp.lt.s32.totalorder %s8145_s25, %s8145_s25 }
  0x76   : > { %p8148_p6 = pnand %p8146_p4, %p8889_p7  ;;  %p8155_p1 = por %p8154_p10, %p8153_p9 }
  0x78   : > { %p8149_p8 = pneg %p8148_p6 }
  0x7a   : > { %p8156_p3 = pnand %p8155_p1, %p8149_p8 }
  0x7c   : > { %8159 = shalt.err (!%p8156_p3)
}
  0x7d   : > { %7306 = dma.hbm_to_vmem [thread:$0]  (!%p8873_p5), %s12283_s5, 32, %s486_s21, [#allocation12]  }
  0x7e   : > { %s8693_s29 = smov [#allocation14]   ;;  %s8694_s18 = smov [#allocation17]  }
  0x7f   : > { %s509_s30 = sshll.u32 %s8693_s29, 4  ;;  %s531_s19 = sshll.u32 %s8694_s18, 4  ;;  %s510_s30 = int_to_ptr.vmem [resolvable:$true] %s509_s30  ;;  %s532_s19 = int_to_ptr.vmem [resolvable:$true] %s531_s19 }
  0x80   : > { %s12284_s7 = sld [smem:[#allocation141_spill]] }
  0x86   : > { %s8160_s22 = scalar_lea.hbm %s12284_s7, 16 }
  0x87   : > { %p8161_p1 = scmp.ne.s32.totalorder %s12284_s7, %s8160_s22  ;;  %p8167_p12 = scmp.lt.u32.totalorder %s8160_s22, %s12284_s7 }
  0x89   : > { %p8163_p3 = pnand %p8161_p1, %p8889_p7 }
  0x8b   : > { %p8164_p11 = pneg %p8163_p3 }
  0x8d   : > { %p8169_p13 = pnand %p8167_p12, %p8164_p11 }
  0x8f   : > { %8172 = shalt.err (!%p8169_p13)
}
  0x90   : > { %s8173_s21 = scalar_lea.vmem %s510_s30, 16  ;;  %s8180_s26 = scalar_lea.vmem %s510_s30, 32 }
  0x91   : > { %p8174_p0 = scmp.ne.s32.totalorder %s510_s30, %s8173_s21  ;;  %p8181_p6 = scmp.lt.s32.totalorder %s510_s30, %s510_s30 }
  0x92   : > { %p8182_p8 = scmp.lt.s32.totalorder %s8180_s26, %s8173_s21 }
  0x93   : > { %p8176_p2 = pnand %p8174_p0, %p8889_p7 }
  0x94   : > { %p8183_p9 = por %p8182_p8, %p8181_p6 }
  0x95   : > { %p8177_p4 = pneg %p8176_p2 }
  0x97   : > { %p8184_p10 = pnand %p8183_p9, %p8177_p4 }
  0x99   : > { %8187 = shalt.err (!%p8184_p10)
}
  0x9a   : > { %7312 = dma.hbm_to_vmem [thread:$0]  (!%p8873_p5), %s12284_s7, 16, %s510_s30, [#allocation15]  }
  0x9b   : > { %s12285_s9 = sld [smem:[#allocation143_spill]] }
  0xa1   : > { %s8188_s1 = scalar_lea.hbm %s12285_s9, 16 }
  0xa2   : > { %p8189_p1 = scmp.ne.s32.totalorder %s12285_s9, %s8188_s1  ;;  %p8195_p12 = scmp.lt.u32.totalorder %s8188_s1, %s12285_s9 }
  0xa4   : > { %p8191_p3 = pnand %p8189_p1, %p8889_p7 }
  0xa6   : > { %p8192_p11 = pneg %p8191_p3 }
  0xa8   : > { %p8197_p13 = pnand %p8195_p12, %p8192_p11 }
  0xaa   : > { %8200 = shalt.err (!%p8197_p13)
}
  0xab   : > { %s8201_s21 = scalar_lea.vmem %s532_s19, 16  ;;  %s8208_s30 = scalar_lea.vmem %s532_s19, 32 }
  0xac   : > { %p8202_p0 = scmp.ne.s32.totalorder %s532_s19, %s8201_s21  ;;  %p8209_p6 = scmp.lt.s32.totalorder %s532_s19, %s532_s19 }
  0xad   : > { %p8210_p8 = scmp.lt.s32.totalorder %s8208_s30, %s8201_s21 }
  0xae   : > { %p8204_p2 = pnand %p8202_p0, %p8889_p7 }
  0xaf   : > { %p8211_p9 = por %p8210_p8, %p8209_p6 }
  0xb0   : > { %p8205_p4 = pneg %p8204_p2 }
  0xb2   : > { %p8212_p10 = pnand %p8211_p9, %p8205_p4 }
  0xb4   : > { %8215 = shalt.err (!%p8212_p10)
}
  0xb5   : > { %7318 = dma.hbm_to_vmem [thread:$0]  (!%p8873_p5), %s12285_s9, 16, %s532_s19, [#allocation18]  }
  0xb6   : > { %s8695_s18 = smov [#allocation20]   ;;  %s8696_s28 = smov [#allocation23]  }
  0xb7   : > { %s555_s23 = sshll.u32 %s8695_s18, 4  ;;  %s579_s1 = sshll.u32 %s8696_s28, 4  ;;  %s556_s23 = int_to_ptr.vmem [resolvable:$true] %s555_s23  ;;  %s580_s1 = int_to_ptr.vmem [resolvable:$true] %s579_s1 }
  0xb8   : > { %s12286_s11 = sld [smem:[#allocation145_spill]] }
  0xbe   : > { %s8216_s25 = scalar_lea.hbm %s12286_s11, 64 }
  0xbf   : > { %p8217_p1 = scmp.ne.s32.totalorder %s12286_s11, %s8216_s25  ;;  %p8223_p12 = scmp.lt.u32.totalorder %s8216_s25, %s12286_s11 }
  0xc1   : > { %p8219_p3 = pnand %p8217_p1, %p8889_p7 }
  0xc3   : > { %p8220_p11 = pneg %p8219_p3 }
  0xc5   : > { %p8225_p13 = pnand %p8223_p12, %p8220_p11 }
  0xc7   : > { %8228 = shalt.err (!%p8225_p13)
}
  0xc8   : > { %s8229_s19 = scalar_lea.vmem %s556_s23, 64  ;;  %p8237_p6 = scmp.lt.s32.totalorder %s556_s23, %s556_s23 }
  0xc9   : > { %p8230_p0 = scmp.ne.s32.totalorder %s556_s23, %s8229_s19  ;;  %p8238_p8 = scmp.lt.s32.totalorder %s8229_s19, %s8229_s19 }
  0xcb   : > { %p8232_p2 = pnand %p8230_p0, %p8889_p7  ;;  %p8239_p9 = por %p8238_p8, %p8237_p6 }
  0xcd   : > { %p8233_p4 = pneg %p8232_p2 }
  0xcf   : > { %p8240_p10 = pnand %p8239_p9, %p8233_p4 }
  0xd1   : > { %8243 = shalt.err (!%p8240_p10)
}
  0xd2   : > { %7324 = dma.hbm_to_vmem [thread:$0]  (!%p8873_p5), %s12286_s11, 64, %s556_s23, [#allocation21]  }
  0xd3   : > { %s8244_s20 = scalar_lea.hbm %s12089_s13, 16 }
  0xd4   : > { %p8245_p1 = scmp.ne.s32.totalorder %s12089_s13, %s8244_s20  ;;  %p8251_p12 = scmp.lt.u32.totalorder %s8244_s20, %s12089_s13 }
  0xd6   : > { %p8247_p3 = pnand %p8245_p1, %p8889_p7 }
  0xd8   : > { %p8248_p11 = pneg %p8247_p3 }
  0xda   : > { %p8253_p13 = pnand %p8251_p12, %p8248_p11 }
  0xdc   : > { %8256 = shalt.err (!%p8253_p13)
}
  0xdd   : > { %s8257_s26 = scalar_lea.vmem %s580_s1, 16  ;;  %s8264_s23 = scalar_lea.vmem %s580_s1, 32 }
  0xde   : > { %p8258_p0 = scmp.ne.s32.totalorder %s580_s1, %s8257_s26  ;;  %p8265_p6 = scmp.lt.s32.totalorder %s580_s1, %s580_s1 }
  0xdf   : > { %p8266_p8 = scmp.lt.s32.totalorder %s8264_s23, %s8257_s26 }
  0xe0   : > { %p8260_p2 = pnand %p8258_p0, %p8889_p7 }
  0xe1   : > { %p8267_p9 = por %p8266_p8, %p8265_p6 }
  0xe2   : > { %p8261_p4 = pneg %p8260_p2 }
  0xe4   : > { %p8268_p10 = pnand %p8267_p9, %p8261_p4 }
  0xe6   : > { %8271 = shalt.err (!%p8268_p10)
}
  0xe7   : > { %7330 = dma.hbm_to_vmem [thread:$0]  (!%p8873_p5), %s12089_s13, 16, %s580_s1, [#allocation24]  }
  0xe8   : > { %s8697_s18 = smov [#allocation10]   ;;  %s12287_s4 = sld [smem:[#allocation138_spill]] }
  0xe9   : > { %s471_s28 = sshll.u32 %s8697_s18, 4  ;;  %s472_s28 = int_to_ptr.vmem [resolvable:$true] %s471_s28 }
  0xee   : > { %s8272_s25 = scalar_lea.hbm %s12287_s4, 2048 }
  0xef   : > { %p8273_p1 = scmp.ne.s32.totalorder %s12287_s4, %s8272_s25  ;;  %p8279_p12 = scmp.lt.u32.totalorder %s8272_s25, %s12287_s4 }
  0xf1   : > { %p8275_p3 = pnand %p8273_p1, %p8889_p7 }
  0xf3   : > { %p8276_p11 = pneg %p8275_p3 }
  0xf5   : > { %p8281_p13 = pnand %p8279_p12, %p8276_p11 }
  0xf7   : > { %8284 = shalt.err (!%p8281_p13)
}
  0xf8   : > { %s8285_s1 = scalar_lea.vmem %s472_s28, 2048  ;;  %p8293_p6 = scmp.lt.s32.totalorder %s472_s28, %s472_s28 }
  0xf9   : > { %p8286_p0 = scmp.ne.s32.totalorder %s472_s28, %s8285_s1  ;;  %p8294_p8 = scmp.lt.s32.totalorder %s8285_s1, %s8285_s1 }
  0xfb   : > { %p8288_p2 = pnand %p8286_p0, %p8889_p7  ;;  %p8295_p9 = por %p8294_p8, %p8293_p6 }
  0xfd   : > { %p8289_p4 = pneg %p8288_p2 }
  0xff   : > { %p8296_p10 = pnand %p8295_p9, %p8289_p4 }
 0x101   : > { %8299 = shalt.err (!%p8296_p10)
}
 0x102   : > { %s12112_s23 = smov 128   ;;  %s12114_s19 = smov 8  }
 0x103   : > { %7303 = dma.hbm_to_vmem [thread:$0]  (!%p8873_p5), %s12287_s4, 2048, %s472_s28, [#allocation9], %s12112_s23, %s12112_s23, %s12114_s19  }
 0x104   : > { %s8700_s22 = smov [#allocation13]   ;;  %s8701_s25 = smov [#allocation16]  }
 0x105   : > { %s495_s20 = sshll.u32 %s8700_s22, 4  ;;  %s520_s27 = sshll.u32 %s8701_s25, 4  ;;  %s496_s20 = int_to_ptr.vmem [resolvable:$true] %s495_s20  ;;  %s9049_s27 = int_to_ptr.vmem [resolvable:$true] %s520_s27 }
 0x106   : > { %s12288_s6 = sld [smem:[#allocation140_spill]] }
 0x10c   : > { %s8300_s26 = scalar_lea.hbm %s12288_s6, 1024 }
 0x10d   : > { %p8301_p1 = scmp.ne.s32.totalorder %s12288_s6, %s8300_s26  ;;  %p8307_p12 = scmp.lt.u32.totalorder %s8300_s26, %s12288_s6 }
 0x10f   : > { %p8303_p3 = pnand %p8301_p1, %p8889_p7 }
 0x111   : > { %p8304_p11 = pneg %p8303_p3 }
 0x113   : > { %p8309_p13 = pnand %p8307_p12, %p8304_p11 }
 0x115   : > { %8312 = shalt.err (!%p8309_p13)
}
 0x116   : > { %s8313_s18 = scalar_lea.vmem %s496_s20, 1024  ;;  %p8321_p6 = scmp.lt.s32.totalorder %s496_s20, %s496_s20 }
 0x117   : > { %p8314_p0 = scmp.ne.s32.totalorder %s496_s20, %s8313_s18  ;;  %p8322_p8 = scmp.lt.s32.totalorder %s8313_s18, %s8313_s18 }
 0x119   : > { %p8316_p2 = pnand %p8314_p0, %p8889_p7  ;;  %p8323_p9 = por %p8322_p8, %p8321_p6 }
 0x11b   : > { %p8317_p4 = pneg %p8316_p2 }
 0x11d   : > { %p8324_p10 = pnand %p8323_p9, %p8317_p4 }
 0x11f   : > { %8327 = shalt.err (!%p8324_p10)
}
 0x120   : > { %s12289_s24 = smov 4   ;;  %s12290_s22 = smov 64  }
 0x121   : > { %7309 = dma.hbm_to_vmem [thread:$0]  (!%p8873_p5), %s12288_s6, 1024, %s496_s20, [#allocation12], %s12290_s22, %s12290_s22, %s12289_s24  }
 0x122   : > { %s12291_s8 = sld [smem:[#allocation142_spill]] }
 0x128   : > { %s8328_s1 = scalar_lea.hbm %s12291_s8, 16 }
 0x129   : > { %p8329_p1 = scmp.ne.s32.totalorder %s12291_s8, %s8328_s1  ;;  %p8335_p12 = scmp.lt.u32.totalorder %s8328_s1, %s12291_s8 }
 0x12b   : > { %p8331_p3 = pnand %p8329_p1, %p8889_p7 }
 0x12d   : > { %p8332_p11 = pneg %p8331_p3 }
 0x12f   : > { %p8337_p13 = pnand %p8335_p12, %p8332_p11 }
 0x131   : > { %8340 = shalt.err (!%p8337_p13)
}
 0x132   : > { %s8341_s20 = scalar_lea.vmem %s9049_s27, 16  ;;  %s8348_s25 = scalar_lea.vmem %s9049_s27, 32 }
 0x133   : > { %p8342_p0 = scmp.ne.s32.totalorder %s9049_s27, %s8341_s20  ;;  %p8349_p6 = scmp.lt.s32.totalorder %s9049_s27, %s9049_s27 }
 0x134   : > { %p8350_p8 = scmp.lt.s32.totalorder %s8348_s25, %s8341_s20 }
 0x135   : > { %p8344_p2 = pnand %p8342_p0, %p8889_p7 }
 0x136   : > { %p8351_p9 = por %p8350_p8, %p8349_p6 }
 0x137   : > { %p8345_p4 = pneg %p8344_p2 }
 0x139   : > { %p8352_p10 = pnand %p8351_p9, %p8345_p4 }
 0x13b   : > { %8355 = shalt.err (!%p8352_p10)
}
 0x13c   : > { %7315 = dma.hbm_to_vmem [thread:$0]  (!%p8873_p5), %s12291_s8, 16, %s9049_s27, [#allocation15]  }
 0x13d   : > { %s8702_s30 = smov [#allocation19]   ;;  %s12292_s10 = sld [smem:[#allocation144_spill]] }
 0x13e   : > { %s541_s26 = sshll.u32 %s8702_s30, 4  ;;  %s542_s26 = int_to_ptr.vmem [resolvable:$true] %s541_s26 }
 0x143   : > { %s8356_s28 = scalar_lea.hbm %s12292_s10, 4096 }
 0x144   : > { %p8357_p1 = scmp.ne.s32.totalorder %s12292_s10, %s8356_s28  ;;  %p8363_p12 = scmp.lt.u32.totalorder %s8356_s28, %s12292_s10 }
 0x146   : > { %p8359_p3 = pnand %p8357_p1, %p8889_p7 }
 0x148   : > { %p8360_p11 = pneg %p8359_p3 }
 0x14a   : > { %p8365_p13 = pnand %p8363_p12, %p8360_p11 }
 0x14c   : > { %8368 = shalt.err (!%p8365_p13)
}
 0x14d   : > { %s8369_s27 = scalar_lea.vmem %s542_s26, 4096  ;;  %p8377_p6 = scmp.lt.s32.totalorder %s542_s26, %s542_s26 }
 0x14e   : > { %p8370_p0 = scmp.ne.s32.totalorder %s542_s26, %s8369_s27  ;;  %p8378_p8 = scmp.lt.s32.totalorder %s8369_s27, %s8369_s27 }
 0x150   : > { %p8372_p2 = pnand %p8370_p0, %p8889_p7  ;;  %p8379_p9 = por %p8378_p8, %p8377_p6 }
 0x152   : > { %p8373_p4 = pneg %p8372_p2 }
 0x154   : > { %p8380_p10 = pnand %p8379_p9, %p8373_p4 }
 0x156   : > { %8383 = shalt.err (!%p8380_p10)
}
 0x157   : > { %s8703_s23 = smov 256   ;;  %s8704_s21 = smov 16  }
 0x158   : > { %7321 = dma.hbm_to_vmem [thread:$0]  (!%p8873_p5), %s12292_s10, 4096, %s542_s26, [#allocation18], %s8703_s23, %s8703_s23, %s8704_s21  }
 0x159   : > { %s8705_s1 = smov [#allocation22]   ;;  %s8706_s28 = smov [#allocation25]  }
 0x15a   : > { %s565_s29 = sshll.u32 %s8705_s1, 4  ;;  %s590_s18 = sshll.u32 %s8706_s28, 4  ;;  %s566_s29 = int_to_ptr.vmem [resolvable:$true] %s565_s29  ;;  %s591_s18 = int_to_ptr.vmem [resolvable:$true] %s590_s18 }
 0x15b   : > { %s8384_s27 = scalar_lea.hbm %s12088_s12, 4096 }
 0x15c   : > { %p8385_p1 = scmp.ne.s32.totalorder %s12088_s12, %s8384_s27  ;;  %p8391_p12 = scmp.lt.u32.totalorder %s8384_s27, %s12088_s12 }
 0x15e   : > { %p8387_p3 = pnand %p8385_p1, %p8889_p7 }
 0x160   : > { %p8388_p11 = pneg %p8387_p3 }
 0x162   : > { %p8393_p13 = pnand %p8391_p12, %p8388_p11 }
 0x164   : > { %8396 = shalt.err (!%p8393_p13)
}
 0x165   : > { %s8397_s26 = scalar_lea.vmem %s566_s29, 4096  ;;  %p8405_p6 = scmp.lt.s32.totalorder %s566_s29, %s566_s29 }
 0x166   : > { %p8398_p0 = scmp.ne.s32.totalorder %s566_s29, %s8397_s26  ;;  %p8406_p8 = scmp.lt.s32.totalorder %s8397_s26, %s8397_s26 }
 0x168   : > { %p8400_p2 = pnand %p8398_p0, %p8889_p7  ;;  %p8407_p9 = por %p8406_p8, %p8405_p6 }
 0x16a   : > { %p8401_p4 = pneg %p8400_p2 }
 0x16c   : > { %p8408_p10 = pnand %p8407_p9, %p8401_p4 }
 0x16e   : > { %8411 = shalt.err (!%p8408_p10)
}
 0x16f   : > { %7327 = dma.hbm_to_vmem [thread:$0]  (!%p8873_p5), %s12088_s12, 4096, %s566_s29, [#allocation21], %s12290_s22, %s12290_s22, %s12289_s24  }
 0x170   : > { %s8412_s23 = scalar_lea.hbm %s12090_s14, 16 }
 0x171   : > { %p8413_p1 = scmp.ne.s32.totalorder %s12090_s14, %s8412_s23  ;;  %p8419_p12 = scmp.lt.u32.totalorder %s8412_s23, %s12090_s14 }
 0x173   : > { %p8415_p3 = pnand %p8413_p1, %p8889_p7 }
 0x175   : > { %p8416_p11 = pneg %p8415_p3 }
 0x177   : > { %p8421_p13 = pnand %p8419_p12, %p8416_p11 }
 0x179   : > { %8424 = shalt.err (!%p8421_p13)
}
 0x17a   : > { %s8425_s28 = scalar_lea.vmem %s591_s18, 16  ;;  %s8432_s24 = scalar_lea.vmem %s591_s18, 32 }
 0x17b   : > { %p8426_p0 = scmp.ne.s32.totalorder %s591_s18, %s8425_s28  ;;  %p8433_p6 = scmp.lt.s32.totalorder %s591_s18, %s591_s18 }
 0x17c   : > { %p8434_p8 = scmp.lt.s32.totalorder %s8432_s24, %s8425_s28 }
 0x17d   : > { %p8428_p2 = pnand %p8426_p0, %p8889_p7 }
 0x17e   : > { %p8435_p9 = por %p8434_p8, %p8433_p6 }
 0x17f   : > { %p8429_p4 = pneg %p8428_p2 }
 0x181   : > { %p8436_p10 = pnand %p8435_p9, %p8429_p4 }
 0x183   : > { %8439 = shalt.err (!%p8436_p10)
}
 0x184   : > { %7333 = dma.hbm_to_vmem [thread:$0]  (!%p8873_p5), %s12090_s14, 16, %s591_s18, [#allocation24]  }
 0x185   : > { %s8707_s20 = smov [#allocation26]   ;;  %s8440_s2 = scalar_lea.hbm %s12091_s15, 16 }
 0x186   : > { %s601_s25 = sshll.u32 %s8707_s20, 4  ;;  %p8441_p1 = scmp.ne.s32.totalorder %s12091_s15, %s8440_s2  ;;  %s602_s25 = int_to_ptr.vmem [resolvable:$true] %s601_s25 }
 0x187   : > { %p8447_p12 = scmp.lt.u32.totalorder %s8440_s2, %s12091_s15 }
 0x188   : > { %p8443_p3 = pnand %p8441_p1, %p8889_p7 }
 0x18a   : > { %p8444_p11 = pneg %p8443_p3 }
 0x18c   : > { %p8449_p13 = pnand %p8447_p12, %p8444_p11 }
 0x18e   : > { %8452 = shalt.err (!%p8449_p13)
}
 0x18f   : > { %s8453_s18 = scalar_lea.vmem %s602_s25, 16  ;;  %s8460_s21 = scalar_lea.vmem %s602_s25, 32 }
 0x190   : > { %p8454_p0 = scmp.ne.s32.totalorder %s602_s25, %s8453_s18  ;;  %p8461_p6 = scmp.lt.s32.totalorder %s602_s25, %s602_s25 }
 0x191   : > { %p8462_p8 = scmp.lt.s32.totalorder %s8460_s21, %s8453_s18 }
 0x192   : > { %p8456_p2 = pnand %p8454_p0, %p8889_p7 }
 0x193   : > { %p8463_p9 = por %p8462_p8, %p8461_p6 }
 0x194   : > { %p8457_p4 = pneg %p8456_p2 }
 0x196   : > { %p8464_p10 = pnand %p8463_p9, %p8457_p4 }
 0x198   : > { %8467 = shalt.err (!%p8464_p10)
}
 0x199   : > { %s12293_s1 = sld [smem:[#allocation48_spill]]  ;;  %s12294_s28 = sld [smem:[#allocation49_spill]] }
 0x19a   : > { %s12295_s24 = sld [smem:[#allocation45_spill]]  ;;  %s12296_s22 = sld [smem:[#allocation44_spill]] }
 0x19b   : > { %s12297_s17 = sld [smem:[#allocation43_spill]]  ;;  %s12298_s29 = sld [smem:[#allocation50_spill]] }
 0x19c   : > { %7336 = dma.hbm_to_vmem [thread:$0]  (!%p8873_p5), %s12091_s15, 16, %s602_s25, [#allocation27]  }
 0x19d   : > { %s6256_s20 = sadd.s32 4294967294, %s8686_s0   ;;  %p12117_p3 = scmp.eq.s32.totalorder %s8686_s0, 0 }
 0x19e   : > { %p428_p6 = scmp.eq.s32.totalorder %s6256_s20, 3  ;;  %s12305_s9 = sld [smem:[#allocation134_spill]] }
 0x19f   : > { %s51_s16 = sadd.s32 1, %s12293_s1  ;;  %s54_s27 = sadd.s32 1, %s12294_s28 }
 0x1a0   : > { %p52_p7 = scmp.ge.s32.totalorder %s51_s16, 2  ;;  %s63_s26 = sadd.s32 1, %s12295_s24 }
 0x1a1   : > { %p70_p1 = scmp.ne.s32.totalorder %s12295_s24, %s12296_s22  ;;  %p76_p12 = scmp.ne.s32.totalorder %s12296_s22, %s12297_s17 }
 0x1a2   : > { %s12628_s16 = smov (%p52_p7, %s51_s16), 0  ;;  %s12630_s27 = smov (!%p52_p7, %s54_s27), %s12294_s28 }
 0x1a3   : > { %s59_s2 = ssub.s32 %s12293_s1, %s12628_s16  ;;  %p56_p11 = scmp.ge.s32.totalorder %s12630_s27, 2 }
 0x1a4   : > { %p9187_p5 = por %p12117_p3, %p70_p1  ;;  %p422_p13 = scmp.eq.s32.totalorder %s12298_s29, 3 }
 0x1a5   : > { %s12632_s27 = smov (%p56_p11, %s12630_s27), 0  ;;  %p12300_p0 = scmp.eq.s32.totalorder %s12298_s29, 0 }
 0x1a6   : > { %p9200_p4 = por %p422_p13, %p70_p1  ;;  %s9206_s5 = ssub.s32 %s12294_s28, %s12632_s27 }
 0x1a7   : > { %p9196_p2 = por %p12300_p0, %p76_p12  ;;  %s60_s23 = sor.u32 %s59_s2, %s9206_s5 }
 0x1a8   : > { %s12302_s4 = scalar_select %p9200_p4, 1, 0 }
 0x1a9   : > { %p61_p9 = scmp.eq.s32.totalorder %s60_s23, 0  ;;  %p9210_p10 = por %p428_p6, %p76_p12 }
 0x1aa   : > { %p12116_p7 = scmp.lt.s32.totalorder %s8686_s0, 4  ;;  %s612_s21 = sand.u32 1, %s12295_s24  }
 0x1ab   : > { %s12303_s18 = scalar_select %p9210_p10, 1, 0 }
 0x1ac   : > { %s12634_s24 = smov (!%p61_p9, %s12295_s24), %s63_s26  ;;  %s6273_s19 = sshll.u32 %s612_s21, 7 }
 0x1ad   : > { %s6274_s30 = sshll.u32 %s12293_s1, 4  ;;  %s6275_s22 = sshll.u32 %s12294_s28, 5 }
 0x1ae   : > { %s616_s17 = scalar_lea.vmem [#allocation2], %s6273_s19  ;;  %s622_s7 = sadd.s32 %s6275_s22, %s6274_s30 }
 0x1af   : > { %s625_s6 = sshll.u32 %s616_s17, 4  ;;  %s6276_s20 = sshll.u32 %s622_s7, 7  ;;  %s9221_s6 = int_to_ptr.vmem [resolvable:$true] %s625_s6 }
 0x1b0   : > { %p9227_p1 = pnand %p12116_p7, %p9187_p5  ;;  %s9234_s26 = scalar_lea.hbm %s12305_s9, %s6276_s20 }
 0x1b1   : > { %s9236_s1 = scalar_lea.sflag [#allocation3], %s612_s21  ;;  %s8468_s7 = scalar_lea.hbm %s9234_s26, 2048 }
 0x1b2   : > { %p8469_p11 = scmp.ne.s32.totalorder %s9234_s26, %s8468_s7  ;;  %p8470_p12 = pneg %p9227_p1 }
 0x1b3   : > { %s8473_s19 = scalar_lea.hbm %s12305_s9, 8192  ;;  %p8474_p0 = scmp.lt.u32.totalorder %s9234_s26, %s12305_s9 }
 0x1b4   : > { %p8471_p5 = pnand %p8470_p12, %p8469_p11  ;;  %p8475_p6 = scmp.lt.u32.totalorder %s8473_s19, %s8468_s7 }
 0x1b5   : > { %p8477_p7 = scmp.lt.u32.totalorder %s8468_s7, %s9234_s26 }
 0x1b6   : > { %p8472_p13 = pneg %p8471_p5  ;;  %p8476_p9 = por %p8475_p6, %p8474_p0 }
 0x1b8   : > { %p8478_p3 = por %p8477_p7, %p8476_p9 }
 0x1ba   : > { %p8479_p8 = pnand %p8478_p3, %p8472_p13 }
 0x1bc   : > { %8482 = shalt.err (!%p8479_p8)
}
 0x1bd   : > { %s8483_s21 = scalar_lea.vmem %s9221_s6, 2048  ;;  %s8708_s17 = smov [#allocation2]  }
 0x1be   : > { %p8484_p11 = scmp.ne.s32.totalorder %s9221_s6, %s8483_s21  ;;  %s8488_s20 = sshll.u32 %s8708_s17, 4  ;;  %s8489_s20 = int_to_ptr.vmem [resolvable:$false] %s8488_s20 }
 0x1bf   : > { %s8490_s23 = scalar_lea.vmem %s8489_s20, 4096  ;;  %p8491_p4 = scmp.lt.s32.totalorder %s9221_s6, %s8489_s20 }
 0x1c0   : > { %p8486_p5 = pnand %p8484_p11, %p8470_p12  ;;  %p8492_p0 = scmp.lt.s32.totalorder %s8490_s23, %s8483_s21 }
 0x1c2   : > { %p8487_p10 = pneg %p8486_p5  ;;  %p8493_p6 = por %p8492_p0, %p8491_p4 }
 0x1c4   : > { %p8494_p7 = pnand %p8493_p6, %p8487_p10 }
 0x1c6   : > { %8497 = shalt.err (!%p8494_p7)
}
 0x1c7   : > { %s12306_s7 = smov 8   ;;  %s12307_s25 = smov 128  }
 0x1c8   : > { %s12308_s8 = sld [smem:[#allocation42_spill]]  ;;  %s12309_s19 = sld [smem:[#allocation41_spill]] }
 0x1c9   : > { %s12310_s30 = sld [smem:[#allocation40_spill]]  ;;  %p12311_p4 = scmp.eq.s32.totalorder %s9206_s5, 0 }
 0x1ca   : > { %7340 = dma.hbm_to_vmem [thread:$0]  (!%p9227_p1), %s9234_s26, 2048, %s9221_s6, %s9236_s1, %s12307_s25, %s12307_s25, %s12306_s7  }
 0x1cb   : > { %p12312_p8 = scmp.eq.s32.totalorder %s8686_s0, 0  ;;  %s635_s21 = sand.u32 1, %s8686_s0  }
 0x1cc   : > { %p12313_p13 = scmp.eq.s32.totalorder %s12298_s29, 0  ;;  %s6471_s9 = sshll.u32 %s12294_s28, 12 }
 0x1cd   : > { %s12315_s6 = sld [smem:[#allocation135_spill]]  ;;  %p12316_p1 = scmp.lt.s32.totalorder %s8686_s0, 4 }
 0x1ce   : > { %s89_s2 = sadd.s32 1, %s12308_s8  ;;  %p96_p3 = scmp.ne.s32.totalorder %s12308_s8, %s12309_s19 }
 0x1cf   : > { %s9273_s22 = scalar_select %p12311_p4, %s12308_s8, %s89_s2  }
 0x1d0   : > { %p98_p10 = por %p96_p3, %p12312_p8  ;;  %p102_p12 = scmp.ne.s32.totalorder %s12309_s19, %s12310_s30 }
 0x1d1   : > { %s637_s17 = sand.u32 1, %s12308_s8   ;;  %s9301_s28 = scalar_lea.sflag [#allocation6], %s635_s21 }
 0x1d2   : > { %p9283_p9 = por %p102_p12, %p12313_p13  ;;  %s6277_s23 = sshll.u32 %s637_s17, 8 }
 0x1d3   : > { %s9291_s26 = scalar_lea.hbm %s12315_s6, %s6471_s9  ;;  %s639_s5 = scalar_lea.vmem [#allocation5], %s6277_s23 }
 0x1d4   : > { %s12314_s20 = scalar_select %p9283_p9, 1, 0 }
 0x1d5   : > { %s646_s1 = sshll.u32 %s639_s5, 4  ;;  %p9295_p11 = pnand %p12316_p1, %p98_p10  ;;  %s9299_s1 = int_to_ptr.vmem [resolvable:$true] %s646_s1 }
 0x1d6   : > { %s8498_s10 = scalar_lea.hbm %s9291_s26, 4096  ;;  %s8503_s8 = scalar_lea.hbm %s12315_s6, 8192 }
 0x1d7   : > { %p8499_p5 = scmp.ne.s32.totalorder %s9291_s26, %s8498_s10  ;;  %p8500_p0 = pneg %p9295_p11 }
 0x1d8   : > { %p8504_p3 = scmp.lt.u32.totalorder %s9291_s26, %s12315_s6  ;;  %p8505_p4 = scmp.lt.u32.totalorder %s8503_s8, %s8498_s10 }
 0x1d9   : > { %p8501_p6 = pnand %p8500_p0, %p8499_p5  ;;  %p8507_p10 = scmp.lt.u32.totalorder %s8498_s10, %s9291_s26 }
 0x1da   : > { %p8506_p8 = por %p8505_p4, %p8504_p3 }
 0x1db   : > { %p8502_p7 = pneg %p8501_p6 }
 0x1dc   : > { %p8508_p12 = por %p8507_p10, %p8506_p8 }
 0x1de   : > { %p8509_p13 = pnand %p8508_p12, %p8502_p7 }
 0x1e0   : > { %8512 = shalt.err (!%p8509_p13)
}
 0x1e1   : > { %s8513_s2 = scalar_lea.vmem %s9299_s1, 4096  ;;  %s8709_s21 = smov [#allocation5]  }
 0x1e2   : > { %p8514_p1 = scmp.ne.s32.totalorder %s9299_s1, %s8513_s2  ;;  %s8518_s17 = sshll.u32 %s8709_s21, 4  ;;  %s8519_s17 = int_to_ptr.vmem [resolvable:$false] %s8518_s17 }
 0x1e3   : > { %s8520_s23 = scalar_lea.vmem %s8519_s17, 8192  ;;  %p8521_p9 = scmp.lt.s32.totalorder %s9299_s1, %s8519_s17 }
 0x1e4   : > { %p8516_p5 = pnand %p8514_p1, %p8500_p0  ;;  %p8522_p3 = scmp.lt.s32.totalorder %s8520_s23, %s8513_s2 }
 0x1e6   : > { %p8517_p6 = pneg %p8516_p5  ;;  %p8523_p4 = por %p8522_p3, %p8521_p9 }
 0x1e8   : > { %p8524_p8 = pnand %p8523_p4, %p8517_p6 }
 0x1ea   : > { %8527 = shalt.err (!%p8524_p8)
}
 0x1eb   : > { %7343 = dma.hbm_to_vmem [thread:$0]  (!%p9295_p11), %s9291_s26, 4096, %s9299_s1, %s9301_s28, %s12307_s25, %s12307_s25, %s12306_s7  }
 0x1ec   : > { %s12318_s5 = sld [smem:[#allocation51_spill]] }
 0x1f2   : > { %p12319_p0 = scmp.ne.s32.totalorder %s12318_s5, 0 }
 0x1f4   : > { %658 = sbr.rel (%p12319_p0) target bundleno = 4260 (0x10a4), region = 84 }
 0x1fb   : > { %s12320_s10 = sld [smem:[#allocation44_spill]] }
 0x201   : > { %s9335_s9 = sand.u32 1, %s12320_s10  }
 0x202   : > { %s6281_s11 = sshll.u32 %s9335_s9, 7  ;;  %s661_s8 = scalar_lea.sflag [#allocation3], %s9335_s9 }
 0x203   : > { %s9341_s29 = scalar_lea.vmem [#allocation2], %s6281_s11 }
 0x204   : > { %8601 = dma.done.wait (%p9196_p2), %s661_s8, 2048  }
 0x205   : > { %8603 = vsyncadd (%p9196_p2), %s661_s8, 4294965248  ;;  %s12321_s7 = sld [smem:[#allocation50_spill]]  ;;  %s12322_s25 = sld [smem:[#allocation41_spill]] }
 0x206   : > { %p12323_p9 = scmp.ne.s32.totalorder %s12314_s20, 0 }
 0x20b   : > { %s669_s26 = sand.u32 1, %s12321_s7   ;;  %s671_s1 = sand.u32 1, %s12322_s25  }
 0x20c   : > { %s6282_s28 = sshll.u32 %s671_s1, 8  ;;  %s670_s19 = scalar_lea.sflag [#allocation6], %s669_s26 }
 0x20d   : > { %s9349_s30 = scalar_lea.vmem [#allocation5], %s6282_s28 }
 0x20e   : > { %8605 = dma.done.wait (%p12323_p9), %s670_s19, 4096  }
 0x20f   : > { %8607 = vsyncadd (%p12323_p9), %s670_s19, 4294963200  ;;  %p12324_p11 = scmp.eq.s32.totalorder %s12321_s7, 0 }
 0x211   : > { %8609 = dma.done.wait (%p12324_p11), [#allocation6], 1024   ;;  %p12325_p7 = pmov %p12324_p11 }
 0x213   : > { %8611 = vsyncadd (%p12325_p7), [#allocation6], 4294966272  ;;  %p12326_p2 = pmov %p12325_p7 }
 0x215   : > { %8613 = dma.done.wait (%p12326_p2), [#allocation9], 2064   ;;  %p12327_p10 = pmov %p12326_p2 }
 0x216   : > { %p12328_p12 = pmov %p12326_p2 }
 0x217   : > { %8615 = vsyncadd (%p12327_p10), [#allocation9], 4294965232 }
 0x218   : > { %8617 = dma.done.wait (%p12328_p12), [#allocation12], 1056   ;;  %p12329_p13 = pmov %p12326_p2 }
 0x219   : > { %p12330_p1 = pmov %p12326_p2 }
 0x21a   : > { %8619 = vsyncadd (%p12329_p13), [#allocation12], 4294966240 }
 0x21b   : > { %8621 = dma.done.wait (%p12330_p1), [#allocation15], 32   ;;  %p12331_p5 = pmov %p12330_p1 }
 0x21c   : > { %p12332_p6 = pmov %p12330_p1 }
 0x21d   : > { %8623 = vsyncadd (%p12331_p5), [#allocation15], 4294967264 }
 0x21e   : > { %8625 = dma.done.wait (%p12332_p6), [#allocation18], 4112   ;;  %p12333_p3 = pmov %p12330_p1 }
 0x21f   : > { %p12334_p4 = pmov %p12330_p1 }
 0x220   : > { %8627 = vsyncadd (%p12333_p3), [#allocation18], 4294963184 }
 0x221   : > { %8629 = dma.done.wait (%p12334_p4), [#allocation21], 4160   ;;  %p12335_p8 = pmov %p12330_p1 }
 0x222   : > { %p12336_p0 = pmov %p12330_p1 }
 0x223   : > { %8631 = vsyncadd (%p12335_p8), [#allocation21], 4294963136 }
 0x224   : > { %8633 = dma.done.wait (%p12336_p0), [#allocation24], 32   ;;  %p12337_p9 = pmov %p12336_p0 }
 0x225   : > { %p12338_p11 = pmov %p12336_p0 }
 0x226   : > { %8635 = vsyncadd (%p12337_p9), [#allocation24], 4294967264 }
 0x227   : > { %8637 = dma.done.wait (%p12338_p11), [#allocation27], 16   ;;  %p12339_p7 = pmov %p12336_p0 }
 0x228   : > { %v7492_v0 = vld [vmem:[#allocation7] sm:$0xff]   ;;  %v7493_v1 = vld [vmem:[#allocation7 + $0x8] sm:$0xff]   ;;  %v7494_v2 = vld [vmem:[#allocation7 + $0x10] sm:$0xff]   ;;  %v12123_v50 = vmov 0   ;;  %vm1502_vm0 = vcmask 261120   ;;  %s8711_s3 = smov 96  }
 0x229   : > { %8639 = vsyncadd (%p12339_p7), [#allocation27], 4294967280  ;;  %7040 = vmatprep.subr.bf16.mxu1 %v7492_v0  ;;  %v7495_v3 = vld [vmem:[#allocation7 + $0x18] sm:$0xff]   ;;  %v786_v4 = vld [vmem:[%s9341_s29] sm:$0xff]  ;;  %s8712_s20 = smov 64   ;;  %s8713_s2 = smov 32  }
 0x22a   : > { %7041 = vmatpush3.bf16.msra.mxu1 %v7492_v0  ;;  %v787_v5 = vld [vmem:[%s9341_s29 + $0x8] sm:$0xff]  ;;  %v7496_v7 = vld [vmem:[#allocation7 + $0x20] sm:$0xff]   ;;  %v7498_v9 = vld [vmem:[#allocation7 + $0x30] sm:$0xff]   ;;  %s11944_s21 = scalar_lea.vmem [#allocation28], %s6281_s11  ;;  %s12604_s17 = sld [smem:[#allocation46_spill]] }
 0x22b   : > { %7042 = vmatprep.subr.bf16.mxu1 %v7493_v1  ;;  %v834_v6 = vpack.c.bf16 %v787_v5, %v786_v4  ;;  %v7497_v8 = vld [vmem:[#allocation7 + $0x28] sm:$0xff]   ;;  %v7499_v10 = vld [vmem:[#allocation7 + $0x38] sm:$0xff]   ;;  %v788_v11 = vld [vmem:[%s9341_s29 + $0x10] sm:$0xff]  ;;  %s12605_s23 = sld [smem:[#allocation47_spill]]  ;;  %s12606_s26 = sld [smem:[#allocation146_spill]] }
 0x22c   : > { %v789_v12 = vld [vmem:[%s9341_s29 + $0x18] sm:$0xff]  ;;  %v7502_v13 = vld [vmem:[#allocation10 + $0x4] ss:$8 sps:$4 sm:$0xff]   ;;  %v7500_v17 = vld [vmem:[#allocation10] ss:$8 sps:$4 sm:$0xff]   ;;  %s5994_s19 = scalar_lea.sflag [#allocation4], %s9335_s9 }
 0x22d   : > { %7056 = vmatprep.mubr.bf16.mxu1 %v834_v6  ;;  %v790_v14 = vld [vmem:[%s9341_s29 + $0x20] sm:$0xff]  ;;  %v791_v15 = vld [vmem:[%s9341_s29 + $0x28] sm:$0xff]  ;;  %v835_v16 = vpack.c.bf16 %v789_v12, %v788_v11  ;;  %v7503_v20 = vld [vmem:[#allocation10 + $0x10] ss:$8 sps:$4 sm:$0xff]   ;;  %p12608_p10 = scmp.ne.s32.totalorder %s12302_s4, 0 }
 0x22e   : > { %7043 = vmatpush3.bf16.msra.mxu1 %v7493_v1  ;;  %v836_v18 = vpack.c.bf16 %v791_v15, %v790_v14  ;;  %v7505_v19 = vld [vmem:[#allocation10 + $0x14] ss:$8 sps:$4 sm:$0xff]   ;;  %v7508_v23 = vld [vmem:[#allocation10 + $0x24] ss:$8 sps:$4 sm:$0xff]   ;;  %v7506_v26 = vld [vmem:[#allocation10 + $0x20] ss:$8 sps:$4 sm:$0xff]  }
 0x22f   : > { %7044 = vmatprep.subr.bf16.mxu1 %v7494_v2  ;;  %v792_v21 = vld [vmem:[%s9341_s29 + $0x30] sm:$0xff]  ;;  %v793_v22 = vld [vmem:[%s9341_s29 + $0x38] sm:$0xff]  ;;  %v794_v24 = vld [vmem:[%s9341_s29 + $0x40] sm:$0xff] }
 0x230   : > { %v795_v25 = vld [vmem:[%s9341_s29 + $0x48] sm:$0xff]  ;;  %v837_v27 = vpack.c.bf16 %v793_v22, %v792_v21  ;;  %v7511_v28 = vld [vmem:[#allocation10 + $0x34] ss:$8 sps:$4 sm:$0xff]   ;;  %v7509_v30 = vld [vmem:[#allocation10 + $0x30] ss:$8 sps:$4 sm:$0xff]   ;;  %s6466_s5 = sshll.u32 %s12604_s17, 4 }
 0x231   : > { %v838_v29 = vpack.c.bf16 %v795_v25, %v794_v24  ;;  %v796_v31 = vld [vmem:[%s9341_s29 + $0x50] sm:$0xff]  ;;  %v797_v32 = vld [vmem:[%s9341_s29 + $0x58] sm:$0xff]  ;;  %v798_v34 = vld [vmem:[%s9341_s29 + $0x60] sm:$0xff]  ;;  %s6467_s10 = sshll.u32 %s12605_s23, 5  ;;  %s12607_s1 = smov %s12606_s26 }
 0x232   : > { %7045 = vmatpush3.bf16.msra.mxu1 %v7494_v2  ;;  %v7514_v33 = vld [vmem:[#allocation10 + $0x44] ss:$8 sps:$4 sm:$0xff]   ;;  %v7512_v36 = vld [vmem:[#allocation10 + $0x40] ss:$8 sps:$4 sm:$0xff]   ;;  %v839_v37 = vpack.c.bf16 %v797_v32, %v796_v31  ;;  %v7517_v38 = vld [vmem:[#allocation10 + $0x54] ss:$8 sps:$4 sm:$0xff]   ;;  %s6006_s11 = sadd.s32 %s6467_s10, %s6466_s5 }
 0x233   : > { %7046 = vmatprep.subr.bf16.mxu1 %v7495_v3  ;;  %v799_v35 = vld [vmem:[%s9341_s29 + $0x68] sm:$0xff]  ;;  %v7515_v40 = vld [vmem:[#allocation10 + $0x50] ss:$8 sps:$4 sm:$0xff]   ;;  %v7523_v46 = vld [vmem:[#allocation10 + $0x74] ss:$8 sps:$4 sm:$0xff]   ;;  %s6468_s8 = sshll.u32 %s6006_s11, 7 }
 0x234   : > { %v840_v39 = vpack.c.bf16 %v799_v35, %v798_v34  ;;  %v800_v41 = vld [vmem:[%s9341_s29 + $0x70] sm:$0xff]  ;;  %v801_v42 = vld [vmem:[%s9341_s29 + $0x78] sm:$0xff]  ;;  %v7518_v44 = vld [vmem:[#allocation10 + $0x60] ss:$8 sps:$4 sm:$0xff]   ;;  %s12008_s28 = scalar_lea.hbm %s12606_s26, %s6468_s8 }
 0x235   : > { %v7520_v43 = vld [vmem:[#allocation10 + $0x64] ss:$8 sps:$4 sm:$0xff]   ;;  %v841_v45 = vpack.c.bf16 %v801_v42, %v800_v41  ;;  %v7521_v47 = vld [vmem:[#allocation10 + $0x70] ss:$8 sps:$4 sm:$0xff]  }
 0x236   : > { %7047 = vmatpush3.bf16.msra.mxu1 %v7495_v3  ;;  %v802_v48 = vld [vmem:[%s9349_s30] sm:$0xff]  ;;  %v803_v49 = vld [vmem:[%s9349_s30 + $0x8] sm:$0xff]  ;;  %v804_v52 = vld [vmem:[%s9349_s30 + $0x10] sm:$0xff] }
 0x237   : > { %7048 = vmatprep.subr.bf16.mxu1 %v7496_v7  ;;  %v842_v51 = vpack.c.bf16 %v803_v49, %v802_v48  ;;  %v805_v53 = vld [vmem:[%s9349_s30 + $0x18] sm:$0xff]  ;;  %v806_v55 = vld [vmem:[%s9349_s30 + $0x20] sm:$0xff]  ;;  %v807_v56 = vld [vmem:[%s9349_s30 + $0x28] sm:$0xff] }
 0x238   : > { %v843_v54 = vpack.c.bf16 %v805_v53, %v804_v52  ;;  %v844_v57 = vpack.c.bf16 %v807_v56, %v806_v55  ;;  %v808_v58 = vld [vmem:[%s9349_s30 + $0x30] sm:$0xff]  ;;  %v809_v59 = vld [vmem:[%s9349_s30 + $0x38] sm:$0xff]  ;;  %v810_v61 = vld [vmem:[%s9349_s30 + $0x40] sm:$0xff] }
 0x239   : > { %v845_v60 = vpack.c.bf16 %v809_v59, %v808_v58  ;;  %v811_v62 = vld [vmem:[%s9349_s30 + $0x48] sm:$0xff]  ;;  %v812_v0 = vld [vmem:[%s9349_s30 + $0x50] sm:$0xff]  ;;  %v813_v1 = vld [vmem:[%s9349_s30 + $0x58] sm:$0xff] }
 0x23a   : > { %7049 = vmatpush3.bf16.msra.mxu1 %v7496_v7  ;;  %v846_v63 = vpack.c.bf16 %v811_v62, %v810_v61  ;;  %v847_v2 = vpack.c.bf16 %v813_v1, %v812_v0  ;;  %v814_v3 = vld [vmem:[%s9349_s30 + $0x60] sm:$0xff]  ;;  %v815_v4 = vld [vmem:[%s9349_s30 + $0x68] sm:$0xff]  ;;  %v816_v6 = vld [vmem:[%s9349_s30 + $0x70] sm:$0xff] }
 0x23b   : > { %7050 = vmatprep.subr.bf16.mxu1 %v7497_v8  ;;  %v848_v5 = vpack.c.bf16 %v815_v4, %v814_v3  ;;  %v817_v7 = vld [vmem:[%s9349_s30 + $0x78] sm:$0xff]  ;;  %v820_v12 = vld [vmem:[%s9349_s30 + $0x90] sm:$0xff]  ;;  %v822_v15 = vld [vmem:[%s9349_s30 + $0xa0] sm:$0xff]  ;;  %v1187_v4 = vlaneseq }
 0x23c   : > { %v826_v21 = vld [vmem:[%s9349_s30 + $0xc0] sm:$0xff]  ;;  %v827_v22 = vld [vmem:[%s9349_s30 + $0xc8] sm:$0xff]  ;;  %v828_v24 = vld [vmem:[%s9349_s30 + $0xd0] sm:$0xff] }
 0x23d   : > { %v829_v25 = vld [vmem:[%s9349_s30 + $0xd8] sm:$0xff] }
 0x23e   : > { %7051 = vmatpush3.bf16.msra.mxu1 %v7497_v8  ;;  %v849_v8 = vpack.c.bf16 %v817_v7, %v816_v6  ;;  %v833_v31 = vld [vmem:[%s9349_s30 + $0xf8] sm:$0xff] }
 0x23f   : > { %7052 = vmatprep.subr.bf16.mxu1 %v7498_v9 }
 0x242   : > { %7053 = vmatpush3.bf16.msra.mxu1 %v7498_v9  ;;  %v818_v9 = vld [vmem:[%s9349_s30 + $0x80] sm:$0xff] }
 0x243   : > { %7054 = vmatprep.subr.bf16.mxu1 %v7499_v10 }
 0x246   : > { %7055 = vmatpush3.bf16.msra.mxu1 %v7499_v10  ;;  %v819_v10 = vld [vmem:[%s9349_s30 + $0x88] sm:$0xff] }
 0x247   : > { %1277 = vmatprep.subr.bf16.mxu1 %v7502_v13  ;;  %v850_v11 = vpack.c.bf16 %v819_v10, %v818_v9  ;;  %v821_v13 = vld [vmem:[%s9349_s30 + $0x98] sm:$0xff] }
 0x248   : > { %v851_v14 = vpack.c.bf16 %v821_v13, %v820_v12  ;;  %v9461_v12 = vshrl.u32 %v1187_v4, 7 }
 0x249   : > { %7057 = vmatmul.mubr.bf16.vlgmr.msra.gmra.mrb[0].mxu1 %v835_v16  ;;  %v823_v16 = vld [vmem:[%s9349_s30 + $0xa8] sm:$0xff] }
 0x24a   : > { %1278 = vmatpush1.bf16.msra.mxu1 %v7500_v17  ;;  %7060 = vmatprep.mubr.bf16.mxu1 %v836_v18  ;;  %v852_v17 = vpack.c.bf16 %v823_v16, %v822_v15  ;;  %v824_v18 = vld [vmem:[%s9349_s30 + $0xb0] sm:$0xff]  ;;  %12344 = vst [vmem:[#allocation56_spill] sm:$0xff] %v9461_v12 }
 0x24b   : > { %1279 = vmatprep.subr.bf16.mxu1 %v7505_v19  ;;  %v825_v19 = vld [vmem:[%s9349_s30 + $0xb8] sm:$0xff] }
 0x24e   : > { %1280 = vmatpush1.bf16.msra.mxu1 %v7503_v20  ;;  %v853_v20 = vpack.c.bf16 %v825_v19, %v824_v18 }
 0x24f   : > { %1281 = vmatprep.subr.bf16.mxu1 %v7508_v23  ;;  %v854_v23 = vpack.c.bf16 %v827_v22, %v826_v21 }
 0x251   : > { %7061 = vmatmul.mubr.bf16.gmra.mrb[4].mxu1 %v837_v27  ;;  %v830_v27 = vld [vmem:[%s9349_s30 + $0xe0] sm:$0xff] }
 0x252   : > { %1282 = vmatpush1.bf16.msra.mxu1 %v7506_v26  ;;  %7064 = vmatprep.mubr.bf16.mxu1 %v838_v29  ;;  %v855_v26 = vpack.c.bf16 %v829_v25, %v828_v24  ;;  %v12122_v24 = vsub.s32 0, %v9461_v12 }
 0x253   : > { %1283 = vmatprep.subr.bf16.mxu1 %v7511_v28  ;;  %v831_v28 = vld [vmem:[%s9349_s30 + $0xe8] sm:$0xff] }
 0x254   : > { %v856_v29 = vpack.c.bf16 %v831_v28, %v830_v27 }
 0x256   : > { %1284 = vmatpush1.bf16.msra.mxu1 %v7509_v30  ;;  %v832_v30 = vld [vmem:[%s9349_s30 + $0xf0] sm:$0xff] }
 0x257   : > { %1285 = vmatprep.subr.bf16.mxu1 %v7514_v33  ;;  %v857_v32 = vpack.c.bf16 %v833_v31, %v832_v30  ;;  %v6298_v33 = vld [vmem:[#allocation8] ss:$0 sm:$0xff] }
 0x259   : > { %7065 = vmatmul.mubr.bf16.gmra.mrb[8].mxu1 %v839_v37 }
 0x25a   : > { %1286 = vmatpush1.bf16.msra.mxu1 %v7512_v36  ;;  %7068 = vmatprep.mubr.bf16.mxu1 %v840_v39 }
 0x25b   : > { %1287 = vmatprep.subr.bf16.mxu1 %v7517_v38 }
 0x25e   : > { %1288 = vmatpush1.bf16.msra.mxu1 %v7515_v40 }
 0x25f   : > { %1289 = vmatprep.subr.bf16.mxu1 %v7520_v43 }
 0x261   : > { %7069 = vmatmul.mubr.bf16.gmra.mrb[12].mxu1 %v841_v45 }
 0x262   : > { %1290 = vmatpush1.bf16.msra.mxu1 %v7518_v44  ;;  %1309 = vmatprep.mubr.bf16.mxu1 %v12123_v50 }
 0x263   : > { %1291 = vmatprep.subr.bf16.mxu1 %v7523_v46 }
 0x266   : > { %1292 = vmatpush1.bf16.msra.mxu1 %v7521_v47 }
 0x269   : > { %1310 = vmatmul.mubr.bf16.vlgmr.msra.gmra.mrb[16].mxu1 %v842_v51 }
 0x26a   : > { %1319 = vmatprep.mubr.bf16.mxu1 %v12123_v50 }
 0x271   : > { %1320 = vmatmul.mubr.bf16.gmra.mrb[20].mxu1 %v843_v54 }
 0x272   : > { %1329 = vmatprep.mubr.bf16.mxu1 %v12123_v50 }
 0x279   : > { %1330 = vmatmul.mubr.bf16.gmra.mrb[24].mxu1 %v844_v57 }
 0x27a   : > { %1339 = vmatprep.mubr.bf16.mxu1 %v12123_v50 }
 0x281   : > { %1340 = vmatmul.mubr.bf16.gmra.mrb[28].mxu1 %v845_v60 }
 0x282   : > { %1349 = vmatprep.mubr.bf16.mxu1 %v12123_v50 }
 0x289   : > { %1350 = vmatmul.mubr.bf16.gmra.mrb[32].mxu1 %v846_v63 }
 0x28a   : > { %1359 = vmatprep.mubr.bf16.mxu1 %v12123_v50 }
 0x291   : > { %1360 = vmatmul.mubr.bf16.gmra.mrb[36].mxu1 %v847_v2 }
 0x292   : > { %1369 = vmatprep.mubr.bf16.mxu1 %v12123_v50 }
 0x299   : > { %1370 = vmatmul.mubr.bf16.gmra.mrb[40].mxu1 %v848_v5 }
 0x29a   : > { %1379 = vmatprep.mubr.bf16.mxu1 %v12123_v50 }
 0x2a1   : > { %1380 = vmatmul.mubr.bf16.gmra.mrb[44].mxu1 %v849_v8 }
 0x2a2   : > { %1389 = vmatprep.mubr.bf16.mxu1 %v12123_v50 }
 0x2a9   : > { %1390 = vmatmul.mubr.bf16.gmra.mrb[48].mxu1 %v850_v11 }
 0x2aa   : > { %1399 = vmatprep.mubr.bf16.mxu1 %v12123_v50 }
 0x2b1   : > { %1400 = vmatmul.mubr.bf16.gmra.mrb[52].mxu1 %v851_v14 }
 0x2b2   : > { %1409 = vmatprep.mubr.bf16.mxu1 %v12123_v50 }
 0x2b9   : > { %1410 = vmatmul.mubr.bf16.gmra.mrb[56].mxu1 %v852_v17 }
 0x2ba   : > { %1419 = vmatprep.mubr.bf16.mxu1 %v12123_v50 }
 0x2c1   : > { %1420 = vmatmul.mubr.bf16.gmra.mrb[60].mxu1 %v853_v20  ;;  %v12121_v20 = vsub.s32 1, %v9461_v12 }
 0x2c2   : > { %1429 = vmatprep.mubr.bf16.mxu1 %v12123_v50 }
 0x2c9   : > { %1430 = vmatmul.mubr.bf16.gmra.mrb[64].mxu1 %v854_v23  ;;  %v1003_v23 = vld [vmem:[#allocation11] sm:$0x3] }
 0x2ca   : > { %1439 = vmatprep.mubr.bf16.mxu1 %v12123_v50  ;;  %v9471_v30 = vrot.slane %v1003_v23, %v12121_v20 }
 0x2d1   : > { %1440 = vmatmul.mubr.bf16.gmra.mrb[68].mxu1 %v855_v26 }
 0x2d2   : > { %1449 = vmatprep.mubr.bf16.mxu1 %v12123_v50 }
 0x2d9   : > { %1450 = vmatmul.mubr.bf16.gmra.mrb[72].mxu1 %v856_v29 }
 0x2da   : > { %1459 = vmatprep.mubr.bf16.mxu1 %v12123_v50 }
 0x2e1   : > { %1460 = vmatmul.mubr.bf16.gmra.mrb[76].mxu1 %v857_v32  ;;  %v9477_v32 = vrot.slane %v1003_v23, %v12122_v24 }
 0x31c   : > { %v7058_v34 = vpop.f32.mrb[0].mxu1 }
 0x31d   : > { %v1108_v35 = vadd.f32 %v7058_v34, %v6298_v33  ;;  %v1099_v36 = vpop.f32.mrb[1].mxu1 }
 0x31e   : > { %v1100_v37 = vadd.f32 %v6298_v33, %v1099_v36  ;;  %v7059_v38 = vpop.f32.mrb[2].mxu1 }
 0x31f   : > { %v1111_v39 = vadd.f32 %v7059_v38, %v6298_v33  ;;  %v1102_v40 = vpop.f32.mrb[3].mxu1  ;;  %v1164_v42 = vmul.f32 0.17677669, %v1108_v35 }
 0x320   : > { %v1103_v41 = vadd.f32 %v6298_v33, %v1102_v40  ;;  %v1162_v44 = vmul.f32 0.17677669, %v1100_v37 }
 0x321   : > { %v1165_v43 = vmul.f32 0.17677669, %v1111_v39 }
 0x322   : > { %v1163_v45 = vmul.f32 0.17677669, %v1103_v41 }
 0x323   : > { %v9451_v46 = vpack.c.bf16 %v1165_v43, %v1164_v42 }
 0x324   : > { %v9453_v47 = vpack.c.bf16 %v1163_v45, %v1162_v44  ;;  %v7062_v48 = vpop.f32.mrb[4].mxu1 }
 0x325   : > { %12340 = vst [vmem:[#allocation52_spill] sm:$0xff] %v9451_v46  ;;  %v1124_v49 = vadd.f32 %v7062_v48, %v6298_v33  ;;  %v1115_v51 = vpop.f32.mrb[5].mxu1 }
 0x326   : > { %12341 = vst [vmem:[#allocation53_spill] sm:$0xff] %v9453_v47  ;;  %v1116_v52 = vadd.f32 %v6298_v33, %v1115_v51  ;;  %v7063_v53 = vpop.f32.mrb[6].mxu1  ;;  %6504 = vmatprep.mubr.msk.bf16.mxu0 %vm1502_vm0, %v9453_v47 }
 0x327   : > { %v1127_v54 = vadd.f32 %v7063_v53, %v6298_v33  ;;  %v1118_v55 = vpop.f32.mrb[7].mxu1  ;;  %v1168_v57 = vmul.f32 0.17677669, %v1124_v49 }
 0x328   : > { %v1119_v56 = vadd.f32 %v6298_v33, %v1118_v55  ;;  %v1166_v59 = vmul.f32 0.17677669, %v1116_v52 }
 0x329   : > { %v1169_v58 = vmul.f32 0.17677669, %v1127_v54 }
 0x32a   : > { %v1167_v60 = vmul.f32 0.17677669, %v1119_v56 }
 0x32b   : > { %v9457_v61 = vpack.c.bf16 %v1169_v58, %v1168_v57 }
 0x32c   : > { %v9459_v62 = vpack.c.bf16 %v1167_v60, %v1166_v59  ;;  %v7066_v63 = vpop.f32.mrb[8].mxu1 }
 0x32d   : > { %12342 = vst [vmem:[#allocation54_spill] sm:$0xff] %v9457_v61  ;;  %v1140_v0 = vadd.f32 %v7066_v63, %v6298_v33  ;;  %v1131_v1 = vpop.f32.mrb[9].mxu1 }
 0x32e   : > { %12343 = vst [vmem:[#allocation55_spill] sm:$0xff] %v9459_v62  ;;  %v1132_v2 = vadd.f32 %v6298_v33, %v1131_v1  ;;  %v7067_v3 = vpop.f32.mrb[10].mxu1 }
 0x32f   : > { %v1143_v5 = vadd.f32 %v7067_v3, %v6298_v33  ;;  %v1134_v6 = vpop.f32.mrb[11].mxu1  ;;  %v1172_v8 = vmul.f32 0.17677669, %v1140_v0 }
 0x330   : > { %v1135_v7 = vadd.f32 %v6298_v33, %v1134_v6  ;;  %v1170_v10 = vmul.f32 0.17677669, %v1132_v2 }
 0x331   : > { %v1173_v9 = vmul.f32 0.17677669, %v1143_v5 }
 0x332   : > { %v1171_v11 = vmul.f32 0.17677669, %v1135_v7 }
 0x333   : > { %v9463_v13 = vpack.c.bf16 %v1173_v9, %v1172_v8 }
 0x334   : > { %v9465_v14 = vpack.c.bf16 %v1171_v11, %v1170_v10  ;;  %v7070_v15 = vpop.f32.mrb[12].mxu1 }
 0x335   : > { %12345 = vst [vmem:[#allocation57_spill] sm:$0xff] %v9463_v13  ;;  %v1156_v16 = vadd.f32 %v7070_v15, %v6298_v33  ;;  %v1147_v17 = vpop.f32.mrb[13].mxu1 }
 0x336   : > { %12346 = vst [vmem:[#allocation58_spill] sm:$0xff] %v9465_v14  ;;  %v1148_v18 = vadd.f32 %v6298_v33, %v1147_v17  ;;  %v7071_v19 = vpop.f32.mrb[14].mxu1 }
 0x337   : > { %v1159_v21 = vadd.f32 %v7071_v19, %v6298_v33  ;;  %v1150_v22 = vpop.f32.mrb[15].mxu1  ;;  %v1176_v26 = vmul.f32 0.17677669, %v1156_v16 }
 0x338   : > { %v1151_v25 = vadd.f32 %v6298_v33, %v1150_v22  ;;  %v1174_v28 = vmul.f32 0.17677669, %v1148_v18 }
 0x339   : > { %v1177_v27 = vmul.f32 0.17677669, %v1159_v21 }
 0x33a   : > { %v1175_v29 = vmul.f32 0.17677669, %v1151_v25 }
 0x33b   : > { %v9473_v31 = vpack.c.bf16 %v1177_v27, %v1176_v26 }
 0x33c   : > { %v9479_v34 = vpack.c.bf16 %v1175_v29, %v1174_v28  ;;  %v1311_v35 = vpop.f32.mrb[16].mxu1 }
 0x33d   : > { %12347 = vst [vmem:[#allocation59_spill] sm:$0xff] %v9473_v31  ;;  %v1313_v36 = vpop.f32.mrb[17].mxu1  ;;  %v1312_v38 = vadd.f32 %v1311_v35, %v9477_v32 }
 0x33e   : > { %12348 = vst [vmem:[#allocation60_spill] sm:$0xff] %v9479_v34  ;;  %v1314_v33 = vadd.f32 %v1313_v36, %v9471_v30  ;;  %v1315_v37 = vpop.f32.mrb[18].mxu1 }
 0x33f   : > { %v1316_v39 = vadd.f32 %v1315_v37, %v9477_v32  ;;  %v1317_v40 = vpop.f32.mrb[19].mxu1 }
 0x340   : > { %v1318_v41 = vadd.f32 %v1317_v40, %v9471_v30 }
 0x341   : > { %v9485_v42 = vpack.c.bf16 %v1316_v39, %v1312_v38 }
 0x342   : > { %v9487_v43 = vpack.c.bf16 %v1318_v41, %v1314_v33 }
 0x343   : > { %12349 = vst [vmem:[#allocation61_spill] sm:$0xff] %v9485_v42  ;;  %2089 = vrot.lane.b32.xlu0 %v9485_v42, %s8711_s3 }
 0x344   : > { %12350 = vst [vmem:[#allocation62_spill] sm:$0xff] %v9487_v43  ;;  %v1321_v44 = vpop.f32.mrb[20].mxu1 }
 0x345   : > { %v1323_v45 = vpop.f32.mrb[21].mxu1  ;;  %v1322_v51 = vadd.f32 %v1321_v44, %v9477_v32 }
 0x346   : > { %v1324_v48 = vadd.f32 %v1323_v45, %v9471_v30  ;;  %v1325_v49 = vpop.f32.mrb[22].mxu1 }
 0x347   : > { %v1326_v52 = vadd.f32 %v1325_v49, %v9477_v32  ;;  %v1327_v53 = vpop.f32.mrb[23].mxu1 }
 0x348   : > { %v1328_v54 = vadd.f32 %v1327_v53, %v9471_v30 }
 0x349   : > { %v9495_v55 = vpack.c.bf16 %v1326_v52, %v1322_v51 }
 0x34a   : > { %v9497_v56 = vpack.c.bf16 %v1328_v54, %v1324_v48 }
 0x34b   : > { %12351 = vst [vmem:[#allocation63_spill] sm:$0xff] %v9495_v55  ;;  %2091 = vrot.lane.b32.xlu1 %v9495_v55, %s8711_s3 }
 0x34c   : > { %12352 = vst [vmem:[#allocation64_spill] sm:$0xff] %v9497_v56  ;;  %v1331_v57 = vpop.f32.mrb[24].mxu1 }
 0x34d   : > { %v1333_v58 = vpop.f32.mrb[25].mxu1  ;;  %v1332_v63 = vadd.f32 %v1331_v57, %v9477_v32 }
 0x34e   : > { %v1334_v59 = vadd.f32 %v1333_v58, %v9471_v30  ;;  %v1335_v60 = vpop.f32.mrb[26].mxu1 }
 0x34f   : > { %v1336_v0 = vadd.f32 %v1335_v60, %v9477_v32  ;;  %v1337_v1 = vpop.f32.mrb[27].mxu1 }
 0x350   : > { %v1338_v2 = vadd.f32 %v1337_v1, %v9471_v30 }
 0x351   : > { %v9505_v3 = vpack.c.bf16 %v1336_v0, %v1332_v63 }
 0x352   : > { %v9507_v4 = vpack.c.bf16 %v1338_v2, %v1334_v59 }
 0x353   : > { %12353 = vst [vmem:[#allocation65_spill] sm:$0xff] %v9505_v3 }
 0x354   : > { %12354 = vst [vmem:[#allocation66_spill] sm:$0xff] %v9507_v4  ;;  %v1341_v5 = vpop.f32.mrb[28].mxu1 }
 0x355   : > { %v1343_v6 = vpop.f32.mrb[29].mxu1  ;;  %v1342_v9 = vadd.f32 %v1341_v5, %v9477_v32 }
 0x356   : > { %v1344_v7 = vadd.f32 %v1343_v6, %v9471_v30  ;;  %v1345_v8 = vpop.f32.mrb[30].mxu1 }
 0x357   : > { %v1346_v10 = vadd.f32 %v1345_v8, %v9477_v32  ;;  %v1347_v11 = vpop.f32.mrb[31].mxu1 }
 0x358   : > { %v1348_v15 = vadd.f32 %v1347_v11, %v9471_v30 }
 0x359   : > { %v9513_v16 = vpack.c.bf16 %v1346_v10, %v1342_v9 }
 0x35a   : > { %v9515_v17 = vpack.c.bf16 %v1348_v15, %v1344_v7 }
 0x35b   : > { %12355 = vst [vmem:[#allocation67_spill] sm:$0xff] %v9513_v16 }
 0x35c   : > { %12356 = vst [vmem:[#allocation68_spill] sm:$0xff] %v9515_v17  ;;  %v1351_v18 = vpop.f32.mrb[32].mxu1 }
 0x35d   : > { %v1353_v19 = vpop.f32.mrb[33].mxu1  ;;  %v1352_v23 = vadd.f32 %v1351_v18, %v9477_v32 }
 0x35e   : > { %v1354_v21 = vadd.f32 %v1353_v19, %v9471_v30  ;;  %v1355_v22 = vpop.f32.mrb[34].mxu1 }
 0x35f   : > { %v1356_v25 = vadd.f32 %v1355_v22, %v9477_v32  ;;  %v1357_v26 = vpop.f32.mrb[35].mxu1 }
 0x360   : > { %v1358_v27 = vadd.f32 %v1357_v26, %v9471_v30 }
 0x361   : > { %v9521_v28 = vpack.c.bf16 %v1356_v25, %v1352_v23 }
 0x362   : > { %v9523_v29 = vpack.c.bf16 %v1358_v27, %v1354_v21 }
 0x363   : > { %12357 = vst [vmem:[#allocation69_spill] sm:$0xff] %v9521_v28 }
 0x364   : > { %12358 = vst [vmem:[#allocation70_spill] sm:$0xff] %v9523_v29  ;;  %v1361_v35 = vpop.f32.mrb[36].mxu1 }
 0x365   : > { %v1363_v36 = vpop.f32.mrb[37].mxu1  ;;  %v1362_v38 = vadd.f32 %v1361_v35, %v9477_v32  ;;  %v1528_v35 = vsel %vm1502_vm0, %v9485_v42, 0 }
 0x366   : > { %v1364_v33 = vadd.f32 %v1363_v36, %v9471_v30  ;;  %v1365_v37 = vpop.f32.mrb[38].mxu1 }
 0x367   : > { %v1366_v39 = vadd.f32 %v1365_v37, %v9477_v32  ;;  %v1367_v40 = vpop.f32.mrb[39].mxu1 }
 0x368   : > { %v1368_v41 = vadd.f32 %v1367_v40, %v9471_v30 }
 0x369   : > { %v9529_v44 = vpack.c.bf16 %v1366_v39, %v1362_v38 }
 0x36a   : > { %v9531_v45 = vpack.c.bf16 %v1368_v41, %v1364_v33 }
 0x36b   : > { %12359 = vst [vmem:[#allocation71_spill] sm:$0xff] %v9529_v44 }
 0x36c   : > { %12360 = vst [vmem:[#allocation72_spill] sm:$0xff] %v9531_v45  ;;  %v1371_v48 = vpop.f32.mrb[40].mxu1 }
 0x36d   : > { %v1373_v49 = vpop.f32.mrb[41].mxu1  ;;  %v1372_v53 = vadd.f32 %v1371_v48, %v9477_v32 }
 0x36e   : > { %v1374_v51 = vadd.f32 %v1373_v49, %v9471_v30  ;;  %v1375_v52 = vpop.f32.mrb[42].mxu1 }
 0x36f   : > { %v1376_v54 = vadd.f32 %v1375_v52, %v9477_v32  ;;  %v1377_v57 = vpop.f32.mrb[43].mxu1 }
 0x370   : > { %v1378_v58 = vadd.f32 %v1377_v57, %v9471_v30 }
 0x371   : > { %v9537_v59 = vpack.c.bf16 %v1376_v54, %v1372_v53  ;;  %v1531_v53 = vsel %vm1502_vm0, %v9495_v55, 0 }
 0x372   : > { %v9539_v60 = vpack.c.bf16 %v1378_v58, %v1374_v51 }
 0x373   : > { %12361 = vst [vmem:[#allocation73_spill] sm:$0xff] %v9537_v59 }
 0x374   : > { %12362 = vst [vmem:[#allocation74_spill] sm:$0xff] %v9539_v60  ;;  %v1381_v63 = vpop.f32.mrb[44].mxu1 }
 0x375   : > { %v1383_v0 = vpop.f32.mrb[45].mxu1  ;;  %v1382_v5 = vadd.f32 %v1381_v63, %v9477_v32 }
 0x376   : > { %v1384_v1 = vadd.f32 %v1383_v0, %v9471_v30  ;;  %v1385_v2 = vpop.f32.mrb[46].mxu1 }
 0x377   : > { %v1386_v6 = vadd.f32 %v1385_v2, %v9477_v32  ;;  %v1387_v7 = vpop.f32.mrb[47].mxu1 }
 0x378   : > { %v1388_v8 = vadd.f32 %v1387_v7, %v9471_v30 }
 0x379   : > { %v9545_v9 = vpack.c.bf16 %v1386_v6, %v1382_v5 }
 0x37a   : > { %v9547_v10 = vpack.c.bf16 %v1388_v8, %v1384_v1  ;;  %v1534_v8 = vsel %vm1502_vm0, %v9505_v3, 0 }
 0x37b   : > { %12363 = vst [vmem:[#allocation75_spill] sm:$0xff] %v9545_v9 }
 0x37c   : > { %12364 = vst [vmem:[#allocation76_spill] sm:$0xff] %v9547_v10  ;;  %v1391_v11 = vpop.f32.mrb[48].mxu1 }
 0x37d   : > { %v1393_v15 = vpop.f32.mrb[49].mxu1  ;;  %v1392_v21 = vadd.f32 %v1391_v11, %v9477_v32 }
 0x37e   : > { %v1394_v18 = vadd.f32 %v1393_v15, %v9471_v30  ;;  %v1395_v19 = vpop.f32.mrb[50].mxu1 }
 0x37f   : > { %v1396_v22 = vadd.f32 %v1395_v19, %v9477_v32  ;;  %v1397_v23 = vpop.f32.mrb[51].mxu1 }
 0x380   : > { %v1398_v25 = vadd.f32 %v1397_v23, %v9471_v30 }
 0x381   : > { %v9553_v26 = vpack.c.bf16 %v1396_v22, %v1392_v21 }
 0x382   : > { %v9555_v27 = vpack.c.bf16 %v1398_v25, %v1394_v18 }
 0x383   : > { %12365 = vst [vmem:[#allocation77_spill] sm:$0xff] %v9553_v26  ;;  %7200 = vmatprep.subr.msk.bf16.mxu0 %vm1502_vm0, %v9553_v26  ;;  %2105 = vrot.lane.b32.xlu0 %v9553_v26, %s8711_s3 }
 0x384   : > { %12366 = vst [vmem:[#allocation78_spill] sm:$0xff] %v9555_v27  ;;  %v1401_v36 = vpop.f32.mrb[52].mxu1  ;;  %6489 = vmatpush3.bf16.xpose.msra.mxu0 %v1528_v35 }
 0x385   : > { %v1403_v33 = vpop.f32.mrb[53].mxu1  ;;  %v1402_v39 = vadd.f32 %v1401_v36, %v9477_v32 }
 0x386   : > { %v1404_v37 = vadd.f32 %v1403_v33, %v9471_v30  ;;  %v1405_v38 = vpop.f32.mrb[54].mxu1  ;;  %v1537_v33 = vsel %vm1502_vm0, %v9513_v16, 0 }
 0x387   : > { %v1406_v40 = vadd.f32 %v1405_v38, %v9477_v32  ;;  %2093 = vrot.lane.b32.xlu0 %v9505_v3, %s8711_s3  ;;  %v1407_v41 = vpop.f32.mrb[55].mxu1 }
 0x388   : > { %v1408_v48 = vadd.f32 %v1407_v41, %v9471_v30 }
 0x389   : > { %v9569_v49 = vpack.c.bf16 %v1406_v40, %v1402_v39 }
 0x38a   : > { %v9571_v51 = vpack.c.bf16 %v1408_v48, %v1404_v37 }
 0x38b   : > { %12367 = vst [vmem:[#allocation79_spill] sm:$0xff] %v9569_v49  ;;  %2107 = vrot.lane.b32.xlu1 %v9569_v49, %s8711_s3  ;;  %2095 = vrot.lane.b32.xlu0 %v9513_v16, %s8711_s3 }
 0x38c   : > { %12368 = vst [vmem:[#allocation80_spill] sm:$0xff] %v9571_v51  ;;  %7201 = vmatprep.subr.msk.bf16.mxu0 %vm1502_vm0, %v9569_v49  ;;  %v1411_v52 = vpop.f32.mrb[56].mxu1 }
 0x38d   : > { %6491 = vmatpush3.bf16.xpose.msra.mxu0 %v1531_v53  ;;  %v1413_v54 = vpop.f32.mrb[57].mxu1  ;;  %v1412_v63 = vadd.f32 %v1411_v52, %v9477_v32 }
 0x38e   : > { %v1414_v57 = vadd.f32 %v1413_v54, %v9471_v30  ;;  %v1415_v58 = vpop.f32.mrb[58].mxu1 }
 0x38f   : > { %v1416_v0 = vadd.f32 %v1415_v58, %v9477_v32  ;;  %2097 = vrot.lane.b32.xlu0 %v9521_v28, %s8711_s3  ;;  %v1417_v1 = vpop.f32.mrb[59].mxu1  ;;  %v1540_v58 = vsel %vm1502_vm0, %v9521_v28, 0 }
 0x390   : > { %v1418_v2 = vadd.f32 %v1417_v1, %v9471_v30 }
 0x391   : > { %v9587_v5 = vpack.c.bf16 %v1416_v0, %v1412_v63 }
 0x392   : > { %v9589_v6 = vpack.c.bf16 %v1418_v2, %v1414_v57 }
 0x393   : > { %12369 = vst [vmem:[#allocation81_spill] sm:$0xff] %v9587_v5  ;;  %2109 = vrot.lane.b32.xlu1 %v9587_v5, %s8711_s3  ;;  %2099 = vrot.lane.b32.xlu0 %v9529_v44, %s8711_s3 }
 0x394   : > { %12370 = vst [vmem:[#allocation82_spill] sm:$0xff] %v9589_v6  ;;  %7202 = vmatprep.subr.msk.bf16.mxu0 %vm1502_vm0, %v9587_v5  ;;  %v1421_v7 = vpop.f32.mrb[60].mxu1 }
 0x395   : > { %6493 = vmatpush3.bf16.xpose.msra.mxu0 %v1534_v8  ;;  %v1423_v11 = vpop.f32.mrb[61].mxu1  ;;  %v1422_v19 = vadd.f32 %v1421_v7, %v9477_v32 }
 0x396   : > { %v1424_v15 = vadd.f32 %v1423_v11, %v9471_v30  ;;  %v1425_v18 = vpop.f32.mrb[62].mxu1 }
 0x397   : > { %v1426_v21 = vadd.f32 %v1425_v18, %v9477_v32  ;;  %2101 = vrot.lane.b32.xlu0 %v9537_v59, %s8711_s3  ;;  %v1427_v22 = vpop.f32.mrb[63].mxu1 }
 0x398   : > { %v1428_v23 = vadd.f32 %v1427_v22, %v9471_v30 }
 0x399   : > { %v9605_v25 = vpack.c.bf16 %v1426_v21, %v1422_v19  ;;  %v1543_v21 = vsel %vm1502_vm0, %v9529_v44, 0 }
 0x39a   : > { %v9607_v35 = vpack.c.bf16 %v1428_v23, %v1424_v15 }
 0x39b   : > { %12371 = vst [vmem:[#allocation83_spill] sm:$0xff] %v9605_v25  ;;  %2111 = vrot.lane.b32.xlu1 %v9605_v25, %s8711_s3  ;;  %2103 = vrot.lane.b32.xlu0 %v9545_v9, %s8711_s3 }
 0x39c   : > { %12372 = vst [vmem:[#allocation84_spill] sm:$0xff] %v9607_v35  ;;  %7203 = vmatprep.subr.msk.bf16.mxu0 %vm1502_vm0, %v9605_v25  ;;  %v1431_v36 = vpop.f32.mrb[64].mxu1 }
 0x39d   : > { %6495 = vmatpush3.bf16.xpose.msra.mxu0 %v1537_v33  ;;  %v1433_v37 = vpop.f32.mrb[65].mxu1  ;;  %v1432_v40 = vadd.f32 %v1431_v36, %v9477_v32 }
 0x39e   : > { %v1434_v38 = vadd.f32 %v1433_v37, %v9471_v30  ;;  %v1435_v39 = vpop.f32.mrb[66].mxu1 }
 0x39f   : > { %v1436_v41 = vadd.f32 %v1435_v39, %v9477_v32  ;;  %2057 = vrot.lane.b32.xlu0 %v9453_v47, %s8711_s3  ;;  %v1437_v48 = vpop.f32.mrb[67].mxu1 }
 0x3a0   : > { %v1438_v52 = vadd.f32 %v1437_v48, %v9471_v30 }
 0x3a1   : > { %v9623_v53 = vpack.c.bf16 %v1436_v41, %v1432_v40 }
 0x3a2   : > { %v9625_v54 = vpack.c.bf16 %v1438_v52, %v1434_v38  ;;  %v1546_v52 = vsel %vm1502_vm0, %v9537_v59, 0 }
 0x3a3   : > { %12373 = vst [vmem:[#allocation85_spill] sm:$0xff] %v9623_v53  ;;  %2113 = vrot.lane.b32.xlu1 %v9623_v53, %s8711_s3  ;;  %7204 = vmatprep.subr.msk.bf16.mxu0 %vm1502_vm0, %v9623_v53 }
 0x3a4   : > { %12374 = vst [vmem:[#allocation86_spill] sm:$0xff] %v9625_v54  ;;  %2061 = vrot.lane.b32.xlu0 %v9459_v62, %s8711_s3  ;;  %v1441_v57 = vpop.f32.mrb[68].mxu1 }
 0x3a5   : > { %6497 = vmatpush3.bf16.xpose.msra.mxu0 %v1540_v58  ;;  %v1443_v63 = vpop.f32.mrb[69].mxu1  ;;  %v1442_v2 = vadd.f32 %v1441_v57, %v9477_v32 }
 0x3a6   : > { %v1444_v0 = vadd.f32 %v1443_v63, %v9471_v30  ;;  %v1445_v1 = vpop.f32.mrb[70].mxu1 }
 0x3a7   : > { %v1446_v7 = vadd.f32 %v1445_v1, %v9477_v32  ;;  %v1447_v8 = vpop.f32.mrb[71].mxu1 }
 0x3a8   : > { %2065 = vrot.lane.b32.xlu0 %v9465_v14, %s8711_s3  ;;  %v1448_v11 = vadd.f32 %v1447_v8, %v9471_v30 }
 0x3a9   : > { %v9641_v15 = vpack.c.bf16 %v1446_v7, %v1442_v2 }
 0x3aa   : > { %v9643_v18 = vpack.c.bf16 %v1448_v11, %v1444_v0 }
 0x3ab   : > { %12375 = vst [vmem:[#allocation87_spill] sm:$0xff] %v9641_v15  ;;  %2115 = vrot.lane.b32.xlu1 %v9641_v15, %s8711_s3  ;;  %7205 = vmatprep.subr.msk.bf16.mxu0 %vm1502_vm0, %v9641_v15 }
 0x3ac   : > { %12376 = vst [vmem:[#allocation88_spill] sm:$0xff] %v9643_v18  ;;  %2069 = vrot.lane.b32.xlu0 %v9479_v34, %s8711_s3  ;;  %v1451_v19 = vpop.f32.mrb[72].mxu1 }
 0x3ad   : > { %6499 = vmatpush3.bf16.xpose.msra.mxu0 %v1543_v21  ;;  %v1453_v22 = vpop.f32.mrb[73].mxu1  ;;  %v1452_v33 = vadd.f32 %v1451_v19, %v9477_v32 }
 0x3ae   : > { %v1454_v23 = vadd.f32 %v1453_v22, %v9471_v30  ;;  %v1455_v36 = vpop.f32.mrb[74].mxu1 }
 0x3af   : > { %v1456_v37 = vadd.f32 %v1455_v36, %v9477_v32  ;;  %v1457_v38 = vpop.f32.mrb[75].mxu1 }
 0x3b0   : > { %2578 = vrot.lane.b32.xlu0 %v9487_v43, %s8711_s3  ;;  %v1458_v39 = vadd.f32 %v1457_v38, %v9471_v30 }
 0x3b1   : > { %v9659_v40 = vpack.c.bf16 %v1456_v37, %v1452_v33 }
 0x3b2   : > { %v9661_v41 = vpack.c.bf16 %v1458_v39, %v1454_v23 }
 0x3b3   : > { %12377 = vst [vmem:[#allocation89_spill] sm:$0xff] %v9659_v40  ;;  %2117 = vrot.lane.b32.xlu1 %v9659_v40, %s8711_s3  ;;  %7206 = vmatprep.subr.msk.bf16.mxu0 %vm1502_vm0, %v9659_v40 }
 0x3b4   : > { %12378 = vst [vmem:[#allocation90_spill] sm:$0xff] %v9661_v41  ;;  %2598 = vrot.lane.b32.xlu0 %v9589_v6, %s8711_s3  ;;  %v1461_v48 = vpop.f32.mrb[76].mxu1 }
 0x3b5   : > { %6501 = vmatpush3.bf16.xpose.msra.mxu0 %v1546_v52  ;;  %v1463_v57 = vpop.f32.mrb[77].mxu1  ;;  %v1462_v0 = vadd.f32 %v1461_v48, %v9477_v32 }
 0x3b6   : > { %v1464_v58 = vadd.f32 %v1463_v57, %v9471_v30  ;;  %v1465_v63 = vpop.f32.mrb[78].mxu1 }
 0x3b7   : > { %v1466_v1 = vadd.f32 %v1465_v63, %v9477_v32  ;;  %v1467_v2 = vpop.f32.mrb[79].mxu1  ;;  %v1549_v32 = vsel %vm1502_vm0, %v9545_v9, 0 }
 0x3b8   : > { %2600 = vrot.lane.b32.xlu0 %v9607_v35, %s8711_s3  ;;  %v1468_v7 = vadd.f32 %v1467_v2, %v9471_v30  ;;  %v2090_v30 = vpop.permute.xlu0 %2089 }
 0x3b9   : > { %v9677_v8 = vpack.c.bf16 %v1466_v1, %v1462_v0  ;;  %v2146_v21 = vsel %vm1502_vm0, %v2090_v30, 0 }
 0x3ba   : > { %v9679_v11 = vpack.c.bf16 %v1468_v7, %v1464_v58 }
 0x3bb   : > { %12379 = vst [vmem:[#allocation91_spill] sm:$0xff] %v9677_v8  ;;  %2119 = vrot.lane.b32.xlu1 %v9677_v8, %s8711_s3  ;;  %7207 = vmatprep.subr.msk.bf16.mxu0 %vm1502_vm0, %v9677_v8 }
 0x3bc   : > { %12380 = vst [vmem:[#allocation92_spill] sm:$0xff] %v9679_v11  ;;  %2602 = vrot.lane.b32.xlu0 %v9625_v54, %s8711_s3 }
 0x3bd   : > { %6503 = vmatpush3.bf16.xpose.msra.mxu0 %v1549_v32  ;;  %v2092_v22 = vpop.permute.xlu1 %2091 }
 0x3be   : > { %6520 = vmatprep.subr.bf16.mxu0 %v9555_v27  ;;  %v2149_v37 = vsel %vm1502_vm0, %v2092_v22, 0 }
 0x3bf   : > { %2059 = vrot.lane.b32.xlu1 %v9451_v46, %s8711_s3 }
 0x3c0   : > { %2604 = vrot.lane.b32.xlu0 %v9643_v18, %s8711_s3 }
 0x3c3   : > { %2063 = vrot.lane.b32.xlu1 %v9457_v61, %s8711_s3 }
 0x3c4   : > { %2606 = vrot.lane.b32.xlu0 %v9661_v41, %s8711_s3  ;;  %6505 = vmatmul.mubr.msk.bf16.vlgmr.msra.gmra.mrb[0].mxu0 %vm1502_vm0, %v9453_v47 }
 0x3c5   : > { %6506 = vmatprep.mubr.msk.bf16.mxu0 %vm1502_vm0, %v9451_v46  ;;  %6521 = vmatpush3.bf16.msra.mxu0 %v9487_v43 }
 0x3c6   : > { %6522 = vmatprep.subr.bf16.mxu0 %v9571_v51 }
 0x3c7   : > { %2067 = vrot.lane.b32.xlu1 %v9463_v13, %s8711_s3 }
 0x3c8   : > { %3013 = vrot.lane.b32.xlu0 %v9485_v42, %s8712_s20 }
 0x3c9   : > { %6523 = vmatpush3.bf16.msra.mxu0 %v9497_v56 }
 0x3ca   : > { %6524 = vmatprep.subr.bf16.mxu0 %v9589_v6 }
 0x3cb   : > { %2071 = vrot.lane.b32.xlu1 %v9473_v31, %s8711_s3 }
 0x3cc   : > { %3015 = vrot.lane.b32.xlu0 %v9495_v55, %s8712_s20  ;;  %6507 = vmatmul.mubr.msk.bf16.gmra.mrb[4].mxu0 %vm1502_vm0, %v9451_v46 }
 0x3cd   : > { %6508 = vmatprep.mubr.msk.bf16.mxu0 %vm1502_vm0, %v9459_v62  ;;  %6525 = vmatpush3.bf16.msra.mxu0 %v9507_v4 }
 0x3ce   : > { %6526 = vmatprep.subr.bf16.mxu0 %v9607_v35 }
 0x3cf   : > { %2594 = vrot.lane.b32.xlu1 %v9555_v27, %s8711_s3 }
 0x3d0   : > { %3017 = vrot.lane.b32.xlu0 %v9505_v3, %s8712_s20 }
 0x3d1   : > { %6527 = vmatpush3.bf16.msra.mxu0 %v9515_v17 }
 0x3d2   : > { %6528 = vmatprep.subr.bf16.mxu0 %v9625_v54 }
 0x3d3   : > { %2596 = vrot.lane.b32.xlu1 %v9571_v51, %s8711_s3 }
 0x3d4   : > { %3019 = vrot.lane.b32.xlu0 %v9513_v16, %s8712_s20  ;;  %6509 = vmatmul.mubr.msk.bf16.gmra.mrb[8].mxu0 %vm1502_vm0, %v9459_v62 }
 0x3d5   : > { %6510 = vmatprep.mubr.msk.bf16.mxu0 %vm1502_vm0, %v9457_v61  ;;  %6529 = vmatpush3.bf16.msra.mxu0 %v9523_v29 }
 0x3d6   : > { %6530 = vmatprep.subr.bf16.mxu0 %v9643_v18 }
 0x3d7   : > { %2580 = vrot.lane.b32.xlu1 %v9497_v56, %s8711_s3 }
 0x3d8   : > { %3021 = vrot.lane.b32.xlu0 %v9521_v28, %s8712_s20 }
 0x3d9   : > { %6531 = vmatpush3.bf16.msra.mxu0 %v9531_v45 }
 0x3da   : > { %6532 = vmatprep.subr.bf16.mxu0 %v9661_v41 }
 0x3db   : > { %2582 = vrot.lane.b32.xlu1 %v9507_v4, %s8711_s3 }
 0x3dc   : > { %6511 = vmatmul.mubr.msk.bf16.gmra.mrb[12].mxu0 %vm1502_vm0, %v9457_v61  ;;  %2608 = vrot.lane.b32.xlu0 %v9679_v11, %s8711_s3 }
 0x3dd   : > { %6512 = vmatprep.mubr.msk.bf16.mxu0 %vm1502_vm0, %v9465_v14  ;;  %6533 = vmatpush3.bf16.msra.mxu0 %v9539_v60 }
 0x3de   : > { %6534 = vmatprep.subr.bf16.mxu0 %v9679_v11 }
 0x3df   : > { %2584 = vrot.lane.b32.xlu1 %v9515_v17, %s8711_s3 }
 0x3e1   : > { %6535 = vmatpush3.bf16.msra.mxu0 %v9547_v10 }
 0x3e3   : > { %2586 = vrot.lane.b32.xlu1 %v9523_v29, %s8711_s3 }
 0x3e4   : > { %6513 = vmatmul.mubr.msk.bf16.gmra.mrb[16].mxu0 %vm1502_vm0, %v9465_v14 }
 0x3e5   : > { %6514 = vmatprep.mubr.msk.bf16.mxu0 %vm1502_vm0, %v9463_v13 }
 0x3e7   : > { %2588 = vrot.lane.b32.xlu1 %v9531_v45, %s8711_s3 }
 0x3eb   : > { %2590 = vrot.lane.b32.xlu1 %v9539_v60, %s8711_s3 }
 0x3ec   : > { %6515 = vmatmul.mubr.msk.bf16.gmra.mrb[20].mxu0 %vm1502_vm0, %v9463_v13 }
 0x3ed   : > { %6516 = vmatprep.mubr.msk.bf16.mxu0 %vm1502_vm0, %v9479_v34 }
 0x3ef   : > { %2592 = vrot.lane.b32.xlu1 %v9547_v10, %s8711_s3  ;;  %s8714_s3 = smov [#allocation28]  }
 0x3f3   : > { %3029 = vrot.lane.b32.xlu1 %v9553_v26, %s8712_s20 }
 0x3f4   : > { %6517 = vmatmul.mubr.msk.bf16.gmra.mrb[24].mxu0 %vm1502_vm0, %v9479_v34 }
 0x3f5   : > { %6518 = vmatprep.mubr.msk.bf16.mxu0 %vm1502_vm0, %v9473_v31  ;;  %v2106_v19 = vpop.permute.xlu0 %2105 }
 0x3f6   : > { %7208 = vmatprep.subr.msk.bf16.mxu1 %vm1502_vm0, %v2106_v19 }
 0x3f7   : > { %3031 = vrot.lane.b32.xlu1 %v9569_v49, %s8712_s20  ;;  %6585 = vmatpush3.bf16.xpose.msra.mxu1 %v2146_v21 }
 0x3f9   : > { %v2094_v23 = vpop.permute.xlu0 %2093 }
 0x3fa   : > { %v2152_v52 = vsel %vm1502_vm0, %v2094_v23, 0 }
 0x3fb   : > { %3033 = vrot.lane.b32.xlu1 %v9587_v5, %s8712_s20 }
 0x3fc   : > { %6519 = vmatmul.mubr.msk.bf16.gmra.mrb[28].mxu0 %vm1502_vm0, %v9473_v31 }
 0x3fd   : > { %v2108_v36 = vpop.permute.xlu1 %2107  ;;  %v2096_v33 = vpop.permute.xlu0 %2095 }
 0x3fe   : > { %7209 = vmatprep.subr.msk.bf16.mxu1 %vm1502_vm0, %v2108_v36  ;;  %v2155_v0 = vsel %vm1502_vm0, %v2096_v33, 0 }
 0x3ff   : > { %3035 = vrot.lane.b32.xlu1 %v9605_v25, %s8712_s20  ;;  %6587 = vmatpush3.bf16.xpose.msra.mxu1 %v2149_v37 }
 0x401   : > { %v2098_v38 = vpop.permute.xlu0 %2097 }
 0x402   : > { %v2158_v7 = vsel %vm1502_vm0, %v2098_v38, 0 }
 0x403   : > { %3037 = vrot.lane.b32.xlu1 %v9623_v53, %s8712_s20 }
 0x405   : > { %v2110_v39 = vpop.permute.xlu1 %2109  ;;  %v2100_v48 = vpop.permute.xlu0 %2099 }
 0x406   : > { %7210 = vmatprep.subr.msk.bf16.mxu1 %vm1502_vm0, %v2110_v39  ;;  %v2161_v30 = vsel %vm1502_vm0, %v2100_v48, 0 }
 0x407   : > { %6589 = vmatpush3.bf16.xpose.msra.mxu1 %v2152_v52 }
 0x409   : > { %v2102_v57 = vpop.permute.xlu0 %2101 }
 0x40a   : > { %v2164_v21 = vsel %vm1502_vm0, %v2102_v57, 0 }
 0x40d   : > { %v2112_v58 = vpop.permute.xlu1 %2111  ;;  %v2104_v63 = vpop.permute.xlu0 %2103 }
 0x40e   : > { %7211 = vmatprep.subr.msk.bf16.mxu1 %vm1502_vm0, %v2112_v58  ;;  %v2167_v23 = vsel %vm1502_vm0, %v2104_v63, 0 }
 0x40f   : > { %6591 = vmatpush3.bf16.xpose.msra.mxu1 %v2155_v0 }
 0x411   : > { %v2058_v1 = vpop.permute.xlu0 %2057 }
 0x412   : > { %6600 = vmatprep.mubr.msk.bf16.mxu1 %vm1502_vm0, %v2058_v1 }
 0x415   : > { %v2114_v2 = vpop.permute.xlu1 %2113 }
 0x416   : > { %7212 = vmatprep.subr.msk.bf16.mxu1 %vm1502_vm0, %v2114_v2  ;;  %v2062_v39 = vpop.permute.xlu0 %2061 }
 0x417   : > { %6593 = vmatpush3.bf16.xpose.msra.mxu1 %v2158_v7 }
 0x41a   : > { %v2066_v52 = vpop.permute.xlu0 %2065 }
 0x41d   : > { %v2116_v32 = vpop.permute.xlu1 %2115 }
 0x41e   : > { %7213 = vmatprep.subr.msk.bf16.mxu1 %vm1502_vm0, %v2116_v32  ;;  %v2070_v57 = vpop.permute.xlu0 %2069 }
 0x41f   : > { %6595 = vmatpush3.bf16.xpose.msra.mxu1 %v2161_v30 }
 0x422   : > { %v9917_v17 = vpop.permute.xlu0 %2578 }
 0x423   : > { %12382 = vst [vmem:[#allocation94_spill] sm:$0xff] %v9917_v17 }
 0x425   : > { %v2118_v19 = vpop.permute.xlu1 %2117 }
 0x426   : > { %7214 = vmatprep.subr.msk.bf16.mxu1 %vm1502_vm0, %v2118_v19  ;;  %v9921_v4 = vpop.permute.xlu0 %2598 }
 0x427   : > { %6597 = vmatpush3.bf16.xpose.msra.mxu1 %v2164_v21  ;;  %12384 = vst [vmem:[#allocation96_spill] sm:$0xff] %v9921_v4 }
 0x42a   : > { %v9925_v27 = vpop.permute.xlu0 %2600 }
 0x42b   : > { %12386 = vst [vmem:[#allocation98_spill] sm:$0xff] %v9925_v27 }
 0x42d   : > { %v2120_v22 = vpop.permute.xlu1 %2119 }
 0x42e   : > { %7215 = vmatprep.subr.msk.bf16.mxu1 %vm1502_vm0, %v2120_v22  ;;  %v9929_v16 = vpop.permute.xlu0 %2602 }
 0x42f   : > { %6599 = vmatpush3.bf16.xpose.msra.mxu1 %v2167_v23  ;;  %12388 = vst [vmem:[#allocation100_spill] sm:$0xff] %v9929_v16 }
 0x431   : > { %v2060_v36 = vpop.permute.xlu1 %2059 }
 0x432   : > { %v9933_v3 = vpop.permute.xlu0 %2604 }
 0x433   : > { %12390 = vst [vmem:[#allocation102_spill] sm:$0xff] %v9933_v3 }
 0x435   : > { %v2064_v33 = vpop.permute.xlu1 %2063 }
 0x436   : > { %6601 = vmatmul.mubr.msk.bf16.vlgmr.msra.gmra.mrb[80].mxu1 %vm1502_vm0, %v2058_v1  ;;  %v9937_v53 = vpop.permute.xlu0 %2606 }
 0x437   : > { %6602 = vmatprep.mubr.msk.bf16.mxu1 %vm1502_vm0, %v2060_v36  ;;  %12392 = vst [vmem:[#allocation104_spill] sm:$0xff] %v9937_v53 }
 0x439   : > { %v2068_v37 = vpop.permute.xlu1 %2067 }
 0x43a   : > { %v9941_v25 = vpop.permute.xlu0 %3013 }
 0x43b   : > { %12394 = vst [vmem:[#allocation106_spill] sm:$0xff] %v9941_v25 }
 0x43d   : > { %v2072_v38 = vpop.permute.xlu1 %2071 }
 0x43e   : > { %6603 = vmatmul.mubr.msk.bf16.gmra.mrb[84].mxu1 %vm1502_vm0, %v2060_v36  ;;  %v9953_v26 = vpop.permute.xlu0 %3015 }
 0x43f   : > { %6604 = vmatprep.mubr.msk.bf16.mxu1 %vm1502_vm0, %v2062_v39  ;;  %12396 = vst [vmem:[#allocation108_spill] sm:$0xff] %v9953_v26 }
 0x441   : > { %v2595_v48 = vpop.permute.xlu1 %2594 }
 0x442   : > { %6616 = vmatprep.subr.bf16.mxu0 %v2595_v48  ;;  %v9963_v13 = vpop.permute.xlu0 %3017 }
 0x443   : > { %12398 = vst [vmem:[#allocation110_spill] sm:$0xff] %v9963_v13 }
 0x446   : > { %6605 = vmatmul.mubr.msk.bf16.gmra.mrb[88].mxu1 %vm1502_vm0, %v2062_v39 }
 0x447   : > { %6606 = vmatprep.mubr.msk.bf16.mxu1 %vm1502_vm0, %v2064_v33 }
 0x44e   : > { %6607 = vmatmul.mubr.msk.bf16.gmra.mrb[92].mxu1 %vm1502_vm0, %v2064_v33 }
 0x44f   : > { %6608 = vmatprep.mubr.msk.bf16.mxu1 %vm1502_vm0, %v2066_v52 }
 0x456   : > { %6609 = vmatmul.mubr.msk.bf16.gmra.mrb[96].mxu1 %vm1502_vm0, %v2066_v52 }
 0x457   : > { %6610 = vmatprep.mubr.msk.bf16.mxu1 %vm1502_vm0, %v2068_v37 }
 0x45e   : > { %6611 = vmatmul.mubr.msk.bf16.gmra.mrb[100].mxu1 %vm1502_vm0, %v2068_v37 }
 0x45f   : > { %6612 = vmatprep.mubr.msk.bf16.mxu1 %vm1502_vm0, %v2070_v57 }
 0x466   : > { %6613 = vmatmul.mubr.msk.bf16.gmra.mrb[104].mxu1 %vm1502_vm0, %v2070_v57 }
 0x467   : > { %6614 = vmatprep.mubr.msk.bf16.mxu1 %vm1502_vm0, %v2072_v38 }
 0x46e   : > { %6615 = vmatmul.mubr.msk.bf16.gmra.mrb[108].mxu1 %vm1502_vm0, %v2072_v38 }
 0x497   : > { %v9819_v58 = vpop.f32.mrb[0].mxu0 }
 0x498   : > { %v9821_v63 = vpop.f32.mrb[1].mxu0 }
 0x499   : > { %v9823_v0 = vpop.f32.mrb[2].mxu0  ;;  %v1688_v1 = vmax.f32 %v9819_v58, %v9821_v63 }
 0x49a   : > { %v9827_v2 = vpop.f32.mrb[3].mxu0 }
 0x49b   : > { %1689 = vmax.xlane.f32.xlu0 %v1688_v1  ;;  %v1691_v7 = vmax.f32 %v9823_v0, %v9827_v2 }
 0x49d   : > { %1692 = vmax.xlane.f32.xlu1 %v1691_v7 }
 0x49f   : > { %v9831_v32 = vpop.f32.mrb[4].mxu0 }
 0x4a0   : > { %v9833_v30 = vpop.f32.mrb[5].mxu0 }
 0x4a1   : > { %v9835_v19 = vpop.f32.mrb[6].mxu0  ;;  %v1694_v21 = vmax.f32 %v9831_v32, %v9833_v30 }
 0x4a2   : > { %v9839_v22 = vpop.f32.mrb[7].mxu0 }
 0x4a3   : > { %1695 = vmax.xlane.f32.xlu0 %v1694_v21  ;;  %v1697_v23 = vmax.f32 %v9835_v19, %v9839_v22 }
 0x4a7   : > { %1698 = vmax.xlane.f32.xlu0 %v1697_v23  ;;  %v9843_v36 = vpop.f32.mrb[8].mxu0 }
 0x4a8   : > { %v9845_v33 = vpop.f32.mrb[9].mxu0 }
 0x4a9   : > { %v9847_v37 = vpop.f32.mrb[10].mxu0  ;;  %v1700_v38 = vmax.f32 %v9843_v36, %v9845_v33 }
 0x4aa   : > { %v9851_v39 = vpop.f32.mrb[11].mxu0 }
 0x4ab   : > { %1701 = vmax.xlane.f32.xlu1 %v1700_v38  ;;  %v1703_v48 = vmax.f32 %v9847_v37, %v9851_v39 }
 0x4ad   : > { %1704 = vmax.xlane.f32.xlu0 %v1703_v48 }
 0x4af   : > { %v9855_v52 = vpop.f32.mrb[12].mxu0 }
 0x4b0   : > { %v9857_v57 = vpop.f32.mrb[13].mxu0 }
 0x4b1   : > { %v9859_v1 = vpop.f32.mrb[14].mxu0  ;;  %v1706_v7 = vmax.f32 %v9855_v52, %v9857_v57 }
 0x4b2   : > { %v9863_v21 = vpop.f32.mrb[15].mxu0 }
 0x4b3   : > { %1707 = vmax.xlane.f32.xlu1 %v1706_v7  ;;  %v1709_v23 = vmax.f32 %v9859_v1, %v9863_v21 }
 0x4b5   : > { %1710 = vmax.xlane.f32.xlu0 %v1709_v23 }
 0x4b7   : > { %v9867_v38 = vpop.f32.mrb[16].mxu0 }
 0x4b8   : > { %v9869_v20 = vpop.f32.mrb[17].mxu0 }
 0x4b9   : > { %v9871_v48 = vpop.f32.mrb[18].mxu0  ;;  %v1712_v24 = vmax.f32 %v9867_v38, %v9869_v20 }
 0x4ba   : > { %v9875_v50 = vpop.f32.mrb[19].mxu0 }
 0x4bb   : > { %1713 = vmax.xlane.f32.xlu1 %v1712_v24  ;;  %v1715_v12 = vmax.f32 %v9871_v48, %v9875_v50 }
 0x4bd   : > { %1716 = vmax.xlane.f32.xlu0 %v1715_v12 }
 0x4bf   : > { %v9879_v7 = vpop.f32.mrb[20].mxu0 }
 0x4c0   : > { %v9881_v11 = vpop.f32.mrb[21].mxu0 }
 0x4c1   : > { %v9883_v23 = vpop.f32.mrb[22].mxu0  ;;  %v1718_v10 = vmax.f32 %v9879_v7, %v9881_v11 }
 0x4c2   : > { %v9887_v60 = vpop.f32.mrb[23].mxu0 }
 0x4c3   : > { %1719 = vmax.xlane.f32.xlu1 %v1718_v10  ;;  %v1721_v45 = vmax.f32 %v9883_v23, %v9887_v60 }
 0x4c5   : > { %1722 = vmax.xlane.f32.xlu0 %v1721_v45 }
 0x4c7   : > { %v9891_v24 = vpop.f32.mrb[24].mxu0 }
 0x4c8   : > { %v9893_v41 = vpop.f32.mrb[25].mxu0 }
 0x4c9   : > { %v9895_v12 = vpop.f32.mrb[26].mxu0  ;;  %v1724_v18 = vmax.f32 %v9891_v24, %v9893_v41 }
 0x4ca   : > { %v9899_v29 = vpop.f32.mrb[27].mxu0 }
 0x4cb   : > { %1725 = vmax.xlane.f32.xlu1 %v1724_v18  ;;  %v1727_v54 = vmax.f32 %v9895_v12, %v9899_v29  ;;  %v9915_v18 = vpop.permute.xlu1 %2596 }
 0x4cc   : > { %12381 = vst [vmem:[#allocation93_spill] sm:$0xff] %v9915_v18 }
 0x4cd   : > { %1728 = vmax.xlane.f32.xlu0 %v1727_v54 }
 0x4cf   : > { %v9903_v10 = vpop.f32.mrb[28].mxu0  ;;  %v9919_v54 = vpop.permute.xlu1 %2580 }
 0x4d0   : > { %v9905_v35 = vpop.f32.mrb[29].mxu0  ;;  %12383 = vst [vmem:[#allocation95_spill] sm:$0xff] %v9919_v54 }
 0x4d1   : > { %v9907_v45 = vpop.f32.mrb[30].mxu0  ;;  %v1730_v6 = vmax.f32 %v9903_v10, %v9905_v35 }
 0x4d2   : > { %v9911_v56 = vpop.f32.mrb[31].mxu0 }
 0x4d3   : > { %1731 = vmax.xlane.f32.xlu1 %v1730_v6  ;;  %v1733_v51 = vmax.f32 %v9907_v45, %v9911_v56  ;;  %v9923_v43 = vpop.permute.xlu1 %2582 }
 0x4d4   : > { %12385 = vst [vmem:[#allocation97_spill] sm:$0xff] %v9923_v43 }
 0x4d5   : > { %1734 = vmax.xlane.f32.xlu0 %v1733_v51 }
 0x4d7   : > { %v9927_v28 = vpop.permute.xlu1 %2584 }
 0x4d8   : > { %12387 = vst [vmem:[#allocation99_spill] sm:$0xff] %v9927_v28 }
 0x4db   : > { %v9931_v6 = vpop.permute.xlu1 %2586 }
 0x4dc   : > { %12389 = vst [vmem:[#allocation101_spill] sm:$0xff] %v9931_v6 }
 0x4df   : > { %v9935_v51 = vpop.permute.xlu1 %2588 }
 0x4e0   : > { %12391 = vst [vmem:[#allocation103_spill] sm:$0xff] %v9935_v51 }
 0x4e3   : > { %v9939_v55 = vpop.permute.xlu1 %2590 }
 0x4e4   : > { %12393 = vst [vmem:[#allocation105_spill] sm:$0xff] %v9939_v55 }
 0x4e7   : > { %v9943_v42 = vpop.permute.xlu1 %2592 }
 0x4e8   : > { %12395 = vst [vmem:[#allocation107_spill] sm:$0xff] %v9943_v42 }
 0x4eb   : > { %v9959_v25 = vpop.permute.xlu1 %3029 }
 0x4ec   : > { %12397 = vst [vmem:[#allocation109_spill] sm:$0xff] %v9959_v25 }
 0x4ef   : > { %v9971_v46 = vpop.permute.xlu1 %3031 }
 0x4f0   : > { %12399 = vst [vmem:[#allocation111_spill] sm:$0xff] %v9971_v46 }
 0x4f3   : > { %v9981_v13 = vpop.permute.xlu1 %3033 }
 0x4f4   : > { %12401 = vst [vmem:[#allocation113_spill] sm:$0xff] %v9981_v13 }
 0x509   : > { %v9945_v5 = vpop.f32.mrb[80].mxu1 }
 0x50a   : > { %v9947_v34 = vpop.f32.mrb[81].mxu1 }
 0x50b   : > { %v9949_v49 = vpop.f32.mrb[82].mxu1  ;;  %v2306_v14 = vmax.f32 %v9945_v5, %v9947_v34 }
 0x50c   : > { %v9955_v62 = vpop.f32.mrb[83].mxu1 }
 0x50d   : > { %2307 = vmax.xlane.f32.xlu1 %v2306_v14  ;;  %v2309_v31 = vmax.f32 %v9949_v49, %v9955_v62 }
 0x50f   : > { %2310 = vmax.xlane.f32.xlu0 %v2309_v31  ;;  %v9977_v31 = vpop.permute.xlu0 %3019 }
 0x510   : > { %12400 = vst [vmem:[#allocation112_spill] sm:$0xff] %v9977_v31  ;;  %v9995_v31 = vpop.permute.xlu1 %3035 }
 0x511   : > { %v9961_v47 = vpop.f32.mrb[84].mxu1  ;;  %12403 = vst [vmem:[#allocation115_spill] sm:$0xff] %v9995_v31 }
 0x512   : > { %v9965_v9 = vpop.f32.mrb[85].mxu1 }
 0x513   : > { %v9967_v61 = vpop.f32.mrb[86].mxu1  ;;  %v2312_v26 = vmax.f32 %v9961_v47, %v9965_v9 }
 0x514   : > { %v9973_v14 = vpop.f32.mrb[87].mxu1 }
 0x515   : > { %2313 = vmax.xlane.f32.xlu1 %v2312_v26  ;;  %v2315_v8 = vmax.f32 %v9967_v61, %v9973_v14 }
 0x517   : > { %2316 = vmax.xlane.f32.xlu0 %v2315_v8  ;;  %v9993_v8 = vpop.permute.xlu0 %3021 }
 0x518   : > { %12402 = vst [vmem:[#allocation114_spill] sm:$0xff] %v9993_v8 }
 0x519   : > { %v9979_v25 = vpop.f32.mrb[88].mxu1 }
 0x51a   : > { %v9983_v42 = vpop.f32.mrb[89].mxu1 }
 0x51b   : > { %v9985_v59 = vpop.f32.mrb[90].mxu1  ;;  %v2318_v46 = vmax.f32 %v9979_v25, %v9983_v42  ;;  %v10005_v6 = vpop.permute.xlu0 %2608 }
 0x51c   : > { %v9989_v55 = vpop.f32.mrb[91].mxu1  ;;  %12404 = vst [vmem:[#allocation116_spill] sm:$0xff] %v10005_v6 }
 0x51d   : > { %2319 = vmax.xlane.f32.xlu1 %v2318_v46  ;;  %v2321_v26 = vmax.f32 %v9985_v59, %v9989_v55 }
 0x51f   : > { %2322 = vmax.xlane.f32.xlu0 %v2321_v26  ;;  %v10011_v26 = vpop.permute.xlu1 %3037 }
 0x520   : > { %12405 = vst [vmem:[#allocation117_spill] sm:$0xff] %v10011_v26 }
 0x521   : > { %v9997_v53 = vpop.f32.mrb[92].mxu1 }
 0x522   : > { %v9999_v13 = vpop.f32.mrb[93].mxu1 }
 0x523   : > { %v10001_v51 = vpop.f32.mrb[94].mxu1  ;;  %v2324_v3 = vmax.f32 %v9997_v53, %v9999_v13 }
 0x524   : > { %v10007_v46 = vpop.f32.mrb[95].mxu1 }
 0x525   : > { %2325 = vmax.xlane.f32.xlu1 %v2324_v3  ;;  %v2327_v8 = vmax.f32 %v10001_v51, %v10007_v46 }
 0x527   : > { %2328 = vmax.xlane.f32.xlu0 %v2327_v8 }
 0x528   : > { %v1690_v31 = vpop.xlane.xlu0 %1689 }
 0x529   : > { %v1736_v16 = vsub.f32 %v9819_v58, %v1690_v31  ;;  %v1737_v28 = vsub.f32 %v9821_v63, %v1690_v31  ;;  %v10015_v40 = vpop.f32.mrb[96].mxu1 }
 0x52a   : > { %v1693_v27 = vpop.xlane.xlu1 %1692  ;;  %v10017_v43 = vpop.f32.mrb[97].mxu1 }
 0x52b   : > { %v1768_v6 = vmul.f32 1.442695, %v1736_v16  ;;  %v1770_v4 = vmul.f32 1.442695, %v1737_v28  ;;  %v1738_v3 = vsub.f32 %v9823_v0, %v1693_v27  ;;  %v1739_v54 = vsub.f32 %v9827_v2, %v1693_v27  ;;  %v10021_v18 = vpop.f32.mrb[98].mxu1 }
 0x52c   : > { %v10023_v26 = vpop.f32.mrb[99].mxu1  ;;  %v2330_v58 = vmax.f32 %v10015_v40, %v10017_v43 }
 0x52d   : > { %7612 = vpow2.f32 %v1768_v6  ;;  %v1772_v63 = vmul.f32 1.442695, %v1738_v3  ;;  %v1774_v31 = vmul.f32 1.442695, %v1739_v54  ;;  %v2333_v8 = vmax.f32 %v10021_v18, %v10023_v26 }
 0x52e   : > { %7614 = vpow2.f32 %v1770_v4  ;;  %2331 = vmax.xlane.f32.xlu1 %v2330_v58 }
 0x52f   : > { %7616 = vpow2.f32 %v1772_v63  ;;  %2334 = vmax.xlane.f32.xlu0 %v2333_v8 }
 0x530   : > { %7618 = vpow2.f32 %v1774_v31  ;;  %v1696_v16 = vpop.xlane.xlu0 %1695 }
 0x531   : > { %v1740_v28 = vsub.f32 %v9831_v32, %v1696_v16  ;;  %v1741_v27 = vsub.f32 %v9833_v30, %v1696_v16  ;;  %v10031_v0 = vpop.f32.mrb[100].mxu1 }
 0x532   : > { %v10033_v2 = vpop.f32.mrb[101].mxu1 }
 0x533   : > { %12406 = vst [vmem:[#allocation118_spill] sm:$0xff] %v10033_v2  ;;  %v1776_v6 = vmul.f32 1.442695, %v1740_v28  ;;  %v1778_v3 = vmul.f32 1.442695, %v1741_v27  ;;  %v10035_v54 = vpop.f32.mrb[102].mxu1  ;;  %v2336_v4 = vmax.f32 %v10031_v0, %v10033_v2 }
 0x534   : > { %v1699_v58 = vpop.xlane.xlu0 %1698  ;;  %v10039_v63 = vpop.f32.mrb[103].mxu1 }
 0x535   : > { %12407 = vst [vmem:[#allocation119_spill] sm:$0xff] %v10039_v63  ;;  %7620 = vpow2.f32 %v1776_v6  ;;  %v1742_v31 = vsub.f32 %v9835_v19, %v1699_v58  ;;  %v1743_v32 = vsub.f32 %v9839_v22, %v1699_v58  ;;  %2337 = vmax.xlane.f32.xlu1 %v2336_v4  ;;  %v2339_v30 = vmax.f32 %v10035_v54, %v10039_v63 }
 0x536   : > { %7622 = vpow2.f32 %v1778_v3 }
 0x537   : > { %v10045_v8 = vpop.eup %7612  ;;  %v1780_v16 = vmul.f32 1.442695, %v1742_v31  ;;  %v1782_v28 = vmul.f32 1.442695, %v1743_v32  ;;  %2340 = vmax.xlane.f32.xlu0 %v2339_v30 }
 0x538   : > { %12408 = vst [vmem:[#allocation120_spill] sm:$0xff] %v10045_v8  ;;  %v10047_v27 = vpop.eup %7614  ;;  %v1702_v17 = vpop.xlane.xlu1 %1701 }
 0x539   : > { %12409 = vst [vmem:[#allocation121_spill] sm:$0xff] %v10047_v27  ;;  %v10049_v2 = vpop.eup %7616  ;;  %7624 = vpow2.f32 %v1780_v16  ;;  %v1744_v19 = vsub.f32 %v9843_v36, %v1702_v17  ;;  %v1745_v22 = vsub.f32 %v9845_v33, %v1702_v17  ;;  %v10053_v6 = vpop.f32.mrb[104].mxu1  ;;  %v1832_v3 = vadd.f32 %v10047_v27, %v10045_v8 }
 0x53a   : > { %v10057_v4 = vpop.eup %7618  ;;  %7626 = vpow2.f32 %v1782_v28  ;;  %v1705_v58 = vpop.xlane.xlu0 %1704 }
 0x53b   : > { %v10059_v31 = vpop.f32.mrb[105].mxu1  ;;  %v1784_v32 = vmul.f32 1.442695, %v1744_v19  ;;  %v1786_v30 = vmul.f32 1.442695, %v1745_v22  ;;  %v1746_v63 = vsub.f32 %v9847_v37, %v1705_v58  ;;  %v1747_v16 = vsub.f32 %v9851_v39, %v1705_v58  ;;  %1833 = vadd.xlane.f32.xlu1 %v1832_v3 }
 0x53c   : > { %v10063_v36 = vpop.f32.mrb[106].mxu1  ;;  %v1835_v17 = vadd.f32 %v10057_v4, %v10049_v2  ;;  %v2342_v28 = vmax.f32 %v10053_v6, %v10059_v31 }
 0x53d   : > { %12410 = vst [vmem:[#allocation122_spill] sm:$0xff] %v10063_v36  ;;  %v10067_v33 = vpop.f32.mrb[107].mxu1  ;;  %7628 = vpow2.f32 %v1784_v32  ;;  %v1788_v8 = vmul.f32 1.442695, %v1746_v63  ;;  %v1790_v27 = vmul.f32 1.442695, %v1747_v16 }
 0x53e   : > { %12411 = vst [vmem:[#allocation123_spill] sm:$0xff] %v10067_v33  ;;  %v2345_v19 = vmax.f32 %v10063_v36, %v10067_v33  ;;  %7630 = vpow2.f32 %v1786_v30  ;;  %1836 = vadd.xlane.f32.xlu0 %v1835_v17 }
 0x53f   : > { %v10073_v37 = vpop.eup %7620  ;;  %7632 = vpow2.f32 %v1788_v8  ;;  %2343 = vmax.xlane.f32.xlu1 %v2342_v28 }
 0x540   : > { %12412 = vst [vmem:[#allocation124_spill] sm:$0xff] %v10073_v37  ;;  %v10075_v39 = vpop.eup %7622  ;;  %7634 = vpow2.f32 %v1790_v27 }
 0x541   : > { %v10077_v22 = vpop.f32.mrb[108].mxu1  ;;  %v1838_v3 = vadd.f32 %v10075_v39, %v10073_v37 }
 0x542   : > { %12413 = vst [vmem:[#allocation125_spill] sm:$0xff] %v10077_v22  ;;  %2346 = vmax.xlane.f32.xlu0 %v2345_v19  ;;  %v10081_v63 = vpop.f32.mrb[109].mxu1 }
 0x543   : > { %12414 = vst [vmem:[#allocation126_spill] sm:$0xff] %v10081_v63  ;;  %v10083_v58 = vpop.eup %7624  ;;  %1839 = vadd.xlane.f32.xlu1 %v1838_v3  ;;  %v10085_v32 = vpop.f32.mrb[110].mxu1  ;;  %v2348_v27 = vmax.f32 %v10077_v22, %v10081_v63 }
 0x544   : > { %12415 = vst [vmem:[#allocation127_spill] sm:$0xff] %v10083_v58  ;;  %12416 = vst [vmem:[#allocation128_spill] sm:$0xff] %v10085_v32  ;;  %v10087_v30 = vpop.eup %7626  ;;  %v10089_v8 = vpop.f32.mrb[111].mxu1 }
 0x545   : > { %12417 = vst [vmem:[#allocation129_spill] sm:$0xff] %v10089_v8  ;;  %v1841_v16 = vadd.f32 %v10087_v30, %v10083_v58  ;;  %v2351_v17 = vmax.f32 %v10085_v32, %v10089_v8 }
 0x547   : > { %v10097_v28 = vpop.eup %7628  ;;  %2349 = vmax.xlane.f32.xlu1 %v2348_v27  ;;  %1842 = vadd.xlane.f32.xlu0 %v1841_v16  ;;  %v1708_v27 = vpop.xlane.xlu1 %1707 }
 0x548   : > { %12418 = vst [vmem:[#allocation130_spill] sm:$0xff] %v10097_v28  ;;  %v10099_v19 = vpop.eup %7630  ;;  %v1711_v16 = vpop.xlane.xlu0 %1710  ;;  %v1748_v22 = vsub.f32 %v9855_v52, %v1708_v27  ;;  %v1749_v8 = vsub.f32 %v9857_v57, %v1708_v27 }
 0x549   : > { %12419 = vst [vmem:[#allocation131_spill] sm:$0xff] %v10099_v19  ;;  %v10101_v3 = vpop.eup %7632  ;;  %v1844_v33 = vadd.f32 %v10099_v19, %v10097_v28 }
 0x54a   : > { %12420 = vst [vmem:[#allocation132_spill] sm:$0xff] %v10101_v3  ;;  %v10105_v36 = vpop.eup %7634 }
 0x54b   : > { %12421 = vst [vmem:[#allocation133_spill] sm:$0xff] %v10105_v36  ;;  %1845 = vadd.xlane.f32.xlu1 %v1844_v33  ;;  %2352 = vmax.xlane.f32.xlu0 %v2351_v17  ;;  %v1847_v63 = vadd.f32 %v10105_v36, %v10101_v3  ;;  %v1714_v32 = vpop.xlane.xlu1 %1713  ;;  %v1750_v33 = vsub.f32 %v9859_v1, %v1711_v16  ;;  %v1792_v3 = vmul.f32 1.442695, %v1748_v22  ;;  %v1794_v36 = vmul.f32 1.442695, %v1749_v8 }
 0x54c   : > { %v1751_v17 = vsub.f32 %v9863_v21, %v1711_v16  ;;  %v1717_v28 = vpop.xlane.xlu0 %1716 }
 0x54d   : > { %v1796_v58 = vmul.f32 1.442695, %v1750_v33  ;;  %v1755_v52 = vsub.f32 %v9875_v50, %v1717_v28  ;;  %7636 = vpow2.f32 %v1792_v3 }
 0x54e   : > { %v1798_v37 = vmul.f32 1.442695, %v1751_v17  ;;  %7638 = vpow2.f32 %v1794_v36 }
 0x54f   : > { %1848 = vadd.xlane.f32.xlu0 %v1847_v63  ;;  %v1752_v63 = vsub.f32 %v9867_v38, %v1714_v32  ;;  %7640 = vpow2.f32 %v1796_v58 }
 0x550   : > { %v1720_v19 = vpop.xlane.xlu1 %1719  ;;  %7642 = vpow2.f32 %v1798_v37 }
 0x551   : > { %v1800_v27 = vmul.f32 1.442695, %v1752_v63  ;;  %v1756_v1 = vsub.f32 %v9879_v7, %v1720_v19  ;;  %v1757_v22 = vsub.f32 %v9881_v11, %v1720_v19 }
 0x552   : > { %v1723_v57 = vpop.xlane.xlu0 %1722 }
 0x553   : > { %7644 = vpow2.f32 %v1800_v27  ;;  %v1808_v50 = vmul.f32 1.442695, %v1756_v1  ;;  %v1810_v7 = vmul.f32 1.442695, %v1757_v22 }
 0x557   : > { %v10131_v33 = vpop.eup %7636 }
 0x558   : > { %v1726_v38 = vpop.xlane.xlu1 %1725  ;;  %v10133_v17 = vpop.eup %7638 }
 0x559   : > { %v10135_v63 = vpop.eup %7640  ;;  %v1850_v1 = vadd.f32 %v10133_v17, %v10131_v33 }
 0x55a   : > { %v1729_v16 = vpop.xlane.xlu0 %1728 }
 0x55b   : > { %v1763_v37 = vsub.f32 %v9899_v29, %v1729_v16 }
 0x55c   : > { %3039 = vrot.lane.b32.xlu1 %v9641_v15, %s8712_s20  ;;  %v1753_v15 = vsub.f32 %v9869_v20, %v1714_v32  ;;  %v1758_v20 = vsub.f32 %v9883_v23, %v1723_v57  ;;  %v1806_v32 = vmul.f32 1.442695, %v1755_v52 }
 0x55e   : > { %v1802_v21 = vmul.f32 1.442695, %v1753_v15  ;;  %v1761_v15 = vsub.f32 %v9893_v41, %v1726_v38  ;;  %v1812_v11 = vmul.f32 1.442695, %v1758_v20 }
 0x560   : > { %7646 = vpow2.f32 %v1802_v21  ;;  %v1732_v36 = vpop.xlane.xlu1 %1731  ;;  %v1818_v19 = vmul.f32 1.442695, %v1761_v15 }
 0x561   : > { %v1764_v58 = vsub.f32 %v9903_v10, %v1732_v36  ;;  %v10138_v10 = vpop.eup %7642 }
 0x562   : > { %v1735_v3 = vpop.xlane.xlu0 %1734  ;;  %v10141_v27 = vpop.eup %7644 }
 0x563   : > { %v1824_v29 = vmul.f32 1.442695, %v1764_v58  ;;  %v1766_v52 = vsub.f32 %v9907_v45, %v1735_v3 }
 0x565   : > { %3023 = vrot.lane.b32.xlu0 %v9529_v44, %s8712_s20  ;;  %v1754_v44 = vsub.f32 %v9871_v48, %v1717_v28  ;;  %v1759_v48 = vsub.f32 %v9887_v60, %v1723_v57  ;;  %v1760_v28 = vsub.f32 %v9891_v24, %v1726_v38  ;;  %v1765_v24 = vsub.f32 %v9905_v35, %v1732_v36 }
 0x566   : > { %v1767_v35 = vsub.f32 %v9911_v56, %v1735_v3  ;;  %v1828_v38 = vmul.f32 1.442695, %v1766_v52 }
 0x567   : > { %v1804_v8 = vmul.f32 1.442695, %v1754_v44  ;;  %v1762_v44 = vsub.f32 %v9895_v12, %v1729_v16  ;;  %v1814_v23 = vmul.f32 1.442695, %v1759_v48  ;;  %v1816_v60 = vmul.f32 1.442695, %v1760_v28 }
 0x568   : > { %v1822_v12 = vmul.f32 1.442695, %v1763_v37  ;;  %v1826_v57 = vmul.f32 1.442695, %v1765_v24 }
 0x569   : > { %7648 = vpow2.f32 %v1804_v8  ;;  %v1820_v41 = vmul.f32 1.442695, %v1762_v44  ;;  %v1830_v8 = vmul.f32 1.442695, %v1767_v35 }
 0x56a   : > { %7650 = vpow2.f32 %v1806_v32  ;;  %v10145_v21 = vpop.eup %7646  ;;  %v1853_v32 = vadd.f32 %v10138_v10, %v10135_v63 }
 0x56b   : > { %7652 = vpow2.f32 %v1808_v50  ;;  %v1856_v56 = vadd.f32 %v10145_v21, %v10141_v27 }
 0x56c   : > { %7654 = vpow2.f32 %v1810_v7 }
 0x56d   : > { %7656 = vpow2.f32 %v1812_v11 }
 0x56e   : > { %7658 = vpow2.f32 %v1814_v23 }
 0x56f   : > { %7660 = vpow2.f32 %v1816_v60 }
 0x570   : > { %7662 = vpow2.f32 %v1818_v19 }
 0x571   : > { %7664 = vpow2.f32 %v1820_v41 }
 0x572   : > { %7666 = vpow2.f32 %v1822_v12 }
 0x573   : > { %v10147_v22 = vpop.eup %7648  ;;  %7668 = vpow2.f32 %v1824_v29 }
 0x574   : > { %v10149_v45 = vpop.eup %7650  ;;  %7670 = vpow2.f32 %v1826_v57 }
 0x575   : > { %v10151_v20 = vpop.eup %7652  ;;  %7672 = vpow2.f32 %v1828_v38  ;;  %v1859_v15 = vadd.f32 %v10149_v45, %v10147_v22 }
 0x576   : > { %v10157_v48 = vpop.eup %7654  ;;  %7674 = vpow2.f32 %v1830_v8 }
 0x577   : > { %v10159_v16 = vpop.eup %7656  ;;  %v1862_v7 = vadd.f32 %v10157_v48, %v10151_v20 }
 0x578   : > { %v10161_v50 = vpop.eup %7658 }
 0x579   : > { %v10163_v28 = vpop.eup %7660  ;;  %v1865_v60 = vadd.f32 %v10161_v50, %v10159_v16 }
 0x57a   : > { %v10169_v36 = vpop.eup %7662 }
 0x57b   : > { %v10171_v11 = vpop.eup %7664  ;;  %v1868_v37 = vadd.f32 %v10169_v36, %v10163_v28 }
 0x57c   : > { %v10173_v44 = vpop.eup %7666 }
 0x57d   : > { %v10175_v23 = vpop.eup %7668  ;;  %v1871_v3 = vadd.f32 %v10173_v44, %v10171_v11 }
 0x57e   : > { %v10181_v58 = vpop.eup %7670 }
 0x57f   : > { %v10183_v19 = vpop.eup %7672  ;;  %v1874_v24 = vadd.f32 %v10181_v58, %v10175_v23 }
 0x580   : > { %1851 = vadd.xlane.f32.xlu1 %v1850_v1  ;;  %v10189_v41 = vpop.eup %7674 }
 0x581   : > { %v1877_v12 = vadd.f32 %v10189_v41, %v10183_v19 }
 0x584   : > { %1857 = vadd.xlane.f32.xlu1 %v1856_v56  ;;  %1854 = vadd.xlane.f32.xlu0 %v1853_v32 }
 0x588   : > { %1863 = vadd.xlane.f32.xlu1 %v1862_v7  ;;  %1860 = vadd.xlane.f32.xlu0 %v1859_v15 }
 0x58c   : > { %1869 = vadd.xlane.f32.xlu1 %v1868_v37  ;;  %1866 = vadd.xlane.f32.xlu0 %v1865_v60 }
 0x590   : > { %1875 = vadd.xlane.f32.xlu1 %v1874_v24  ;;  %1872 = vadd.xlane.f32.xlu0 %v1871_v3 }
 0x594   : > { %1878 = vadd.xlane.f32.xlu0 %v1877_v12 }
 0x59a   : > { %v2308_v29 = vpop.xlane.xlu1 %2307 }
 0x59b   : > { %v2354_v52 = vsub.f32 %v9945_v5, %v2308_v29  ;;  %v2355_v57 = vsub.f32 %v9947_v34, %v2308_v29 }
 0x59c   : > { %v2311_v35 = vpop.xlane.xlu0 %2310 }
 0x59d   : > { %v2386_v1 = vmul.f32 1.442695, %v2354_v52  ;;  %v2388_v38 = vmul.f32 1.442695, %v2355_v57  ;;  %v2356_v8 = vsub.f32 %v9949_v49, %v2311_v35  ;;  %v2357_v56 = vsub.f32 %v9955_v62, %v2311_v35 }
 0x59f   : > { %7676 = vpow2.f32 %v2386_v1  ;;  %v2390_v32 = vmul.f32 1.442695, %v2356_v8  ;;  %v2392_v7 = vmul.f32 1.442695, %v2357_v56 }
 0x5a0   : > { %7678 = vpow2.f32 %v2388_v38 }
 0x5a1   : > { %7680 = vpow2.f32 %v2390_v32 }
 0x5a2   : > { %7682 = vpow2.f32 %v2392_v7  ;;  %v2314_v15 = vpop.xlane.xlu1 %2313 }
 0x5a3   : > { %v2358_v37 = vsub.f32 %v9961_v47, %v2314_v15  ;;  %v2359_v5 = vsub.f32 %v9965_v9, %v2314_v15 }
 0x5a4   : > { %v2317_v60 = vpop.xlane.xlu0 %2316 }
 0x5a5   : > { %v2394_v34 = vmul.f32 1.442695, %v2358_v37  ;;  %v2396_v24 = vmul.f32 1.442695, %v2359_v5  ;;  %v2360_v3 = vsub.f32 %v9967_v61, %v2317_v60  ;;  %v2361_v49 = vsub.f32 %v9973_v14, %v2317_v60 }
 0x5a7   : > { %7684 = vpow2.f32 %v2394_v34  ;;  %v2398_v62 = vmul.f32 1.442695, %v2360_v3  ;;  %v2400_v12 = vmul.f32 1.442695, %v2361_v49 }
 0x5a8   : > { %7686 = vpow2.f32 %v2396_v24 }
 0x5a9   : > { %v10201_v29 = vpop.eup %7676  ;;  %7688 = vpow2.f32 %v2398_v62 }
 0x5aa   : > { %v10203_v52 = vpop.eup %7678  ;;  %7690 = vpow2.f32 %v2400_v12  ;;  %v2320_v47 = vpop.xlane.xlu1 %2319 }
 0x5ab   : > { %v10205_v57 = vpop.eup %7680  ;;  %v2362_v9 = vsub.f32 %v9979_v25, %v2320_v47  ;;  %v2363_v35 = vsub.f32 %v9983_v42, %v2320_v47  ;;  %v2450_v61 = vadd.f32 %v10203_v52, %v10201_v29 }
 0x5ac   : > { %v10211_v14 = vpop.eup %7682  ;;  %v2323_v1 = vpop.xlane.xlu0 %2322 }
 0x5ad   : > { %v2402_v38 = vmul.f32 1.442695, %v2362_v9  ;;  %v2404_v8 = vmul.f32 1.442695, %v2363_v35  ;;  %2451 = vadd.xlane.f32.xlu0 %v2450_v61  ;;  %v2364_v56 = vsub.f32 %v9985_v59, %v2323_v1  ;;  %v2365_v32 = vsub.f32 %v9989_v55, %v2323_v1 }
 0x5ae   : > { %v2453_v7 = vadd.f32 %v10211_v14, %v10205_v57 }
 0x5af   : > { %7692 = vpow2.f32 %v2402_v38  ;;  %v2406_v25 = vmul.f32 1.442695, %v2364_v56  ;;  %v2408_v15 = vmul.f32 1.442695, %v2365_v32 }
 0x5b0   : > { %7694 = vpow2.f32 %v2404_v8  ;;  %2454 = vadd.xlane.f32.xlu1 %v2453_v7 }
 0x5b1   : > { %v10217_v42 = vpop.eup %7684  ;;  %7696 = vpow2.f32 %v2406_v25 }
 0x5b2   : > { %v10219_v37 = vpop.eup %7686  ;;  %7698 = vpow2.f32 %v2408_v15  ;;  %v2326_v5 = vpop.xlane.xlu1 %2325 }
 0x5b3   : > { %v10221_v60 = vpop.eup %7688  ;;  %v2366_v59 = vsub.f32 %v9997_v53, %v2326_v5  ;;  %v2367_v55 = vsub.f32 %v9999_v13, %v2326_v5  ;;  %v2456_v34 = vadd.f32 %v10219_v37, %v10217_v42 }
 0x5b4   : > { %v10227_v24 = vpop.eup %7690  ;;  %v2329_v3 = vpop.xlane.xlu0 %2328 }
 0x5b5   : > { %v2410_v49 = vmul.f32 1.442695, %v2366_v59  ;;  %v2412_v62 = vmul.f32 1.442695, %v2367_v55  ;;  %2457 = vadd.xlane.f32.xlu0 %v2456_v34  ;;  %v2368_v12 = vsub.f32 %v10001_v51, %v2329_v3  ;;  %v2369_v47 = vsub.f32 %v10007_v46, %v2329_v3 }
 0x5b6   : > { %v2459_v9 = vadd.f32 %v10227_v24, %v10221_v60 }
 0x5b7   : > { %7700 = vpow2.f32 %v2410_v49  ;;  %v2414_v53 = vmul.f32 1.442695, %v2368_v12  ;;  %v2416_v35 = vmul.f32 1.442695, %v2369_v47 }
 0x5b8   : > { %7702 = vpow2.f32 %v2412_v62  ;;  %2460 = vadd.xlane.f32.xlu1 %v2459_v9 }
 0x5b9   : > { %v10233_v13 = vpop.eup %7692  ;;  %7704 = vpow2.f32 %v2414_v53 }
 0x5ba   : > { %v10235_v61 = vpop.eup %7694  ;;  %7706 = vpow2.f32 %v2416_v35 }
 0x5bb   : > { %v10237_v1 = vpop.eup %7696  ;;  %v2332_v38 = vpop.xlane.xlu1 %2331  ;;  %v2462_v51 = vadd.f32 %v10235_v61, %v10233_v13 }
 0x5bc   : > { %v10241_v46 = vpop.eup %7698  ;;  %v2370_v8 = vsub.f32 %v10015_v40, %v2332_v38  ;;  %v2371_v56 = vsub.f32 %v10017_v43, %v2332_v38  ;;  %v2335_v32 = vpop.xlane.xlu0 %2334 }
 0x5bd   : > { %2463 = vadd.xlane.f32.xlu0 %v2462_v51  ;;  %v2372_v7 = vsub.f32 %v10021_v18, %v2335_v32  ;;  %v2373_v25 = vsub.f32 %v10023_v26, %v2335_v32  ;;  %v2465_v15 = vadd.f32 %v10241_v46, %v10237_v1  ;;  %v12422_v26 = vld [vmem:[#allocation118_spill] sm:$0xff]  ;;  %v12423_v51 = vld [vmem:[#allocation119_spill] sm:$0xff] }
 0x5be   : > { %v2418_v5 = vmul.f32 1.442695, %v2370_v8  ;;  %v2420_v59 = vmul.f32 1.442695, %v2371_v56 }
 0x5bf   : > { %v2422_v55 = vmul.f32 1.442695, %v2372_v7  ;;  %v2424_v34 = vmul.f32 1.442695, %v2373_v25  ;;  %2466 = vadd.xlane.f32.xlu1 %v2465_v15 }
 0x5c0   : > { %7708 = vpow2.f32 %v2418_v5 }
 0x5c1   : > { %v10249_v3 = vpop.eup %7700  ;;  %7710 = vpow2.f32 %v2420_v59 }
 0x5c2   : > { %v10251_v40 = vpop.eup %7702  ;;  %7712 = vpow2.f32 %v2422_v55  ;;  %v2338_v43 = vpop.xlane.xlu1 %2337 }
 0x5c3   : > { %v10253_v49 = vpop.eup %7704  ;;  %7714 = vpow2.f32 %v2424_v34  ;;  %v2374_v18 = vsub.f32 %v10031_v0, %v2338_v43  ;;  %v2375_v62 = vsub.f32 %v12422_v26, %v2338_v43  ;;  %v2468_v12 = vadd.f32 %v10251_v40, %v10249_v3 }
 0x5c4   : > { %v10259_v47 = vpop.eup %7706  ;;  %v2341_v9 = vpop.xlane.xlu0 %2340 }
 0x5c5   : > { %v2426_v53 = vmul.f32 1.442695, %v2374_v18  ;;  %v2428_v35 = vmul.f32 1.442695, %v2375_v62  ;;  %2469 = vadd.xlane.f32.xlu0 %v2468_v12  ;;  %v2376_v38 = vsub.f32 %v10035_v54, %v2341_v9  ;;  %v2377_v8 = vsub.f32 %v12423_v51, %v2341_v9 }
 0x5c6   : > { %v2471_v56 = vadd.f32 %v10259_v47, %v10253_v49 }
 0x5c7   : > { %7716 = vpow2.f32 %v2426_v53  ;;  %v2430_v0 = vmul.f32 1.442695, %v2376_v38  ;;  %v2432_v32 = vmul.f32 1.442695, %v2377_v8 }
 0x5c8   : > { %7718 = vpow2.f32 %v2428_v35  ;;  %v1834_v7 = vpop.xlane.xlu1 %1833  ;;  %2472 = vadd.xlane.f32.xlu1 %v2471_v56 }
 0x5c9   : > { %7720 = vpow2.f32 %v2430_v0 }
 0x5ca   : > { %v10265_v25 = vpop.eup %7708  ;;  %7722 = vpow2.f32 %v2432_v32 }
 0x5cb   : > { %v10267_v15 = vpop.eup %7710  ;;  %7724 = vrcp.f32 %v1834_v7  ;;  %v1837_v5 = vpop.xlane.xlu0 %1836 }
 0x5cc   : > { %v10269_v54 = vpop.eup %7712  ;;  %7726 = vrcp.f32 %v1837_v5  ;;  %v2344_v59 = vpop.xlane.xlu1 %2343  ;;  %v2474_v55 = vadd.f32 %v10267_v15, %v10265_v25 }
 0x5cd   : > { %v10273_v34 = vpop.eup %7714  ;;  %v2378_v43 = vsub.f32 %v10053_v6, %v2344_v59  ;;  %v2379_v18 = vsub.f32 %v10059_v31, %v2344_v59  ;;  %v12426_v59 = vld [vmem:[#allocation121_spill] sm:$0xff] }
 0x5ce   : > { %2475 = vadd.xlane.f32.xlu0 %v2474_v55  ;;  %v2477_v26 = vadd.f32 %v10273_v34, %v10269_v54 }
 0x5cf   : > { %v2434_v62 = vmul.f32 1.442695, %v2378_v43  ;;  %v2436_v12 = vmul.f32 1.442695, %v2379_v18  ;;  %v10279_v9 = vpop.xlane.xlu0 %2346  ;;  %v12427_v18 = vld [vmem:[#allocation120_spill] sm:$0xff] }
 0x5d0   : > { %v1840_v53 = vpop.xlane.xlu1 %1839  ;;  %2478 = vadd.xlane.f32.xlu1 %v2477_v26 }
 0x5d1   : > { %v10281_v35 = vpop.eup %7716  ;;  %7728 = vpow2.f32 %v2434_v62 }
 0x5d2   : > { %12424 = vst [vmem:[#allocation118_spill] sm:$0xff] %v10281_v35  ;;  %v10283_v38 = vpop.eup %7718  ;;  %7730 = vpow2.f32 %v2436_v12 }
 0x5d3   : > { %12425 = vst [vmem:[#allocation119_spill] sm:$0xff] %v10283_v38  ;;  %v10285_v51 = vpop.eup %7720  ;;  %v2480_v6 = vadd.f32 %v10283_v38, %v10281_v35  ;;  %7732 = vrcp.f32 %v1840_v53 }
 0x5d4   : > { %v10289_v31 = vpop.eup %7722  ;;  %v10291_v8 = vpop.xlane.xlu1 %2349 }
 0x5d5   : > { %v1843_v56 = vpop.xlane.xlu0 %1842  ;;  %v7725_v0 = vpop.eup %7724  ;;  %2481 = vadd.xlane.f32.xlu0 %v2480_v6  ;;  %v2483_v32 = vadd.f32 %v10289_v31, %v10285_v51 }
 0x5d6   : > { %v7727_v7 = vpop.eup %7726  ;;  %7734 = vrcp.f32 %v1843_v56  ;;  %v1897_v55 = vmul.f32 %v7725_v0, %v12426_v59  ;;  %v1896_v26 = vmul.f32 %v7725_v0, %v12427_v18  ;;  %v12433_v18 = vld [vmem:[#allocation127_spill] sm:$0xff] }
 0x5d7   : > { %v1898_v5 = vmul.f32 %v7727_v7, %v10049_v2  ;;  %2484 = vadd.xlane.f32.xlu1 %v2483_v32  ;;  %v1899_v43 = vmul.f32 %v7727_v7, %v10057_v4  ;;  %v12429_v2 = vld [vmem:[#allocation94_spill] sm:$0xff]  ;;  %v12430_v7 = vld [vmem:[#allocation93_spill] sm:$0xff] }
 0x5d8   : > { %v1846_v53 = vpop.xlane.xlu1 %1845 }
 0x5d9   : > { %v2353_v62 = vpop.xlane.xlu0 %2352  ;;  %v1929_v12 = vpack.c.bf16 %v1899_v43, %v1897_v55  ;;  %v1928_v35 = vpack.c.bf16 %v1898_v5, %v1896_v26  ;;  %7736 = vrcp.f32 %v1846_v53  ;;  %v12431_v5 = vld [vmem:[#allocation95_spill] sm:$0xff] }
 0x5db   : > { %v10299_v38 = vpop.eup %7728  ;;  %1976 = vmatprep.mubr.bf16.mxu0 %v1929_v12  ;;  %v12434_v12 = vld [vmem:[#allocation96_spill] sm:$0xff] }
 0x5dc   : > { %12428 = vst [vmem:[#allocation121_spill] sm:$0xff] %v10299_v38  ;;  %v10301_v6 = vpop.eup %7730  ;;  %1977 = vmatmul.mubr.bf16.vlgmr.msra.gmra.mrb[32].mxu0 %v1928_v35  ;;  %v12432_v35 = vld [vmem:[#allocation124_spill] sm:$0xff] }
 0x5dd   : > { %v1849_v56 = vpop.xlane.xlu0 %1848  ;;  %6617 = vmatpush3.bf16.msra.mxu0 %v12429_v2  ;;  %v2486_v32 = vadd.f32 %v10301_v6, %v10299_v38  ;;  %v7733_v4 = vpop.eup %7732  ;;  %v12435_v38 = vld [vmem:[#allocation97_spill] sm:$0xff] }
 0x5de   : > { %6618 = vmatprep.subr.bf16.mxu0 %v12430_v7  ;;  %7738 = vrcp.f32 %v1849_v56  ;;  %v1901_v59 = vmul.f32 %v7733_v4, %v10075_v39  ;;  %v1900_v43 = vmul.f32 %v7733_v4, %v12432_v35  ;;  %v12436_v56 = vld [vmem:[#allocation98_spill] sm:$0xff]  ;;  %v12437_v7 = vld [vmem:[#allocation89_spill] sm:$0xff]  ;;  %v12439_v4 = vld [vmem:[#allocation100_spill] sm:$0xff] }
 0x5df   : > { %2487 = vadd.xlane.f32.xlu0 %v2486_v32  ;;  %v12441_v35 = vld [vmem:[#allocation133_spill] sm:$0xff] }
 0x5e0   : > { %v7735_v0 = vpop.eup %7734 }
 0x5e1   : > { %6619 = vmatpush3.bf16.msra.mxu0 %v12431_v5  ;;  %v1903_v55 = vmul.f32 %v7735_v0, %v10087_v30  ;;  %v1902_v26 = vmul.f32 %v7735_v0, %v12433_v18  ;;  %v12438_v30 = vld [vmem:[#allocation99_spill] sm:$0xff] }
 0x5e2   : > { %6620 = vmatprep.subr.bf16.mxu0 %v12434_v12  ;;  %v12440_v0 = vld [vmem:[#allocation131_spill] sm:$0xff] }
 0x5e3   : > { %v1931_v53 = vpack.c.bf16 %v1903_v55, %v1901_v59  ;;  %v1930_v2 = vpack.c.bf16 %v1902_v26, %v1900_v43  ;;  %v7737_v32 = vpop.eup %7736  ;;  %v12442_v55 = vld [vmem:[#allocation130_spill] sm:$0xff] }
 0x5e4   : > { %v1905_v5 = vmul.f32 %v7737_v32, %v12440_v0  ;;  %v1904_v43 = vmul.f32 %v7737_v32, %v12442_v55  ;;  %v12450_v55 = vld [vmem:[#allocation105_spill] sm:$0xff] }
 0x5e5   : > { %6621 = vmatpush3.bf16.msra.mxu0 %v12435_v38  ;;  %1984 = vmatprep.mubr.bf16.mxu0 %v1931_v53  ;;  %v12443_v38 = vld [vmem:[#allocation132_spill] sm:$0xff]  ;;  %v12444_v53 = vld [vmem:[#allocation101_spill] sm:$0xff] }
 0x5e6   : > { %6622 = vmatprep.subr.bf16.mxu0 %v12436_v56  ;;  %1985 = vmatmul.mubr.bf16.gmra.mrb[36].mxu0 %v1930_v2  ;;  %v12445_v2 = vld [vmem:[#allocation102_spill] sm:$0xff]  ;;  %v12446_v56 = vld [vmem:[#allocation103_spill] sm:$0xff] }
 0x5e8   : > { %3041 = vrot.lane.b32.xlu1 %v12437_v7, %s8712_s20  ;;  %v7739_v39 = vpop.eup %7738 }
 0x5e9   : > { %6623 = vmatpush3.bf16.msra.mxu0 %v12438_v30  ;;  %v1907_v59 = vmul.f32 %v7739_v39, %v12441_v35  ;;  %v1906_v18 = vmul.f32 %v7739_v39, %v12443_v38  ;;  %v12447_v30 = vld [vmem:[#allocation104_spill] sm:$0xff]  ;;  %v12449_v35 = vld [vmem:[#allocation123_spill] sm:$0xff]  ;;  %v12451_v39 = vld [vmem:[#allocation73_spill] sm:$0xff] }
 0x5ea   : > { %6624 = vmatprep.subr.bf16.mxu0 %v12439_v4  ;;  %v12448_v4 = vld [vmem:[#allocation122_spill] sm:$0xff]  ;;  %v2381_v32 = vsub.f32 %v12449_v35, %v10279_v9 }
 0x5eb   : > { %v1933_v26 = vpack.c.bf16 %v1907_v59, %v1905_v5  ;;  %v1932_v12 = vpack.c.bf16 %v1906_v18, %v1904_v43  ;;  %v2380_v0 = vsub.f32 %v12448_v4, %v10279_v9  ;;  %v12452_v5 = vld [vmem:[#allocation116_spill] sm:$0xff]  ;;  %v12457_v9 = vld [vmem:[#allocation125_spill] sm:$0xff]  ;;  %v12458_v4 = vld [vmem:[#allocation126_spill] sm:$0xff] }
 0x5ec   : > { %v12453_v43 = vld [vmem:[#allocation128_spill] sm:$0xff]  ;;  %v2440_v18 = vmul.f32 1.442695, %v2381_v32  ;;  %v2383_v35 = vsub.f32 %v12458_v4, %v10291_v8 }
 0x5ed   : > { %6625 = vmatpush3.bf16.msra.mxu0 %v12444_v53  ;;  %1992 = vmatprep.mubr.bf16.mxu0 %v1933_v26  ;;  %v2438_v59 = vmul.f32 1.442695, %v2380_v0  ;;  %v2384_v38 = vsub.f32 %v12453_v43, %v2353_v62  ;;  %v12454_v26 = vld [vmem:[#allocation129_spill] sm:$0xff]  ;;  %v12455_v53 = vld [vmem:[#allocation107_spill] sm:$0xff] }
 0x5ee   : > { %6626 = vmatprep.subr.bf16.mxu0 %v12445_v2  ;;  %1993 = vmatmul.mubr.bf16.gmra.mrb[40].mxu0 %v1932_v12  ;;  %v2385_v12 = vsub.f32 %v12454_v26, %v2353_v62  ;;  %v12456_v2 = vld [vmem:[#allocation109_spill] sm:$0xff]  ;;  %v2444_v32 = vmul.f32 1.442695, %v2383_v35 }
 0x5ef   : > { %7740 = vpow2.f32 %v2438_v59  ;;  %v10348_v59 = vpop.permute.xlu1 %3039 }
 0x5f0   : > { %7742 = vpow2.f32 %v2440_v18  ;;  %v2448_v0 = vmul.f32 1.442695, %v2385_v12 }
 0x5f1   : > { %6627 = vmatpush3.bf16.msra.mxu0 %v12446_v56  ;;  %v2382_v56 = vsub.f32 %v12457_v9, %v10291_v8  ;;  %v10356_v8 = vpop.permute.xlu0 %3023 }
 0x5f2   : > { %6628 = vmatprep.subr.bf16.mxu0 %v12447_v30  ;;  %v2446_v30 = vmul.f32 1.442695, %v2384_v38 }
 0x5f4   : > { %7744 = vpow2.f32 %v2446_v30 }
 0x5f5   : > { %6629 = vmatpush3.bf16.msra.mxu0 %v12450_v55  ;;  %3025 = vrot.lane.b32.xlu0 %v12451_v39, %s8712_s20  ;;  %v2442_v55 = vmul.f32 1.442695, %v2382_v56  ;;  %7746 = vpow2.f32 %v2448_v0 }
 0x5f6   : > { %6630 = vmatprep.subr.bf16.mxu0 %v12452_v5 }
 0x5f7   : > { %7748 = vpow2.f32 %v2442_v55 }
 0x5f8   : > { %7750 = vpow2.f32 %v2444_v32 }
 0x5f9   : > { %6631 = vmatpush3.bf16.msra.mxu0 %v12455_v53  ;;  %v10344_v62 = vpop.eup %7740 }
 0x5fa   : > { %7216 = vmatprep.subr.msk.bf16.mxu0 %vm1502_vm0, %v12456_v2  ;;  %v10346_v5 = vpop.eup %7742 }
 0x5fb   : > { %v2489_v38 = vadd.f32 %v10346_v5, %v10344_v62 }
 0x5fe   : > { %v10350_v43 = vpop.eup %7744 }
 0x5ff   : > { %12459 = vst [vmem:[#allocation120_spill] sm:$0xff] %v10350_v43  ;;  %v10354_v18 = vpop.eup %7746 }
 0x600   : > { %12460 = vst [vmem:[#allocation94_spill] sm:$0xff] %v10354_v18  ;;  %v2495_v53 = vadd.f32 %v10354_v18, %v10350_v43 }
 0x601   : > { %v10358_v12 = vpop.eup %7748 }
 0x602   : > { %12461 = vst [vmem:[#allocation93_spill] sm:$0xff] %v10358_v12  ;;  %v10362_v2 = vpop.eup %7750 }
 0x603   : > { %12462 = vst [vmem:[#allocation95_spill] sm:$0xff] %v10362_v2  ;;  %v2492_v30 = vadd.f32 %v10362_v2, %v10358_v12 }
 0x60c   : > { %2490 = vadd.xlane.f32.xlu1 %v2489_v38 }
 0x60d   : > { %v1852_v26 = vpop.xlane.xlu1 %1851 }
 0x60e   : > { %7752 = vrcp.f32 %v1852_v26 }
 0x610   : > { %2496 = vadd.xlane.f32.xlu1 %v2495_v53 }
 0x611   : > { %v1858_v9 = vpop.xlane.xlu1 %1857  ;;  %v1855_v56 = vpop.xlane.xlu0 %1854 }
 0x612   : > { %7754 = vrcp.f32 %v1855_v56 }
 0x613   : > { %7756 = vrcp.f32 %v1858_v9 }
 0x614   : > { %2493 = vadd.xlane.f32.xlu0 %v2492_v30 }
 0x615   : > { %v1861_v4 = vpop.xlane.xlu0 %1860  ;;  %v1864_v35 = vpop.xlane.xlu1 %1863 }
 0x616   : > { %7758 = vrcp.f32 %v1861_v4  ;;  %v12463_v4 = vld [vmem:[#allocation91_spill] sm:$0xff] }
 0x617   : > { %7760 = vrcp.f32 %v1864_v35 }
 0x618   : > { %v7753_v55 = vpop.eup %7752 }
 0x619   : > { %v1867_v0 = vpop.xlane.xlu0 %1866  ;;  %v1909_v53 = vmul.f32 %v7753_v55, %v10133_v17  ;;  %v1908_v43 = vmul.f32 %v7753_v55, %v10131_v33  ;;  %v1870_v30 = vpop.xlane.xlu1 %1869 }
 0x61a   : > { %7762 = vrcp.f32 %v1867_v0 }
 0x61c   : > { %v7755_v32 = vpop.eup %7754 }
 0x61d   : > { %v1873_v38 = vpop.xlane.xlu0 %1872  ;;  %v1911_v26 = vmul.f32 %v7755_v32, %v10138_v10  ;;  %v1910_v12 = vmul.f32 %v7755_v32, %v10135_v63  ;;  %v7757_v56 = vpop.eup %7756  ;;  %v12464_v63 = vld [vmem:[#allocation52_spill] sm:$0xff] }
 0x61e   : > { %7764 = vrcp.f32 %v1873_v38  ;;  %v1913_v35 = vmul.f32 %v7757_v56, %v10145_v21  ;;  %v1912_v32 = vmul.f32 %v7757_v56, %v10141_v27  ;;  %v1876_v38 = vpop.xlane.xlu1 %1875 }
 0x61f   : > { %v1935_v9 = vpack.c.bf16 %v1911_v26, %v1909_v53  ;;  %v1934_v18 = vpack.c.bf16 %v1910_v12, %v1908_v43  ;;  %7766 = vrcp.f32 %v1870_v30  ;;  %v12466_v53 = vld [vmem:[#allocation75_spill] sm:$0xff] }
 0x620   : > { %v7759_v2 = vpop.eup %7758 }
 0x621   : > { %3043 = vrot.lane.b32.xlu1 %v12463_v4, %s8712_s20  ;;  %2000 = vmatprep.mubr.bf16.mxu0 %v1935_v9  ;;  %v1915_v17 = vmul.f32 %v7759_v2, %v10149_v45  ;;  %v7761_v10 = vpop.eup %7760  ;;  %v1914_v43 = vmul.f32 %v7759_v2, %v10147_v22  ;;  %v1879_v12 = vpop.xlane.xlu0 %1878  ;;  %v12465_v45 = vld [vmem:[#allocation54_spill] sm:$0xff] }
 0x622   : > { %2001 = vmatmul.mubr.bf16.gmra.mrb[44].mxu0 %v1934_v18  ;;  %v1917_v21 = vmul.f32 %v7761_v10, %v10157_v48  ;;  %7768 = vrcp.f32 %v1879_v12  ;;  %v12468_v48 = vld [vmem:[#allocation53_spill] sm:$0xff]  ;;  %v1916_v56 = vmul.f32 %v7761_v10, %v10151_v20 }
 0x623   : > { %v1937_v33 = vpack.c.bf16 %v1915_v17, %v1913_v35  ;;  %v1936_v18 = vpack.c.bf16 %v1914_v43, %v1912_v32  ;;  %7770 = vrcp.f32 %v1876_v38  ;;  %v12469_v35 = vld [vmem:[#allocation59_spill] sm:$0xff] }
 0x624   : > { %v7763_v0 = vpop.eup %7762  ;;  %v12473_v32 = vld [vmem:[#allocation79_spill] sm:$0xff] }
 0x625   : > { %2999 = vrot.lane.b32.xlu1 %v12464_v63, %s8712_s20  ;;  %2008 = vmatprep.mubr.bf16.mxu0 %v1937_v33  ;;  %v1919_v55 = vmul.f32 %v7763_v0, %v10161_v50  ;;  %v12467_v50 = vld [vmem:[#allocation57_spill] sm:$0xff]  ;;  %v1918_v27 = vmul.f32 %v7763_v0, %v10159_v16  ;;  %v12470_v33 = vld [vmem:[#allocation55_spill] sm:$0xff] }
 0x626   : > { %v12471_v0 = vld [vmem:[#allocation77_spill] sm:$0xff] }
 0x627   : > { %v1939_v26 = vpack.c.bf16 %v1919_v55, %v1917_v21  ;;  %v1938_v17 = vpack.c.bf16 %v1918_v27, %v1916_v56  ;;  %v12474_v21 = vld [vmem:[#allocation60_spill] sm:$0xff] }
 0x628   : > { %v7765_v30 = vpop.eup %7764 }
 0x629   : > { %3003 = vrot.lane.b32.xlu1 %v12465_v45, %s8712_s20  ;;  %v7767_v22 = vpop.eup %7766  ;;  %v1923_v2 = vmul.f32 %v7765_v30, %v10173_v44  ;;  %v1922_v20 = vmul.f32 %v7765_v30, %v10171_v11  ;;  %v12475_v30 = vld [vmem:[#allocation81_spill] sm:$0xff] }
 0x62a   : > { %3027 = vrot.lane.b32.xlu0 %v12466_v53, %s8712_s20  ;;  %2009 = vmatmul.mubr.bf16.gmra.mrb[48].mxu0 %v1936_v18  ;;  %v1921_v9 = vmul.f32 %v7767_v22, %v10169_v36  ;;  %v12472_v36 = vld [vmem:[#allocation58_spill] sm:$0xff]  ;;  %v1920_v10 = vmul.f32 %v7767_v22, %v10163_v28  ;;  %v12477_v22 = vld [vmem:[#allocation83_spill] sm:$0xff] }
 0x62b   : > { %2016 = vmatprep.mubr.bf16.mxu0 %v1939_v26 }
 0x62c   : > { %v1941_v43 = vpack.c.bf16 %v1923_v2, %v1921_v9  ;;  %v7769_v12 = vpop.eup %7768  ;;  %v1940_v38 = vpack.c.bf16 %v1922_v20, %v1920_v10  ;;  %v12478_v2 = vld [vmem:[#allocation63_spill] sm:$0xff] }
 0x62d   : > { %3007 = vrot.lane.b32.xlu1 %v12467_v50, %s8712_s20  ;;  %v7771_v16 = vpop.eup %7770  ;;  %v1927_v44 = vmul.f32 %v7769_v12, %v10189_v41  ;;  %v1926_v28 = vmul.f32 %v7769_v12, %v10183_v19  ;;  %v12482_v10 = vld [vmem:[#allocation67_spill] sm:$0xff] }
 0x62e   : > { %2997 = vrot.lane.b32.xlu0 %v12468_v48, %s8712_s20  ;;  %v1925_v55 = vmul.f32 %v7771_v16, %v10181_v58  ;;  %v12476_v58 = vld [vmem:[#allocation61_spill] sm:$0xff]  ;;  %v1924_v41 = vmul.f32 %v7771_v16, %v10175_v23 }
 0x630   : > { %v1943_v18 = vpack.c.bf16 %v1927_v44, %v1925_v55  ;;  %v1942_v27 = vpack.c.bf16 %v1926_v28, %v1924_v41  ;;  %v12486_v41 = vld [vmem:[#allocation71_spill] sm:$0xff] }
 0x631   : > { %3011 = vrot.lane.b32.xlu1 %v12469_v35, %s8712_s20 }
 0x632   : > { %3001 = vrot.lane.b32.xlu0 %v12470_v33, %s8712_s20  ;;  %2017 = vmatmul.mubr.bf16.gmra.mrb[52].mxu0 %v1938_v17  ;;  %v12479_v17 = vld [vmem:[#allocation85_spill] sm:$0xff] }
 0x633   : > { %2024 = vmatprep.mubr.bf16.mxu0 %v1941_v43  ;;  %v12480_v43 = vld [vmem:[#allocation65_spill] sm:$0xff] }
 0x635   : > { %3820 = vrot.lane.b32.xlu1 %v12471_v0, %s8713_s2  ;;  %v12481_v0 = vld [vmem:[#allocation87_spill] sm:$0xff] }
 0x636   : > { %3005 = vrot.lane.b32.xlu0 %v12472_v36, %s8712_s20 }
 0x639   : > { %3822 = vrot.lane.b32.xlu1 %v12473_v32, %s8713_s2 }
 0x63a   : > { %3009 = vrot.lane.b32.xlu0 %v12474_v21, %s8712_s20  ;;  %v2452_v26 = vpop.xlane.xlu0 %2451  ;;  %2025 = vmatmul.mubr.bf16.gmra.mrb[56].mxu0 %v1940_v38 }
 0x63b   : > { %2032 = vmatprep.mubr.bf16.mxu0 %v1943_v18  ;;  %7772 = vrcp.f32 %v2452_v26 }
 0x63d   : > { %v2455_v11 = vpop.xlane.xlu1 %2454  ;;  %3824 = vrot.lane.b32.xlu1 %v12475_v30, %s8713_s2 }
 0x63e   : > { %3804 = vrot.lane.b32.xlu0 %v12476_v58, %s8713_s2  ;;  %7774 = vrcp.f32 %v2455_v11  ;;  %v12485_v11 = vld [vmem:[#allocation111_spill] sm:$0xff] }
 0x641   : > { %3826 = vrot.lane.b32.xlu1 %v12477_v22, %s8713_s2 }
 0x642   : > { %3806 = vrot.lane.b32.xlu0 %v12478_v2, %s8713_s2  ;;  %v2458_v56 = vpop.xlane.xlu0 %2457  ;;  %2033 = vmatmul.mubr.bf16.gmra.mrb[60].mxu0 %v1942_v27 }
 0x643   : > { %7776 = vrcp.f32 %v2458_v56 }
 0x645   : > { %v2461_v9 = vpop.xlane.xlu1 %2460  ;;  %3828 = vrot.lane.b32.xlu1 %v12479_v17, %s8713_s2  ;;  %v7773_v19 = vpop.eup %7772 }
 0x646   : > { %3808 = vrot.lane.b32.xlu0 %v12480_v43, %s8713_s2  ;;  %7778 = vrcp.f32 %v2461_v9  ;;  %v2514_v12 = vmul.f32 %v7773_v19, %v10201_v29  ;;  %v2515_v20 = vmul.f32 %v7773_v19, %v10203_v52  ;;  %v12484_v52 = vld [vmem:[#allocation69_spill] sm:$0xff] }
 0x648   : > { %v7775_v23 = vpop.eup %7774 }
 0x649   : > { %v2516_v16 = vmul.f32 %v7775_v23, %v10205_v57  ;;  %3830 = vrot.lane.b32.xlu1 %v12481_v0, %s8713_s2  ;;  %v2517_v44 = vmul.f32 %v7775_v23, %v10211_v14  ;;  %v12483_v57 = vld [vmem:[#allocation106_spill] sm:$0xff] }
 0x64a   : > { %3810 = vrot.lane.b32.xlu0 %v12482_v10, %s8713_s2  ;;  %v2464_v55 = vpop.xlane.xlu0 %2463  ;;  %v3070_v26 = vsel %vm1502_vm0, %v12483_v57, 0 }
 0x64b   : > { %7780 = vrcp.f32 %v2464_v55  ;;  %v2547_v32 = vpack.c.bf16 %v2517_v44, %v2515_v20  ;;  %v2546_v38 = vpack.c.bf16 %v2516_v16, %v2514_v12 }
 0x64c   : > { %v2467_v18 = vpop.xlane.xlu1 %2466 }
 0x64d   : > { %7782 = vrcp.f32 %v2467_v18  ;;  %2658 = vmatprep.mubr.bf16.mxu0 %v2547_v32  ;;  %3832 = vrot.lane.b32.xlu1 %v12437_v7, %s8713_s2  ;;  %v7777_v29 = vpop.eup %7776  ;;  %v12492_v32 = vld [vmem:[#allocation62_spill] sm:$0xff] }
 0x64e   : > { %3812 = vrot.lane.b32.xlu0 %v12484_v52, %s8713_s2  ;;  %2659 = vmatmul.mubr.bf16.vlgmr.msra.gmra.mrb[64].mxu0 %v2546_v38  ;;  %v2519_v30 = vmul.f32 %v7777_v29, %v10219_v37  ;;  %v2518_v28 = vmul.f32 %v7777_v29, %v10217_v42  ;;  %v12487_v37 = vld [vmem:[#allocation108_spill] sm:$0xff] }
 0x64f   : > { %6701 = vmatpush3.bf16.xpose.msra.mxu0 %v3070_v26  ;;  %v12493_v38 = vld [vmem:[#allocation112_spill] sm:$0xff] }
 0x650   : > { %v7779_v14 = vpop.eup %7778  ;;  %7217 = vmatprep.subr.msk.bf16.mxu0 %vm1502_vm0, %v12485_v11  ;;  %v12496_v11 = vld [vmem:[#allocation68_spill] sm:$0xff] }
 0x651   : > { %3834 = vrot.lane.b32.xlu1 %v12463_v4, %s8713_s2  ;;  %v2521_v7 = vmul.f32 %v7779_v14, %v10227_v24  ;;  %v2520_v58 = vmul.f32 %v7779_v14, %v10221_v60  ;;  %v3073_v24 = vsel %vm1502_vm0, %v12487_v37, 0  ;;  %v12488_v60 = vld [vmem:[#allocation113_spill] sm:$0xff]  ;;  %v12503_v37 = vld [vmem:[#allocation84_spill] sm:$0xff] }
 0x652   : > { %3814 = vrot.lane.b32.xlu0 %v12486_v41, %s8713_s2  ;;  %v2470_v22 = vpop.xlane.xlu0 %2469  ;;  %v12500_v41 = vld [vmem:[#allocation80_spill] sm:$0xff] }
 0x653   : > { %v2549_v27 = vpack.c.bf16 %v2521_v7, %v2519_v30  ;;  %v2548_v2 = vpack.c.bf16 %v2520_v58, %v2518_v28  ;;  %7784 = vrcp.f32 %v2470_v22  ;;  %v12497_v30 = vld [vmem:[#allocation114_spill] sm:$0xff] }
 0x654   : > { %v3082_v7 = vsel %vm1502_vm0, %v12497_v30, 0 }
 0x655   : > { %v7781_v56 = vpop.eup %7780  ;;  %v2473_v9 = vpop.xlane.xlu1 %2472  ;;  %2666 = vmatprep.mubr.bf16.mxu0 %v2549_v27  ;;  %3792 = vrot.lane.b32.xlu1 %v12470_v33, %s8713_s2 }
 0x656   : > { %3816 = vrot.lane.b32.xlu0 %v12451_v39, %s8713_s2  ;;  %7786 = vrcp.f32 %v2473_v9  ;;  %2667 = vmatmul.mubr.bf16.gmra.mrb[68].mxu0 %v2548_v2  ;;  %v2523_v4 = vmul.f32 %v7781_v56, %v10235_v61  ;;  %v2522_v19 = vmul.f32 %v7781_v56, %v10233_v13  ;;  %v3085_v2 = vsel %vm1502_vm0, %v10356_v8, 0  ;;  %v12504_v8 = vld [vmem:[#allocation86_spill] sm:$0xff] }
 0x657   : > { %v7783_v42 = vpop.eup %7782  ;;  %6703 = vmatpush3.bf16.xpose.msra.mxu0 %v3073_v24  ;;  %v12505_v24 = vld [vmem:[#allocation70_spill] sm:$0xff] }
 0x658   : > { %7218 = vmatprep.subr.msk.bf16.mxu0 %vm1502_vm0, %v12488_v60  ;;  %v2525_v17 = vmul.f32 %v7783_v42, %v10241_v46  ;;  %v2524_v33 = vmul.f32 %v7783_v42, %v10237_v1  ;;  %v12489_v46 = vld [vmem:[#allocation110_spill] sm:$0xff]  ;;  %v12506_v42 = vld [vmem:[#allocation88_spill] sm:$0xff] }
 0x659   : > { %3796 = vrot.lane.b32.xlu1 %v12472_v36, %s8713_s2  ;;  %v3076_v13 = vsel %vm1502_vm0, %v12489_v46, 0  ;;  %v12491_v36 = vld [vmem:[#allocation78_spill] sm:$0xff]  ;;  %v12507_v46 = vld [vmem:[#allocation121_spill] sm:$0xff] }
 0x65a   : > { %3818 = vrot.lane.b32.xlu0 %v12466_v53, %s8713_s2  ;;  %v2551_v39 = vpack.c.bf16 %v2525_v17, %v2523_v4  ;;  %v2550_v43 = vpack.c.bf16 %v2524_v33, %v2522_v19  ;;  %v12490_v53 = vld [vmem:[#allocation115_spill] sm:$0xff] }
 0x65b   : > { %v2476_v23 = vpop.xlane.xlu0 %2475 }
 0x65c   : > { %7788 = vrcp.f32 %v2476_v23  ;;  %2674 = vmatprep.mubr.bf16.mxu0 %v2551_v39 }
 0x65d   : > { %v2479_v12 = vpop.xlane.xlu1 %2478  ;;  %3802 = vrot.lane.b32.xlu1 %v12469_v35, %s8713_s2  ;;  %v7785_v61 = vpop.eup %7784 }
 0x65e   : > { %3788 = vrot.lane.b32.xlu0 %v12468_v48, %s8713_s2  ;;  %7790 = vrcp.f32 %v2479_v12  ;;  %2675 = vmatmul.mubr.bf16.gmra.mrb[72].mxu0 %v2550_v43  ;;  %v2527_v16 = vmul.f32 %v7785_v61, %v10251_v40  ;;  %v2526_v0 = vmul.f32 %v7785_v61, %v10249_v3 }
 0x65f   : > { %6705 = vmatpush3.bf16.xpose.msra.mxu0 %v3076_v13 }
 0x660   : > { %v7787_v1 = vpop.eup %7786  ;;  %7219 = vmatprep.subr.msk.bf16.mxu0 %vm1502_vm0, %v12490_v53 }
 0x661   : > { %3502 = vrot.lane.b32.xlu1 %v12491_v36, %s8712_s20  ;;  %v2529_v35 = vmul.f32 %v7787_v1, %v10259_v47  ;;  %v2528_v20 = vmul.f32 %v7787_v1, %v10253_v49  ;;  %v3079_v47 = vsel %vm1502_vm0, %v12493_v38, 0  ;;  %v12494_v49 = vld [vmem:[#allocation117_spill] sm:$0xff]  ;;  %v12509_v38 = vld [vmem:[#allocation94_spill] sm:$0xff] }
 0x662   : > { %3790 = vrot.lane.b32.xlu0 %v12464_v63, %s8713_s2  ;;  %v2482_v48 = vpop.xlane.xlu0 %2481  ;;  %v12495_v63 = vld [vmem:[#allocation66_spill] sm:$0xff] }
 0x663   : > { %7792 = vrcp.f32 %v2482_v48  ;;  %v2553_v44 = vpack.c.bf16 %v2529_v35, %v2527_v16  ;;  %v2552_v10 = vpack.c.bf16 %v2528_v20, %v2526_v0  ;;  %v7524_v0 = vld [vmem:[#allocation13 + $0x10] sm:$0xff]  }
 0x664   : > { %v2485_v55 = vpop.xlane.xlu1 %2484  ;;  %7072 = vmatprep.subr.bf16.mxu1 %v7524_v0 }
 0x665   : > { %7794 = vrcp.f32 %v2485_v55  ;;  %2682 = vmatprep.mubr.bf16.mxu0 %v2553_v44  ;;  %3486 = vrot.lane.b32.xlu1 %v12492_v32, %s8712_s20 }
 0x666   : > { %v7789_v40 = vpop.eup %7788  ;;  %3794 = vrot.lane.b32.xlu0 %v12465_v45, %s8713_s2  ;;  %2683 = vmatmul.mubr.bf16.gmra.mrb[76].mxu0 %v2552_v10 }
 0x667   : > { %6707 = vmatpush3.bf16.xpose.msra.mxu0 %v3079_v47  ;;  %v2531_v18 = vmul.f32 %v7789_v40, %v10267_v15  ;;  %v2530_v57 = vmul.f32 %v7789_v40, %v10265_v25  ;;  %v12498_v15 = vld [vmem:[#allocation119_spill] sm:$0xff]  ;;  %7073 = vmatpush3.bf16.msra.mxu1 %v7524_v0 }
 0x668   : > { %v7791_v3 = vpop.eup %7790  ;;  %7220 = vmatprep.subr.msk.bf16.mxu0 %vm1502_vm0, %v12494_v49  ;;  %v3042_v56 = vpop.permute.xlu1 %3041 }
 0x669   : > { %3490 = vrot.lane.b32.xlu1 %v12495_v63, %s8712_s20  ;;  %v2533_v29 = vmul.f32 %v7791_v3, %v10273_v34  ;;  %v2532_v26 = vmul.f32 %v7791_v3, %v10269_v54  ;;  %v12510_v3 = vld [vmem:[#allocation93_spill] sm:$0xff]  ;;  %v12525_v63 = vld [vmem:[#allocation74_spill] sm:$0xff] }
 0x66a   : > { %3798 = vrot.lane.b32.xlu0 %v12467_v50, %s8713_s2  ;;  %v12499_v50 = vld [vmem:[#allocation118_spill] sm:$0xff] }
 0x66b   : > { %v2555_v45 = vpack.c.bf16 %v2533_v29, %v2531_v18  ;;  %v2554_v52 = vpack.c.bf16 %v2532_v26, %v2530_v57  ;;  %v12511_v18 = vld [vmem:[#allocation120_spill] sm:$0xff] }
 0x66d   : > { %v7793_v14 = vpop.eup %7792  ;;  %2690 = vmatprep.mubr.bf16.mxu0 %v2555_v45  ;;  %3492 = vrot.lane.b32.xlu1 %v12496_v11, %s8712_s20  ;;  %v10540_v45 = vld [vmem:[#allocation13] sm:$0xff]  }
 0x66e   : > { %3800 = vrot.lane.b32.xlu0 %v12474_v21, %s8713_s2  ;;  %2691 = vmatmul.mubr.bf16.gmra.mrb[80].mxu0 %v2554_v52  ;;  %v2535_v54 = vmul.f32 %v7793_v14, %v12498_v15  ;;  %v2534_v28 = vmul.f32 %v7793_v14, %v12499_v50  ;;  %v2488_v21 = vpop.xlane.xlu0 %2487 }
 0x66f   : > { %v7795_v25 = vpop.eup %7794  ;;  %6709 = vmatpush3.bf16.xpose.msra.mxu0 %v3082_v7  ;;  %7796 = vrcp.f32 %v2488_v21 }
 0x670   : > { %7221 = vmatprep.subr.msk.bf16.mxu0 %vm1502_vm0, %v10348_v59  ;;  %v2537_v34 = vmul.f32 %v7795_v25, %v10289_v31  ;;  %v2536_v58 = vmul.f32 %v7795_v25, %v10285_v51  ;;  %v12501_v59 = vld [vmem:[#allocation64_spill] sm:$0xff]  ;;  %v12502_v51 = vld [vmem:[#allocation82_spill] sm:$0xff] }
 0x672   : > { %3504 = vrot.lane.b32.xlu0 %v12500_v41, %s8712_s20  ;;  %v2557_v22 = vpack.c.bf16 %v2537_v34, %v2535_v54  ;;  %v2556_v27 = vpack.c.bf16 %v2536_v58, %v2534_v28  ;;  %v3026_v31 = vpop.permute.xlu0 %3025 }
 0x673   : > { %v3088_v9 = vsel %vm1502_vm0, %v3026_v31, 0 }
 0x674   : > { %2698 = vmatprep.mubr.bf16.mxu0 %v2557_v22 }
 0x676   : > { %3488 = vrot.lane.b32.xlu0 %v12501_v59, %s8712_s20  ;;  %2699 = vmatmul.mubr.bf16.gmra.mrb[84].mxu0 %v2556_v27 }
 0x677   : > { %6711 = vmatpush3.bf16.xpose.msra.mxu0 %v3085_v2 }
 0x678   : > { %7222 = vmatprep.subr.msk.bf16.mxu0 %vm1502_vm0, %v3042_v56 }
 0x679   : > { %v7797_v33 = vpop.eup %7796 }
 0x67a   : > { %3506 = vrot.lane.b32.xlu0 %v12502_v51, %s8712_s20  ;;  %v2539_v12 = vmul.f32 %v7797_v33, %v10301_v6  ;;  %v2538_v13 = vmul.f32 %v7797_v33, %v12507_v46 }
 0x67e   : > { %3508 = vrot.lane.b32.xlu0 %v12503_v37, %s8712_s20 }
 0x67f   : > { %6713 = vmatpush3.bf16.xpose.msra.mxu0 %v3088_v9 }
 0x682   : > { %3510 = vrot.lane.b32.xlu0 %v12504_v8, %s8712_s20 }
 0x686   : > { %3494 = vrot.lane.b32.xlu0 %v12505_v24, %s8712_s20 }
 0x68a   : > { %3512 = vrot.lane.b32.xlu0 %v12506_v42, %s8712_s20 }
 0x699   : > { %v2491_v60 = vpop.xlane.xlu1 %2490 }
 0x69a   : > { %7798 = vrcp.f32 %v2491_v60 }
 0x69d   : > { %v2497_v4 = vpop.xlane.xlu1 %2496 }
 0x69e   : > { %7800 = vrcp.f32 %v2497_v4 }
 0x6a1   : > { %v2494_v17 = vpop.xlane.xlu0 %2493  ;;  %v3044_v19 = vpop.permute.xlu1 %3043 }
 0x6a2   : > { %7802 = vrcp.f32 %v2494_v17  ;;  %7223 = vmatprep.subr.msk.bf16.mxu0 %vm1502_vm0, %v3044_v19 }
 0x6a4   : > { %v7799_v39 = vpop.eup %7798 }
 0x6a5   : > { %v3028_v43 = vpop.permute.xlu0 %3027  ;;  %v10525_v23 = vpop.permute.xlu1 %2999  ;;  %v2541_v61 = vmul.f32 %v7799_v39, %v10346_v5  ;;  %v2540_v1 = vmul.f32 %v7799_v39, %v10344_v62  ;;  %v7525_v5 = vld [vmem:[#allocation13 + $0x18] sm:$0xff]   ;;  %v12508_v62 = vld [vmem:[#allocation95_spill] sm:$0xff] }
 0x6a6   : > { %v3091_v53 = vsel %vm1502_vm0, %v3028_v43, 0  ;;  %7074 = vmatprep.subr.bf16.mxu1 %v7525_v5 }
 0x6a7   : > { %6715 = vmatpush3.bf16.xpose.msra.mxu0 %v3091_v53  ;;  %v2559_v16 = vpack.c.bf16 %v2541_v61, %v2539_v12  ;;  %v2558_v35 = vpack.c.bf16 %v2540_v1, %v2538_v13  ;;  %7075 = vmatpush3.bf16.msra.mxu1 %v7525_v5 }
 0x6a8   : > { %v7801_v44 = vpop.eup %7800  ;;  %7092 = vmatprep.subr.bf16.mxu1 %v10540_v45 }
 0x6a9   : > { %v2998_v20 = vpop.permute.xlu0 %2997  ;;  %v10532_v48 = vpop.permute.xlu1 %3003  ;;  %2706 = vmatprep.mubr.bf16.mxu0 %v2559_v16  ;;  %v2545_v47 = vmul.f32 %v7801_v44, %v12509_v38  ;;  %v2544_v29 = vmul.f32 %v7801_v44, %v12511_v18 }
 0x6aa   : > { %2707 = vmatmul.mubr.bf16.gmra.mrb[88].mxu0 %v2558_v35 }
 0x6ac   : > { %v7803_v6 = vpop.eup %7802 }
 0x6ad   : > { %v3002_v10 = vpop.permute.xlu0 %3001  ;;  %v10534_v55 = vpop.permute.xlu1 %3007  ;;  %v2543_v40 = vmul.f32 %v7803_v6, %v12508_v62  ;;  %v2542_v49 = vmul.f32 %v7803_v6, %v12510_v3 }
 0x6af   : > { %v6536_v57 = vpop.f32.mrb[32].mxu0  ;;  %v2561_v26 = vpack.c.bf16 %v2545_v47, %v2543_v40  ;;  %v2560_v14 = vpack.c.bf16 %v2544_v29, %v2542_v49 }
 0x6b0   : > { %v6537_v52 = vpop.f32.mrb[33].mxu0 }
 0x6b1   : > { %v10542_v30 = vadd.f32 %v6537_v52, %v6536_v57  ;;  %v6539_v7 = vpop.f32.mrb[34].mxu0  ;;  %2714 = vmatprep.mubr.bf16.mxu0 %v2561_v26  ;;  %v3006_v25 = vpop.permute.xlu0 %3005 }
 0x6b2   : > { %v6540_v15 = vpop.f32.mrb[35].mxu0  ;;  %v10545_v54 = vpop.permute.xlu1 %3011  ;;  %2715 = vmatmul.mubr.bf16.gmra.mrb[92].mxu0 %v2560_v14 }
 0x6b3   : > { %v10547_v34 = vadd.f32 %v6540_v15, %v6539_v7  ;;  %6716 = vmatprep.mubr.msk.bf16.mxu0 %vm1502_vm0, %v2998_v20 }
 0x6b5   : > { %v2041_v50 = vpack.c.bf16 %v10547_v34, %v10542_v30  ;;  %v3010_v28 = vpop.permute.xlu0 %3009 }
 0x6b6   : > { %v3821_v58 = vpop.permute.xlu1 %3820 }
 0x6b7   : > { %7224 = vmatprep.subr.msk.bf16.mxu0 %vm1502_vm0, %v3821_v58 }
 0x6b9   : > { %v6542_v22 = vpop.f32.mrb[36].mxu0  ;;  %v3805_v27 = vpop.permute.xlu0 %3804 }
 0x6ba   : > { %v3861_v21 = vsel %vm1502_vm0, %v3805_v27, 0  ;;  %v6543_v2 = vpop.f32.mrb[37].mxu0  ;;  %v3823_v56 = vpop.permute.xlu1 %3822  ;;  %6717 = vmatmul.mubr.msk.bf16.vlgmr.msra.gmra.mrb[96].mxu0 %vm1502_vm0, %v2998_v20 }
 0x6bb   : > { %v10555_v31 = vadd.f32 %v6543_v2, %v6542_v22  ;;  %v6545_v9 = vpop.f32.mrb[38].mxu0  ;;  %6807 = vmatpush3.bf16.xpose.msra.mxu0 %v3861_v21  ;;  %6718 = vmatprep.mubr.msk.bf16.mxu0 %vm1502_vm0, %v10525_v23 }
 0x6bc   : > { %v6546_v60 = vpop.f32.mrb[39].mxu0  ;;  %7225 = vmatprep.subr.msk.bf16.mxu0 %vm1502_vm0, %v3823_v56 }
 0x6bd   : > { %v10560_v4 = vadd.f32 %v6546_v60, %v6545_v9  ;;  %v3807_v19 = vpop.permute.xlu0 %3806 }
 0x6be   : > { %v3864_v33 = vsel %vm1502_vm0, %v3807_v19, 0  ;;  %v3825_v43 = vpop.permute.xlu1 %3824 }
 0x6bf   : > { %v2042_v17 = vpack.c.bf16 %v10560_v4, %v10555_v31 }
 0x6c1   : > { %v6548_v39 = vpop.f32.mrb[40].mxu0  ;;  %v3809_v53 = vpop.permute.xlu0 %3808 }
 0x6c2   : > { %6719 = vmatmul.mubr.msk.bf16.gmra.mrb[100].mxu0 %vm1502_vm0, %v10525_v23  ;;  %v6549_v12 = vpop.f32.mrb[41].mxu0  ;;  %v3867_v35 = vsel %vm1502_vm0, %v3809_v53, 0  ;;  %v3827_v23 = vpop.permute.xlu1 %3826 }
 0x6c3   : > { %6809 = vmatpush3.bf16.xpose.msra.mxu0 %v3864_v33  ;;  %6720 = vmatprep.mubr.msk.bf16.mxu0 %vm1502_vm0, %v3002_v10  ;;  %v10568_v61 = vadd.f32 %v6549_v12, %v6548_v39  ;;  %v6551_v46 = vpop.f32.mrb[42].mxu0 }
 0x6c4   : > { %7226 = vmatprep.subr.msk.bf16.mxu0 %vm1502_vm0, %v3825_v43  ;;  %v6552_v13 = vpop.f32.mrb[43].mxu0 }
 0x6c5   : > { %v10571_v1 = vadd.f32 %v6552_v13, %v6551_v46  ;;  %v3811_v0 = vpop.permute.xlu0 %3810 }
 0x6c6   : > { %v3870_v20 = vsel %vm1502_vm0, %v3811_v0, 0  ;;  %v3829_v44 = vpop.permute.xlu1 %3828 }
 0x6c7   : > { %v2043_v16 = vpack.c.bf16 %v10571_v1, %v10568_v61 }
 0x6c9   : > { %v3813_v6 = vpop.permute.xlu0 %3812 }
 0x6ca   : > { %6721 = vmatmul.mubr.msk.bf16.gmra.mrb[104].mxu0 %vm1502_vm0, %v3002_v10  ;;  %v3873_v5 = vsel %vm1502_vm0, %v3813_v6, 0  ;;  %v3831_v10 = vpop.permute.xlu1 %3830 }
 0x6cb   : > { %6811 = vmatpush3.bf16.xpose.msra.mxu0 %v3867_v35  ;;  %6722 = vmatprep.mubr.msk.bf16.mxu0 %vm1502_vm0, %v10532_v48 }
 0x6cc   : > { %7227 = vmatprep.subr.msk.bf16.mxu0 %vm1502_vm0, %v3827_v23 }
 0x6cd   : > { %v3815_v62 = vpop.permute.xlu0 %3814 }
 0x6ce   : > { %v3833_v40 = vpop.permute.xlu1 %3832 }
 0x6d1   : > { %v3817_v38 = vpop.permute.xlu0 %3816 }
 0x6d2   : > { %6723 = vmatmul.mubr.msk.bf16.gmra.mrb[108].mxu0 %vm1502_vm0, %v10532_v48  ;;  %v3876_v48 = vsel %vm1502_vm0, %v3815_v62, 0  ;;  %v3879_v47 = vsel %vm1502_vm0, %v3817_v38, 0  ;;  %v3835_v3 = vpop.permute.xlu1 %3834 }
 0x6d3   : > { %6813 = vmatpush3.bf16.xpose.msra.mxu0 %v3870_v20  ;;  %6724 = vmatprep.mubr.msk.bf16.mxu0 %vm1502_vm0, %v3006_v25 }
 0x6d4   : > { %7228 = vmatprep.subr.msk.bf16.mxu0 %vm1502_vm0, %v3829_v44 }
 0x6d5   : > { %v3819_v49 = vpop.permute.xlu0 %3818 }
 0x6d6   : > { %v3793_v21 = vpop.permute.xlu1 %3792 }
 0x6d9   : > { %v3789_v18 = vpop.permute.xlu0 %3788 }
 0x6da   : > { %6725 = vmatmul.mubr.msk.bf16.gmra.mrb[112].mxu0 %vm1502_vm0, %v3006_v25  ;;  %v3797_v20 = vpop.permute.xlu1 %3796 }
 0x6db   : > { %6815 = vmatpush3.bf16.xpose.msra.mxu0 %v3873_v5  ;;  %6726 = vmatprep.mubr.msk.bf16.mxu0 %vm1502_vm0, %v10534_v55 }
 0x6dc   : > { %7229 = vmatprep.subr.msk.bf16.mxu0 %vm1502_vm0, %v3831_v10 }
 0x6dd   : > { %v3791_v7 = vpop.permute.xlu0 %3790 }
 0x6e1   : > { %v3795_v43 = vpop.permute.xlu0 %3794 }
 0x6e2   : > { %6727 = vmatmul.mubr.msk.bf16.gmra.mrb[116].mxu0 %vm1502_vm0, %v10534_v55  ;;  %v3882_v55 = vsel %vm1502_vm0, %v3819_v49, 0 }
 0x6e3   : > { %6817 = vmatpush3.bf16.xpose.msra.mxu0 %v3876_v48  ;;  %6728 = vmatprep.mubr.msk.bf16.mxu0 %vm1502_vm0, %v3010_v28 }
 0x6e4   : > { %7230 = vmatprep.subr.msk.bf16.mxu0 %vm1502_vm0, %v3833_v40 }
 0x6e5   : > { %v3799_v38 = vpop.permute.xlu0 %3798 }
 0x6ea   : > { %6729 = vmatmul.mubr.msk.bf16.gmra.mrb[120].mxu0 %vm1502_vm0, %v3010_v28 }
 0x6eb   : > { %6819 = vmatpush3.bf16.xpose.msra.mxu0 %v3879_v47  ;;  %6730 = vmatprep.mubr.msk.bf16.mxu0 %vm1502_vm0, %v10545_v54 }
 0x6ec   : > { %7231 = vmatprep.subr.msk.bf16.mxu0 %vm1502_vm0, %v3835_v3 }
 0x6f2   : > { %6731 = vmatmul.mubr.msk.bf16.gmra.mrb[124].mxu0 %vm1502_vm0, %v10545_v54 }
 0x6f3   : > { %6821 = vmatpush3.bf16.xpose.msra.mxu0 %v3882_v55  ;;  %6822 = vmatprep.mubr.msk.bf16.mxu0 %vm1502_vm0, %v3789_v18  ;;  %v3801_v55 = vpop.permute.xlu0 %3800 }
 0x6f5   : > { %v6554_v29 = vpop.f32.mrb[44].mxu0 }
 0x6f6   : > { %v6555_v57 = vpop.f32.mrb[45].mxu0 }
 0x6f7   : > { %v10604_v26 = vadd.f32 %v6555_v57, %v6554_v29  ;;  %v6557_v52 = vpop.f32.mrb[46].mxu0 }
 0x6f8   : > { %v6558_v14 = vpop.f32.mrb[47].mxu0 }
 0x6f9   : > { %v10606_v25 = vadd.f32 %v6558_v14, %v6557_v52 }
 0x6fa   : > { %6823 = vmatmul.mubr.msk.bf16.vlgmr.msra.gmra.mrb[128].mxu0 %vm1502_vm0, %v3789_v18 }
 0x6fb   : > { %6824 = vmatprep.mubr.msk.bf16.mxu0 %vm1502_vm0, %v3791_v7  ;;  %v2044_v15 = vpack.c.bf16 %v10606_v25, %v10604_v26 }
 0x6fd   : > { %v6560_v54 = vpop.f32.mrb[48].mxu0 }
 0x6fe   : > { %v6561_v28 = vpop.f32.mrb[49].mxu0 }
 0x6ff   : > { %v10612_v58 = vadd.f32 %v6561_v28, %v6560_v54  ;;  %v6563_v22 = vpop.f32.mrb[50].mxu0  ;;  %v3803_v28 = vpop.permute.xlu1 %3802 }
 0x700   : > { %v6564_v27 = vpop.f32.mrb[51].mxu0 }
 0x701   : > { %v10614_v2 = vadd.f32 %v6564_v27, %v6563_v22 }
 0x702   : > { %6825 = vmatmul.mubr.msk.bf16.gmra.mrb[132].mxu0 %vm1502_vm0, %v3791_v7 }
 0x703   : > { %6826 = vmatprep.mubr.msk.bf16.mxu0 %vm1502_vm0, %v3793_v21  ;;  %v2045_v56 = vpack.c.bf16 %v10614_v2, %v10612_v58 }
 0x705   : > { %v6566_v9 = vpop.f32.mrb[52].mxu0 }
 0x706   : > { %v6567_v60 = vpop.f32.mrb[53].mxu0 }
 0x707   : > { %v10620_v19 = vadd.f32 %v6567_v60, %v6566_v9  ;;  %v6569_v33 = vpop.f32.mrb[54].mxu0 }
 0x708   : > { %v6570_v39 = vpop.f32.mrb[55].mxu0 }
 0x709   : > { %v10622_v12 = vadd.f32 %v6570_v39, %v6569_v33  ;;  %v7527_v39 = vld [vmem:[#allocation13 + $0x8] sm:$0xff]  }
 0x70a   : > { %6827 = vmatmul.mubr.msk.bf16.gmra.mrb[136].mxu0 %vm1502_vm0, %v3793_v21 }
 0x70b   : > { %6828 = vmatprep.mubr.msk.bf16.mxu0 %vm1502_vm0, %v3795_v43  ;;  %v2046_v46 = vpack.c.bf16 %v10622_v12, %v10620_v19 }
 0x70d   : > { %v6572_v13 = vpop.f32.mrb[56].mxu0 }
 0x70e   : > { %v6573_v53 = vpop.f32.mrb[57].mxu0 }
 0x70f   : > { %v10628_v35 = vadd.f32 %v6573_v53, %v6572_v13  ;;  %v6575_v23 = vpop.f32.mrb[58].mxu0 }
 0x710   : > { %v6576_v0 = vpop.f32.mrb[59].mxu0 }
 0x711   : > { %v10630_v44 = vadd.f32 %v6576_v0, %v6575_v23  ;;  %v12512_v0 = vmov 0  }
 0x712   : > { %6829 = vmatmul.mubr.msk.bf16.gmra.mrb[140].mxu0 %vm1502_vm0, %v3795_v43 }
 0x713   : > { %6830 = vmatprep.mubr.msk.bf16.mxu0 %vm1502_vm0, %v3797_v20  ;;  %v2047_v6 = vpack.c.bf16 %v10630_v44, %v10628_v35 }
 0x715   : > { %v6578_v5 = vpop.f32.mrb[60].mxu0 }
 0x716   : > { %v6579_v10 = vpop.f32.mrb[61].mxu0 }
 0x717   : > { %v10636_v62 = vadd.f32 %v6579_v10, %v6578_v5  ;;  %v6581_v48 = vpop.f32.mrb[62].mxu0  ;;  %v3503_v10 = vpop.permute.xlu1 %3502 }
 0x718   : > { %v6582_v40 = vpop.f32.mrb[63].mxu0 }
 0x719   : > { %v10638_v47 = vadd.f32 %v6582_v40, %v6581_v48 }
 0x71a   : > { %6831 = vmatmul.mubr.msk.bf16.gmra.mrb[144].mxu0 %vm1502_vm0, %v3797_v20 }
 0x71b   : > { %6832 = vmatprep.mubr.msk.bf16.mxu0 %vm1502_vm0, %v3799_v38  ;;  %v2048_v3 = vpack.c.bf16 %v10638_v47, %v10636_v62 }
 0x721   : > { %v6632_v49 = vpop.f32.mrb[64].mxu0 }
 0x722   : > { %v6633_v18 = vpop.f32.mrb[65].mxu0  ;;  %6833 = vmatmul.mubr.msk.bf16.gmra.mrb[148].mxu0 %vm1502_vm0, %v3799_v38 }
 0x723   : > { %v6634_v29 = vadd.f32 %v6633_v18, %v6632_v49  ;;  %v6635_v57 = vpop.f32.mrb[66].mxu0  ;;  %6834 = vmatprep.mubr.msk.bf16.mxu0 %vm1502_vm0, %v3801_v55 }
 0x724   : > { %v6636_v52 = vpop.f32.mrb[67].mxu0 }
 0x725   : > { %v6637_v14 = vadd.f32 %v6636_v52, %v6635_v57 }
 0x727   : > { %v2723_v7 = vpack.c.bf16 %v6637_v14, %v6634_v29 }
 0x729   : > { %v6638_v54 = vpop.f32.mrb[68].mxu0  ;;  %7076 = vmatprep.mubr.msk.bf16.mxu1 %vm1502_vm0, %v2723_v7 }
 0x72a   : > { %v6639_v22 = vpop.f32.mrb[69].mxu0  ;;  %6835 = vmatmul.mubr.msk.bf16.gmra.mrb[152].mxu0 %vm1502_vm0, %v3801_v55 }
 0x72b   : > { %v6640_v27 = vadd.f32 %v6639_v22, %v6638_v54  ;;  %v6641_v21 = vpop.f32.mrb[70].mxu0  ;;  %6836 = vmatprep.mubr.msk.bf16.mxu0 %vm1502_vm0, %v3803_v28 }
 0x72c   : > { %v6642_v9 = vpop.f32.mrb[71].mxu0 }
 0x72d   : > { %v6643_v60 = vadd.f32 %v6642_v9, %v6641_v21 }
 0x72f   : > { %v2724_v33 = vpack.c.bf16 %v6643_v60, %v6640_v27 }
 0x731   : > { %v6644_v43 = vpop.f32.mrb[72].mxu0  ;;  %7077 = vmatmul.mubr.msk.bf16.vlgmr.msra.gmra.mrb[112].mxu1 %vm1502_vm0, %v2724_v33 }
 0x732   : > { %7093 = vmatpush3.bf16.msra.mxu1 %v10540_v45  ;;  %v6645_v13 = vpop.f32.mrb[73].mxu0  ;;  %6837 = vmatmul.mubr.msk.bf16.gmra.mrb[156].mxu0 %vm1502_vm0, %v3803_v28 }
 0x733   : > { %v6646_v53 = vadd.f32 %v6645_v13, %v6644_v43  ;;  %v6647_v23 = vpop.f32.mrb[74].mxu0  ;;  %7094 = vmatprep.subr.bf16.mxu1 %v7527_v39  ;;  %5059 = vmatprep.mubr.bf16.mxu0 %v12512_v0 }
 0x734   : > { %v6648_v20 = vpop.f32.mrb[75].mxu0 }
 0x735   : > { %v6649_v5 = vadd.f32 %v6648_v20, %v6647_v23 }
 0x736   : > { %7095 = vmatpush3.bf16.msra.mxu1 %v7527_v39 }
 0x737   : > { %v2725_v48 = vpack.c.bf16 %v6649_v5, %v6646_v53  ;;  %6732 = vmatprep.subr.bf16.mxu1 %v3503_v10 }
 0x739   : > { %v6650_v40 = vpop.f32.mrb[76].mxu0  ;;  %7080 = vmatprep.mubr.msk.bf16.mxu1 %vm1502_vm0, %v2725_v48  ;;  %v3505_v48 = vpop.permute.xlu0 %3504 }
 0x73a   : > { %v6651_v38 = vpop.f32.mrb[77].mxu0 }
 0x73b   : > { %v6652_v49 = vadd.f32 %v6651_v38, %v6650_v40  ;;  %v6653_v45 = vpop.f32.mrb[78].mxu0 }
 0x73c   : > { %v6654_v55 = vpop.f32.mrb[79].mxu0 }
 0x73d   : > { %v6655_v18 = vadd.f32 %v6654_v55, %v6653_v45 }
 0x73f   : > { %v2726_v29 = vpack.c.bf16 %v6655_v18, %v6652_v49  ;;  %v3489_v18 = vpop.permute.xlu0 %3488 }
 0x741   : > { %v6656_v57 = vpop.f32.mrb[80].mxu0  ;;  %7081 = vmatmul.mubr.msk.bf16.gmra.mrb[116].mxu1 %vm1502_vm0, %v2726_v29 }
 0x742   : > { %v6657_v52 = vpop.f32.mrb[81].mxu0 }
 0x743   : > { %v6658_v14 = vadd.f32 %v6657_v52, %v6656_v57  ;;  %v6659_v7 = vpop.f32.mrb[82].mxu0 }
 0x744   : > { %v6660_v54 = vpop.f32.mrb[83].mxu0 }
 0x745   : > { %v6661_v28 = vadd.f32 %v6660_v54, %v6659_v7  ;;  %v3507_v7 = vpop.permute.xlu0 %3506 }
 0x747   : > { %v2727_v22 = vpack.c.bf16 %v6661_v28, %v6658_v14 }
 0x749   : > { %v6662_v27 = vpop.f32.mrb[84].mxu0  ;;  %7084 = vmatprep.mubr.msk.bf16.mxu1 %vm1502_vm0, %v2727_v22 }
 0x74a   : > { %v6663_v21 = vpop.f32.mrb[85].mxu0 }
 0x74b   : > { %v6664_v9 = vadd.f32 %v6663_v21, %v6662_v27  ;;  %v6665_v60 = vpop.f32.mrb[86].mxu0 }
 0x74c   : > { %v6666_v33 = vpop.f32.mrb[87].mxu0 }
 0x74d   : > { %v6667_v39 = vadd.f32 %v6666_v33, %v6665_v60  ;;  %v3487_v60 = vpop.permute.xlu1 %3486 }
 0x74f   : > { %v2728_v43 = vpack.c.bf16 %v6667_v39, %v6664_v9  ;;  %v3509_v9 = vpop.permute.xlu0 %3508 }
 0x751   : > { %7085 = vmatmul.mubr.msk.bf16.gmra.mrb[120].mxu1 %vm1502_vm0, %v2728_v43 }
 0x753   : > { %v3511_v4 = vpop.permute.xlu0 %3510 }
 0x77d   : > { %v6668_v13 = vpop.f32.mrb[88].mxu0 }
 0x77e   : > { %v6669_v53 = vpop.f32.mrb[89].mxu0 }
 0x77f   : > { %v6670_v23 = vadd.f32 %v6669_v53, %v6668_v13  ;;  %v6671_v20 = vpop.f32.mrb[90].mxu0  ;;  %v3495_v13 = vpop.permute.xlu0 %3494 }
 0x780   : > { %v6672_v5 = vpop.f32.mrb[91].mxu0 }
 0x781   : > { %v6673_v10 = vadd.f32 %v6672_v5, %v6671_v20 }
 0x783   : > { %v2729_v40 = vpack.c.bf16 %v6673_v10, %v6670_v23  ;;  %v3513_v2 = vpop.permute.xlu0 %3512 }
 0x785   : > { %v6674_v38 = vpop.f32.mrb[92].mxu0  ;;  %7088 = vmatprep.mubr.msk.bf16.mxu1 %vm1502_vm0, %v2729_v40 }
 0x786   : > { %v6675_v49 = vpop.f32.mrb[93].mxu0 }
 0x787   : > { %v6676_v45 = vadd.f32 %v6675_v49, %v6674_v38  ;;  %v6677_v55 = vpop.f32.mrb[94].mxu0 }
 0x788   : > { %v6678_v29 = vpop.f32.mrb[95].mxu0 }
 0x789   : > { %v6679_v57 = vadd.f32 %v6678_v29, %v6677_v55  ;;  %v12513_v55 = vld [vmem:[#allocation90_spill] sm:$0xff] }
 0x78b   : > { %v2730_v52 = vpack.c.bf16 %v6679_v57, %v6676_v45 }
 0x78d   : > { %7089 = vmatmul.mubr.msk.bf16.gmra.mrb[124].mxu1 %vm1502_vm0, %v2730_v52  ;;  %v10659_v14 = vpop.f32.mrb[96].mxu0 }
 0x78e   : > { %7096 = vmatprep.mubr.msk.bf16.mxu1 %vm1502_vm0, %v2041_v50  ;;  %v10665_v54 = vpop.f32.mrb[97].mxu0 }
 0x78f   : > { %v3230_v28 = vmax.f32 %v10659_v14, %v10665_v54  ;;  %v10669_v22 = vpop.f32.mrb[98].mxu0 }
 0x790   : > { %v10671_v27 = vpop.f32.mrb[99].mxu0 }
 0x791   : > { %v3233_v21 = vmax.f32 %v10669_v22, %v10671_v27  ;;  %3231 = vmax.xlane.f32.xlu0 %v3230_v28 }
 0x793   : > { %3234 = vmax.xlane.f32.xlu1 %v3233_v21 }
 0x795   : > { %7097 = vmatmul.mubr.msk.bf16.vlgmr.msra.gmra.mrb[112].mxu1 %vm1502_vm0, %v2042_v17  ;;  %v10679_v30 = vpop.f32.mrb[100].mxu0  ;;  %v3491_v17 = vpop.permute.xlu1 %3490 }
 0x796   : > { %6733 = vmatpush3.bf16.msra.mxu1 %v3487_v60  ;;  %7100 = vmatprep.mubr.msk.bf16.mxu1 %vm1502_vm0, %v2043_v16  ;;  %v10685_v34 = vpop.f32.mrb[101].mxu0 }
 0x797   : > { %v3236_v50 = vmax.f32 %v10679_v30, %v10685_v34  ;;  %6734 = vmatprep.subr.bf16.mxu1 %v3505_v48  ;;  %v10689_v33 = vpop.f32.mrb[102].mxu0 }
 0x798   : > { %v10691_v39 = vpop.f32.mrb[103].mxu0 }
 0x799   : > { %v3239_v31 = vmax.f32 %v10689_v33, %v10691_v39  ;;  %3237 = vmax.xlane.f32.xlu1 %v3236_v50  ;;  %v3493_v25 = vpop.permute.xlu1 %3492 }
 0x79a   : > { %6735 = vmatpush3.bf16.msra.mxu1 %v3489_v18 }
 0x79b   : > { %6736 = vmatprep.subr.bf16.mxu1 %v3507_v7  ;;  %3240 = vmax.xlane.f32.xlu0 %v3239_v31  ;;  %v12514_v7 = vld [vmem:[#allocation72_spill] sm:$0xff] }
 0x79d   : > { %7101 = vmatmul.mubr.msk.bf16.gmra.mrb[116].mxu1 %vm1502_vm0, %v2044_v15  ;;  %v10699_v61 = vpop.f32.mrb[104].mxu0 }
 0x79e   : > { %6737 = vmatpush3.bf16.msra.mxu1 %v3491_v17  ;;  %7104 = vmatprep.mubr.msk.bf16.mxu1 %vm1502_vm0, %v2045_v56  ;;  %v10705_v1 = vpop.f32.mrb[105].mxu0 }
 0x79f   : > { %v3242_v16 = vmax.f32 %v10699_v61, %v10705_v1  ;;  %6738 = vmatprep.subr.bf16.mxu1 %v3509_v9  ;;  %v10709_v43 = vpop.f32.mrb[106].mxu0 }
 0x7a0   : > { %v10711_v26 = vpop.f32.mrb[107].mxu0 }
 0x7a1   : > { %v3245_v15 = vmax.f32 %v10709_v43, %v10711_v26  ;;  %3243 = vmax.xlane.f32.xlu1 %v3242_v16 }
 0x7a2   : > { %6739 = vmatpush3.bf16.msra.mxu1 %v3493_v25 }
 0x7a3   : > { %6740 = vmatprep.subr.bf16.mxu1 %v3511_v4 }
 0x7a5   : > { %7105 = vmatmul.mubr.msk.bf16.gmra.mrb[120].mxu1 %vm1502_vm0, %v2046_v46  ;;  %3246 = vmax.xlane.f32.xlu1 %v3245_v15  ;;  %v10719_v58 = vpop.f32.mrb[108].mxu0 }
 0x7a6   : > { %6741 = vmatpush3.bf16.msra.mxu1 %v3495_v13  ;;  %7108 = vmatprep.mubr.msk.bf16.mxu1 %vm1502_vm0, %v2047_v6  ;;  %v10725_v56 = vpop.f32.mrb[109].mxu0 }
 0x7a7   : > { %v3248_v53 = vmax.f32 %v10719_v58, %v10725_v56  ;;  %6742 = vmatprep.subr.bf16.mxu1 %v3513_v2  ;;  %v10729_v23 = vpop.f32.mrb[110].mxu0 }
 0x7a8   : > { %v10731_v19 = vpop.f32.mrb[111].mxu0 }
 0x7a9   : > { %v3251_v12 = vmax.f32 %v10729_v23, %v10731_v19  ;;  %3249 = vmax.xlane.f32.xlu0 %v3248_v53 }
 0x7ab   : > { %3252 = vmax.xlane.f32.xlu1 %v3251_v12 }
 0x7ad   : > { %7109 = vmatmul.mubr.msk.bf16.gmra.mrb[124].mxu1 %vm1502_vm0, %v2048_v3  ;;  %v10739_v46 = vpop.f32.mrb[112].mxu0 }
 0x7ae   : > { %v10741_v35 = vpop.f32.mrb[113].mxu0 }
 0x7af   : > { %v3254_v44 = vmax.f32 %v10739_v46, %v10741_v35  ;;  %v10745_v6 = vpop.f32.mrb[114].mxu0 }
 0x7b0   : > { %v10747_v20 = vpop.f32.mrb[115].mxu0 }
 0x7b1   : > { %v3257_v5 = vmax.f32 %v10745_v6, %v10747_v20  ;;  %3255 = vmax.xlane.f32.xlu1 %v3254_v44 }
 0x7b5   : > { %3258 = vmax.xlane.f32.xlu1 %v3257_v5  ;;  %v10751_v10 = vpop.f32.mrb[116].mxu0 }
 0x7b6   : > { %v10753_v62 = vpop.f32.mrb[117].mxu0 }
 0x7b7   : > { %v3260_v47 = vmax.f32 %v10751_v10, %v10753_v62  ;;  %v10757_v3 = vpop.f32.mrb[118].mxu0 }
 0x7b8   : > { %v10759_v48 = vpop.f32.mrb[119].mxu0 }
 0x7b9   : > { %v3263_v40 = vmax.f32 %v10757_v3, %v10759_v48 }
 0x7bd   : > { %v10763_v38 = vpop.f32.mrb[120].mxu0 }
 0x7be   : > { %v10765_v49 = vpop.f32.mrb[121].mxu0 }
 0x7bf   : > { %v3266_v45 = vmax.f32 %v10763_v38, %v10765_v49  ;;  %3514 = vrot.lane.b32.xlu0 %v12513_v55, %s8712_s20  ;;  %v10771_v18 = vpop.f32.mrb[122].mxu0 }
 0x7c0   : > { %v10773_v29 = vpop.f32.mrb[123].mxu0 }
 0x7c1   : > { %v3269_v57 = vmax.f32 %v10771_v18, %v10773_v29 }
 0x7c5   : > { %v10777_v52 = vpop.f32.mrb[124].mxu0 }
 0x7c6   : > { %3496 = vrot.lane.b32.xlu1 %v12514_v7, %s8712_s20  ;;  %v10781_v28 = vpop.f32.mrb[125].mxu0 }
 0x7c7   : > { %v3272_v21 = vmax.f32 %v10777_v52, %v10781_v28  ;;  %v10785_v9 = vpop.f32.mrb[126].mxu0 }
 0x7c8   : > { %v10787_v60 = vpop.f32.mrb[127].mxu0 }
 0x7c9   : > { %v3275_v50 = vmax.f32 %v10785_v9, %v10787_v60 }
 0x7cd   : > { %v10791_v31 = vpop.f32.mrb[128].mxu0 }
 0x7ce   : > { %v10793_v4 = vpop.f32.mrb[129].mxu0 }
 0x7cf   : > { %v10797_v16 = vpop.f32.mrb[130].mxu0 }
 0x7d0   : > { %v10799_v13 = vpop.f32.mrb[131].mxu0 }
 0x7d5   : > { %v10803_v15 = vpop.f32.mrb[132].mxu0 }
 0x7d6   : > { %v10805_v2 = vpop.f32.mrb[133].mxu0 }
 0x7d7   : > { %v10809_v12 = vpop.f32.mrb[134].mxu0 }
 0x7d8   : > { %12515 = vst [vmem:[#allocation124_spill] sm:$0xff] %v10809_v12  ;;  %v10811_v44 = vpop.f32.mrb[135].mxu0 }
 0x7d9   : > { %12516 = vst [vmem:[#allocation127_spill] sm:$0xff] %v10811_v44 }
 0x7dd   : > { %v10815_v17 = vpop.f32.mrb[136].mxu0 }
 0x7de   : > { %3261 = vmax.xlane.f32.xlu0 %v3260_v47  ;;  %v10817_v0 = vpop.f32.mrb[137].mxu0 }
 0x7df   : > { %v10821_v55 = vpop.f32.mrb[138].mxu0 }
 0x7e0   : > { %12517 = vst [vmem:[#allocation96_spill] sm:$0xff] %v10821_v55  ;;  %v10823_v42 = vpop.f32.mrb[139].mxu0 }
 0x7e1   : > { %12518 = vst [vmem:[#allocation97_spill] sm:$0xff] %v10823_v42 }
 0x7e5   : > { %v10827_v8 = vpop.f32.mrb[140].mxu0 }
 0x7e6   : > { %v10829_v37 = vpop.f32.mrb[141].mxu0 }
 0x7e7   : > { %v10833_v47 = vpop.f32.mrb[142].mxu0 }
 0x7e8   : > { %12519 = vst [vmem:[#allocation98_spill] sm:$0xff] %v10833_v47  ;;  %v10835_v59 = vpop.f32.mrb[143].mxu0 }
 0x7e9   : > { %12520 = vst [vmem:[#allocation89_spill] sm:$0xff] %v10835_v59 }
 0x7ea   : > { %3264 = vmax.xlane.f32.xlu1 %v3263_v40 }
 0x7ed   : > { %v10839_v32 = vpop.f32.mrb[144].mxu0 }
 0x7ee   : > { %12521 = vst [vmem:[#allocation99_spill] sm:$0xff] %v10839_v32  ;;  %3267 = vmax.xlane.f32.xlu1 %v3266_v45  ;;  %v10841_v7 = vpop.f32.mrb[145].mxu0 }
 0x7ef   : > { %12522 = vst [vmem:[#allocation100_spill] sm:$0xff] %v10841_v7  ;;  %v10845_v24 = vpop.f32.mrb[146].mxu0 }
 0x7f0   : > { %12523 = vst [vmem:[#allocation131_spill] sm:$0xff] %v10845_v24  ;;  %v10847_v11 = vpop.f32.mrb[147].mxu0 }
 0x7f1   : > { %12524 = vst [vmem:[#allocation133_spill] sm:$0xff] %v10847_v11 }
 0x7f2   : > { %3270 = vmax.xlane.f32.xlu1 %v3269_v57 }
 0x7f4   : > { %3498 = vrot.lane.b32.xlu0 %v12525_v63, %s8712_s20 }
 0x7f5   : > { %v10853_v40 = vpop.f32.mrb[148].mxu0 }
 0x7f6   : > { %12526 = vst [vmem:[#allocation130_spill] sm:$0xff] %v10853_v40  ;;  %3273 = vmax.xlane.f32.xlu1 %v3272_v21  ;;  %v10855_v45 = vpop.f32.mrb[149].mxu0 }
 0x7f7   : > { %12527 = vst [vmem:[#allocation132_spill] sm:$0xff] %v10855_v45  ;;  %v10859_v53 = vpop.f32.mrb[150].mxu0 }
 0x7f8   : > { %12528 = vst [vmem:[#allocation101_spill] sm:$0xff] %v10859_v53  ;;  %v10861_v51 = vpop.f32.mrb[151].mxu0 }
 0x7f9   : > { %12529 = vst [vmem:[#allocation102_spill] sm:$0xff] %v10861_v51 }
 0x7fd   : > { %v10865_v5 = vpop.f32.mrb[152].mxu0 }
 0x7fe   : > { %12530 = vst [vmem:[#allocation103_spill] sm:$0xff] %v10865_v5  ;;  %v10867_v57 = vpop.f32.mrb[153].mxu0 }
 0x7ff   : > { %12531 = vst [vmem:[#allocation104_spill] sm:$0xff] %v10867_v57  ;;  %v10871_v21 = vpop.f32.mrb[154].mxu0 }
 0x800   : > { %12532 = vst [vmem:[#allocation122_spill] sm:$0xff] %v10871_v21  ;;  %v10873_v11 = vpop.f32.mrb[155].mxu0 }
 0x801   : > { %12533 = vst [vmem:[#allocation123_spill] sm:$0xff] %v10873_v11 }
 0x805   : > { %v10877_v24 = vpop.f32.mrb[156].mxu0 }
 0x806   : > { %v10879_v36 = vpop.f32.mrb[157].mxu0 }
 0x807   : > { %v10883_v51 = vpop.f32.mrb[158].mxu0 }
 0x808   : > { %12534 = vst [vmem:[#allocation105_spill] sm:$0xff] %v10883_v51  ;;  %v10885_v53 = vpop.f32.mrb[159].mxu0 }
 0x809   : > { %12535 = vst [vmem:[#allocation73_spill] sm:$0xff] %v10885_v53 }
 0x813   : > { %3276 = vmax.xlane.f32.xlu0 %v3275_v50 }
 0x81e   : > { %v3232_v59 = vpop.xlane.xlu0 %3231 }
 0x81f   : > { %v3278_v47 = vsub.f32 %v10659_v14, %v3232_v59  ;;  %v3279_v25 = vsub.f32 %v10665_v54, %v3232_v59 }
 0x820   : > { %v3235_v11 = vpop.xlane.xlu1 %3234 }
 0x821   : > { %v3310_v21 = vmul.f32 1.442695, %v3278_v47  ;;  %v3312_v42 = vmul.f32 1.442695, %v3279_v25  ;;  %v3280_v55 = vsub.f32 %v10669_v22, %v3235_v11  ;;  %v3281_v41 = vsub.f32 %v10671_v27, %v3235_v11 }
 0x823   : > { %7804 = vpow2.f32 %v3310_v21  ;;  %v3314_v44 = vmul.f32 1.442695, %v3280_v55  ;;  %v3316_v12 = vmul.f32 1.442695, %v3281_v41 }
 0x824   : > { %7806 = vpow2.f32 %v3312_v42 }
 0x825   : > { %7808 = vpow2.f32 %v3314_v44 }
 0x826   : > { %7810 = vpow2.f32 %v3316_v12  ;;  %v3238_v63 = vpop.xlane.xlu1 %3237 }
 0x827   : > { %v3282_v50 = vsub.f32 %v10679_v30, %v3238_v63  ;;  %v3283_v14 = vsub.f32 %v10685_v34, %v3238_v63 }
 0x828   : > { %v3241_v53 = vpop.xlane.xlu0 %3240 }
 0x829   : > { %v3318_v59 = vmul.f32 1.442695, %v3282_v50  ;;  %v3320_v54 = vmul.f32 1.442695, %v3283_v14  ;;  %v3284_v25 = vsub.f32 %v10689_v33, %v3241_v53  ;;  %v3285_v22 = vsub.f32 %v10691_v39, %v3241_v53 }
 0x82b   : > { %7812 = vpow2.f32 %v3318_v59  ;;  %v3322_v11 = vmul.f32 1.442695, %v3284_v25  ;;  %v3324_v27 = vmul.f32 1.442695, %v3285_v22 }
 0x82c   : > { %7814 = vpow2.f32 %v3320_v54 }
 0x82d   : > { %v10897_v41 = vpop.eup %7804  ;;  %7816 = vpow2.f32 %v3322_v11 }
 0x82e   : > { %v10899_v42 = vpop.eup %7806  ;;  %7818 = vpow2.f32 %v3324_v27  ;;  %v3244_v30 = vpop.xlane.xlu1 %3243 }
 0x82f   : > { %v10901_v55 = vpop.eup %7808  ;;  %v3286_v63 = vsub.f32 %v10699_v61, %v3244_v30  ;;  %v3287_v34 = vsub.f32 %v10705_v1, %v3244_v30  ;;  %v3374_v33 = vadd.f32 %v10899_v42, %v10897_v41 }
 0x830   : > { %v10907_v39 = vpop.eup %7810 }
 0x831   : > { %v3326_v53 = vmul.f32 1.442695, %v3286_v63  ;;  %v3328_v12 = vmul.f32 1.442695, %v3287_v34  ;;  %3375 = vadd.xlane.f32.xlu1 %v3374_v33  ;;  %v3377_v44 = vadd.f32 %v10907_v39, %v10901_v55 }
 0x832   : > { %v3247_v47 = vpop.xlane.xlu1 %3246 }
 0x833   : > { %7820 = vpow2.f32 %v3326_v53  ;;  %v3288_v21 = vsub.f32 %v10709_v43, %v3247_v47  ;;  %v3289_v50 = vsub.f32 %v10711_v26, %v3247_v47  ;;  %3378 = vadd.xlane.f32.xlu0 %v3377_v44 }
 0x834   : > { %7822 = vpow2.f32 %v3328_v12 }
 0x835   : > { %v10913_v61 = vpop.eup %7812  ;;  %v3330_v1 = vmul.f32 1.442695, %v3288_v21  ;;  %v3332_v14 = vmul.f32 1.442695, %v3289_v50 }
 0x836   : > { %v10915_v59 = vpop.eup %7814  ;;  %v3250_v54 = vpop.xlane.xlu0 %3249 }
 0x837   : > { %v10917_v25 = vpop.eup %7816  ;;  %7824 = vpow2.f32 %v3330_v1  ;;  %v3290_v22 = vsub.f32 %v10719_v58, %v3250_v54  ;;  %v3291_v11 = vsub.f32 %v10725_v56, %v3250_v54  ;;  %v3380_v43 = vadd.f32 %v10915_v59, %v10913_v61 }
 0x838   : > { %v10923_v26 = vpop.eup %7818  ;;  %7826 = vpow2.f32 %v3332_v14  ;;  %v3253_v27 = vpop.xlane.xlu1 %3252 }
 0x839   : > { %v3334_v30 = vmul.f32 1.442695, %v3290_v22  ;;  %v3336_v63 = vmul.f32 1.442695, %v3291_v11  ;;  %v3292_v34 = vsub.f32 %v10729_v23, %v3253_v27  ;;  %v3293_v33 = vsub.f32 %v10731_v19, %v3253_v27  ;;  %3381 = vadd.xlane.f32.xlu0 %v3380_v43 }
 0x83a   : > { %v3383_v53 = vadd.f32 %v10923_v26, %v10917_v25  ;;  %v3515_v43 = vpop.permute.xlu0 %3514 }
 0x83b   : > { %7828 = vpow2.f32 %v3334_v30  ;;  %v3338_v58 = vmul.f32 1.442695, %v3292_v34  ;;  %v3340_v56 = vmul.f32 1.442695, %v3293_v33  ;;  %v12538_v34 = vld [vmem:[#allocation76_spill] sm:$0xff] }
 0x83c   : > { %7830 = vpow2.f32 %v3336_v63  ;;  %3384 = vadd.xlane.f32.xlu1 %v3383_v53  ;;  %v12539_v33 = vld [vmem:[#allocation92_spill] sm:$0xff] }
 0x83d   : > { %v10929_v12 = vpop.eup %7820  ;;  %7832 = vpow2.f32 %v3338_v58 }
 0x83e   : > { %v10931_v44 = vpop.eup %7822  ;;  %7834 = vpow2.f32 %v3340_v56  ;;  %v3256_v47 = vpop.xlane.xlu1 %3255 }
 0x83f   : > { %v3386_v23 = vadd.f32 %v10931_v44, %v10929_v12  ;;  %v3294_v53 = vsub.f32 %v10739_v46, %v3256_v47  ;;  %v3295_v58 = vsub.f32 %v10741_v35, %v3256_v47 }
 0x841   : > { %v10935_v19 = vpop.eup %7824  ;;  %3387 = vadd.xlane.f32.xlu0 %v3386_v23 }
 0x842   : > { %v10937_v21 = vpop.eup %7826  ;;  %v3259_v50 = vpop.xlane.xlu1 %3258 }
 0x843   : > { %v3389_v1 = vadd.f32 %v10937_v21, %v10935_v19  ;;  %v3296_v56 = vsub.f32 %v10745_v6, %v3259_v50  ;;  %v3297_v23 = vsub.f32 %v10747_v20, %v3259_v50 }
 0x845   : > { %v10941_v14 = vpop.eup %7828  ;;  %3390 = vadd.xlane.f32.xlu1 %v3389_v1  ;;  %v3342_v1 = vmul.f32 1.442695, %v3294_v53 }
 0x846   : > { %12536 = vst [vmem:[#allocation116_spill] sm:$0xff] %v10941_v14  ;;  %v10943_v54 = vpop.eup %7830  ;;  %v3497_v22 = vpop.permute.xlu1 %3496 }
 0x847   : > { %v10945_v11 = vpop.eup %7832  ;;  %6743 = vmatpush3.bf16.msra.mxu1 %v3497_v22  ;;  %v3392_v27 = vadd.f32 %v10943_v54, %v10941_v14  ;;  %v3344_v22 = vmul.f32 1.442695, %v3295_v58  ;;  %7836 = vpow2.f32 %v3342_v1 }
 0x848   : > { %12537 = vst [vmem:[#allocation128_spill] sm:$0xff] %v10945_v11  ;;  %v10949_v30 = vpop.eup %7834  ;;  %6744 = vmatprep.subr.bf16.mxu1 %v3515_v43 }
 0x849   : > { %3393 = vadd.xlane.f32.xlu0 %v3392_v27  ;;  %v3395_v63 = vadd.f32 %v10949_v30, %v10945_v11  ;;  %v3346_v27 = vmul.f32 1.442695, %v3296_v56  ;;  %7838 = vpow2.f32 %v3344_v22 }
 0x84b   : > { %3396 = vadd.xlane.f32.xlu1 %v3395_v63  ;;  %7840 = vpow2.f32 %v3346_v27 }
 0x851   : > { %v10963_v6 = vpop.eup %7836 }
 0x853   : > { %v10967_v47 = vpop.eup %7838 }
 0x85c   : > { %3500 = vrot.lane.b32.xlu1 %v12538_v34, %s8712_s20  ;;  %v3348_v34 = vmul.f32 1.442695, %v3297_v23 }
 0x85e   : > { %7842 = vpow2.f32 %v3348_v34 }
 0x85f   : > { %3516 = vrot.lane.b32.xlu0 %v12539_v33, %s8712_s20  ;;  %s8532_s20 = sshll.u32 %s8714_s3, 4  ;;  %s8533_s20 = int_to_ptr.vmem [resolvable:$false] %s8532_s20 }
 0x86b   : > { %v3262_v43 = vpop.xlane.xlu0 %3261 }
 0x86c   : > { %v3298_v63 = vsub.f32 %v10751_v10, %v3262_v43  ;;  %v3299_v14 = vsub.f32 %v10753_v62, %v3262_v43  ;;  %v10969_v62 = vpop.eup %7840 }
 0x86e   : > { %v3350_v11 = vmul.f32 1.442695, %v3298_v63  ;;  %v3352_v33 = vmul.f32 1.442695, %v3299_v14  ;;  %v10971_v14 = vpop.eup %7842 }
 0x86f   : > { %v3499_v46 = vpop.permute.xlu0 %3498  ;;  %v3401_v1 = vadd.f32 %v10971_v14, %v10969_v62 }
 0x870   : > { %6745 = vmatpush3.bf16.msra.mxu1 %v3499_v46  ;;  %7844 = vpow2.f32 %v3350_v11 }
 0x871   : > { %7846 = vpow2.f32 %v3352_v33 }
 0x877   : > { %v3265_v35 = vpop.xlane.xlu1 %3264 }
 0x878   : > { %v3300_v20 = vsub.f32 %v10757_v3, %v3265_v35  ;;  %v3301_v10 = vsub.f32 %v10759_v48, %v3265_v35  ;;  %v3398_v3 = vadd.f32 %v10967_v47, %v10963_v6 }
 0x87a   : > { %v3354_v50 = vmul.f32 1.442695, %v3300_v20  ;;  %v3356_v53 = vmul.f32 1.442695, %v3301_v10  ;;  %v10973_v56 = vpop.eup %7844 }
 0x87b   : > { %v3268_v58 = vpop.xlane.xlu1 %3267  ;;  %v10979_v48 = vpop.eup %7846 }
 0x87c   : > { %7848 = vpow2.f32 %v3354_v50  ;;  %v3302_v11 = vsub.f32 %v10763_v38, %v3268_v58  ;;  %v3303_v34 = vsub.f32 %v10765_v49, %v3268_v58  ;;  %v3404_v49 = vadd.f32 %v10979_v48, %v10973_v56 }
 0x87d   : > { %7850 = vpow2.f32 %v3356_v53 }
 0x87e   : > { %v3358_v33 = vmul.f32 1.442695, %v3302_v11  ;;  %v3360_v23 = vmul.f32 1.442695, %v3303_v34  ;;  %3399 = vadd.xlane.f32.xlu0 %v3398_v3 }
 0x87f   : > { %v3271_v22 = vpop.xlane.xlu1 %3270 }
 0x880   : > { %7852 = vpow2.f32 %v3358_v33  ;;  %v3304_v43 = vsub.f32 %v10771_v18, %v3271_v22  ;;  %v3305_v38 = vsub.f32 %v10773_v29, %v3271_v22  ;;  %3402 = vadd.xlane.f32.xlu1 %v3401_v1  ;;  %v12540_v22 = vmax.f32 %v10791_v31, %v10793_v4 }
 0x881   : > { %7854 = vpow2.f32 %v3360_v23 }
 0x882   : > { %v3362_v27 = vmul.f32 1.442695, %v3304_v43  ;;  %v3364_v63 = vmul.f32 1.442695, %v3305_v38  ;;  %3405 = vadd.xlane.f32.xlu0 %v3404_v49  ;;  %v12541_v43 = vmax.f32 %v10803_v15, %v10805_v2 }
 0x883   : > { %v3274_v46 = vpop.xlane.xlu1 %3273 }
 0x884   : > { %7856 = vpow2.f32 %v3362_v27  ;;  %v3306_v35 = vsub.f32 %v10777_v52, %v3274_v46  ;;  %v3307_v20 = vsub.f32 %v10781_v28, %v3274_v46 }
 0x885   : > { %7858 = vpow2.f32 %v3364_v63  ;;  %v12542_v63 = vmax.f32 %v10815_v17, %v10817_v0 }
 0x886   : > { %v10989_v10 = vpop.eup %7848  ;;  %v3366_v18 = vmul.f32 1.442695, %v3306_v35  ;;  %v3368_v50 = vmul.f32 1.442695, %v3307_v20  ;;  %v12543_v20 = vmax.f32 %v10827_v8, %v10829_v37 }
 0x887   : > { %v10991_v29 = vpop.eup %7850 }
 0x888   : > { %7860 = vpow2.f32 %v3366_v18  ;;  %v3407_v53 = vadd.f32 %v10991_v29, %v10989_v10  ;;  %v12544_v18 = vmax.f32 %v10839_v32, %v10841_v7 }
 0x889   : > { %7862 = vpow2.f32 %v3368_v50 }
 0x88a   : > { %v10995_v58 = vpop.eup %7852  ;;  %3408 = vadd.xlane.f32.xlu0 %v3407_v53 }
 0x88b   : > { %v10997_v11 = vpop.eup %7854 }
 0x88c   : > { %v3410_v52 = vadd.f32 %v10997_v11, %v10995_v58 }
 0x88e   : > { %v11001_v28 = vpop.eup %7856  ;;  %3411 = vadd.xlane.f32.xlu1 %v3410_v52  ;;  %v12546_v52 = vmax.f32 %v10865_v5, %v10867_v57  ;;  %v12562_v57 = vld [vmem:[#allocation80_spill] sm:$0xff]  ;;  %v12564_v5 = vld [vmem:[#allocation102_spill] sm:$0xff] }
 0x88f   : > { %v11003_v34 = vpop.eup %7858 }
 0x890   : > { %v3413_v3 = vadd.f32 %v11003_v34, %v11001_v28 }
 0x892   : > { %v11007_v33 = vpop.eup %7860  ;;  %3414 = vadd.xlane.f32.xlu0 %v3413_v3  ;;  %v12547_v3 = vmax.f32 %v10877_v24, %v10879_v36 }
 0x893   : > { %v11009_v23 = vpop.eup %7862 }
 0x894   : > { %v3416_v1 = vadd.f32 %v11009_v23, %v11007_v33 }
 0x896   : > { %3417 = vadd.xlane.f32.xlu1 %v3416_v1  ;;  %v12548_v1 = vmax.f32 %v10797_v16, %v10799_v13 }
 0x89a   : > { %4022 = vmax.xlane.f32.xlu1 %v12540_v22  ;;  %v12549_v22 = vld [vmem:[#allocation124_spill] sm:$0xff] }
 0x89e   : > { %4028 = vmax.xlane.f32.xlu1 %v12541_v43  ;;  %v12550_v43 = vld [vmem:[#allocation127_spill] sm:$0xff] }
 0x8a0   : > { %v3277_v38 = vpop.xlane.xlu0 %3276 }
 0x8a1   : > { %v3308_v49 = vsub.f32 %v10785_v9, %v3277_v38  ;;  %v3309_v27 = vsub.f32 %v10787_v60, %v3277_v38  ;;  %v12545_v9 = vmax.f32 %v10853_v40, %v10855_v45  ;;  %v12551_v38 = vmax.f32 %v12549_v22, %v12550_v43 }
 0x8a2   : > { %4034 = vmax.xlane.f32.xlu1 %v12542_v63  ;;  %v12553_v63 = vld [vmem:[#allocation97_spill] sm:$0xff] }
 0x8a3   : > { %v3370_v46 = vmul.f32 1.442695, %v3308_v49  ;;  %v3372_v35 = vmul.f32 1.442695, %v3309_v27  ;;  %v12552_v27 = vld [vmem:[#allocation96_spill] sm:$0xff] }
 0x8a5   : > { %7864 = vpow2.f32 %v3370_v46  ;;  %v12554_v46 = vmax.f32 %v12552_v27, %v12553_v63 }
 0x8a6   : > { %7866 = vpow2.f32 %v3372_v35  ;;  %4040 = vmax.xlane.f32.xlu1 %v12543_v20  ;;  %v12555_v20 = vld [vmem:[#allocation98_spill] sm:$0xff] }
 0x8aa   : > { %4046 = vmax.xlane.f32.xlu1 %v12544_v18  ;;  %v12556_v18 = vld [vmem:[#allocation89_spill] sm:$0xff] }
 0x8ae   : > { %4052 = vmax.xlane.f32.xlu1 %v12545_v9  ;;  %v12557_v9 = vmax.f32 %v12555_v20, %v12556_v18 }
 0x8af   : > { %v11033_v60 = vpop.eup %7864 }
 0x8b0   : > { %v11035_v50 = vpop.eup %7866 }
 0x8b1   : > { %v3419_v53 = vadd.f32 %v11035_v50, %v11033_v60 }
 0x8b2   : > { %4058 = vmax.xlane.f32.xlu1 %v12546_v52  ;;  %v12559_v52 = vld [vmem:[#allocation131_spill] sm:$0xff] }
 0x8b3   : > { %3420 = vadd.xlane.f32.xlu0 %v3419_v53  ;;  %v12558_v53 = vld [vmem:[#allocation78_spill] sm:$0xff] }
 0x8b6   : > { %4064 = vmax.xlane.f32.xlu1 %v12547_v3  ;;  %v12560_v3 = vld [vmem:[#allocation133_spill] sm:$0xff] }
 0x8b7   : > { %4025 = vmax.xlane.f32.xlu0 %v12548_v1  ;;  %v12561_v1 = vmax.f32 %v12559_v52, %v12560_v3  ;;  %v12566_v3 = vld [vmem:[#allocation82_spill] sm:$0xff]  ;;  %v12568_v52 = vld [vmem:[#allocation123_spill] sm:$0xff] }
 0x8bb   : > { %4031 = vmax.xlane.f32.xlu0 %v12551_v38 }
 0x8be   : > { %v3376_v49 = vpop.xlane.xlu1 %3375 }
 0x8bf   : > { %7868 = vrcp.f32 %v3376_v49  ;;  %4037 = vmax.xlane.f32.xlu0 %v12554_v46  ;;  %v12563_v46 = vld [vmem:[#allocation101_spill] sm:$0xff] }
 0x8c0   : > { %v3379_v35 = vpop.xlane.xlu0 %3378 }
 0x8c1   : > { %7870 = vrcp.f32 %v3379_v35  ;;  %v12565_v35 = vmax.f32 %v12563_v46, %v12564_v5 }
 0x8c3   : > { %4043 = vmax.xlane.f32.xlu0 %v12557_v9 }
 0x8c6   : > { %v3382_v7 = vpop.xlane.xlu0 %3381 }
 0x8c7   : > { %4293 = vrot.lane.b32.xlu1 %v12558_v53, %s8713_s2  ;;  %4049 = vmax.xlane.f32.xlu0 %v12561_v1  ;;  %v12567_v1 = vld [vmem:[#allocation122_spill] sm:$0xff] }
 0x8c8   : > { %v12569_v32 = vmax.f32 %v12567_v1, %v12568_v52  ;;  %v7528_v52 = vld [vmem:[#allocation13 + $0x20] sm:$0xff]  }
 0x8c9   : > { %v7869_v38 = vpop.eup %7868  ;;  %v3385_v49 = vpop.xlane.xlu1 %3384  ;;  %v12574_v1 = vld [vmem:[#allocation70_spill] sm:$0xff] }
 0x8ca   : > { %v3439_v40 = vmul.f32 %v7869_v38, %v10899_v42  ;;  %7872 = vrcp.f32 %v3385_v49  ;;  %v12571_v42 = vld [vmem:[#allocation73_spill] sm:$0xff]  ;;  %v12573_v49 = vld [vmem:[#allocation68_spill] sm:$0xff] }
 0x8cb   : > { %v7871_v45 = vpop.eup %7870  ;;  %4295 = vrot.lane.b32.xlu1 %v12562_v57, %s8713_s2  ;;  %4055 = vmax.xlane.f32.xlu0 %v12565_v35  ;;  %7874 = vrcp.f32 %v3382_v7  ;;  %v12570_v35 = vld [vmem:[#allocation66_spill] sm:$0xff] }
 0x8cc   : > { %v3441_v9 = vmul.f32 %v7871_v45, %v10907_v39  ;;  %v12572_v39 = vmax.f32 %v10883_v51, %v12571_v42  ;;  %v3440_v7 = vmul.f32 %v7871_v45, %v10901_v55  ;;  %v7529_v42 = vld [vmem:[#allocation13 + $0x28] sm:$0xff]   ;;  %v12575_v45 = vld [vmem:[#allocation72_spill] sm:$0xff] }
 0x8ce   : > { %v3471_v53 = vpack.c.bf16 %v3441_v9, %v3439_v40  ;;  %v3388_v57 = vpop.xlane.xlu0 %3387 }
 0x8cf   : > { %4297 = vrot.lane.b32.xlu1 %v12566_v3, %s8713_s2  ;;  %4061 = vmax.xlane.f32.xlu0 %v12569_v32 }
 0x8d0   : > { %3566 = vmatprep.mubr.bf16.mxu1 %v3471_v53 }
 0x8d2   : > { %v3391_v18 = vpop.xlane.xlu1 %3390 }
 0x8d3   : > { %4281 = vrot.lane.b32.xlu1 %v12570_v35, %s8713_s2  ;;  %4067 = vmax.xlane.f32.xlu0 %v12572_v39  ;;  %7876 = vrcp.f32 %v3391_v18  ;;  %v3438_v18 = vmul.f32 %v7869_v38, %v10897_v41  ;;  %v12576_v38 = vld [vmem:[#allocation74_spill] sm:$0xff] }
 0x8d4   : > { %v7873_v3 = vpop.eup %7872  ;;  %7878 = vrcp.f32 %v3388_v57 }
 0x8d5   : > { %v7875_v32 = vpop.eup %7874  ;;  %v3445_v35 = vmul.f32 %v7873_v3, %v10923_v26  ;;  %v3470_v57 = vpack.c.bf16 %v3440_v7, %v3438_v18  ;;  %v3444_v41 = vmul.f32 %v7873_v3, %v10917_v25  ;;  %v12579_v18 = vld [vmem:[#allocation84_spill] sm:$0xff] }
 0x8d6   : > { %v3394_v40 = vpop.xlane.xlu0 %3393 }
 0x8d7   : > { %4283 = vrot.lane.b32.xlu1 %v12573_v49, %s8713_s2  ;;  %v3443_v49 = vmul.f32 %v7875_v32, %v10915_v59 }
 0x8d8   : > { %v3397_v9 = vpop.xlane.xlu1 %3396 }
 0x8d9   : > { %7880 = vrcp.f32 %v3397_v9  ;;  %v3473_v55 = vpack.c.bf16 %v3445_v35, %v3443_v49 }
 0x8da   : > { %v3517_v53 = vpop.permute.xlu0 %3516  ;;  %7882 = vrcp.f32 %v3394_v40 }
 0x8db   : > { %4285 = vrot.lane.b32.xlu1 %v12574_v1, %s8713_s2  ;;  %6746 = vmatprep.subr.bf16.mxu1 %v3517_v53  ;;  %v3442_v1 = vmul.f32 %v7875_v32, %v10913_v61  ;;  %v12578_v61 = vld [vmem:[#allocation64_spill] sm:$0xff] }
 0x8dc   : > { %v3501_v39 = vpop.permute.xlu1 %3500 }
 0x8dd   : > { %6747 = vmatpush3.bf16.msra.mxu1 %v3501_v39  ;;  %v7877_v51 = vpop.eup %7876  ;;  %v3472_v7 = vpack.c.bf16 %v3444_v41, %v3442_v1  ;;  %v12580_v39 = vld [vmem:[#allocation128_spill] sm:$0xff] }
 0x8de   : > { %7112 = vmatprep.subr.bf16.mxu1 %v7528_v52  ;;  %v7879_v26 = vpop.eup %7878  ;;  %v3449_v59 = vmul.f32 %v7877_v51, %v10937_v21  ;;  %v3448_v3 = vmul.f32 %v7877_v51, %v10935_v19  ;;  %v12582_v19 = vld [vmem:[#allocation86_spill] sm:$0xff] }
 0x8df   : > { %4287 = vrot.lane.b32.xlu1 %v12575_v45, %s8713_s2  ;;  %v3447_v9 = vmul.f32 %v7879_v26, %v10931_v44  ;;  %v3446_v21 = vmul.f32 %v7879_v26, %v10929_v12 }
 0x8e0   : > { %3567 = vmatmul.mubr.bf16.vlgmr.msra.gmra.mrb[128].mxu1 %v3470_v57  ;;  %v12581_v57 = vld [vmem:[#allocation116_spill] sm:$0xff] }
 0x8e1   : > { %3574 = vmatprep.mubr.bf16.mxu1 %v3473_v55  ;;  %7113 = vmatpush3.bf16.msra.mxu1 %v7528_v52  ;;  %v3475_v53 = vpack.c.bf16 %v3449_v59, %v3447_v9  ;;  %v12577_v52 = vld [vmem:[#allocation62_spill] sm:$0xff] }
 0x8e2   : > { %7114 = vmatprep.subr.bf16.mxu1 %v7529_v42 }
 0x8e3   : > { %4289 = vrot.lane.b32.xlu1 %v12576_v38, %s8713_s2  ;;  %v7881_v40 = vpop.eup %7880 }
 0x8e4   : > { %v7883_v25 = vpop.eup %7882  ;;  %v3453_v35 = vmul.f32 %v7881_v40, %v10949_v30  ;;  %v3452_v49 = vmul.f32 %v7881_v40, %v12580_v39  ;;  %v12583_v30 = vld [vmem:[#allocation88_spill] sm:$0xff] }
 0x8e5   : > { %7115 = vmatpush3.bf16.msra.mxu1 %v7529_v42  ;;  %v3451_v44 = vmul.f32 %v7883_v25, %v10943_v54  ;;  %v3474_v42 = vpack.c.bf16 %v3448_v3, %v3446_v21  ;;  %v3450_v51 = vmul.f32 %v7883_v25, %v12581_v57  ;;  %v12584_v54 = vld [vmem:[#allocation90_spill] sm:$0xff] }
 0x8e7   : > { %v3477_v32 = vpack.c.bf16 %v3453_v35, %v3451_v44  ;;  %v3476_v12 = vpack.c.bf16 %v3452_v49, %v3450_v51 }
 0x8e8   : > { %3575 = vmatmul.mubr.bf16.gmra.mrb[132].mxu1 %v3472_v7 }
 0x8e9   : > { %4277 = vrot.lane.b32.xlu0 %v12577_v52, %s8713_s2  ;;  %3582 = vmatprep.mubr.bf16.mxu1 %v3475_v53 }
 0x8ed   : > { %4279 = vrot.lane.b32.xlu0 %v12578_v61, %s8713_s2 }
 0x8f0   : > { %3583 = vmatmul.mubr.bf16.gmra.mrb[136].mxu1 %v3474_v42 }
 0x8f1   : > { %4299 = vrot.lane.b32.xlu0 %v12579_v18, %s8713_s2  ;;  %3590 = vmatprep.mubr.bf16.mxu1 %v3477_v32 }
 0x8f5   : > { %4301 = vrot.lane.b32.xlu0 %v12582_v19, %s8713_s2 }
 0x8f8   : > { %3591 = vmatmul.mubr.bf16.gmra.mrb[140].mxu1 %v3476_v12 }
 0x8f9   : > { %4303 = vrot.lane.b32.xlu0 %v12583_v30, %s8713_s2 }
 0x8fd   : > { %4305 = vrot.lane.b32.xlu0 %v12584_v54, %s8713_s2 }
 0x90b   : > { %v3400_v45 = vpop.xlane.xlu0 %3399 }
 0x90c   : > { %7884 = vrcp.f32 %v3400_v45 }
 0x90d   : > { %v3403_v55 = vpop.xlane.xlu1 %3402 }
 0x90e   : > { %7886 = vrcp.f32 %v3403_v55 }
 0x90f   : > { %v3406_v26 = vpop.xlane.xlu0 %3405 }
 0x910   : > { %7888 = vrcp.f32 %v3406_v26 }
 0x916   : > { %v7885_v41 = vpop.eup %7884 }
 0x917   : > { %v3409_v38 = vpop.xlane.xlu0 %3408  ;;  %v3455_v1 = vmul.f32 %v7885_v41, %v10967_v47  ;;  %v3454_v7 = vmul.f32 %v7885_v41, %v10963_v6 }
 0x918   : > { %v7887_v59 = vpop.eup %7886  ;;  %7890 = vrcp.f32 %v3409_v38 }
 0x919   : > { %v3457_v9 = vmul.f32 %v7887_v59, %v10971_v14  ;;  %v3456_v53 = vmul.f32 %v7887_v59, %v10969_v62 }
 0x91a   : > { %v7889_v35 = vpop.eup %7888 }
 0x91b   : > { %v3412_v40 = vpop.xlane.xlu1 %3411  ;;  %v3479_v52 = vpack.c.bf16 %v3457_v9, %v3455_v1  ;;  %v3478_v25 = vpack.c.bf16 %v3456_v53, %v3454_v7  ;;  %v3459_v44 = vmul.f32 %v7889_v35, %v10979_v48  ;;  %v3458_v14 = vmul.f32 %v7889_v35, %v10973_v56 }
 0x91c   : > { %7892 = vrcp.f32 %v3412_v40 }
 0x91d   : > { %3598 = vmatprep.mubr.bf16.mxu1 %v3479_v52 }
 0x91e   : > { %3599 = vmatmul.mubr.bf16.gmra.mrb[144].mxu1 %v3478_v25 }
 0x91f   : > { %v3415_v3 = vpop.xlane.xlu0 %3414 }
 0x920   : > { %7894 = vrcp.f32 %v3415_v3 }
 0x922   : > { %v7891_v21 = vpop.eup %7890 }
 0x923   : > { %v3418_v61 = vpop.xlane.xlu1 %3417  ;;  %v3461_v47 = vmul.f32 %v7891_v21, %v10991_v29  ;;  %v3460_v6 = vmul.f32 %v7891_v21, %v10989_v10 }
 0x925   : > { %v3481_v62 = vpack.c.bf16 %v3461_v47, %v3459_v44  ;;  %v3480_v42 = vpack.c.bf16 %v3460_v6, %v3458_v14 }
 0x926   : > { %v7893_v18 = vpop.eup %7892 }
 0x927   : > { %v4023_v32 = vpop.xlane.xlu1 %4022  ;;  %3606 = vmatprep.mubr.bf16.mxu1 %v3481_v62  ;;  %v3463_v29 = vmul.f32 %v7893_v18, %v10997_v11  ;;  %v3462_v10 = vmul.f32 %v7893_v18, %v10995_v58 }
 0x928   : > { %v4069_v39 = vsub.f32 %v10791_v31, %v4023_v32  ;;  %v4070_v49 = vsub.f32 %v10793_v4, %v4023_v32  ;;  %3607 = vmatmul.mubr.bf16.gmra.mrb[148].mxu1 %v3480_v42 }
 0x92a   : > { %v7895_v57 = vpop.eup %7894  ;;  %v4101_v51 = vmul.f32 1.442695, %v4069_v39  ;;  %v4103_v19 = vmul.f32 1.442695, %v4070_v49 }
 0x92b   : > { %v4029_v48 = vpop.xlane.xlu1 %4028  ;;  %v3465_v56 = vmul.f32 %v7895_v57, %v11003_v34  ;;  %v3464_v12 = vmul.f32 %v7895_v57, %v11001_v28 }
 0x92c   : > { %7896 = vpow2.f32 %v4101_v51  ;;  %v4073_v34 = vsub.f32 %v10803_v15, %v4029_v48  ;;  %v4074_v38 = vsub.f32 %v10805_v2, %v4029_v48 }
 0x92d   : > { %7898 = vpow2.f32 %v4103_v19  ;;  %v3483_v30 = vpack.c.bf16 %v3465_v56, %v3463_v29  ;;  %v3482_v54 = vpack.c.bf16 %v3464_v12, %v3462_v10 }
 0x92e   : > { %7900 = vrcp.f32 %v3418_v61  ;;  %v4109_v1 = vmul.f32 1.442695, %v4073_v34  ;;  %v4111_v52 = vmul.f32 1.442695, %v4074_v38 }
 0x92f   : > { %v4035_v31 = vpop.xlane.xlu1 %4034  ;;  %3614 = vmatprep.mubr.bf16.mxu1 %v3483_v30 }
 0x930   : > { %3615 = vmatmul.mubr.bf16.gmra.mrb[152].mxu1 %v3482_v54  ;;  %v4077_v9 = vsub.f32 %v10815_v17, %v4035_v31  ;;  %v4078_v21 = vsub.f32 %v10817_v0, %v4035_v31 }
 0x932   : > { %v4117_v61 = vmul.f32 1.442695, %v4077_v9  ;;  %v4119_v42 = vmul.f32 1.442695, %v4078_v21  ;;  %v12586_v21 = vld [vmem:[#allocation76_spill] sm:$0xff] }
 0x933   : > { %v4041_v4 = vpop.xlane.xlu1 %4040 }
 0x934   : > { %v4082_v0 = vsub.f32 %v10829_v37, %v4041_v4 }
 0x936   : > { %v11127_v45 = vpop.eup %7896  ;;  %v4127_v37 = vmul.f32 1.442695, %v4082_v0 }
 0x937   : > { %v11129_v55 = vpop.eup %7898  ;;  %v11131_v26 = vpop.xlane.xlu1 %4046 }
 0x938   : > { %v4165_v11 = vadd.f32 %v11129_v55, %v11127_v45  ;;  %v7901_v44 = vpop.eup %7900 }
 0x939   : > { %v3467_v18 = vmul.f32 %v7901_v44, %v11009_v23 }
 0x93a   : > { %4166 = vadd.xlane.f32.xlu1 %v4165_v11 }
 0x93b   : > { %v11135_v58 = vpop.xlane.xlu1 %4052 }
 0x93f   : > { %v11137_v28 = vpop.xlane.xlu1 %4058 }
 0x940   : > { %v3421_v41 = vpop.xlane.xlu0 %3420 }
 0x941   : > { %7902 = vrcp.f32 %v3421_v41 }
 0x942   : > { %7904 = vpow2.f32 %v4109_v1 }
 0x943   : > { %v11141_v59 = vpop.xlane.xlu1 %4064  ;;  %7906 = vpow2.f32 %v4111_v52 }
 0x944   : > { %v4097_v7 = vsub.f32 %v10877_v24, %v11141_v59  ;;  %v4098_v53 = vsub.f32 %v10879_v36, %v11141_v59  ;;  %v4026_v40 = vpop.xlane.xlu0 %4025  ;;  %v12599_v59 = vld [vmem:[#allocation73_spill] sm:$0xff] }
 0x945   : > { %v4071_v25 = vsub.f32 %v10797_v16, %v4026_v40  ;;  %v4072_v15 = vsub.f32 %v10799_v13, %v4026_v40  ;;  %v4081_v16 = vsub.f32 %v10827_v8, %v4041_v4  ;;  %v3466_v8 = vmul.f32 %v7901_v44, %v11007_v33  ;;  %v12588_v44 = vld [vmem:[#allocation99_spill] sm:$0xff] }
 0x947   : > { %v4105_v3 = vmul.f32 1.442695, %v4071_v25  ;;  %v4107_v2 = vmul.f32 1.442695, %v4072_v15  ;;  %v4294_v35 = vpop.permute.xlu1 %4293  ;;  %v4125_v57 = vmul.f32 1.442695, %v4081_v16 }
 0x948   : > { %6838 = vmatprep.subr.bf16.mxu1 %v4294_v35  ;;  %v4032_v17 = vpop.xlane.xlu0 %4031 }
 0x949   : > { %v4075_v47 = vsub.f32 %v12549_v22, %v4032_v17  ;;  %v4076_v14 = vsub.f32 %v12550_v43, %v4032_v17  ;;  %7908 = vpow2.f32 %v4105_v3 }
 0x94a   : > { %7910 = vpow2.f32 %v4107_v2 }
 0x94b   : > { %v4113_v13 = vmul.f32 1.442695, %v4075_v47  ;;  %v4115_v6 = vmul.f32 1.442695, %v4076_v14  ;;  %v7903_v62 = vpop.eup %7902  ;;  %7912 = vpow2.f32 %v4117_v61  ;;  %v12587_v61 = vld [vmem:[#allocation92_spill] sm:$0xff]  ;;  %v4085_v47 = vsub.f32 %v12588_v44, %v11131_v26  ;;  %v12589_v14 = vld [vmem:[#allocation131_spill] sm:$0xff] }
 0x94c   : > { %v4038_v32 = vpop.xlane.xlu0 %4037  ;;  %v3469_v43 = vmul.f32 %v7903_v62, %v11035_v50  ;;  %v3468_v49 = vmul.f32 %v7903_v62, %v11033_v60  ;;  %v11163_v50 = vpop.eup %7904  ;;  %v12591_v62 = vld [vmem:[#allocation100_spill] sm:$0xff] }
 0x94d   : > { %7914 = vpow2.f32 %v4113_v13  ;;  %v4079_v39 = vsub.f32 %v12552_v27, %v4038_v32  ;;  %v4080_v22 = vsub.f32 %v12553_v63, %v4038_v32  ;;  %v12585_v63 = vld [vmem:[#allocation89_spill] sm:$0xff]  ;;  %v11165_v33 = vpop.eup %7906  ;;  %v4133_v32 = vmul.f32 1.442695, %v4085_v47 }
 0x94e   : > { %7916 = vpow2.f32 %v4115_v6  ;;  %v3485_v48 = vpack.c.bf16 %v3469_v43, %v3467_v18  ;;  %v3484_v23 = vpack.c.bf16 %v3468_v49, %v3466_v8  ;;  %v4171_v41 = vadd.f32 %v11165_v33, %v11163_v50  ;;  %v12590_v13 = vld [vmem:[#allocation133_spill] sm:$0xff]  ;;  %v12592_v18 = vld [vmem:[#allocation130_spill] sm:$0xff]  ;;  %v12594_v49 = vld [vmem:[#allocation104_spill] sm:$0xff] }
 0x94f   : > { %v4121_v51 = vmul.f32 1.442695, %v4079_v39  ;;  %v4123_v19 = vmul.f32 1.442695, %v4080_v22  ;;  %7918 = vpow2.f32 %v4119_v42  ;;  %v4086_v42 = vsub.f32 %v12591_v62, %v11131_v26  ;;  %v12593_v22 = vld [vmem:[#allocation103_spill] sm:$0xff] }
 0x950   : > { %v4044_v29 = vpop.xlane.xlu0 %4043  ;;  %3622 = vmatprep.mubr.bf16.mxu1 %v3485_v48  ;;  %v4089_v39 = vsub.f32 %v12592_v18, %v11135_v58  ;;  %v4093_v43 = vsub.f32 %v12593_v22, %v11137_v28  ;;  %v12595_v48 = vld [vmem:[#allocation132_spill] sm:$0xff] }
 0x951   : > { %7920 = vpow2.f32 %v4121_v51  ;;  %v4083_v27 = vsub.f32 %v12555_v20, %v4044_v29  ;;  %v4084_v56 = vsub.f32 %v12585_v63, %v4044_v29  ;;  %3623 = vmatmul.mubr.bf16.gmra.mrb[156].mxu1 %v3484_v23 }
 0x952   : > { %7922 = vpow2.f32 %v4123_v19  ;;  %v4135_v19 = vmul.f32 1.442695, %v4086_v42  ;;  %v4141_v29 = vmul.f32 1.442695, %v4089_v39  ;;  %v4149_v26 = vmul.f32 1.442695, %v4093_v43 }
 0x953   : > { %7924 = vpow2.f32 %v4125_v57  ;;  %v4129_v60 = vmul.f32 1.442695, %v4083_v27  ;;  %v4131_v10 = vmul.f32 1.442695, %v4084_v56  ;;  %v11167_v12 = vpop.eup %7908  ;;  %v4094_v57 = vsub.f32 %v12594_v49, %v11137_v28 }
 0x954   : > { %7926 = vpow2.f32 %v4127_v37  ;;  %v11169_v30 = vpop.eup %7910  ;;  %v4050_v17 = vpop.xlane.xlu0 %4049  ;;  %v4090_v37 = vsub.f32 %v12595_v48, %v11135_v58  ;;  %v4157_v28 = vmul.f32 1.442695, %v4097_v7  ;;  %v4159_v58 = vmul.f32 1.442695, %v4098_v53  ;;  %v12598_v7 = vld [vmem:[#allocation105_spill] sm:$0xff] }
 0x955   : > { %7928 = vpow2.f32 %v4129_v60  ;;  %v11171_v54 = vpop.eup %7912  ;;  %v4168_v20 = vadd.f32 %v11169_v30, %v11167_v12  ;;  %v4087_v16 = vsub.f32 %v12589_v14, %v4050_v17  ;;  %v4088_v6 = vsub.f32 %v12590_v13, %v4050_v17 }
 0x956   : > { %7930 = vpow2.f32 %v4131_v10  ;;  %v4151_v27 = vmul.f32 1.442695, %v4094_v57  ;;  %v4143_v56 = vmul.f32 1.442695, %v4090_v37 }
 0x957   : > { %v11175_v31 = vpop.eup %7914  ;;  %4169 = vadd.xlane.f32.xlu0 %v4168_v20  ;;  %v4137_v8 = vmul.f32 1.442695, %v4087_v16  ;;  %v4139_v51 = vmul.f32 1.442695, %v4088_v6  ;;  %7932 = vpow2.f32 %v4133_v32  ;;  %v12596_v20 = vld [vmem:[#allocation122_spill] sm:$0xff] }
 0x958   : > { %v11177_v4 = vpop.eup %7916  ;;  %v4056_v0 = vpop.xlane.xlu0 %4055 }
 0x959   : > { %v4174_v11 = vadd.f32 %v11177_v4, %v11175_v31  ;;  %v11181_v34 = vpop.eup %7918  ;;  %7934 = vpow2.f32 %v4137_v8  ;;  %v4091_v63 = vsub.f32 %v12563_v46, %v4056_v0  ;;  %v4092_v60 = vsub.f32 %v12564_v5, %v4056_v0 }
 0x95a   : > { %v4177_v25 = vadd.f32 %v11181_v34, %v11171_v54  ;;  %7936 = vpow2.f32 %v4139_v51 }
 0x95b   : > { %v11185_v38 = vpop.eup %7920  ;;  %4175 = vadd.xlane.f32.xlu1 %v4174_v11  ;;  %4172 = vadd.xlane.f32.xlu0 %v4171_v41  ;;  %7938 = vpow2.f32 %v4135_v19  ;;  %v4145_v10 = vmul.f32 1.442695, %v4091_v63  ;;  %v4147_v46 = vmul.f32 1.442695, %v4092_v60  ;;  %v12597_v41 = vld [vmem:[#allocation123_spill] sm:$0xff] }
 0x95c   : > { %v11187_v1 = vpop.eup %7922  ;;  %v4062_v23 = vpop.xlane.xlu0 %4061  ;;  %7940 = vpow2.f32 %v4141_v29 }
 0x95d   : > { %v11189_v9 = vpop.eup %7924  ;;  %v4180_v40 = vadd.f32 %v11187_v1, %v11185_v38  ;;  %7942 = vpow2.f32 %v4149_v26  ;;  %v4095_v11 = vsub.f32 %v12596_v20, %v4062_v23 }
 0x95e   : > { %v11193_v52 = vpop.eup %7926  ;;  %7944 = vpow2.f32 %v4151_v27 }
 0x95f   : > { %v11197_v15 = vpop.eup %7928  ;;  %4181 = vadd.xlane.f32.xlu1 %v4180_v40  ;;  %4178 = vadd.xlane.f32.xlu0 %v4177_v25  ;;  %v4183_v35 = vadd.f32 %v11193_v52, %v11189_v9  ;;  %7946 = vpow2.f32 %v4143_v56  ;;  %v4096_v40 = vsub.f32 %v12597_v41, %v4062_v23  ;;  %v4153_v24 = vmul.f32 1.442695, %v4095_v11  ;;  %v4296_v56 = vpop.permute.xlu1 %4295 }
 0x960   : > { %v11199_v3 = vpop.eup %7930  ;;  %v4068_v25 = vpop.xlane.xlu0 %4067  ;;  %7948 = vpow2.f32 %v4157_v28 }
 0x961   : > { %v4186_v2 = vadd.f32 %v11199_v3, %v11197_v15  ;;  %7950 = vpow2.f32 %v4159_v58  ;;  %v11233_v5 = vpop.eup %7932  ;;  %v4155_v36 = vmul.f32 1.442695, %v4096_v40  ;;  %v4100_v53 = vsub.f32 %v12599_v59, %v4068_v25 }
 0x962   : > { %7952 = vpow2.f32 %v4145_v10 }
 0x963   : > { %4187 = vadd.xlane.f32.xlu1 %v4186_v2  ;;  %4184 = vadd.xlane.f32.xlu0 %v4183_v35  ;;  %v4099_v2 = vsub.f32 %v12598_v7, %v4068_v25  ;;  %v11236_v35 = vpop.eup %7934  ;;  %7954 = vpow2.f32 %v4147_v46  ;;  %v4163_v14 = vmul.f32 1.442695, %v4100_v53  ;;  %v4298_v11 = vpop.permute.xlu1 %4297 }
 0x964   : > { %7956 = vpow2.f32 %v4153_v24  ;;  %v4278_v58 = vpop.permute.xlu0 %4277 }
 0x965   : > { %v4161_v44 = vmul.f32 1.442695, %v4099_v2  ;;  %7958 = vpow2.f32 %v4155_v36 }
 0x967   : > { %7960 = vpow2.f32 %v4161_v44  ;;  %v4282_v2 = vpop.permute.xlu1 %4281 }
 0x968   : > { %7962 = vpow2.f32 %v4163_v14  ;;  %v4280_v24 = vpop.permute.xlu0 %4279 }
 0x96c   : > { %v4300_v14 = vpop.permute.xlu0 %4299 }
 0x974   : > { %4291 = vrot.lane.b32.xlu1 %v12586_v21, %s8713_s2  ;;  %v11239_v21 = vpop.eup %7936 }
 0x975   : > { %v4192_v16 = vadd.f32 %v11239_v21, %v11236_v35 }
 0x979   : > { %4307 = vrot.lane.b32.xlu0 %v12587_v61, %s8713_s2  ;;  %v11241_v61 = vpop.eup %7938  ;;  %s8534_s2 = scalar_lea.vmem %s8533_s20, 4096 }
 0x97a   : > { %v11243_v17 = vpop.eup %7940  ;;  %v4189_v6 = vadd.f32 %v11241_v61, %v11233_v5 }
 0x97b   : > { %v11245_v47 = vpop.eup %7942 }
 0x97c   : > { %v11249_v13 = vpop.eup %7944 }
 0x97d   : > { %v11253_v62 = vpop.eup %7946  ;;  %v4201_v32 = vadd.f32 %v11249_v13, %v11245_v47 }
 0x97e   : > { %v11255_v42 = vpop.eup %7948  ;;  %v4195_v39 = vadd.f32 %v11253_v62, %v11243_v17 }
 0x97f   : > { %v11257_v0 = vpop.eup %7950 }
 0x980   : > { %v11261_v18 = vpop.eup %7952  ;;  %v4207_v43 = vadd.f32 %v11257_v0, %v11255_v42 }
 0x981   : > { %v11265_v22 = vpop.eup %7954 }
 0x982   : > { %v11269_v8 = vpop.eup %7956  ;;  %v4198_v49 = vadd.f32 %v11265_v22, %v11261_v18 }
 0x983   : > { %v11273_v57 = vpop.eup %7958 }
 0x984   : > { %v11275_v51 = vpop.eup %7960  ;;  %v4204_v19 = vadd.f32 %v11273_v57, %v11269_v8 }
 0x985   : > { %v11279_v48 = vpop.eup %7962 }
 0x986   : > { %v4210_v37 = vadd.f32 %v11279_v48, %v11275_v51 }
 0x998   : > { %4193 = vadd.xlane.f32.xlu1 %v4192_v16  ;;  %4190 = vadd.xlane.f32.xlu0 %v4189_v6 }
 0x99c   : > { %4202 = vadd.xlane.f32.xlu1 %v4201_v32  ;;  %4196 = vadd.xlane.f32.xlu0 %v4195_v39  ;;  %v4284_v32 = vpop.permute.xlu1 %4283 }
 0x9a0   : > { %4208 = vadd.xlane.f32.xlu1 %v4207_v43  ;;  %4199 = vadd.xlane.f32.xlu0 %v4198_v49  ;;  %v4302_v49 = vpop.permute.xlu0 %4301 }
 0x9a4   : > { %4205 = vadd.xlane.f32.xlu0 %v4204_v19 }
 0x9a8   : > { %4211 = vadd.xlane.f32.xlu0 %v4210_v37 }
 0x9b3   : > { %v6748_v29 = vpop.f32.mrb[128].mxu1 }
 0x9b4   : > { %v6749_v26 = vpop.f32.mrb[129].mxu1 }
 0x9b5   : > { %v6750_v23 = vadd.f32 %v6749_v26, %v6748_v29  ;;  %v6751_v27 = vpop.f32.mrb[130].mxu1 }
 0x9b6   : > { %v6752_v63 = vpop.f32.mrb[131].mxu1 }
 0x9b7   : > { %v6753_v60 = vadd.f32 %v6752_v63, %v6751_v27 }
 0x9b9   : > { %v3631_v28 = vpack.c.bf16 %v6753_v60, %v6750_v23  ;;  %v4286_v23 = vpop.permute.xlu1 %4285 }
 0x9bb   : > { %v6754_v10 = vpop.f32.mrb[132].mxu1  ;;  %7116 = vmatprep.mubr.msk.bf16.mxu1 %vm1502_vm0, %v3631_v28 }
 0x9bc   : > { %v6755_v20 = vpop.f32.mrb[133].mxu1 }
 0x9bd   : > { %v6756_v46 = vadd.f32 %v6755_v20, %v6754_v10  ;;  %v6757_v41 = vpop.f32.mrb[134].mxu1  ;;  %v4288_v60 = vpop.permute.xlu1 %4287 }
 0x9be   : > { %v6758_v40 = vpop.f32.mrb[135].mxu1 }
 0x9bf   : > { %v6759_v25 = vadd.f32 %v6758_v40, %v6757_v41 }
 0x9c1   : > { %v3632_v7 = vpack.c.bf16 %v6759_v25, %v6756_v46 }
 0x9c3   : > { %v6760_v36 = vpop.f32.mrb[136].mxu1  ;;  %7117 = vmatmul.mubr.msk.bf16.vlgmr.msra.gmra.mrb[112].mxu1 %vm1502_vm0, %v3632_v7 }
 0x9c4   : > { %6839 = vmatpush3.bf16.msra.mxu1 %v4278_v58  ;;  %v6761_v59 = vpop.f32.mrb[137].mxu1  ;;  %v4290_v58 = vpop.permute.xlu1 %4289 }
 0x9c5   : > { %v6762_v53 = vadd.f32 %v6761_v59, %v6760_v36  ;;  %6840 = vmatprep.subr.bf16.mxu1 %v4296_v56  ;;  %v6763_v44 = vpop.f32.mrb[138].mxu1  ;;  %v4304_v56 = vpop.permute.xlu0 %4303 }
 0x9c6   : > { %v6764_v16 = vpop.f32.mrb[139].mxu1 }
 0x9c7   : > { %v6765_v6 = vadd.f32 %v6764_v16, %v6763_v44 }
 0x9c8   : > { %6841 = vmatpush3.bf16.msra.mxu1 %v4280_v24  ;;  %v4167_v10 = vpop.xlane.xlu1 %4166 }
 0x9c9   : > { %v3633_v39 = vpack.c.bf16 %v6765_v6, %v6762_v53  ;;  %6842 = vmatprep.subr.bf16.mxu1 %v4298_v11  ;;  %v4306_v28 = vpop.permute.xlu0 %4305 }
 0x9cb   : > { %v6766_v43 = vpop.f32.mrb[140].mxu1  ;;  %7120 = vmatprep.mubr.msk.bf16.mxu1 %vm1502_vm0, %v3633_v39 }
 0x9cc   : > { %6843 = vmatpush3.bf16.msra.mxu1 %v4282_v2  ;;  %v6767_v19 = vpop.f32.mrb[141].mxu1 }
 0x9cd   : > { %v6768_v37 = vadd.f32 %v6767_v19, %v6766_v43  ;;  %6844 = vmatprep.subr.bf16.mxu1 %v4300_v14  ;;  %v6769_v29 = vpop.f32.mrb[142].mxu1 }
 0x9ce   : > { %v6770_v26 = vpop.f32.mrb[143].mxu1 }
 0x9cf   : > { %v6771_v27 = vadd.f32 %v6770_v26, %v6769_v29 }
 0x9d0   : > { %6845 = vmatpush3.bf16.msra.mxu1 %v4284_v32 }
 0x9d1   : > { %v3634_v63 = vpack.c.bf16 %v6771_v27, %v6768_v37  ;;  %6846 = vmatprep.subr.bf16.mxu1 %v4302_v49 }
 0x9d3   : > { %7121 = vmatmul.mubr.msk.bf16.gmra.mrb[116].mxu1 %vm1502_vm0, %v3634_v63 }
 0x9d4   : > { %6847 = vmatpush3.bf16.msra.mxu1 %v4286_v23 }
 0x9d5   : > { %6848 = vmatprep.subr.bf16.mxu1 %v4304_v56 }
 0x9d8   : > { %6849 = vmatpush3.bf16.msra.mxu1 %v4288_v60 }
 0x9d9   : > { %6850 = vmatprep.subr.bf16.mxu1 %v4306_v28 }
 0x9dc   : > { %6851 = vmatpush3.bf16.msra.mxu1 %v4290_v58 }
 0x9e4   : > { %v4170_v20 = vpop.xlane.xlu0 %4169 }
 0x9e8   : > { %v4176_v11 = vpop.xlane.xlu1 %4175  ;;  %v4173_v46 = vpop.xlane.xlu0 %4172 }
 0x9ec   : > { %v4182_v41 = vpop.xlane.xlu1 %4181  ;;  %v4179_v40 = vpop.xlane.xlu0 %4178 }
 0x9ed   : > { %7964 = vrcp.f32 %v4182_v41 }
 0x9ee   : > { %7966 = vrcp.f32 %v4179_v40 }
 0x9f0   : > { %v4188_v25 = vpop.xlane.xlu1 %4187  ;;  %v4185_v24 = vpop.xlane.xlu0 %4184 }
 0x9f1   : > { %7968 = vrcp.f32 %v4188_v25  ;;  %v6772_v7 = vpop.f32.mrb[144].mxu1 }
 0x9f2   : > { %7970 = vrcp.f32 %v4185_v24  ;;  %v6773_v2 = vpop.f32.mrb[145].mxu1 }
 0x9f3   : > { %v6774_v36 = vadd.f32 %v6773_v2, %v6772_v7  ;;  %v6775_v59 = vpop.f32.mrb[146].mxu1  ;;  %7972 = vrcp.f32 %v4170_v20 }
 0x9f4   : > { %v4292_v53 = vpop.permute.xlu1 %4291  ;;  %v6776_v44 = vpop.f32.mrb[147].mxu1  ;;  %7974 = vrcp.f32 %v4167_v10 }
 0x9f5   : > { %v4308_v14 = vpop.permute.xlu0 %4307  ;;  %v6777_v16 = vadd.f32 %v6776_v44, %v6775_v59  ;;  %7976 = vrcp.f32 %v4176_v11 }
 0x9f6   : > { %6852 = vmatprep.subr.bf16.mxu1 %v4308_v14  ;;  %7978 = vrcp.f32 %v4173_v46 }
 0x9f7   : > { %v7965_v6 = vpop.eup %7964  ;;  %v3635_v32 = vpack.c.bf16 %v6777_v16, %v6774_v36  ;;  %6853 = vmatpush3.bf16.msra.mxu1 %v4292_v53 }
 0x9f8   : > { %v7967_v39 = vpop.eup %7966  ;;  %v11288_v43 = vmul.f32 %v7965_v6, %v11187_v1  ;;  %v11291_v49 = vmul.f32 %v7965_v6, %v11185_v38 }
 0x9f9   : > { %7124 = vmatprep.mubr.msk.bf16.mxu1 %vm1502_vm0, %v3635_v32  ;;  %v11295_v19 = vmul.f32 %v7967_v39, %v11181_v34  ;;  %v11298_v37 = vmul.f32 %v7967_v39, %v11171_v54 }
 0x9fb   : > { %v7969_v29 = vpop.eup %7968  ;;  %v6778_v26 = vpop.f32.mrb[148].mxu1  ;;  %v4266_v23 = vpack.c.bf16 %v11288_v43, %v11295_v19  ;;  %v4265_v1 = vpack.c.bf16 %v11291_v49, %v11298_v37 }
 0x9fc   : > { %v7971_v27 = vpop.eup %7970  ;;  %v6779_v63 = vpop.f32.mrb[149].mxu1  ;;  %v11305_v38 = vmul.f32 %v7969_v29, %v11199_v3  ;;  %v11308_v56 = vmul.f32 %v7969_v29, %v11197_v15 }
 0x9fd   : > { %v6780_v34 = vadd.f32 %v6779_v63, %v6778_v26  ;;  %v6781_v60 = vpop.f32.mrb[150].mxu1  ;;  %v4242_v54 = vmul.f32 %v7971_v27, %v11193_v52  ;;  %v11312_v28 = vmul.f32 %v7971_v27, %v11189_v9  ;;  %v7973_v9 = vpop.eup %7972 }
 0x9fe   : > { %v6782_v58 = vpop.f32.mrb[151].mxu1  ;;  %v7975_v14 = vpop.eup %7974  ;;  %v4232_v39 = vmul.f32 %v7973_v9, %v11169_v30  ;;  %v4231_v10 = vmul.f32 %v7973_v9, %v11167_v12 }
 0x9ff   : > { %v6783_v41 = vadd.f32 %v6782_v58, %v6781_v60  ;;  %v4268_v40 = vpack.c.bf16 %v11305_v38, %v4242_v54  ;;  %v4267_v25 = vpack.c.bf16 %v11308_v56, %v11312_v28  ;;  %v4230_v19 = vmul.f32 %v7975_v14, %v11129_v55  ;;  %v7977_v26 = vpop.eup %7976 }
 0xa00   : > { %v7979_v63 = vpop.eup %7978  ;;  %v4236_v11 = vmul.f32 %v7977_v26, %v11177_v4  ;;  %v4229_v46 = vmul.f32 %v7975_v14, %v11127_v45  ;;  %v4235_v54 = vmul.f32 %v7977_v26, %v11175_v31 }
 0xa01   : > { %v3636_v24 = vpack.c.bf16 %v6783_v41, %v6780_v34  ;;  %v4262_v27 = vpack.c.bf16 %v4232_v39, %v4230_v19  ;;  %v4234_v20 = vmul.f32 %v7979_v63, %v11165_v33  ;;  %v4233_v60 = vmul.f32 %v7979_v63, %v11163_v50 }
 0xa02   : > { %v4261_v38 = vpack.c.bf16 %v4231_v10, %v4229_v46 }
 0xa03   : > { %v6784_v3 = vpop.f32.mrb[152].mxu1  ;;  %7125 = vmatmul.mubr.msk.bf16.gmra.mrb[120].mxu1 %vm1502_vm0, %v3636_v24  ;;  %v4264_v34 = vpack.c.bf16 %v4236_v11, %v4234_v20  ;;  %v4263_v12 = vpack.c.bf16 %v4235_v54, %v4233_v60 }
 0xa04   : > { %v6785_v15 = vpop.f32.mrb[153].mxu1 }
 0xa05   : > { %v6786_v7 = vadd.f32 %v6785_v15, %v6784_v3  ;;  %v6787_v2 = vpop.f32.mrb[154].mxu1 }
 0xa06   : > { %v6788_v36 = vpop.f32.mrb[155].mxu1 }
 0xa07   : > { %v6789_v59 = vadd.f32 %v6788_v36, %v6787_v2 }
 0xa09   : > { %v3637_v52 = vpack.c.bf16 %v6789_v59, %v6786_v7 }
 0xa0b   : > { %7128 = vmatprep.mubr.msk.bf16.mxu1 %vm1502_vm0, %v3637_v52 }
 0xa24   : > { %v6790_v53 = vpop.f32.mrb[156].mxu1 }
 0xa25   : > { %v6791_v44 = vpop.f32.mrb[157].mxu1  ;;  %v4191_v30 = vpop.xlane.xlu0 %4190 }
 0xa26   : > { %v6792_v16 = vadd.f32 %v6791_v44, %v6790_v53  ;;  %v6793_v6 = vpop.f32.mrb[158].mxu1  ;;  %v4194_v55 = vpop.xlane.xlu1 %4193 }
 0xa27   : > { %v6794_v32 = vpop.f32.mrb[159].mxu1  ;;  %7980 = vrcp.f32 %v4194_v55 }
 0xa28   : > { %v6795_v43 = vadd.f32 %v6794_v32, %v6793_v6  ;;  %7982 = vrcp.f32 %v4191_v30  ;;  %v7530_v6 = vld [vmem:[#allocation13 + $0x30] sm:$0xff]  }
 0xa29   : > { %v4197_v58 = vpop.xlane.xlu0 %4196  ;;  %7132 = vmatprep.subr.bf16.mxu1 %v7530_v6 }
 0xa2a   : > { %v3638_v29 = vpack.c.bf16 %v6795_v43, %v6792_v16  ;;  %v4203_v24 = vpop.xlane.xlu1 %4202 }
 0xa2c   : > { %7129 = vmatmul.mubr.msk.bf16.gmra.mrb[124].mxu1 %vm1502_vm0, %v3638_v29 }
 0xa2d   : > { %4357 = vmatprep.mubr.bf16.mxu1 %v4262_v27  ;;  %v4200_v33 = vpop.xlane.xlu0 %4199 }
 0xa2e   : > { %7984 = vrcp.f32 %v4200_v33 }
 0xa2f   : > { %7986 = vrcp.f32 %v4197_v58 }
 0xa31   : > { %v7981_v4 = vpop.eup %7980  ;;  %v4206_v41 = vpop.xlane.xlu0 %4205 }
 0xa32   : > { %v7983_v45 = vpop.eup %7982  ;;  %v4248_v31 = vmul.f32 %v7981_v4, %v11239_v21  ;;  %7988 = vrcp.f32 %v4206_v41  ;;  %v4247_v37 = vmul.f32 %v7981_v4, %v11236_v35 }
 0xa33   : > { %v4246_v50 = vmul.f32 %v7983_v45, %v11241_v61  ;;  %7990 = vrcp.f32 %v4203_v24  ;;  %v4245_v49 = vmul.f32 %v7983_v45, %v11233_v5 }
 0xa34   : > { %4358 = vmatmul.mubr.bf16.vlgmr.msra.gmra.mrb[160].mxu1 %v4261_v38 }
 0xa35   : > { %4365 = vmatprep.mubr.bf16.mxu1 %v4264_v34  ;;  %v4270_v3 = vpack.c.bf16 %v4248_v31, %v4246_v50  ;;  %v4269_v7 = vpack.c.bf16 %v4247_v37, %v4245_v49  ;;  %7133 = vmatpush3.bf16.msra.mxu1 %v7530_v6 }
 0xa38   : > { %v7985_v15 = vpop.eup %7984 }
 0xa39   : > { %v4252_v61 = vmul.f32 %v7985_v15, %v11265_v22  ;;  %v4251_v28 = vmul.f32 %v7985_v15, %v11261_v18 }
 0xa3c   : > { %4366 = vmatmul.mubr.bf16.gmra.mrb[164].mxu1 %v4263_v12 }
 0xa3d   : > { %4373 = vmatprep.mubr.bf16.mxu1 %v4266_v23  ;;  %v7987_v23 = vpop.eup %7986 }
 0xa3e   : > { %v4250_v21 = vmul.f32 %v7987_v23, %v11253_v62  ;;  %v7989_v36 = vpop.eup %7988  ;;  %v4249_v35 = vmul.f32 %v7987_v23, %v11243_v17 }
 0xa3f   : > { %v7991_v56 = vpop.eup %7990  ;;  %v4256_v5 = vmul.f32 %v7989_v36, %v11273_v57  ;;  %v4255_v9 = vmul.f32 %v7989_v36, %v11269_v8  ;;  %v7531_v8 = vld [vmem:[#allocation13 + $0x38] sm:$0xff]  }
 0xa40   : > { %v4272_v2 = vpack.c.bf16 %v4252_v61, %v4250_v21  ;;  %v4271_v22 = vpack.c.bf16 %v4251_v28, %v4249_v35  ;;  %v4253_v44 = vmul.f32 %v7991_v56, %v11245_v47  ;;  %7134 = vmatprep.subr.bf16.mxu1 %v7531_v8 }
 0xa41   : > { %7135 = vmatpush3.bf16.msra.mxu1 %v7531_v8  ;;  %v8060_v8 = vld [vmem:[%s9341_s29] sm:$0xff] }
 0xa42   : > { %v4273_v14 = vpack.c.bf16 %v4255_v9, %v4253_v44 }
 0xa44   : > { %4374 = vmatmul.mubr.bf16.gmra.mrb[168].mxu1 %v4265_v1  ;;  %v4212_v1 = vpop.xlane.xlu0 %4211 }
 0xa45   : > { %4381 = vmatprep.mubr.bf16.mxu1 %v4268_v40  ;;  %v4209_v40 = vpop.xlane.xlu1 %4208  ;;  %7992 = vrcp.f32 %v4212_v1 }
 0xa46   : > { %7994 = vrcp.f32 %v4209_v40 }
 0xa4c   : > { %4382 = vmatmul.mubr.bf16.gmra.mrb[172].mxu1 %v4267_v25  ;;  %v4254_v25 = vmul.f32 %v7991_v56, %v11249_v13 }
 0xa4d   : > { %4389 = vmatprep.mubr.bf16.mxu1 %v4270_v3 }
 0xa4e   : > { %v4274_v59 = vpack.c.bf16 %v4256_v5, %v4254_v25 }
 0xa4f   : > { %v7993_v52 = vpop.eup %7992 }
 0xa50   : > { %v7995_v62 = vpop.eup %7994  ;;  %v4260_v53 = vmul.f32 %v7993_v52, %v11279_v48  ;;  %v4259_v17 = vmul.f32 %v7993_v52, %v11275_v51 }
 0xa51   : > { %v4258_v18 = vmul.f32 %v7995_v62, %v11257_v0  ;;  %v4257_v13 = vmul.f32 %v7995_v62, %v11255_v42 }
 0xa53   : > { %v4276_v57 = vpack.c.bf16 %v4260_v53, %v4258_v18  ;;  %v4275_v16 = vpack.c.bf16 %v4259_v17, %v4257_v13  ;;  %v11358_v18 = vld [vmem:[#allocation14] ss:$0 sm:$0xff] }
 0xa54   : > { %4390 = vmatmul.mubr.bf16.gmra.mrb[176].mxu1 %v4269_v7 }
 0xa55   : > { %4397 = vmatprep.mubr.bf16.mxu1 %v4272_v2 }
 0xa5c   : > { %4398 = vmatmul.mubr.bf16.gmra.mrb[180].mxu1 %v4271_v22 }
 0xa5d   : > { %4405 = vmatprep.mubr.bf16.mxu1 %v4274_v59 }
 0xa64   : > { %4406 = vmatmul.mubr.bf16.gmra.mrb[184].mxu1 %v4273_v14 }
 0xa65   : > { %4413 = vmatprep.mubr.bf16.mxu1 %v4276_v57 }
 0xa6c   : > { %4414 = vmatmul.mubr.bf16.gmra.mrb[188].mxu1 %v4275_v16 }
 0xb07   : > { %v6854_v48 = vpop.f32.mrb[160].mxu1 }
 0xb08   : > { %v6855_v47 = vpop.f32.mrb[161].mxu1 }
 0xb09   : > { %v6856_v32 = vadd.f32 %v6855_v47, %v6854_v48  ;;  %v6857_v0 = vpop.f32.mrb[162].mxu1 }
 0xb0a   : > { %v6858_v39 = vpop.f32.mrb[163].mxu1 }
 0xb0b   : > { %v6859_v43 = vadd.f32 %v6858_v39, %v6857_v0  ;;  %v8061_v0 = vld [vmem:[%s9341_s29 + $0x8] sm:$0xff] }
 0xb0d   : > { %v4422_v19 = vpack.c.bf16 %v6859_v43, %v6856_v32  ;;  %v8062_v43 = vld [vmem:[%s9341_s29 + $0x10] sm:$0xff] }
 0xb0f   : > { %v6860_v29 = vpop.f32.mrb[164].mxu1  ;;  %7136 = vmatprep.mubr.msk.bf16.mxu1 %vm1502_vm0, %v4422_v19 }
 0xb10   : > { %v6861_v51 = vpop.f32.mrb[165].mxu1 }
 0xb11   : > { %v6862_v42 = vadd.f32 %v6861_v51, %v6860_v29  ;;  %v6863_v26 = vpop.f32.mrb[166].mxu1  ;;  %v8063_v29 = vld [vmem:[%s9341_s29 + $0x18] sm:$0xff] }
 0xb12   : > { %v6864_v27 = vpop.f32.mrb[167].mxu1 }
 0xb13   : > { %v6865_v63 = vadd.f32 %v6864_v27, %v6863_v26 }
 0xb15   : > { %v4423_v10 = vpack.c.bf16 %v6865_v63, %v6862_v42 }
 0xb17   : > { %v6866_v20 = vpop.f32.mrb[168].mxu1  ;;  %7137 = vmatmul.mubr.msk.bf16.vlgmr.msra.gmra.mrb[112].mxu1 %vm1502_vm0, %v4423_v10 }
 0xb18   : > { %v6867_v11 = vpop.f32.mrb[169].mxu1 }
 0xb19   : > { %v6868_v46 = vadd.f32 %v6867_v11, %v6866_v20  ;;  %v6869_v38 = vpop.f32.mrb[170].mxu1  ;;  %v8064_v11 = vld [vmem:[%s9341_s29 + $0x20] sm:$0xff] }
 0xb1a   : > { %v6870_v30 = vpop.f32.mrb[171].mxu1 }
 0xb1b   : > { %v6871_v34 = vadd.f32 %v6870_v30, %v6869_v38 }
 0xb1d   : > { %v4424_v55 = vpack.c.bf16 %v6871_v34, %v6868_v46  ;;  %v8065_v34 = vld [vmem:[%s9341_s29 + $0x28] sm:$0xff] }
 0xb1f   : > { %v6872_v60 = vpop.f32.mrb[172].mxu1  ;;  %7140 = vmatprep.mubr.msk.bf16.mxu1 %vm1502_vm0, %v4424_v55 }
 0xb20   : > { %v6873_v54 = vpop.f32.mrb[173].mxu1 }
 0xb21   : > { %v6874_v58 = vadd.f32 %v6873_v54, %v6872_v60  ;;  %v6875_v12 = vpop.f32.mrb[174].mxu1  ;;  %v8066_v60 = vld [vmem:[%s9341_s29 + $0x30] sm:$0xff] }
 0xb22   : > { %v6876_v33 = vpop.f32.mrb[175].mxu1 }
 0xb23   : > { %v6877_v4 = vadd.f32 %v6876_v33, %v6875_v12 }
 0xb25   : > { %v4425_v45 = vpack.c.bf16 %v6877_v4, %v6874_v58  ;;  %v8067_v58 = vld [vmem:[%s9341_s29 + $0x38] sm:$0xff] }
 0xb27   : > { %v6878_v41 = vpop.f32.mrb[176].mxu1  ;;  %7141 = vmatmul.mubr.msk.bf16.gmra.mrb[116].mxu1 %vm1502_vm0, %v4425_v45 }
 0xb28   : > { %v6879_v50 = vpop.f32.mrb[177].mxu1 }
 0xb29   : > { %v6880_v31 = vadd.f32 %v6879_v50, %v6878_v41  ;;  %v6881_v24 = vpop.f32.mrb[178].mxu1 }
 0xb2a   : > { %v6882_v3 = vpop.f32.mrb[179].mxu1 }
 0xb2b   : > { %v6883_v15 = vadd.f32 %v6882_v3, %v6881_v24  ;;  %v8068_v24 = vld [vmem:[%s9341_s29 + $0x40] sm:$0xff] }
 0xb2d   : > { %v4426_v23 = vpack.c.bf16 %v6883_v15, %v6880_v31 }
 0xb2f   : > { %v6884_v49 = vpop.f32.mrb[180].mxu1  ;;  %7144 = vmatprep.mubr.msk.bf16.mxu1 %vm1502_vm0, %v4426_v23 }
 0xb30   : > { %v6885_v37 = vpop.f32.mrb[181].mxu1 }
 0xb31   : > { %v6886_v1 = vadd.f32 %v6885_v37, %v6884_v49  ;;  %v6887_v61 = vpop.f32.mrb[182].mxu1  ;;  %v8069_v49 = vld [vmem:[%s9341_s29 + $0x48] sm:$0xff] }
 0xb32   : > { %v6888_v40 = vpop.f32.mrb[183].mxu1 }
 0xb33   : > { %v6889_v21 = vadd.f32 %v6888_v40, %v6887_v61  ;;  %v8071_v40 = vld [vmem:[%s9341_s29 + $0x58] sm:$0xff] }
 0xb35   : > { %v4427_v7 = vpack.c.bf16 %v6889_v21, %v6886_v1  ;;  %v8070_v1 = vld [vmem:[%s9341_s29 + $0x50] sm:$0xff] }
 0xb37   : > { %v6890_v2 = vpop.f32.mrb[184].mxu1  ;;  %7145 = vmatmul.mubr.msk.bf16.gmra.mrb[120].mxu1 %vm1502_vm0, %v4427_v7 }
 0xb38   : > { %v6891_v36 = vpop.f32.mrb[185].mxu1 }
 0xb39   : > { %v6892_v56 = vadd.f32 %v6891_v36, %v6890_v2  ;;  %v6893_v28 = vpop.f32.mrb[186].mxu1 }
 0xb3a   : > { %v6894_v5 = vpop.f32.mrb[187].mxu1 }
 0xb3b   : > { %v6895_v35 = vadd.f32 %v6894_v5, %v6893_v28 }
 0xb3d   : > { %v4428_v25 = vpack.c.bf16 %v6895_v35, %v6892_v56  ;;  %v8072_v35 = vld [vmem:[%s9341_s29 + $0x60] sm:$0xff] }
 0xb3f   : > { %v6896_v22 = vpop.f32.mrb[188].mxu1  ;;  %7148 = vmatprep.mubr.msk.bf16.mxu1 %vm1502_vm0, %v4428_v25 }
 0xb40   : > { %v6897_v59 = vpop.f32.mrb[189].mxu1 }
 0xb41   : > { %v6898_v52 = vadd.f32 %v6897_v59, %v6896_v22  ;;  %v6899_v62 = vpop.f32.mrb[190].mxu1 }
 0xb42   : > { %v6900_v9 = vpop.f32.mrb[191].mxu1 }
 0xb43   : > { %v6901_v53 = vadd.f32 %v6900_v9, %v6899_v62  ;;  %v8074_v9 = vld [vmem:[%s9341_s29 + $0x70] sm:$0xff] }
 0xb45   : > { %v4429_v44 = vpack.c.bf16 %v6901_v53, %v6898_v52  ;;  %v8073_v52 = vld [vmem:[%s9341_s29 + $0x68] sm:$0xff] }
 0xb47   : > { %7149 = vmatmul.mubr.msk.bf16.gmra.mrb[124].mxu1 %vm1502_vm0, %v4429_v44  ;;  %v8075_v44 = vld [vmem:[%s9341_s29 + $0x78] sm:$0xff]  ;;  %s6009_s29 = sshll.u32 %s11944_s21, 4  ;;  %s12010_s29 = int_to_ptr.vmem [resolvable:$true] %s6009_s29 }
 0xb48   : > { %s8528_s30 = scalar_lea.vmem %s12010_s29, 2048  ;;  %p8535_p1 = scmp.lt.s32.totalorder %s12010_s29, %s8533_s20 }
 0xb49   : > { %p8529_p2 = scmp.ne.s32.totalorder %s12010_s29, %s8528_s30  ;;  %p8536_p5 = scmp.lt.s32.totalorder %s8534_s2, %s8528_s30 }
 0xb4b   : > { %p8530_p12 = pnand %p8529_p2, %p12608_p10  ;;  %p8537_p6 = por %p8536_p5, %p8535_p1 }
 0xb4d   : > { %p8531_p13 = pneg %p8530_p12 }
 0xb4f   : > { %p8538_p3 = pnand %p8537_p6, %p8531_p13 }
 0xbea   : > { %v7138_v14 = vpop.f32.mrb[112].mxu1 }
 0xbeb   : > { %v4500_v57 = vpop.f32.mrb[113].mxu1  ;;  %v4587_v6 = vadd.f32 %v7138_v14, %v11358_v18 }
 0xbec   : > { %v4585_v17 = vadd.f32 %v11358_v18, %v4500_v57  ;;  %v7139_v13 = vpop.f32.mrb[114].mxu1  ;;  %v7532_v57 = vld [vmem:[#allocation19] ss:$16 sps:$4 sm:$0xff]  }
 0xbed   : > { %v4503_v16 = vpop.f32.mrb[115].mxu1  ;;  %v4588_v32 = vadd.f32 %v7139_v13, %v11358_v18  ;;  %v11372_v19 = vadd.f32 %v8062_v43, %v4587_v6  ;;  %v7535_v13 = vld [vmem:[#allocation19 + $0x20] ss:$16 sps:$4 sm:$0xff]  }
 0xbee   : > { %v11363_v48 = vadd.f32 %v8060_v8, %v4585_v17  ;;  %v4586_v47 = vadd.f32 %v11358_v18, %v4503_v16  ;;  %v7534_v17 = vld [vmem:[#allocation19 + $0x4] ss:$16 sps:$4 sm:$0xff]  }
 0xbef   : > { %v11376_v51 = vadd.f32 %v8063_v29, %v4588_v32  ;;  %5027 = vmatprep.subr.bf16.mxu0 %v7534_v17 }
 0xbf0   : > { %v11368_v39 = vadd.f32 %v8061_v0, %v4586_v47  ;;  %4617 = vadd.xlane.f32.xlu1 %v11363_v48  ;;  %5028 = vmatpush1.bf16.msra.mxu0 %v7532_v57 }
 0xbf2   : > { %4619 = vadd.xlane.f32.xlu0 %v11368_v39 }
 0xbf4   : > { %4621 = vadd.xlane.f32.xlu1 %v11372_v19 }
 0xbf6   : > { %4623 = vadd.xlane.f32.xlu0 %v11376_v51 }
 0xbfa   : > { %v7142_v42 = vpop.f32.mrb[116].mxu1 }
 0xbfb   : > { %v4516_v26 = vpop.f32.mrb[117].mxu1  ;;  %v4591_v20 = vadd.f32 %v7142_v42, %v11358_v18 }
 0xbfc   : > { %v4589_v27 = vadd.f32 %v11358_v18, %v4516_v26  ;;  %v7143_v63 = vpop.f32.mrb[118].mxu1 }
 0xbfd   : > { %v4519_v10 = vpop.f32.mrb[119].mxu1  ;;  %v4592_v30 = vadd.f32 %v7143_v63, %v11358_v18  ;;  %v11392_v54 = vadd.f32 %v8066_v60, %v4591_v20 }
 0xbfe   : > { %v11383_v46 = vadd.f32 %v8064_v11, %v4589_v27  ;;  %v4590_v38 = vadd.f32 %v11358_v18, %v4519_v10 }
 0xbff   : > { %v11396_v12 = vadd.f32 %v8067_v58, %v4592_v30 }
 0xc00   : > { %v11388_v55 = vadd.f32 %v8065_v34, %v4590_v38  ;;  %4625 = vadd.xlane.f32.xlu1 %v11383_v46 }
 0xc02   : > { %4627 = vadd.xlane.f32.xlu0 %v11388_v55 }
 0xc04   : > { %4629 = vadd.xlane.f32.xlu1 %v11392_v54 }
 0xc06   : > { %4631 = vadd.xlane.f32.xlu0 %v11396_v12 }
 0xc0a   : > { %v7146_v33 = vpop.f32.mrb[120].mxu1 }
 0xc0b   : > { %v4532_v4 = vpop.f32.mrb[121].mxu1  ;;  %v4595_v31 = vadd.f32 %v7146_v33, %v11358_v18 }
 0xc0c   : > { %v4593_v45 = vadd.f32 %v11358_v18, %v4532_v4  ;;  %v7147_v41 = vpop.f32.mrb[122].mxu1  ;;  %v7540_v4 = vld [vmem:[#allocation19 + $0x44] ss:$16 sps:$4 sm:$0xff]  }
 0xc0d   : > { %v4535_v50 = vpop.f32.mrb[123].mxu1  ;;  %v4596_v23 = vadd.f32 %v7147_v41, %v11358_v18  ;;  %v11412_v61 = vadd.f32 %v8070_v1, %v4595_v31  ;;  %v7538_v41 = vld [vmem:[#allocation19 + $0x40] ss:$16 sps:$4 sm:$0xff]  }
 0xc0e   : > { %v11403_v3 = vadd.f32 %v8068_v24, %v4593_v45  ;;  %v4594_v15 = vadd.f32 %v11358_v18, %v4535_v50  ;;  %v7544_v1 = vld [vmem:[#allocation19 + $0x80] ss:$16 sps:$4 sm:$0xff]  }
 0xc0f   : > { %v11416_v21 = vadd.f32 %v8071_v40, %v4596_v23  ;;  %v7541_v23 = vld [vmem:[#allocation19 + $0x60] ss:$16 sps:$4 sm:$0xff]  }
 0xc10   : > { %v11408_v37 = vadd.f32 %v8069_v49, %v4594_v15  ;;  %4633 = vadd.xlane.f32.xlu1 %v11403_v3  ;;  %v7543_v15 = vld [vmem:[#allocation19 + $0x64] ss:$16 sps:$4 sm:$0xff]  }
 0xc11   : > { %v7546_v49 = vld [vmem:[#allocation19 + $0x84] ss:$16 sps:$4 sm:$0xff]  }
 0xc12   : > { %4635 = vadd.xlane.f32.xlu0 %v11408_v37 }
 0xc14   : > { %4637 = vadd.xlane.f32.xlu1 %v11412_v61 }
 0xc16   : > { %4639 = vadd.xlane.f32.xlu0 %v11416_v21 }
 0xc1a   : > { %v7150_v7 = vpop.f32.mrb[124].mxu1 }
 0xc1b   : > { %v4548_v2 = vpop.f32.mrb[125].mxu1  ;;  %v4599_v5 = vadd.f32 %v7150_v7, %v11358_v18  ;;  %v7549_v7 = vld [vmem:[#allocation19 + $0xa4] ss:$16 sps:$4 sm:$0xff]  }
 0xc1c   : > { %v4597_v36 = vadd.f32 %v11358_v18, %v4548_v2  ;;  %v7151_v56 = vpop.f32.mrb[126].mxu1 }
 0xc1d   : > { %v4551_v28 = vpop.f32.mrb[127].mxu1  ;;  %v4600_v59 = vadd.f32 %v7151_v56, %v11358_v18  ;;  %v11432_v53 = vadd.f32 %v8074_v9, %v4599_v5 }
 0xc1e   : > { %v11423_v25 = vadd.f32 %v8072_v35, %v4597_v36  ;;  %v4598_v22 = vadd.f32 %v11358_v18, %v4551_v28  ;;  %v7537_v18 = vld [vmem:[#allocation19 + $0x24] ss:$16 sps:$4 sm:$0xff]   ;;  %v7547_v36 = vld [vmem:[#allocation19 + $0xa0] ss:$16 sps:$4 sm:$0xff]  }
 0xc1f   : > { %v11436_v14 = vadd.f32 %v8075_v44, %v4600_v59  ;;  %5029 = vmatprep.subr.bf16.mxu0 %v7537_v18  ;;  %v7550_v44 = vld [vmem:[#allocation19 + $0xc0] ss:$16 sps:$4 sm:$0xff]  }
 0xc20   : > { %v11428_v62 = vadd.f32 %v8073_v52, %v4598_v22  ;;  %4641 = vadd.xlane.f32.xlu1 %v11423_v25  ;;  %5030 = vmatpush1.bf16.msra.mxu0 %v7535_v13  ;;  %v7552_v52 = vld [vmem:[#allocation19 + $0xc4] ss:$16 sps:$4 sm:$0xff]  }
 0xc21   : > { %5031 = vmatprep.subr.bf16.mxu0 %v7540_v4  ;;  %v7555_v13 = vld [vmem:[#allocation19 + $0xe4] ss:$16 sps:$4 sm:$0xff]  }
 0xc22   : > { %4643 = vadd.xlane.f32.xlu0 %v11428_v62 }
 0xc24   : > { %4645 = vadd.xlane.f32.xlu1 %v11432_v53  ;;  %5032 = vmatpush1.bf16.msra.mxu0 %v7538_v41 }
 0xc25   : > { %5033 = vmatprep.subr.bf16.mxu0 %v7543_v15 }
 0xc26   : > { %4647 = vadd.xlane.f32.xlu0 %v11436_v14 }
 0xc28   : > { %5034 = vmatpush1.bf16.msra.mxu0 %v7541_v23  ;;  %v11520_v23 = vld [vmem:[#allocation16] ss:$0 sm:$0xff] }
 0xc29   : > { %5035 = vmatprep.subr.bf16.mxu0 %v7546_v49 }
 0xc2c   : > { %5036 = vmatpush1.bf16.msra.mxu0 %v7544_v1 }
 0xc2d   : > { %5037 = vmatprep.subr.bf16.mxu0 %v7549_v7 }
 0xc30   : > { %5038 = vmatpush1.bf16.msra.mxu0 %v7547_v36  ;;  %v7580_v36 = vld [vmem:[#allocation22 + $0x40] sm:$0xff]  }
 0xc31   : > { %5039 = vmatprep.subr.bf16.mxu0 %v7552_v52  ;;  %6912 = vmatprep.subr.bf16.mxu1 %v7580_v36 }
 0xc34   : > { %5040 = vmatpush1.bf16.msra.mxu0 %v7550_v44 }
 0xc35   : > { %5041 = vmatprep.subr.bf16.mxu0 %v7555_v13  ;;  %v7583_v13 = vld [vmem:[#allocation22 + $0x8] sm:$0xff]  }
 0xc7d   : > { %v4618_v16 = vpop.xlane.xlu1 %4617 }
 0xc7e   : > { %v4650_v6 = vmul.f32 0.0078125, %v4618_v16  ;;  %v7553_v16 = vld [vmem:[#allocation19 + $0xe0] ss:$16 sps:$4 sm:$0xff]  }
 0xc7f   : > { %v4620_v8 = vpop.xlane.xlu0 %4619  ;;  %5042 = vmatpush1.bf16.msra.mxu0 %v7553_v16 }
 0xc80   : > { %v11441_v47 = vsub.f32 %v11363_v48, %v4650_v6  ;;  %v4651_v32 = vmul.f32 0.0078125, %v4620_v8 }
 0xc81   : > { %v4622_v0 = vpop.xlane.xlu1 %4621 }
 0xc82   : > { %v11444_v43 = vsub.f32 %v11368_v39, %v4651_v32  ;;  %v4652_v29 = vmul.f32 0.0078125, %v4622_v0  ;;  %v4682_v42 = vmul.f32 %v11441_v47, %v11441_v47 }
 0xc83   : > { %v4624_v26 = vpop.xlane.xlu0 %4623 }
 0xc84   : > { %v11449_v27 = vsub.f32 %v11372_v19, %v4652_v29  ;;  %v4653_v63 = vmul.f32 0.0078125, %v4624_v26  ;;  %4698 = vadd.xlane.f32.xlu1 %v4682_v42  ;;  %v4683_v10 = vmul.f32 %v11444_v43, %v11444_v43 }
 0xc86   : > { %v11454_v48 = vsub.f32 %v11376_v51, %v4653_v63  ;;  %4700 = vadd.xlane.f32.xlu0 %v4683_v10  ;;  %v4684_v39 = vmul.f32 %v11449_v27, %v11449_v27 }
 0xc88   : > { %4702 = vadd.xlane.f32.xlu1 %v4684_v39  ;;  %v4685_v20 = vmul.f32 %v11454_v48, %v11454_v48 }
 0xc8a   : > { %4704 = vadd.xlane.f32.xlu0 %v4685_v20 }
 0xc8d   : > { %v4626_v11 = vpop.xlane.xlu1 %4625 }
 0xc8e   : > { %v4654_v19 = vmul.f32 0.0078125, %v4626_v11 }
 0xc8f   : > { %v4628_v38 = vpop.xlane.xlu0 %4627 }
 0xc90   : > { %v11461_v30 = vsub.f32 %v11383_v46, %v4654_v19  ;;  %v4655_v34 = vmul.f32 0.0078125, %v4628_v38  ;;  %v7558_v38 = vld [vmem:[#allocation19 + $0xc] ss:$16 sps:$4 sm:$0xff]  }
 0xc91   : > { %v4630_v60 = vpop.xlane.xlu1 %4629  ;;  %5140 = vmatprep.subr.bf16.mxu0 %v7558_v38  ;;  %v7559_v38 = vld [vmem:[#allocation19 + $0x28] ss:$16 sps:$4 sm:$0xff]  }
 0xc92   : > { %v11464_v51 = vsub.f32 %v11388_v55, %v4655_v34  ;;  %v4656_v58 = vmul.f32 0.0078125, %v4630_v60  ;;  %v4686_v33 = vmul.f32 %v11461_v30, %v11461_v30 }
 0xc93   : > { %v4632_v45 = vpop.xlane.xlu0 %4631 }
 0xc94   : > { %v11469_v50 = vsub.f32 %v11392_v54, %v4656_v58  ;;  %v4657_v31 = vmul.f32 0.0078125, %v4632_v45  ;;  %4706 = vadd.xlane.f32.xlu1 %v4686_v33  ;;  %v4687_v46 = vmul.f32 %v11464_v51, %v11464_v51 }
 0xc96   : > { %v11474_v55 = vsub.f32 %v11396_v12, %v4657_v31  ;;  %4708 = vadd.xlane.f32.xlu0 %v4687_v46  ;;  %v4688_v24 = vmul.f32 %v11469_v50, %v11469_v50 }
 0xc98   : > { %4710 = vadd.xlane.f32.xlu1 %v4688_v24  ;;  %v4689_v54 = vmul.f32 %v11474_v55, %v11474_v55 }
 0xc9a   : > { %4712 = vadd.xlane.f32.xlu0 %v4689_v54 }
 0xc9d   : > { %v4634_v40 = vpop.xlane.xlu1 %4633 }
 0xc9e   : > { %v4658_v12 = vmul.f32 0.0078125, %v4634_v40 }
 0xc9f   : > { %v4636_v2 = vpop.xlane.xlu0 %4635 }
 0xca0   : > { %v11481_v56 = vsub.f32 %v11403_v3, %v4658_v12  ;;  %v4659_v28 = vmul.f32 0.0078125, %v4636_v2 }
 0xca1   : > { %v4638_v5 = vpop.xlane.xlu1 %4637 }
 0xca2   : > { %v11484_v35 = vsub.f32 %v11408_v37, %v4659_v28  ;;  %v4660_v22 = vmul.f32 0.0078125, %v4638_v5  ;;  %v4690_v59 = vmul.f32 %v11481_v56, %v11481_v56  ;;  %v7581_v28 = vld [vmem:[#allocation22] sm:$0xff]   ;;  %v7582_v5 = vld [vmem:[#allocation22 + $0x48] sm:$0xff]  }
 0xca3   : > { %v4640_v9 = vpop.xlane.xlu0 %4639  ;;  %6913 = vmatpush3.bf16.msra.mxu1 %v7581_v28 }
 0xca4   : > { %v11489_v57 = vsub.f32 %v11412_v61, %v4660_v22  ;;  %v4661_v17 = vmul.f32 0.0078125, %v4640_v9  ;;  %4714 = vadd.xlane.f32.xlu1 %v4690_v59  ;;  %v4691_v3 = vmul.f32 %v11484_v35, %v11484_v35  ;;  %v11525_v9 = vld [vmem:[#allocation17] ss:$0 sm:$0xff]  ;;  %6914 = vmatprep.subr.bf16.mxu1 %v7582_v5 }
 0xca6   : > { %v11494_v37 = vsub.f32 %v11416_v21, %v4661_v17  ;;  %4716 = vadd.xlane.f32.xlu0 %v4691_v3  ;;  %v4692_v18 = vmul.f32 %v11489_v57, %v11489_v57 }
 0xca7   : > { %6915 = vmatpush3.bf16.msra.mxu1 %v7583_v13 }
 0xca8   : > { %4718 = vadd.xlane.f32.xlu1 %v4692_v18  ;;  %v4693_v61 = vmul.f32 %v11494_v37, %v11494_v37 }
 0xcaa   : > { %4720 = vadd.xlane.f32.xlu0 %v4693_v61 }
 0xcad   : > { %v4642_v6 = vpop.xlane.xlu1 %4641 }
 0xcae   : > { %v4662_v8 = vmul.f32 0.0078125, %v4642_v6 }
 0xcaf   : > { %v4644_v32 = vpop.xlane.xlu0 %4643 }
 0xcb0   : > { %v11501_v0 = vsub.f32 %v11423_v25, %v4662_v8  ;;  %v4663_v21 = vmul.f32 0.0078125, %v4644_v32  ;;  %v7584_v32 = vld [vmem:[#allocation22 + $0x50] sm:$0xff]  }
 0xcb1   : > { %v4646_v29 = vpop.xlane.xlu1 %4645  ;;  %6916 = vmatprep.subr.bf16.mxu1 %v7584_v32 }
 0xcb2   : > { %v11504_v42 = vsub.f32 %v11428_v62, %v4663_v21  ;;  %v4664_v26 = vmul.f32 0.0078125, %v4646_v29  ;;  %v4694_v63 = vmul.f32 %v11501_v0, %v11501_v0 }
 0xcb3   : > { %v4648_v10 = vpop.xlane.xlu0 %4647 }
 0xcb4   : > { %v11509_v39 = vsub.f32 %v11432_v53, %v4664_v26  ;;  %v4665_v20 = vmul.f32 0.0078125, %v4648_v10  ;;  %4722 = vadd.xlane.f32.xlu1 %v4694_v63  ;;  %v4695_v11 = vmul.f32 %v11504_v42, %v11504_v42  ;;  %v7556_v26 = vld [vmem:[#allocation19 + $0x8] ss:$16 sps:$4 sm:$0xff]  }
 0xcb6   : > { %v11514_v25 = vsub.f32 %v11436_v14, %v4665_v20  ;;  %4724 = vadd.xlane.f32.xlu0 %v4695_v11  ;;  %v4696_v62 = vmul.f32 %v11509_v39, %v11509_v39  ;;  %v7561_v20 = vld [vmem:[#allocation19 + $0x2c] ss:$16 sps:$4 sm:$0xff]  }
 0xcb8   : > { %4726 = vadd.xlane.f32.xlu1 %v4696_v62  ;;  %v4697_v19 = vmul.f32 %v11514_v25, %v11514_v25  ;;  %v7585_v62 = vld [vmem:[#allocation22 + $0x10] sm:$0xff]  }
 0xcb9   : > { %6917 = vmatpush3.bf16.msra.mxu1 %v7585_v62  ;;  %v7574_v62 = vld [vmem:[#allocation19 + $0xc8] ss:$16 sps:$4 sm:$0xff]  }
 0xcba   : > { %4728 = vadd.xlane.f32.xlu0 %v4697_v19  ;;  %v12600_v19 = vmov 0  }
 0xd11   : > { %v4699_v53 = vpop.xlane.xlu1 %4698 }
 0xd12   : > { %v4730_v34 = vmul.f32 0.0078125, %v4699_v53 }
 0xd13   : > { %v4701_v60 = vpop.xlane.xlu0 %4700 }
 0xd14   : > { %v4746_v58 = vadd.f32 1e-05, %v4730_v34  ;;  %v4731_v33 = vmul.f32 0.0078125, %v4701_v60  ;;  %v7564_v34 = vld [vmem:[#allocation19 + $0x4c] ss:$16 sps:$4 sm:$0xff]  }
 0xd15   : > { %v4703_v4 = vpop.xlane.xlu1 %4702  ;;  %v7587_v60 = vld [vmem:[#allocation22 + $0x18] sm:$0xff]  }
 0xd16   : > { %7996 = vrsqrt.f32 %v4746_v58  ;;  %v4747_v14 = vadd.f32 1e-05, %v4731_v33  ;;  %v4732_v45 = vmul.f32 0.0078125, %v4703_v4  ;;  %v7588_v33 = vld [vmem:[#allocation22 + $0x60] sm:$0xff]  }
 0xd17   : > { %v4705_v41 = vpop.xlane.xlu0 %4704 }
 0xd18   : > { %7998 = vrsqrt.f32 %v4747_v14  ;;  %v4748_v31 = vadd.f32 1e-05, %v4732_v45  ;;  %v4733_v46 = vmul.f32 0.0078125, %v4705_v41  ;;  %v7562_v14 = vld [vmem:[#allocation19 + $0x48] ss:$16 sps:$4 sm:$0xff]  }
 0xd1a   : > { %8000 = vrsqrt.f32 %v4748_v31  ;;  %v4749_v24 = vadd.f32 1e-05, %v4733_v46  ;;  %v7567_v46 = vld [vmem:[#allocation19 + $0x6c] ss:$16 sps:$4 sm:$0xff]  }
 0xd1c   : > { %8002 = vrsqrt.f32 %v4749_v24 }
 0xd20   : > { %v7997_v15 = vpop.eup %7996 }
 0xd21   : > { %v4778_v54 = vmul.f32 %v7997_v15, %v11441_v47  ;;  %v4707_v49 = vpop.xlane.xlu1 %4706 }
 0xd22   : > { %v7999_v1 = vpop.eup %7998  ;;  %v4734_v40 = vmul.f32 0.0078125, %v4707_v49 }
 0xd23   : > { %v4800_v12 = vmul.f32 %v11520_v23, %v4778_v54  ;;  %v4779_v7 = vmul.f32 %v7999_v1, %v11444_v43  ;;  %v4709_v2 = vpop.xlane.xlu0 %4708  ;;  %v7589_v54 = vld [vmem:[#allocation22 + $0x20] sm:$0xff]  }
 0xd24   : > { %v8001_v22 = vpop.eup %8000  ;;  %v4750_v59 = vadd.f32 1e-05, %v4734_v40  ;;  %v4735_v52 = vmul.f32 0.0078125, %v4709_v2 }
 0xd25   : > { %v4801_v44 = vmul.f32 %v11520_v23, %v4779_v7  ;;  %v4711_v17 = vpop.xlane.xlu1 %4710  ;;  %v11529_v16 = vadd.f32 %v11525_v9, %v4800_v12  ;;  %v4780_v6 = vmul.f32 %v8001_v22, %v11449_v27  ;;  %v7590_v12 = vld [vmem:[#allocation22 + $0x68] sm:$0xff]  }
 0xd26   : > { %v8003_v47 = vpop.eup %8002  ;;  %8004 = vrsqrt.f32 %v4750_v59  ;;  %v4751_v3 = vadd.f32 1e-05, %v4735_v52  ;;  %v4736_v18 = vmul.f32 0.0078125, %v4711_v17  ;;  %v7570_v22 = vld [vmem:[#allocation19 + $0x8c] ss:$16 sps:$4 sm:$0xff]  }
 0xd27   : > { %v4713_v43 = vpop.xlane.xlu0 %4712  ;;  %v11532_v61 = vadd.f32 %v11525_v9, %v4801_v44  ;;  %v4781_v8 = vmul.f32 %v8003_v47, %v11454_v48  ;;  %v4802_v27 = vmul.f32 %v11520_v23, %v4780_v6  ;;  %v7586_v48 = vld [vmem:[#allocation22 + $0x58] sm:$0xff]   ;;  %v7568_v6 = vld [vmem:[#allocation19 + $0x88] ss:$16 sps:$4 sm:$0xff]  }
 0xd28   : > { %8006 = vrsqrt.f32 %v4751_v3  ;;  %v4752_v21 = vadd.f32 1e-05, %v4736_v18  ;;  %v4737_v29 = vmul.f32 0.0078125, %v4713_v43  ;;  %6918 = vmatprep.subr.bf16.mxu1 %v7586_v48 }
 0xd29   : > { %v11538_v63 = vpack.c.bf16 %v11532_v61, %v11529_v16  ;;  %v4803_v10 = vmul.f32 %v11520_v23, %v4781_v8  ;;  %v11548_v58 = vadd.f32 %v11525_v9, %v4802_v27  ;;  %6919 = vmatpush3.bf16.msra.mxu1 %v7587_v60 }
 0xd2a   : > { %8008 = vrsqrt.f32 %v4752_v21  ;;  %v4753_v11 = vadd.f32 1e-05, %v4737_v29  ;;  %6920 = vmatprep.subr.bf16.mxu1 %v7588_v33  ;;  %v7573_v21 = vld [vmem:[#allocation19 + $0xac] ss:$16 sps:$4 sm:$0xff]  }
 0xd2b   : > { %5060 = vmatmul.mubr.bf16.vlgmr.msra.gmra.mrb[160].mxu0 %v11538_v63  ;;  %v11545_v53 = vadd.f32 %v11525_v9, %v4803_v10  ;;  %v7576_v10 = vld [vmem:[#allocation19 + $0xcc] ss:$16 sps:$4 sm:$0xff]  }
 0xd2c   : > { %8010 = vrsqrt.f32 %v4753_v11  ;;  %5069 = vmatprep.mubr.bf16.mxu0 %v12600_v19  ;;  %5141 = vmatpush1.bf16.msra.mxu0 %v7556_v26 }
 0xd2d   : > { %5142 = vmatprep.subr.bf16.mxu0 %v7561_v20  ;;  %v11552_v41 = vpack.c.bf16 %v11545_v53, %v11548_v58  ;;  %6921 = vmatpush3.bf16.msra.mxu1 %v7589_v54 }
 0xd2e   : > { %6922 = vmatprep.subr.bf16.mxu1 %v7590_v12 }
 0xd30   : > { %v8005_v4 = vpop.eup %8004  ;;  %5143 = vmatpush1.bf16.msra.mxu0 %v7559_v38 }
 0xd31   : > { %v4715_v45 = vpop.xlane.xlu1 %4714  ;;  %v4782_v31 = vmul.f32 %v8005_v4, %v11461_v30  ;;  %5144 = vmatprep.subr.bf16.mxu0 %v7564_v34  ;;  %v7565_v30 = vld [vmem:[#allocation19 + $0x68] ss:$16 sps:$4 sm:$0xff]   ;;  %v7579_v34 = vld [vmem:[#allocation19 + $0xec] ss:$16 sps:$4 sm:$0xff]  }
 0xd32   : > { %v8007_v24 = vpop.eup %8006  ;;  %v4738_v15 = vmul.f32 0.0078125, %v4715_v45 }
 0xd33   : > { %5070 = vmatmul.mubr.bf16.gmra.mrb[164].mxu0 %v11552_v41  ;;  %v4717_v49 = vpop.xlane.xlu0 %4716  ;;  %v4783_v1 = vmul.f32 %v8007_v24, %v11464_v51  ;;  %v4804_v40 = vmul.f32 %v11520_v23, %v4782_v31 }
 0xd34   : > { %v8009_v7 = vpop.eup %8008  ;;  %v4754_v2 = vadd.f32 1e-05, %v4738_v15  ;;  %v4739_v36 = vmul.f32 0.0078125, %v4717_v49  ;;  %5079 = vmatprep.mubr.bf16.mxu0 %v12600_v19  ;;  %5145 = vmatpush1.bf16.msra.mxu0 %v7562_v14  ;;  %v7577_v15 = vld [vmem:[#allocation19 + $0xe8] ss:$16 sps:$4 sm:$0xff]  }
 0xd35   : > { %v4719_v28 = vpop.xlane.xlu1 %4718  ;;  %v4805_v5 = vmul.f32 %v11520_v23, %v4783_v1  ;;  %5146 = vmatprep.subr.bf16.mxu0 %v7567_v46  ;;  %v11561_v17 = vadd.f32 %v11525_v9, %v4804_v40  ;;  %v4784_v3 = vmul.f32 %v8009_v7, %v11469_v50 }
 0xd36   : > { %v8011_v59 = vpop.eup %8010  ;;  %8012 = vrsqrt.f32 %v4754_v2  ;;  %v4755_v52 = vadd.f32 1e-05, %v4739_v36  ;;  %v4740_v51 = vmul.f32 0.0078125, %v4719_v28 }
 0xd37   : > { %v4721_v44 = vpop.xlane.xlu0 %4720  ;;  %v11564_v47 = vadd.f32 %v11525_v9, %v4805_v5  ;;  %v4785_v18 = vmul.f32 %v8011_v59, %v11474_v55  ;;  %v4806_v50 = vmul.f32 %v11520_v23, %v4784_v3  ;;  %v7571_v55 = vld [vmem:[#allocation19 + $0xa8] ss:$16 sps:$4 sm:$0xff]  }
 0xd38   : > { %8014 = vrsqrt.f32 %v4755_v52  ;;  %v4756_v13 = vadd.f32 1e-05, %v4740_v51  ;;  %v4741_v43 = vmul.f32 0.0078125, %v4721_v44  ;;  %5147 = vmatpush1.bf16.msra.mxu0 %v7565_v30 }
 0xd39   : > { %v11570_v8 = vpack.c.bf16 %v11564_v47, %v11561_v17  ;;  %v4807_v32 = vmul.f32 %v11520_v23, %v4785_v18  ;;  %5148 = vmatprep.subr.bf16.mxu0 %v7570_v22  ;;  %v11580_v20 = vadd.f32 %v11525_v9, %v4806_v50 }
 0xd3a   : > { %8016 = vrsqrt.f32 %v4756_v13  ;;  %v4757_v29 = vadd.f32 1e-05, %v4741_v43 }
 0xd3b   : > { %5080 = vmatmul.mubr.bf16.gmra.mrb[168].mxu0 %v11570_v8  ;;  %v11577_v26 = vadd.f32 %v11525_v9, %v4807_v32 }
 0xd3c   : > { %8018 = vrsqrt.f32 %v4757_v29  ;;  %5089 = vmatprep.mubr.bf16.mxu0 %v12600_v19  ;;  %5149 = vmatpush1.bf16.msra.mxu0 %v7568_v6 }
 0xd3d   : > { %5150 = vmatprep.subr.bf16.mxu0 %v7573_v21  ;;  %v11584_v48 = vpack.c.bf16 %v11577_v26, %v11580_v20 }
 0xd40   : > { %v8013_v11 = vpop.eup %8012  ;;  %5151 = vmatpush1.bf16.msra.mxu0 %v7571_v55 }
 0xd41   : > { %v4723_v27 = vpop.xlane.xlu1 %4722  ;;  %v4786_v38 = vmul.f32 %v8013_v11, %v11481_v56  ;;  %5152 = vmatprep.subr.bf16.mxu0 %v7576_v10 }
 0xd42   : > { %v8015_v60 = vpop.eup %8014  ;;  %v4742_v33 = vmul.f32 0.0078125, %v4723_v27 }
 0xd43   : > { %5090 = vmatmul.mubr.bf16.gmra.mrb[172].mxu0 %v11584_v48  ;;  %v4725_v4 = vpop.xlane.xlu0 %4724  ;;  %v4787_v14 = vmul.f32 %v8015_v60, %v11484_v35  ;;  %v4808_v45 = vmul.f32 %v11520_v23, %v4786_v38  ;;  %v7595_v38 = vld [vmem:[#allocation22 + $0x38] sm:$0xff]   ;;  %v7600_v60 = vld [vmem:[#allocation22 + $0xd0] sm:$0xff]  }
 0xd44   : > { %v8017_v31 = vpop.eup %8016  ;;  %v4758_v46 = vadd.f32 1e-05, %v4742_v33  ;;  %v4743_v24 = vmul.f32 0.0078125, %v4725_v4  ;;  %5099 = vmatprep.mubr.bf16.mxu0 %v12600_v19  ;;  %5153 = vmatpush1.bf16.msra.mxu0 %v7574_v62  ;;  %v7601_v33 = vld [vmem:[#allocation22 + $0x90] sm:$0xff]   ;;  %v7602_v4 = vld [vmem:[#allocation22 + $0xd8] sm:$0xff]  }
 0xd45   : > { %v4727_v54 = vpop.xlane.xlu1 %4726  ;;  %v4809_v56 = vmul.f32 %v11520_v23, %v4787_v14  ;;  %5154 = vmatprep.subr.bf16.mxu0 %v7579_v34  ;;  %v11593_v35 = vadd.f32 %v11525_v9, %v4808_v45  ;;  %v4788_v2 = vmul.f32 %v8017_v31, %v11489_v57  ;;  %v7599_v34 = vld [vmem:[#allocation22 + $0x88] sm:$0xff]   ;;  %v7603_v14 = vld [vmem:[#allocation22 + $0x98] sm:$0xff]   ;;  %v7604_v45 = vld [vmem:[#allocation22 + $0xe0] sm:$0xff]  }
 0xd46   : > { %v8019_v49 = vpop.eup %8018  ;;  %8020 = vrsqrt.f32 %v4758_v46  ;;  %v4759_v1 = vadd.f32 1e-05, %v4743_v24  ;;  %v4744_v40 = vmul.f32 0.0078125, %v4727_v54  ;;  %v7605_v31 = vld [vmem:[#allocation22 + $0xa0] sm:$0xff]   ;;  %v7607_v46 = vld [vmem:[#allocation22 + $0xa8] sm:$0xff]   ;;  %v7608_v24 = vld [vmem:[#allocation22 + $0xf0] sm:$0xff]  }
 0xd47   : > { %v4729_v12 = vpop.xlane.xlu0 %4728  ;;  %v11596_v7 = vadd.f32 %v11525_v9, %v4809_v56  ;;  %v4789_v36 = vmul.f32 %v8019_v49, %v11494_v37  ;;  %v4810_v52 = vmul.f32 %v11520_v23, %v4788_v2  ;;  %v7610_v54 = vld [vmem:[#allocation22 + $0xf8] sm:$0xff]  }
 0xd48   : > { %8022 = vrsqrt.f32 %v4759_v1  ;;  %v4760_v30 = vadd.f32 1e-05, %v4744_v40  ;;  %v4745_v28 = vmul.f32 0.0078125, %v4729_v12  ;;  %5155 = vmatpush1.bf16.msra.mxu0 %v7577_v15  ;;  %v7609_v15 = vld [vmem:[#allocation22 + $0xb0] sm:$0xff]   ;;  %v7611_v56 = vld [vmem:[#allocation22 + $0xb8] sm:$0xff]   ;;  %v12601_v1 = vld [vmem:[#allocation56_spill] sm:$0xff] }
 0xd49   : > { %v4842_v5 = vpack.c.bf16 %v11596_v7, %v11593_v35  ;;  %v4811_v22 = vmul.f32 %v11520_v23, %v4789_v36  ;;  %v11609_v37 = vadd.f32 %v11525_v9, %v4810_v52  ;;  %v11651_v49 = vld [vmem:[#allocation20] sm:$0xf]  ;;  %v12602_v40 = vsub.s32 0, %v12601_v1 }
 0xd4a   : > { %8024 = vrsqrt.f32 %v4760_v30  ;;  %v4761_v59 = vadd.f32 1e-05, %v4745_v28  ;;  %v12603_v2 = vsub.s32 1, %v12601_v1 }
 0xd4b   : > { %5100 = vmatmul.mubr.bf16.gmra.mrb[176].mxu0 %v4842_v5  ;;  %v11606_v57 = vadd.f32 %v11525_v9, %v4811_v22  ;;  %v11656_v12 = vrot.slane %v11651_v49, %v12602_v40 }
 0xd4c   : > { %8026 = vrsqrt.f32 %v4761_v59  ;;  %5109 = vmatprep.mubr.bf16.mxu0 %v12600_v19  ;;  %v11661_v36 = vrot.slane %v11651_v49, %v12603_v2 }
 0xd4d   : > { %v4843_v44 = vpack.c.bf16 %v11606_v57, %v11609_v37 }
 0xd50   : > { %v8021_v51 = vpop.eup %8020 }
 0xd51   : > { %v4790_v3 = vmul.f32 %v8021_v51, %v11501_v0 }
 0xd52   : > { %v8023_v18 = vpop.eup %8022 }
 0xd53   : > { %5110 = vmatmul.mubr.bf16.gmra.mrb[180].mxu0 %v4843_v44  ;;  %v4791_v13 = vmul.f32 %v8023_v18, %v11504_v42  ;;  %v4812_v43 = vmul.f32 %v11520_v23, %v4790_v3 }
 0xd54   : > { %v8025_v6 = vpop.eup %8024  ;;  %5119 = vmatprep.mubr.bf16.mxu0 %v12600_v19 }
 0xd55   : > { %v4813_v32 = vmul.f32 %v11520_v23, %v4791_v13  ;;  %v11619_v29 = vadd.f32 %v11525_v9, %v4812_v43  ;;  %v4792_v0 = vmul.f32 %v8025_v6, %v11509_v39 }
 0xd56   : > { %v8027_v21 = vpop.eup %8026 }
 0xd57   : > { %v11622_v50 = vadd.f32 %v11525_v9, %v4813_v32  ;;  %v4793_v55 = vmul.f32 %v8027_v21, %v11514_v25  ;;  %v4814_v11 = vmul.f32 %v11520_v23, %v4792_v0  ;;  %v7591_v25 = vld [vmem:[#allocation22 + $0x28] sm:$0xff]  }
 0xd58   : > { %6923 = vmatpush3.bf16.msra.mxu1 %v7591_v25 }
 0xd59   : > { %v4844_v42 = vpack.c.bf16 %v11622_v50, %v11619_v29  ;;  %v4815_v10 = vmul.f32 %v11520_v23, %v4793_v55  ;;  %v11635_v27 = vadd.f32 %v11525_v9, %v4814_v11  ;;  %v7592_v23 = vld [vmem:[#allocation22 + $0x70] sm:$0xff]  }
 0xd5a   : > { %6924 = vmatprep.subr.bf16.mxu1 %v7592_v23 }
 0xd5b   : > { %5120 = vmatmul.mubr.bf16.gmra.mrb[184].mxu0 %v4844_v42  ;;  %v11632_v62 = vadd.f32 %v11525_v9, %v4815_v10  ;;  %v7593_v9 = vld [vmem:[#allocation22 + $0x30] sm:$0xff]  }
 0xd5c   : > { %5129 = vmatprep.mubr.bf16.mxu0 %v12600_v19  ;;  %6925 = vmatpush3.bf16.msra.mxu1 %v7593_v9 }
 0xd5d   : > { %v4845_v39 = vpack.c.bf16 %v11632_v62, %v11635_v27 }
 0xd63   : > { %5130 = vmatmul.mubr.bf16.gmra.mrb[188].mxu0 %v4845_v39 }
 0xd64   : > { %5172 = vmatprep.mubr.bf16.mxu0 %v12600_v19 }
 0xd6b   : > { %5173 = vmatmul.mubr.bf16.vlgmr.msra.gmra.mrb[192].mxu0 %v11538_v63  ;;  %v7594_v63 = vld [vmem:[#allocation22 + $0x78] sm:$0xff]  }
 0xd6c   : > { %5182 = vmatprep.mubr.bf16.mxu0 %v12600_v19  ;;  %6926 = vmatprep.subr.bf16.mxu1 %v7594_v63 }
 0xd6d   : > { %6927 = vmatpush3.bf16.msra.mxu1 %v7595_v38 }
 0xd73   : > { %5183 = vmatmul.mubr.bf16.gmra.mrb[196].mxu0 %v11552_v41  ;;  %v7596_v41 = vld [vmem:[#allocation22 + $0xc0] sm:$0xff]  }
 0xd74   : > { %5192 = vmatprep.mubr.bf16.mxu0 %v12600_v19  ;;  %6976 = vmatprep.subr.bf16.mxu0 %v7596_v41 }
 0xd7b   : > { %5193 = vmatmul.mubr.bf16.gmra.mrb[200].mxu0 %v11570_v8  ;;  %v7597_v8 = vld [vmem:[#allocation22 + $0x80] sm:$0xff]  }
 0xd7c   : > { %5202 = vmatprep.mubr.bf16.mxu0 %v12600_v19  ;;  %6977 = vmatpush3.bf16.msra.mxu0 %v7597_v8 }
 0xd83   : > { %5203 = vmatmul.mubr.bf16.gmra.mrb[204].mxu0 %v11584_v48  ;;  %v7598_v48 = vld [vmem:[#allocation22 + $0xc8] sm:$0xff]  }
 0xd84   : > { %5212 = vmatprep.mubr.bf16.mxu0 %v12600_v19  ;;  %6978 = vmatprep.subr.bf16.mxu0 %v7598_v48 }
 0xd85   : > { %6979 = vmatpush3.bf16.msra.mxu0 %v7599_v34 }
 0xd86   : > { %6980 = vmatprep.subr.bf16.mxu0 %v7600_v60 }
 0xd89   : > { %6981 = vmatpush3.bf16.msra.mxu0 %v7601_v33 }
 0xd8a   : > { %6982 = vmatprep.subr.bf16.mxu0 %v7602_v4 }
 0xd8b   : > { %5213 = vmatmul.mubr.bf16.gmra.mrb[208].mxu0 %v4842_v5 }
 0xd8c   : > { %5222 = vmatprep.mubr.bf16.mxu0 %v12600_v19 }
 0xd8d   : > { %6983 = vmatpush3.bf16.msra.mxu0 %v7603_v14 }
 0xd8e   : > { %6984 = vmatprep.subr.bf16.mxu0 %v7604_v45 }
 0xd91   : > { %6985 = vmatpush3.bf16.msra.mxu0 %v7605_v31 }
 0xd93   : > { %5223 = vmatmul.mubr.bf16.gmra.mrb[212].mxu0 %v4843_v44 }
 0xd94   : > { %5232 = vmatprep.mubr.bf16.mxu0 %v12600_v19 }
 0xd9b   : > { %5233 = vmatmul.mubr.bf16.gmra.mrb[216].mxu0 %v4844_v42 }
 0xd9c   : > { %5242 = vmatprep.mubr.bf16.mxu0 %v12600_v19  ;;  %v7606_v19 = vld [vmem:[#allocation22 + $0xe8] sm:$0xff]  }
 0xd9d   : > { %6986 = vmatprep.subr.bf16.mxu0 %v7606_v19 }
 0xd9e   : > { %6987 = vmatpush3.bf16.msra.mxu0 %v7607_v46 }
 0xd9f   : > { %6988 = vmatprep.subr.bf16.mxu0 %v7608_v24 }
 0xda2   : > { %6989 = vmatpush3.bf16.msra.mxu0 %v7609_v15 }
 0xda3   : > { %5243 = vmatmul.mubr.bf16.gmra.mrb[220].mxu0 %v4845_v39  ;;  %6990 = vmatprep.subr.bf16.mxu0 %v7610_v54 }
 0xda6   : > { %6991 = vmatpush3.bf16.msra.mxu0 %v7611_v56 }
 0xdfe   : > { %v5061_v30 = vpop.f32.mrb[160].mxu0 }
 0xdff   : > { %v5062_v28 = vadd.f32 %v5061_v30, %v11656_v12  ;;  %v5063_v5 = vpop.f32.mrb[161].mxu0 }
 0xe00   : > { %v5064_v22 = vadd.f32 %v5063_v5, %v11661_v36  ;;  %v5065_v59 = vpop.f32.mrb[162].mxu0 }
 0xe01   : > { %v5066_v52 = vadd.f32 %v5065_v59, %v11656_v12  ;;  %v5067_v51 = vpop.f32.mrb[163].mxu0  ;;  %v5253_v3 = vmax.f32 %v5062_v28, 0.0 }
 0xe02   : > { %v5068_v44 = vadd.f32 %v5067_v51, %v11661_v36  ;;  %v5254_v13 = vmax.f32 %v5064_v22, 0.0 }
 0xe03   : > { %v5257_v18 = vmax.f32 %v5066_v52, 0.0 }
 0xe04   : > { %v5258_v43 = vmax.f32 %v5068_v44, 0.0 }
 0xe05   : > { %v5317_v6 = vpack.c.bf16 %v5257_v18, %v5253_v3 }
 0xe06   : > { %v5318_v32 = vpack.c.bf16 %v5258_v43, %v5254_v13  ;;  %v5071_v21 = vpop.f32.mrb[164].mxu0 }
 0xe07   : > { %v5072_v0 = vadd.f32 %v5071_v21, %v11656_v12  ;;  %v5073_v55 = vpop.f32.mrb[165].mxu0 }
 0xe08   : > { %v5074_v42 = vadd.f32 %v5073_v55, %v11661_v36  ;;  %v5075_v10 = vpop.f32.mrb[166].mxu0  ;;  %5579 = vmatprep.mubr.bf16.mxu1 %v5318_v32 }
 0xe09   : > { %v5076_v11 = vadd.f32 %v5075_v10, %v11656_v12  ;;  %v5077_v39 = vpop.f32.mrb[167].mxu0  ;;  %5580 = vmatmul.mubr.bf16.vlgmr.msra.gmra.mrb[192].mxu1 %v5317_v6  ;;  %v5261_v23 = vmax.f32 %v5072_v0, 0.0 }
 0xe0a   : > { %v5078_v25 = vadd.f32 %v5077_v39, %v11661_v36  ;;  %v5262_v63 = vmax.f32 %v5074_v42, 0.0 }
 0xe0b   : > { %v5265_v9 = vmax.f32 %v5076_v11, 0.0 }
 0xe0c   : > { %v5266_v38 = vmax.f32 %v5078_v25, 0.0 }
 0xe0d   : > { %v5321_v41 = vpack.c.bf16 %v5265_v9, %v5261_v23 }
 0xe0e   : > { %v5322_v8 = vpack.c.bf16 %v5266_v38, %v5262_v63  ;;  %v5081_v48 = vpop.f32.mrb[168].mxu0 }
 0xe0f   : > { %v5082_v34 = vadd.f32 %v5081_v48, %v11656_v12  ;;  %v5083_v60 = vpop.f32.mrb[169].mxu0 }
 0xe10   : > { %v5084_v33 = vadd.f32 %v5083_v60, %v11661_v36  ;;  %v5085_v4 = vpop.f32.mrb[170].mxu0  ;;  %5587 = vmatprep.mubr.bf16.mxu1 %v5322_v8 }
 0xe11   : > { %v5086_v14 = vadd.f32 %v5085_v4, %v11656_v12  ;;  %v5087_v45 = vpop.f32.mrb[171].mxu0  ;;  %5588 = vmatmul.mubr.bf16.gmra.mrb[196].mxu1 %v5321_v41  ;;  %v5269_v19 = vmax.f32 %v5082_v34, 0.0 }
 0xe12   : > { %v5088_v31 = vadd.f32 %v5087_v45, %v11661_v36  ;;  %v5270_v24 = vmax.f32 %v5084_v33, 0.0 }
 0xe13   : > { %v5273_v46 = vmax.f32 %v5086_v14, 0.0 }
 0xe14   : > { %v5274_v15 = vmax.f32 %v5088_v31, 0.0 }
 0xe15   : > { %v5325_v54 = vpack.c.bf16 %v5273_v46, %v5269_v19 }
 0xe16   : > { %v5326_v56 = vpack.c.bf16 %v5274_v15, %v5270_v24  ;;  %v5091_v40 = vpop.f32.mrb[172].mxu0 }
 0xe17   : > { %v5092_v2 = vadd.f32 %v5091_v40, %v11656_v12  ;;  %v5093_v30 = vpop.f32.mrb[173].mxu0 }
 0xe18   : > { %v5094_v28 = vadd.f32 %v5093_v30, %v11661_v36  ;;  %v5095_v5 = vpop.f32.mrb[174].mxu0  ;;  %5595 = vmatprep.mubr.bf16.mxu1 %v5326_v56 }
 0xe19   : > { %v5096_v22 = vadd.f32 %v5095_v5, %v11656_v12  ;;  %v5097_v59 = vpop.f32.mrb[175].mxu0  ;;  %5596 = vmatmul.mubr.bf16.gmra.mrb[200].mxu1 %v5325_v54  ;;  %v5277_v51 = vmax.f32 %v5092_v2, 0.0 }
 0xe1a   : > { %v5098_v52 = vadd.f32 %v5097_v59, %v11661_v36  ;;  %v5278_v3 = vmax.f32 %v5094_v28, 0.0 }
 0xe1b   : > { %v5281_v44 = vmax.f32 %v5096_v22, 0.0 }
 0xe1c   : > { %v5282_v18 = vmax.f32 %v5098_v52, 0.0 }
 0xe1d   : > { %v5329_v13 = vpack.c.bf16 %v5281_v44, %v5277_v51 }
 0xe1e   : > { %v5330_v43 = vpack.c.bf16 %v5282_v18, %v5278_v3  ;;  %v5101_v6 = vpop.f32.mrb[176].mxu0 }
 0xe1f   : > { %v5102_v32 = vadd.f32 %v5101_v6, %v11656_v12  ;;  %v5103_v21 = vpop.f32.mrb[177].mxu0 }
 0xe20   : > { %v5104_v0 = vadd.f32 %v5103_v21, %v11661_v36  ;;  %v5105_v55 = vpop.f32.mrb[178].mxu0  ;;  %5603 = vmatprep.mubr.bf16.mxu1 %v5330_v43 }
 0xe21   : > { %v5106_v42 = vadd.f32 %v5105_v55, %v11656_v12  ;;  %v5107_v10 = vpop.f32.mrb[179].mxu0  ;;  %5604 = vmatmul.mubr.bf16.gmra.mrb[204].mxu1 %v5329_v13  ;;  %v5285_v39 = vmax.f32 %v5102_v32, 0.0  ;;  %v4857_v32 = vsub.s32 2, %v12601_v1  ;;  %v4861_v55 = vsub.s32 3, %v12601_v1 }
 0xe22   : > { %v5108_v11 = vadd.f32 %v5107_v10, %v11661_v36  ;;  %v5286_v23 = vmax.f32 %v5104_v0, 0.0 }
 0xe23   : > { %v5289_v25 = vmax.f32 %v5106_v42, 0.0 }
 0xe24   : > { %v5290_v9 = vmax.f32 %v5108_v11, 0.0 }
 0xe25   : > { %v5333_v63 = vpack.c.bf16 %v5289_v25, %v5285_v39 }
 0xe26   : > { %v5334_v38 = vpack.c.bf16 %v5290_v9, %v5286_v23  ;;  %v5111_v41 = vpop.f32.mrb[180].mxu0  ;;  %v11698_v23 = vrot.slane %v11651_v49, %v4857_v32 }
 0xe27   : > { %v5112_v8 = vadd.f32 %v5111_v41, %v11656_v12  ;;  %v5113_v48 = vpop.f32.mrb[181].mxu0 }
 0xe28   : > { %v5114_v34 = vadd.f32 %v5113_v48, %v11661_v36  ;;  %v5115_v60 = vpop.f32.mrb[182].mxu0  ;;  %5611 = vmatprep.mubr.bf16.mxu1 %v5334_v38  ;;  %v11701_v38 = vrot.slane %v11651_v49, %v4861_v55 }
 0xe29   : > { %v5116_v33 = vadd.f32 %v5115_v60, %v11656_v12  ;;  %v5117_v4 = vpop.f32.mrb[183].mxu0  ;;  %5612 = vmatmul.mubr.bf16.gmra.mrb[208].mxu1 %v5333_v63  ;;  %v5293_v45 = vmax.f32 %v5112_v8, 0.0 }
 0xe2a   : > { %v5118_v14 = vadd.f32 %v5117_v4, %v11661_v36  ;;  %v5294_v19 = vmax.f32 %v5114_v34, 0.0 }
 0xe2b   : > { %v5297_v31 = vmax.f32 %v5116_v33, 0.0 }
 0xe2c   : > { %v5298_v46 = vmax.f32 %v5118_v14, 0.0 }
 0xe2d   : > { %v5337_v24 = vpack.c.bf16 %v5297_v31, %v5293_v45 }
 0xe2e   : > { %v5338_v15 = vpack.c.bf16 %v5298_v46, %v5294_v19  ;;  %v5121_v54 = vpop.f32.mrb[184].mxu0 }
 0xe2f   : > { %v5122_v56 = vadd.f32 %v5121_v54, %v11656_v12  ;;  %v5123_v40 = vpop.f32.mrb[185].mxu0 }
 0xe30   : > { %v5124_v2 = vadd.f32 %v5123_v40, %v11661_v36  ;;  %v5125_v30 = vpop.f32.mrb[186].mxu0  ;;  %5619 = vmatprep.mubr.bf16.mxu1 %v5338_v15 }
 0xe31   : > { %v5126_v28 = vadd.f32 %v5125_v30, %v11656_v12  ;;  %v5127_v5 = vpop.f32.mrb[187].mxu0  ;;  %5620 = vmatmul.mubr.bf16.gmra.mrb[212].mxu1 %v5337_v24  ;;  %v5301_v59 = vmax.f32 %v5122_v56, 0.0 }
 0xe32   : > { %v5128_v22 = vadd.f32 %v5127_v5, %v11661_v36  ;;  %v5302_v51 = vmax.f32 %v5124_v2, 0.0 }
 0xe33   : > { %v5305_v52 = vmax.f32 %v5126_v28, 0.0 }
 0xe34   : > { %v5306_v44 = vmax.f32 %v5128_v22, 0.0 }
 0xe35   : > { %v5341_v3 = vpack.c.bf16 %v5305_v52, %v5301_v59 }
 0xe36   : > { %v5342_v18 = vpack.c.bf16 %v5306_v44, %v5302_v51  ;;  %v5131_v13 = vpop.f32.mrb[188].mxu0 }
 0xe37   : > { %v5132_v43 = vadd.f32 %v5131_v13, %v11656_v12  ;;  %v5133_v6 = vpop.f32.mrb[189].mxu0 }
 0xe38   : > { %v5134_v21 = vadd.f32 %v5133_v6, %v11661_v36  ;;  %v5135_v0 = vpop.f32.mrb[190].mxu0  ;;  %5627 = vmatprep.mubr.bf16.mxu1 %v5342_v18 }
 0xe39   : > { %v5136_v42 = vadd.f32 %v5135_v0, %v11656_v12  ;;  %v5137_v10 = vpop.f32.mrb[191].mxu0  ;;  %5628 = vmatmul.mubr.bf16.gmra.mrb[216].mxu1 %v5341_v3  ;;  %v5309_v39 = vmax.f32 %v5132_v43, 0.0 }
 0xe3a   : > { %v5138_v11 = vadd.f32 %v5137_v10, %v11661_v36  ;;  %v5310_v9 = vmax.f32 %v5134_v21, 0.0 }
 0xe3b   : > { %v5313_v25 = vmax.f32 %v5136_v42, 0.0 }
 0xe3c   : > { %v5314_v63 = vmax.f32 %v5138_v11, 0.0 }
 0xe3d   : > { %v5345_v41 = vpack.c.bf16 %v5313_v25, %v5309_v39 }
 0xe3e   : > { %v5346_v8 = vpack.c.bf16 %v5314_v63, %v5310_v9  ;;  %v5174_v48 = vpop.f32.mrb[192].mxu0 }
 0xe3f   : > { %v5175_v1 = vadd.f32 %v5174_v48, %v11698_v23  ;;  %v5176_v12 = vpop.f32.mrb[193].mxu0 }
 0xe40   : > { %v5177_v34 = vadd.f32 %v5176_v12, %v11701_v38  ;;  %v5178_v60 = vpop.f32.mrb[194].mxu0  ;;  %5635 = vmatprep.mubr.bf16.mxu1 %v5346_v8 }
 0xe41   : > { %v5179_v36 = vadd.f32 %v5178_v60, %v11698_v23  ;;  %v5180_v33 = vpop.f32.mrb[195].mxu0  ;;  %5636 = vmatmul.mubr.bf16.gmra.mrb[220].mxu1 %v5345_v41  ;;  %v5255_v14 = vmax.f32 %v5175_v1, 0.0 }
 0xe42   : > { %v5181_v4 = vadd.f32 %v5180_v33, %v11701_v38  ;;  %v5256_v49 = vmax.f32 %v5177_v34, 0.0 }
 0xe43   : > { %v5259_v45 = vmax.f32 %v5179_v36, 0.0 }
 0xe44   : > { %v5260_v31 = vmax.f32 %v5181_v4, 0.0 }
 0xe45   : > { %v5319_v19 = vpack.c.bf16 %v5259_v45, %v5255_v14 }
 0xe46   : > { %v5320_v46 = vpack.c.bf16 %v5260_v31, %v5256_v49  ;;  %v5184_v24 = vpop.f32.mrb[196].mxu0 }
 0xe47   : > { %v5185_v15 = vadd.f32 %v5184_v24, %v11698_v23  ;;  %v5186_v54 = vpop.f32.mrb[197].mxu0 }
 0xe48   : > { %v5187_v56 = vadd.f32 %v5186_v54, %v11701_v38  ;;  %v5188_v40 = vpop.f32.mrb[198].mxu0  ;;  %5676 = vmatprep.mubr.bf16.mxu0 %v5320_v46 }
 0xe49   : > { %v5189_v2 = vadd.f32 %v5188_v40, %v11698_v23  ;;  %v5190_v30 = vpop.f32.mrb[199].mxu0  ;;  %5677 = vmatmul.mubr.bf16.vlgmr.msra.gmra.mrb[224].mxu0 %v5319_v19  ;;  %v5263_v5 = vmax.f32 %v5185_v15, 0.0 }
 0xe4a   : > { %v5191_v28 = vadd.f32 %v5190_v30, %v11701_v38  ;;  %v5264_v59 = vmax.f32 %v5187_v56, 0.0 }
 0xe4b   : > { %v5267_v22 = vmax.f32 %v5189_v2, 0.0 }
 0xe4c   : > { %v5268_v52 = vmax.f32 %v5191_v28, 0.0 }
 0xe4d   : > { %v5323_v51 = vpack.c.bf16 %v5267_v22, %v5263_v5 }
 0xe4e   : > { %v5324_v44 = vpack.c.bf16 %v5268_v52, %v5264_v59  ;;  %v5194_v3 = vpop.f32.mrb[200].mxu0 }
 0xe4f   : > { %v5195_v18 = vadd.f32 %v5194_v3, %v11698_v23  ;;  %v5196_v13 = vpop.f32.mrb[201].mxu0 }
 0xe50   : > { %v5197_v43 = vadd.f32 %v5196_v13, %v11701_v38  ;;  %v5198_v6 = vpop.f32.mrb[202].mxu0  ;;  %5684 = vmatprep.mubr.bf16.mxu0 %v5324_v44 }
 0xe51   : > { %v5199_v32 = vadd.f32 %v5198_v6, %v11698_v23  ;;  %v5200_v21 = vpop.f32.mrb[203].mxu0  ;;  %5685 = vmatmul.mubr.bf16.gmra.mrb[228].mxu0 %v5323_v51  ;;  %v5271_v55 = vmax.f32 %v5195_v18, 0.0 }
 0xe52   : > { %v5201_v0 = vadd.f32 %v5200_v21, %v11701_v38  ;;  %v5272_v10 = vmax.f32 %v5197_v43, 0.0 }
 0xe53   : > { %v5275_v42 = vmax.f32 %v5199_v32, 0.0 }
 0xe54   : > { %v5276_v11 = vmax.f32 %v5201_v0, 0.0 }
 0xe55   : > { %v5327_v39 = vpack.c.bf16 %v5275_v42, %v5271_v55 }
 0xe56   : > { %v5328_v25 = vpack.c.bf16 %v5276_v11, %v5272_v10  ;;  %v5204_v9 = vpop.f32.mrb[204].mxu0 }
 0xe57   : > { %v5205_v63 = vadd.f32 %v5204_v9, %v11698_v23  ;;  %v5206_v41 = vpop.f32.mrb[205].mxu0 }
 0xe58   : > { %v5207_v8 = vadd.f32 %v5206_v41, %v11701_v38  ;;  %v5208_v48 = vpop.f32.mrb[206].mxu0  ;;  %5692 = vmatprep.mubr.bf16.mxu0 %v5328_v25 }
 0xe59   : > { %v5209_v1 = vadd.f32 %v5208_v48, %v11698_v23  ;;  %v5210_v12 = vpop.f32.mrb[207].mxu0  ;;  %5693 = vmatmul.mubr.bf16.gmra.mrb[232].mxu0 %v5327_v39  ;;  %v5279_v60 = vmax.f32 %v5205_v63, 0.0 }
 0xe5a   : > { %v5211_v34 = vadd.f32 %v5210_v12, %v11701_v38  ;;  %v5280_v33 = vmax.f32 %v5207_v8, 0.0 }
 0xe5b   : > { %v5283_v36 = vmax.f32 %v5209_v1, 0.0 }
 0xe5c   : > { %v5284_v4 = vmax.f32 %v5211_v34, 0.0 }
 0xe5d   : > { %v5331_v14 = vpack.c.bf16 %v5283_v36, %v5279_v60 }
 0xe5e   : > { %v5332_v45 = vpack.c.bf16 %v5284_v4, %v5280_v33  ;;  %v5214_v49 = vpop.f32.mrb[208].mxu0 }
 0xe5f   : > { %v5215_v31 = vadd.f32 %v5214_v49, %v11698_v23  ;;  %v5216_v19 = vpop.f32.mrb[209].mxu0 }
 0xe60   : > { %v5217_v46 = vadd.f32 %v5216_v19, %v11701_v38  ;;  %v5218_v24 = vpop.f32.mrb[210].mxu0  ;;  %5700 = vmatprep.mubr.bf16.mxu0 %v5332_v45 }
 0xe61   : > { %v5219_v15 = vadd.f32 %v5218_v24, %v11698_v23  ;;  %v5220_v54 = vpop.f32.mrb[211].mxu0  ;;  %5701 = vmatmul.mubr.bf16.gmra.mrb[236].mxu0 %v5331_v14  ;;  %v5287_v40 = vmax.f32 %v5215_v31, 0.0 }
 0xe62   : > { %v5221_v56 = vadd.f32 %v5220_v54, %v11701_v38  ;;  %v5288_v30 = vmax.f32 %v5217_v46, 0.0 }
 0xe63   : > { %v5291_v2 = vmax.f32 %v5219_v15, 0.0 }
 0xe64   : > { %v5292_v28 = vmax.f32 %v5221_v56, 0.0 }
 0xe65   : > { %v5335_v5 = vpack.c.bf16 %v5291_v2, %v5287_v40 }
 0xe66   : > { %v5336_v22 = vpack.c.bf16 %v5292_v28, %v5288_v30  ;;  %v5224_v59 = vpop.f32.mrb[212].mxu0 }
 0xe67   : > { %v5225_v52 = vadd.f32 %v5224_v59, %v11698_v23  ;;  %v5226_v51 = vpop.f32.mrb[213].mxu0 }
 0xe68   : > { %v5227_v44 = vadd.f32 %v5226_v51, %v11701_v38  ;;  %v5228_v3 = vpop.f32.mrb[214].mxu0  ;;  %5708 = vmatprep.mubr.bf16.mxu0 %v5336_v22 }
 0xe69   : > { %v5229_v18 = vadd.f32 %v5228_v3, %v11698_v23  ;;  %v5230_v13 = vpop.f32.mrb[215].mxu0  ;;  %5709 = vmatmul.mubr.bf16.gmra.mrb[240].mxu0 %v5335_v5  ;;  %v5295_v6 = vmax.f32 %v5225_v52, 0.0 }
 0xe6a   : > { %v5231_v43 = vadd.f32 %v5230_v13, %v11701_v38  ;;  %v5296_v21 = vmax.f32 %v5227_v44, 0.0 }
 0xe6b   : > { %v5299_v32 = vmax.f32 %v5229_v18, 0.0 }
 0xe6c   : > { %v5300_v0 = vmax.f32 %v5231_v43, 0.0 }
 0xe6d   : > { %v5339_v55 = vpack.c.bf16 %v5299_v32, %v5295_v6 }
 0xe6e   : > { %v5340_v42 = vpack.c.bf16 %v5300_v0, %v5296_v21  ;;  %v5234_v10 = vpop.f32.mrb[216].mxu0 }
 0xe6f   : > { %v5235_v11 = vadd.f32 %v5234_v10, %v11698_v23  ;;  %v5236_v39 = vpop.f32.mrb[217].mxu0 }
 0xe70   : > { %v5237_v25 = vadd.f32 %v5236_v39, %v11701_v38  ;;  %v5238_v9 = vpop.f32.mrb[218].mxu0  ;;  %5716 = vmatprep.mubr.bf16.mxu0 %v5340_v42 }
 0xe71   : > { %v5239_v63 = vadd.f32 %v5238_v9, %v11698_v23  ;;  %v5240_v41 = vpop.f32.mrb[219].mxu0  ;;  %5717 = vmatmul.mubr.bf16.gmra.mrb[244].mxu0 %v5339_v55  ;;  %v5303_v48 = vmax.f32 %v5235_v11, 0.0 }
 0xe72   : > { %v5241_v8 = vadd.f32 %v5240_v41, %v11701_v38  ;;  %v5304_v12 = vmax.f32 %v5237_v25, 0.0 }
 0xe73   : > { %v5307_v1 = vmax.f32 %v5239_v63, 0.0 }
 0xe74   : > { %v5308_v34 = vmax.f32 %v5241_v8, 0.0 }
 0xe75   : > { %v5343_v60 = vpack.c.bf16 %v5307_v1, %v5303_v48 }
 0xe76   : > { %v5344_v36 = vpack.c.bf16 %v5308_v34, %v5304_v12  ;;  %v5244_v33 = vpop.f32.mrb[220].mxu0 }
 0xe77   : > { %v5245_v4 = vadd.f32 %v5244_v33, %v11698_v23  ;;  %v5246_v14 = vpop.f32.mrb[221].mxu0 }
 0xe78   : > { %v5247_v45 = vadd.f32 %v5246_v14, %v11701_v38  ;;  %v5248_v49 = vpop.f32.mrb[222].mxu0  ;;  %5724 = vmatprep.mubr.bf16.mxu0 %v5344_v36 }
 0xe79   : > { %v5249_v31 = vadd.f32 %v5248_v49, %v11698_v23  ;;  %v5250_v19 = vpop.f32.mrb[223].mxu0  ;;  %5725 = vmatmul.mubr.bf16.gmra.mrb[248].mxu0 %v5343_v60  ;;  %v5311_v24 = vmax.f32 %v5245_v4, 0.0 }
 0xe7a   : > { %v5251_v46 = vadd.f32 %v5250_v19, %v11701_v38  ;;  %v5312_v54 = vmax.f32 %v5247_v45, 0.0 }
 0xe7b   : > { %v5315_v15 = vmax.f32 %v5249_v31, 0.0 }
 0xe7c   : > { %v5316_v56 = vmax.f32 %v5251_v46, 0.0 }
 0xe7d   : > { %v5347_v40 = vpack.c.bf16 %v5315_v15, %v5311_v24 }
 0xe7e   : > { %v5348_v2 = vpack.c.bf16 %v5316_v56, %v5312_v54 }
 0xe80   : > { %5732 = vmatprep.mubr.bf16.mxu0 %v5348_v2 }
 0xe81   : > { %5733 = vmatmul.mubr.bf16.gmra.mrb[252].mxu0 %v5347_v40 }
 0xedc   : > { %v6928_v30 = vpop.f32.mrb[192].mxu1 }
 0xedd   : > { %v6929_v28 = vpop.f32.mrb[193].mxu1 }
 0xede   : > { %v6930_v5 = vadd.f32 %v6929_v28, %v6928_v30  ;;  %v6931_v22 = vpop.f32.mrb[194].mxu1  ;;  %v11759_v30 = vld [vmem:[#allocation23] ss:$0 sm:$0xff] }
 0xedf   : > { %v6932_v59 = vpop.f32.mrb[195].mxu1 }
 0xee0   : > { %v6933_v52 = vadd.f32 %v6932_v59, %v6931_v22  ;;  %v5582_v59 = vadd.f32 %v6930_v5, %v11759_v30 }
 0xee4   : > { %v6934_v51 = vpop.f32.mrb[196].mxu1 }
 0xee5   : > { %v6935_v23 = vpop.f32.mrb[197].mxu1 }
 0xee6   : > { %v6936_v44 = vadd.f32 %v6935_v23, %v6934_v51  ;;  %v6937_v3 = vpop.f32.mrb[198].mxu1 }
 0xee7   : > { %v6938_v18 = vpop.f32.mrb[199].mxu1 }
 0xee8   : > { %v6939_v38 = vadd.f32 %v6938_v18, %v6937_v3  ;;  %v5585_v18 = vadd.f32 %v6933_v52, %v11759_v30  ;;  %v5590_v5 = vadd.f32 %v6936_v44, %v11759_v30 }
 0xeec   : > { %v6940_v13 = vpop.f32.mrb[200].mxu1 }
 0xeed   : > { %v6941_v43 = vpop.f32.mrb[201].mxu1 }
 0xeee   : > { %v11735_v6 = vadd.f32 %v6941_v43, %v6940_v13  ;;  %v6943_v32 = vpop.f32.mrb[202].mxu1 }
 0xeef   : > { %v6944_v21 = vpop.f32.mrb[203].mxu1 }
 0xef0   : > { %v11737_v0 = vadd.f32 %v6944_v21, %v6943_v32 }
 0xef4   : > { %v6946_v55 = vpop.f32.mrb[204].mxu1 }
 0xef5   : > { %v6947_v42 = vpop.f32.mrb[205].mxu1 }
 0xef6   : > { %v11739_v10 = vadd.f32 %v6947_v42, %v6946_v55  ;;  %v6949_v11 = vpop.f32.mrb[206].mxu1 }
 0xef7   : > { %v6950_v39 = vpop.f32.mrb[207].mxu1 }
 0xef8   : > { %v11741_v25 = vadd.f32 %v6950_v39, %v6949_v11 }
 0xefc   : > { %v6952_v9 = vpop.f32.mrb[208].mxu1 }
 0xefd   : > { %v6953_v63 = vpop.f32.mrb[209].mxu1 }
 0xefe   : > { %v11743_v41 = vadd.f32 %v6953_v63, %v6952_v9  ;;  %v6955_v8 = vpop.f32.mrb[210].mxu1  ;;  %v5593_v63 = vadd.f32 %v6939_v38, %v11759_v30 }
 0xeff   : > { %v6956_v48 = vpop.f32.mrb[211].mxu1 }
 0xf00   : > { %v11745_v1 = vadd.f32 %v6956_v48, %v6955_v8 }
 0xf04   : > { %v6958_v12 = vpop.f32.mrb[212].mxu1 }
 0xf05   : > { %v6959_v34 = vpop.f32.mrb[213].mxu1 }
 0xf06   : > { %v11747_v60 = vadd.f32 %v6959_v34, %v6958_v12  ;;  %v6961_v36 = vpop.f32.mrb[214].mxu1 }
 0xf07   : > { %v6962_v33 = vpop.f32.mrb[215].mxu1 }
 0xf08   : > { %v11749_v4 = vadd.f32 %v6962_v33, %v6961_v36  ;;  %v5598_v36 = vadd.f32 %v11735_v6, %v11759_v30 }
 0xf0c   : > { %v6964_v14 = vpop.f32.mrb[216].mxu1 }
 0xf0d   : > { %v6965_v45 = vpop.f32.mrb[217].mxu1 }
 0xf0e   : > { %v11751_v49 = vadd.f32 %v6965_v45, %v6964_v14  ;;  %v6967_v31 = vpop.f32.mrb[218].mxu1  ;;  %v5601_v45 = vadd.f32 %v11737_v0, %v11759_v30 }
 0xf0f   : > { %v6968_v19 = vpop.f32.mrb[219].mxu1 }
 0xf10   : > { %v11753_v46 = vadd.f32 %v6968_v19, %v6967_v31 }
 0xf14   : > { %v6970_v24 = vpop.f32.mrb[220].mxu1 }
 0xf15   : > { %v6971_v15 = vpop.f32.mrb[221].mxu1 }
 0xf16   : > { %v11755_v54 = vadd.f32 %v6971_v15, %v6970_v24  ;;  %v6973_v56 = vpop.f32.mrb[222].mxu1 }
 0xf17   : > { %v6974_v40 = vpop.f32.mrb[223].mxu1 }
 0xf18   : > { %v11757_v2 = vadd.f32 %v6974_v40, %v6973_v56  ;;  %v5606_v56 = vadd.f32 %v11739_v10, %v11759_v30 }
 0xf1c   : > { %v6992_v28 = vpop.f32.mrb[224].mxu0 }
 0xf1d   : > { %v6993_v22 = vpop.f32.mrb[225].mxu0 }
 0xf1e   : > { %v6994_v51 = vadd.f32 %v6993_v22, %v6992_v28  ;;  %v6995_v23 = vpop.f32.mrb[226].mxu0  ;;  %v5609_v22 = vadd.f32 %v11741_v25, %v11759_v30 }
 0xf1f   : > { %v6996_v3 = vpop.f32.mrb[227].mxu0 }
 0xf20   : > { %v5679_v13 = vadd.f32 %v6994_v51, %v5582_v59  ;;  %v6997_v43 = vadd.f32 %v6996_v3, %v6995_v23 }
 0xf22   : > { %v5682_v32 = vadd.f32 %v6997_v43, %v5585_v18  ;;  %v11764_v21 = vadd.f32 %v5679_v13, %v11529_v16  ;;  %v5614_v18 = vadd.f32 %v11743_v41, %v11759_v30 }
 0xf24   : > { %v6998_v55 = vpop.f32.mrb[228].mxu0  ;;  %5757 = vadd.xlane.f32.xlu1 %v11764_v21  ;;  %v11768_v42 = vadd.f32 %v5682_v32, %v11532_v61  ;;  %v5617_v32 = vadd.f32 %v11745_v1, %v11759_v30 }
 0xf25   : > { %v6999_v11 = vpop.f32.mrb[229].mxu0 }
 0xf26   : > { %v7000_v39 = vadd.f32 %v6999_v11, %v6998_v55  ;;  %v7001_v9 = vpop.f32.mrb[230].mxu0  ;;  %5759 = vadd.xlane.f32.xlu0 %v11768_v42 }
 0xf27   : > { %v7002_v52 = vpop.f32.mrb[231].mxu0 }
 0xf28   : > { %v5687_v8 = vadd.f32 %v7000_v39, %v5590_v5  ;;  %v7003_v48 = vadd.f32 %v7002_v52, %v7001_v9  ;;  %v5622_v9 = vadd.f32 %v11747_v60, %v11759_v30 }
 0xf2a   : > { %v5690_v16 = vadd.f32 %v7003_v48, %v5593_v63  ;;  %v11774_v12 = vadd.f32 %v5687_v8, %v11548_v58  ;;  %v5625_v8 = vadd.f32 %v11749_v4, %v11759_v30 }
 0xf2c   : > { %v7004_v34 = vpop.f32.mrb[232].mxu0  ;;  %5761 = vadd.xlane.f32.xlu1 %v11774_v12  ;;  %v11778_v61 = vadd.f32 %v5690_v16, %v11545_v53 }
 0xf2d   : > { %v7005_v44 = vpop.f32.mrb[233].mxu0 }
 0xf2e   : > { %v7006_v33 = vadd.f32 %v7005_v44, %v7004_v34  ;;  %v7007_v14 = vpop.f32.mrb[234].mxu0  ;;  %5763 = vadd.xlane.f32.xlu0 %v11778_v61 }
 0xf2f   : > { %v7008_v38 = vpop.f32.mrb[235].mxu0 }
 0xf30   : > { %v5695_v58 = vadd.f32 %v7006_v33, %v5598_v36  ;;  %v7009_v31 = vadd.f32 %v7008_v38, %v7007_v14  ;;  %v5630_v36 = vadd.f32 %v11751_v49, %v11759_v30  ;;  %v5633_v38 = vadd.f32 %v11753_v46, %v11759_v30 }
 0xf32   : > { %v5698_v19 = vadd.f32 %v7009_v31, %v5601_v45  ;;  %v11786_v24 = vadd.f32 %v5695_v58, %v11561_v17 }
 0xf34   : > { %v7010_v53 = vpop.f32.mrb[236].mxu0  ;;  %5765 = vadd.xlane.f32.xlu1 %v11786_v24  ;;  %v11790_v15 = vadd.f32 %v5698_v19, %v11564_v47 }
 0xf35   : > { %v7011_v6 = vpop.f32.mrb[237].mxu0 }
 0xf36   : > { %v7012_v40 = vadd.f32 %v7011_v6, %v7010_v53  ;;  %v7013_v28 = vpop.f32.mrb[238].mxu0  ;;  %5767 = vadd.xlane.f32.xlu0 %v11790_v15  ;;  %v5638_v53 = vadd.f32 %v11755_v54, %v11759_v30 }
 0xf37   : > { %v7014_v0 = vpop.f32.mrb[239].mxu0 }
 0xf38   : > { %v5703_v17 = vadd.f32 %v7012_v40, %v5606_v56  ;;  %v7015_v59 = vadd.f32 %v7014_v0, %v7013_v28  ;;  %v5641_v40 = vadd.f32 %v11757_v2, %v11759_v30 }
 0xf3a   : > { %v5706_v51 = vadd.f32 %v7015_v59, %v5609_v22  ;;  %v11798_v23 = vadd.f32 %v5703_v17, %v11580_v20 }
 0xf3c   : > { %v7016_v47 = vpop.f32.mrb[240].mxu0  ;;  %5769 = vadd.xlane.f32.xlu1 %v11798_v23  ;;  %v11802_v3 = vadd.f32 %v5706_v51, %v11577_v26 }
 0xf3d   : > { %v7017_v10 = vpop.f32.mrb[241].mxu0 }
 0xf3e   : > { %v7018_v13 = vadd.f32 %v7017_v10, %v7016_v47  ;;  %v7019_v43 = vpop.f32.mrb[242].mxu0  ;;  %5771 = vadd.xlane.f32.xlu0 %v11802_v3 }
 0xf3f   : > { %v7020_v25 = vpop.f32.mrb[243].mxu0 }
 0xf40   : > { %v5711_v20 = vadd.f32 %v7018_v13, %v5614_v18  ;;  %v7021_v55 = vadd.f32 %v7020_v25, %v7019_v43 }
 0xf42   : > { %v5714_v11 = vadd.f32 %v7021_v55, %v5617_v32  ;;  %v11810_v5 = vadd.f32 %v5711_v20, %v11593_v35 }
 0xf44   : > { %v7022_v26 = vpop.f32.mrb[244].mxu0  ;;  %5773 = vadd.xlane.f32.xlu1 %v11810_v5  ;;  %v11814_v39 = vadd.f32 %v5714_v11, %v11596_v7 }
 0xf45   : > { %v7023_v41 = vpop.f32.mrb[245].mxu0 }
 0xf46   : > { %v7024_v52 = vadd.f32 %v7023_v41, %v7022_v26  ;;  %v7025_v63 = vpop.f32.mrb[246].mxu0  ;;  %5775 = vadd.xlane.f32.xlu0 %v11814_v39 }
 0xf47   : > { %v7026_v1 = vpop.f32.mrb[247].mxu0 }
 0xf48   : > { %v5719_v35 = vadd.f32 %v7024_v52, %v5622_v9  ;;  %v7027_v48 = vadd.f32 %v7026_v1, %v7025_v63 }
 0xf4a   : > { %v5722_v16 = vadd.f32 %v7027_v48, %v5625_v8  ;;  %v11822_v34 = vadd.f32 %v5719_v35, %v11609_v37 }
 0xf4c   : > { %v7028_v7 = vpop.f32.mrb[248].mxu0  ;;  %5777 = vadd.xlane.f32.xlu1 %v11822_v34  ;;  %v11826_v44 = vadd.f32 %v5722_v16, %v11606_v57 }
 0xf4d   : > { %v7029_v60 = vpop.f32.mrb[249].mxu0 }
 0xf4e   : > { %v7030_v33 = vadd.f32 %v7029_v60, %v7028_v7  ;;  %v7031_v14 = vpop.f32.mrb[250].mxu0  ;;  %5779 = vadd.xlane.f32.xlu0 %v11826_v44 }
 0xf4f   : > { %v7032_v4 = vpop.f32.mrb[251].mxu0 }
 0xf50   : > { %v5727_v37 = vadd.f32 %v7030_v33, %v5630_v36  ;;  %v7033_v45 = vadd.f32 %v7032_v4, %v7031_v14 }
 0xf52   : > { %v5730_v58 = vadd.f32 %v7033_v45, %v5633_v38  ;;  %v11834_v31 = vadd.f32 %v5727_v37, %v11619_v29 }
 0xf54   : > { %v7034_v57 = vpop.f32.mrb[252].mxu0  ;;  %5781 = vadd.xlane.f32.xlu1 %v11834_v31  ;;  %v11838_v19 = vadd.f32 %v5730_v58, %v11622_v50 }
 0xf55   : > { %v7035_v49 = vpop.f32.mrb[253].mxu0 }
 0xf56   : > { %v7036_v6 = vadd.f32 %v7035_v49, %v7034_v57  ;;  %v7037_v56 = vpop.f32.mrb[254].mxu0  ;;  %5783 = vadd.xlane.f32.xlu0 %v11838_v19 }
 0xf57   : > { %v7038_v46 = vpop.f32.mrb[255].mxu0 }
 0xf58   : > { %v5735_v29 = vadd.f32 %v7036_v6, %v5638_v53  ;;  %v7039_v28 = vadd.f32 %v7038_v46, %v7037_v56 }
 0xf5a   : > { %v5738_v0 = vadd.f32 %v7039_v28, %v5641_v40  ;;  %v11846_v22 = vadd.f32 %v5735_v29, %v11635_v27 }
 0xf5c   : > { %5785 = vadd.xlane.f32.xlu1 %v11846_v22  ;;  %v11850_v50 = vadd.f32 %v5738_v0, %v11632_v62 }
 0xf5e   : > { %5787 = vadd.xlane.f32.xlu0 %v11850_v50 }
 0xfb1   : > { %v5758_v54 = vpop.xlane.xlu1 %5757 }
 0xfb2   : > { %v5789_v17 = vmul.f32 0.0078125, %v5758_v54 }
 0xfb3   : > { %v5760_v59 = vpop.xlane.xlu0 %5759 }
 0xfb4   : > { %v11854_v51 = vsub.f32 %v11764_v21, %v5789_v17  ;;  %v5790_v2 = vmul.f32 0.0078125, %v5760_v59 }
 0xfb6   : > { %v11857_v30 = vsub.f32 %v11768_v42, %v5790_v2  ;;  %v5821_v27 = vmul.f32 %v11854_v51, %v11854_v51 }
 0xfb8   : > { %5837 = vadd.xlane.f32.xlu1 %v5821_v27  ;;  %v5822_v62 = vmul.f32 %v11857_v30, %v11857_v30 }
 0xfb9   : > { %v5762_v47 = vpop.xlane.xlu1 %5761 }
 0xfba   : > { %v5791_v10 = vmul.f32 0.0078125, %v5762_v47  ;;  %5839 = vadd.xlane.f32.xlu0 %v5822_v62 }
 0xfbb   : > { %v5764_v18 = vpop.xlane.xlu0 %5763 }
 0xfbc   : > { %v11864_v13 = vsub.f32 %v11774_v12, %v5791_v10  ;;  %v5792_v21 = vmul.f32 0.0078125, %v5764_v18 }
 0xfbe   : > { %v11867_v43 = vsub.f32 %v11778_v61, %v5792_v21  ;;  %v5823_v42 = vmul.f32 %v11864_v13, %v11864_v13 }
 0xfc0   : > { %5841 = vadd.xlane.f32.xlu1 %v5823_v42  ;;  %v5824_v25 = vmul.f32 %v11867_v43, %v11867_v43 }
 0xfc1   : > { %v5766_v32 = vpop.xlane.xlu1 %5765 }
 0xfc2   : > { %v5793_v20 = vmul.f32 0.0078125, %v5766_v32  ;;  %5843 = vadd.xlane.f32.xlu0 %v5824_v25 }
 0xfc3   : > { %v5768_v55 = vpop.xlane.xlu0 %5767 }
 0xfc4   : > { %v11874_v11 = vsub.f32 %v11786_v24, %v5793_v20  ;;  %v5794_v12 = vmul.f32 0.0078125, %v5768_v55  ;;  %v11933_v20 = vld [vmem:[#allocation25] ss:$0 sm:$0xff] }
 0xfc6   : > { %v11877_v26 = vsub.f32 %v11790_v15, %v5794_v12  ;;  %v5825_v61 = vmul.f32 %v11874_v11, %v11874_v11 }
 0xfc8   : > { %5845 = vadd.xlane.f32.xlu1 %v5825_v61  ;;  %v5826_v41 = vmul.f32 %v11877_v26, %v11877_v26 }
 0xfc9   : > { %v5770_v9 = vpop.xlane.xlu1 %5769 }
 0xfca   : > { %v5795_v52 = vmul.f32 0.0078125, %v5770_v9  ;;  %5847 = vadd.xlane.f32.xlu0 %v5826_v41  ;;  %v11936_v41 = vld [vmem:[#allocation26] ss:$0 sm:$0xff] }
 0xfcb   : > { %v5772_v63 = vpop.xlane.xlu0 %5771 }
 0xfcc   : > { %v11884_v1 = vsub.f32 %v11798_v23, %v5795_v52  ;;  %v5796_v24 = vmul.f32 0.0078125, %v5772_v63 }
 0xfce   : > { %v11887_v8 = vsub.f32 %v11802_v3, %v5796_v24  ;;  %v5827_v15 = vmul.f32 %v11884_v1, %v11884_v1 }
 0xfd0   : > { %5849 = vadd.xlane.f32.xlu1 %v5827_v15  ;;  %v5828_v35 = vmul.f32 %v11887_v8, %v11887_v8 }
 0xfd1   : > { %v5774_v48 = vpop.xlane.xlu1 %5773 }
 0xfd2   : > { %v5797_v16 = vmul.f32 0.0078125, %v5774_v48  ;;  %5851 = vadd.xlane.f32.xlu0 %v5828_v35 }
 0xfd3   : > { %v5776_v7 = vpop.xlane.xlu0 %5775 }
 0xfd4   : > { %v11894_v60 = vsub.f32 %v11810_v5, %v5797_v16  ;;  %v5798_v23 = vmul.f32 0.0078125, %v5776_v7 }
 0xfd6   : > { %v11897_v36 = vsub.f32 %v11814_v39, %v5798_v23  ;;  %v5829_v3 = vmul.f32 %v11894_v60, %v11894_v60 }
 0xfd8   : > { %5853 = vadd.xlane.f32.xlu1 %v5829_v3  ;;  %v5830_v33 = vmul.f32 %v11897_v36, %v11897_v36 }
 0xfd9   : > { %v5778_v14 = vpop.xlane.xlu1 %5777 }
 0xfda   : > { %v5799_v4 = vmul.f32 0.0078125, %v5778_v14  ;;  %5855 = vadd.xlane.f32.xlu0 %v5830_v33 }
 0xfdb   : > { %v5780_v38 = vpop.xlane.xlu0 %5779 }
 0xfdc   : > { %v11904_v37 = vsub.f32 %v11822_v34, %v5799_v4  ;;  %v5800_v5 = vmul.f32 0.0078125, %v5780_v38 }
 0xfde   : > { %v11907_v45 = vsub.f32 %v11826_v44, %v5800_v5  ;;  %v5831_v39 = vmul.f32 %v11904_v37, %v11904_v37 }
 0xfe0   : > { %5857 = vadd.xlane.f32.xlu1 %v5831_v39  ;;  %v5832_v58 = vmul.f32 %v11907_v45, %v11907_v45 }
 0xfe1   : > { %v5782_v57 = vpop.xlane.xlu1 %5781 }
 0xfe2   : > { %v5801_v49 = vmul.f32 0.0078125, %v5782_v57  ;;  %5859 = vadd.xlane.f32.xlu0 %v5832_v58 }
 0xfe3   : > { %v5784_v53 = vpop.xlane.xlu0 %5783 }
 0xfe4   : > { %v11914_v6 = vsub.f32 %v11834_v31, %v5801_v49  ;;  %v5802_v34 = vmul.f32 0.0078125, %v5784_v53 }
 0xfe6   : > { %v11917_v56 = vsub.f32 %v11838_v19, %v5802_v34  ;;  %v5833_v44 = vmul.f32 %v11914_v6, %v11914_v6 }
 0xfe8   : > { %5861 = vadd.xlane.f32.xlu1 %v5833_v44  ;;  %v5834_v46 = vmul.f32 %v11917_v56, %v11917_v56 }
 0xfe9   : > { %v5786_v40 = vpop.xlane.xlu1 %5785 }
 0xfea   : > { %v5803_v29 = vmul.f32 0.0078125, %v5786_v40  ;;  %5863 = vadd.xlane.f32.xlu0 %v5834_v46 }
 0xfeb   : > { %v5788_v28 = vpop.xlane.xlu0 %5787 }
 0xfec   : > { %v11924_v0 = vsub.f32 %v11846_v22, %v5803_v29  ;;  %v5804_v31 = vmul.f32 0.0078125, %v5788_v28 }
 0xfee   : > { %v11927_v54 = vsub.f32 %v11850_v50, %v5804_v31  ;;  %v5835_v19 = vmul.f32 %v11924_v0, %v11924_v0 }
 0xff0   : > { %5865 = vadd.xlane.f32.xlu1 %v5835_v19  ;;  %v5836_v17 = vmul.f32 %v11927_v54, %v11927_v54 }
 0xff2   : > { %5867 = vadd.xlane.f32.xlu0 %v5836_v17 }
0x1045   : > { %v5838_v59 = vpop.xlane.xlu1 %5837 }
0x1046   : > { %v5869_v2 = vmul.f32 0.0078125, %v5838_v59 }
0x1047   : > { %v5840_v27 = vpop.xlane.xlu0 %5839 }
0x1048   : > { %v5885_v62 = vadd.f32 1e-05, %v5869_v2  ;;  %v5870_v47 = vmul.f32 0.0078125, %v5840_v27 }
0x104a   : > { %8028 = vrsqrt.f32 %v5885_v62  ;;  %v5886_v22 = vadd.f32 1e-05, %v5870_v47 }
0x104c   : > { %8030 = vrsqrt.f32 %v5886_v22 }
0x104d   : > { %v5842_v10 = vpop.xlane.xlu1 %5841 }
0x104e   : > { %v5871_v18 = vmul.f32 0.0078125, %v5842_v10 }
0x104f   : > { %v5844_v50 = vpop.xlane.xlu0 %5843 }
0x1050   : > { %v5887_v21 = vadd.f32 1e-05, %v5871_v18  ;;  %v5872_v42 = vmul.f32 0.0078125, %v5844_v50 }
0x1052   : > { %8032 = vrsqrt.f32 %v5887_v21  ;;  %v5888_v25 = vadd.f32 1e-05, %v5872_v42 }
0x1054   : > { %v8029_v32 = vpop.eup %8028  ;;  %8034 = vrsqrt.f32 %v5888_v25 }
0x1055   : > { %v5917_v55 = vmul.f32 %v8029_v32, %v11854_v51  ;;  %v5846_v12 = vpop.xlane.xlu1 %5845 }
0x1056   : > { %v8031_v61 = vpop.eup %8030  ;;  %v5873_v9 = vmul.f32 0.0078125, %v5846_v12 }
0x1057   : > { %v5939_v52 = vmul.f32 %v11933_v20, %v5917_v55  ;;  %v5918_v63 = vmul.f32 %v8031_v61, %v11857_v30  ;;  %v5848_v24 = vpop.xlane.xlu0 %5847 }
0x1058   : > { %v5889_v15 = vadd.f32 1e-05, %v5873_v9  ;;  %v5874_v35 = vmul.f32 0.0078125, %v5848_v24 }
0x1059   : > { %v5961_v48 = vadd.f32 %v11936_v41, %v5939_v52  ;;  %v5940_v16 = vmul.f32 %v11933_v20, %v5918_v63 }
0x105a   : > { %8036 = vrsqrt.f32 %v5889_v15  ;;  %v5890_v7 = vadd.f32 1e-05, %v5874_v35 }
0x105b   : > { %5977 = vst [vmem:[%s11944_s21] sm:$0xff] %v5961_v48  ;;  %v5962_v51 = vadd.f32 %v11936_v41, %v5940_v16 }
0x105c   : > { %v8033_v23 = vpop.eup %8032  ;;  %8038 = vrsqrt.f32 %v5890_v7 }
0x105d   : > { %5978 = vst [vmem:[%s11944_s21 + $0x8] sm:$0xff] %v5962_v51  ;;  %v5919_v30 = vmul.f32 %v8033_v23, %v11864_v13  ;;  %v5850_v3 = vpop.xlane.xlu1 %5849 }
0x105e   : > { %v8035_v33 = vpop.eup %8034  ;;  %v5875_v14 = vmul.f32 0.0078125, %v5850_v3 }
0x105f   : > { %v5941_v4 = vmul.f32 %v11933_v20, %v5919_v30  ;;  %v5920_v38 = vmul.f32 %v8035_v33, %v11867_v43  ;;  %v5852_v5 = vpop.xlane.xlu0 %5851 }
0x1060   : > { %v5891_v39 = vadd.f32 1e-05, %v5875_v14  ;;  %v5876_v58 = vmul.f32 0.0078125, %v5852_v5 }
0x1061   : > { %v5963_v57 = vadd.f32 %v11936_v41, %v5941_v4  ;;  %v5942_v49 = vmul.f32 %v11933_v20, %v5920_v38 }
0x1062   : > { %8040 = vrsqrt.f32 %v5891_v39  ;;  %v5892_v53 = vadd.f32 1e-05, %v5876_v58 }
0x1063   : > { %5979 = vst [vmem:[%s11944_s21 + $0x10] sm:$0xff] %v5963_v57  ;;  %v5964_v13 = vadd.f32 %v11936_v41, %v5942_v49 }
0x1064   : > { %v8037_v34 = vpop.eup %8036  ;;  %8042 = vrsqrt.f32 %v5892_v53 }
0x1065   : > { %5980 = vst [vmem:[%s11944_s21 + $0x18] sm:$0xff] %v5964_v13  ;;  %v5921_v44 = vmul.f32 %v8037_v34, %v11874_v11  ;;  %v5854_v46 = vpop.xlane.xlu1 %5853 }
0x1066   : > { %v8039_v43 = vpop.eup %8038  ;;  %v5877_v40 = vmul.f32 0.0078125, %v5854_v46 }
0x1067   : > { %v5943_v29 = vmul.f32 %v11933_v20, %v5921_v44  ;;  %v5922_v28 = vmul.f32 %v8039_v43, %v11877_v26  ;;  %v5856_v31 = vpop.xlane.xlu0 %5855 }
0x1068   : > { %v5893_v19 = vadd.f32 1e-05, %v5877_v40  ;;  %v5878_v17 = vmul.f32 0.0078125, %v5856_v31 }
0x1069   : > { %v5965_v59 = vadd.f32 %v11936_v41, %v5943_v29  ;;  %v5944_v2 = vmul.f32 %v11933_v20, %v5922_v28 }
0x106a   : > { %8044 = vrsqrt.f32 %v5893_v19  ;;  %v5894_v27 = vadd.f32 1e-05, %v5878_v17 }
0x106b   : > { %5981 = vst [vmem:[%s11944_s21 + $0x20] sm:$0xff] %v5965_v59  ;;  %v5966_v11 = vadd.f32 %v11936_v41, %v5944_v2 }
0x106c   : > { %v8041_v62 = vpop.eup %8040  ;;  %8046 = vrsqrt.f32 %v5894_v27 }
0x106d   : > { %5982 = vst [vmem:[%s11944_s21 + $0x28] sm:$0xff] %v5966_v11  ;;  %v5923_v47 = vmul.f32 %v8041_v62, %v11884_v1  ;;  %v5858_v22 = vpop.xlane.xlu1 %5857 }
0x106e   : > { %v8043_v26 = vpop.eup %8042  ;;  %v5879_v10 = vmul.f32 0.0078125, %v5858_v22 }
0x106f   : > { %v5945_v18 = vmul.f32 %v11933_v20, %v5923_v47  ;;  %v5924_v50 = vmul.f32 %v8043_v26, %v11887_v8  ;;  %v5860_v21 = vpop.xlane.xlu0 %5859 }
0x1070   : > { %v5895_v42 = vadd.f32 1e-05, %v5879_v10  ;;  %v5880_v25 = vmul.f32 0.0078125, %v5860_v21 }
0x1071   : > { %v5967_v32 = vadd.f32 %v11936_v41, %v5945_v18  ;;  %v5946_v55 = vmul.f32 %v11933_v20, %v5924_v50 }
0x1072   : > { %8048 = vrsqrt.f32 %v5895_v42  ;;  %v5896_v12 = vadd.f32 1e-05, %v5880_v25 }
0x1073   : > { %5983 = vst [vmem:[%s11944_s21 + $0x30] sm:$0xff] %v5967_v32  ;;  %v5968_v1 = vadd.f32 %v11936_v41, %v5946_v55 }
0x1074   : > { %v8045_v61 = vpop.eup %8044  ;;  %8050 = vrsqrt.f32 %v5896_v12 }
0x1075   : > { %5984 = vst [vmem:[%s11944_s21 + $0x38] sm:$0xff] %v5968_v1  ;;  %v5925_v9 = vmul.f32 %v8045_v61, %v11894_v60  ;;  %v5862_v52 = vpop.xlane.xlu1 %5861 }
0x1076   : > { %v8047_v8 = vpop.eup %8046  ;;  %v5881_v63 = vmul.f32 0.0078125, %v5862_v52 }
0x1077   : > { %v5947_v24 = vmul.f32 %v11933_v20, %v5925_v9  ;;  %v5926_v15 = vmul.f32 %v8047_v8, %v11897_v36  ;;  %v5864_v35 = vpop.xlane.xlu0 %5863 }
0x1078   : > { %v5897_v48 = vadd.f32 1e-05, %v5881_v63  ;;  %v5882_v16 = vmul.f32 0.0078125, %v5864_v35 }
0x1079   : > { %v5969_v7 = vadd.f32 %v11936_v41, %v5947_v24  ;;  %v5948_v51 = vmul.f32 %v11933_v20, %v5926_v15 }
0x107a   : > { %8052 = vrsqrt.f32 %v5897_v48  ;;  %v5898_v23 = vadd.f32 1e-05, %v5882_v16 }
0x107b   : > { %5985 = vst [vmem:[%s11944_s21 + $0x40] sm:$0xff] %v5969_v7  ;;  %v5970_v60 = vadd.f32 %v11936_v41, %v5948_v51 }
0x107c   : > { %v8049_v30 = vpop.eup %8048  ;;  %8054 = vrsqrt.f32 %v5898_v23 }
0x107d   : > { %5986 = vst [vmem:[%s11944_s21 + $0x48] sm:$0xff] %v5970_v60  ;;  %v5927_v3 = vmul.f32 %v8049_v30, %v11904_v37  ;;  %v5866_v33 = vpop.xlane.xlu1 %5865 }
0x107e   : > { %v8051_v36 = vpop.eup %8050  ;;  %v5883_v14 = vmul.f32 0.0078125, %v5866_v33 }
0x107f   : > { %v5949_v4 = vmul.f32 %v11933_v20, %v5927_v3  ;;  %v5928_v38 = vmul.f32 %v8051_v36, %v11907_v45  ;;  %v5868_v5 = vpop.xlane.xlu0 %5867 }
0x1080   : > { %v5899_v39 = vadd.f32 1e-05, %v5883_v14  ;;  %v5884_v58 = vmul.f32 0.0078125, %v5868_v5 }
0x1081   : > { %v5971_v57 = vadd.f32 %v11936_v41, %v5949_v4  ;;  %v5950_v49 = vmul.f32 %v11933_v20, %v5928_v38 }
0x1082   : > { %8056 = vrsqrt.f32 %v5899_v39  ;;  %v5900_v37 = vadd.f32 1e-05, %v5884_v58 }
0x1083   : > { %5987 = vst [vmem:[%s11944_s21 + $0x50] sm:$0xff] %v5971_v57  ;;  %v5972_v53 = vadd.f32 %v11936_v41, %v5950_v49 }
0x1084   : > { %v8053_v13 = vpop.eup %8052  ;;  %8058 = vrsqrt.f32 %v5900_v37 }
0x1085   : > { %5988 = vst [vmem:[%s11944_s21 + $0x58] sm:$0xff] %v5972_v53  ;;  %v5929_v45 = vmul.f32 %v8053_v13, %v11914_v6 }
0x1086   : > { %v8055_v34 = vpop.eup %8054 }
0x1087   : > { %v5951_v44 = vmul.f32 %v11933_v20, %v5929_v45  ;;  %v5930_v46 = vmul.f32 %v8055_v34, %v11917_v56 }
0x1089   : > { %v5973_v43 = vadd.f32 %v11936_v41, %v5951_v44  ;;  %v5952_v40 = vmul.f32 %v11933_v20, %v5930_v46 }
0x108b   : > { %5989 = vst [vmem:[%s11944_s21 + $0x60] sm:$0xff] %v5973_v43  ;;  %v5974_v29 = vadd.f32 %v11936_v41, %v5952_v40 }
0x108c   : > { %v8057_v28 = vpop.eup %8056 }
0x108d   : > { %5990 = vst [vmem:[%s11944_s21 + $0x68] sm:$0xff] %v5974_v29  ;;  %v5931_v6 = vmul.f32 %v8057_v28, %v11924_v0 }
0x108e   : > { %v8059_v31 = vpop.eup %8058 }
0x108f   : > { %v5953_v56 = vmul.f32 %v11933_v20, %v5931_v6  ;;  %v5932_v19 = vmul.f32 %v8059_v31, %v11927_v54 }
0x1091   : > { %v5975_v17 = vadd.f32 %v11936_v41, %v5953_v56  ;;  %v5954_v59 = vmul.f32 %v11933_v20, %v5932_v19 }
0x1093   : > { %5991 = vst [vmem:[%s11944_s21 + $0x70] sm:$0xff] %v5975_v17  ;;  %v5976_v0 = vadd.f32 %v11936_v41, %v5954_v59 }
0x1095   : > { %5992 = vst [vmem:[%s11944_s21 + $0x78] sm:$0xff] %v5976_v0 }
0x1096   : > { %8541 = shalt.err (!%p8538_p3)
}
0x1097   : > { %s8542_s21 = scalar_lea.hbm %s12008_s28, 2048  ;;  %s8546_s5 = scalar_lea.hbm %s12607_s1, 8192 }
0x1098   : > { %p8543_p4 = scmp.ne.s32.totalorder %s12008_s28, %s8542_s21  ;;  %p8547_p9 = scmp.lt.u32.totalorder %s12008_s28, %s12607_s1 }
0x1099   : > { %p8548_p11 = scmp.lt.u32.totalorder %s8546_s5, %s8542_s21  ;;  %p8550_p2 = scmp.lt.u32.totalorder %s8542_s21, %s12008_s28 }
0x109a   : > { %p8544_p8 = pnand %p8543_p4, %p12608_p10 }
0x109b   : > { %p8549_p7 = por %p8548_p11, %p8547_p9 }
0x109c   : > { %p8545_p0 = pneg %p8544_p8 }
0x109d   : > { %p8551_p12 = por %p8550_p2, %p8549_p7 }
0x109f   : > { %p8552_p13 = pnand %p8551_p12, %p8545_p0 }
0x10a1   : > { %8555 = shalt.err (!%p8552_p13)
}
0x10a2   : > { %s8715_s8 = smov 128   ;;  %s8716_s7 = smov 8  }
0x10a3   : > { %7292 = dma.vmem_to_hbm [thread:$0]  (%p12608_p10), %s12010_s29, 2048, %s12008_s28, %s5994_s19, %s8715_s8, %s8715_s8, %s8716_s7  }
0x10a4 PF: > { %s12609_s25 = sld [smem:[#allocation43_spill]]  ;;  %p7377_p1 = scmp.ge.s32.totalorder %s8686_s0, 2 }
0x10a5   : > { %p12610_p5 = scmp.ne.s32.totalorder %s12303_s18, 0 }
0x10a7   : > { %p7345_p6 = pnand %p7377_p1, %p12610_p5 }
0x10aa   : > { %s6024_s26 = sand.u32 1, %s12609_s25  }
0x10ab   : > { %s6025_s30 = scalar_lea.sflag [#allocation4], %s6024_s26 }
0x10ac   : > { %8641 = dma.done.wait (!%p7345_p6), %s6025_s30, 2048  }
0x10ad   : > { %8643 = vsyncadd (!%p7345_p6), %s6025_s30, 4294965248  ;;  %s42_s0 = sadd.s32 1, %s8686_s0   ;;  %s12611_s21 = sld [smem:[#allocation41_spill]] }
0x10ae   : > { %p39_p3 = scmp.ge.s32.totalorder %s42_s0, 6   ;;  %s12612_s3 = sld [smem:[#allocation42_spill]] }
0x10af   : > { %s12613_s20 = smov %s9273_s22  ;;  %s12614_s4 = sld [smem:[#allocation44_spill]] }
0x10b0   : > { %s12615_s25 = sld [smem:[#allocation45_spill]]  ;;  %s12616_s9 = smov %s12634_s24 }
0x10b1   : > { %s12617_s29 = sld [smem:[#allocation48_spill]]  ;;  %s12618_s28 = sld [smem:[#allocation49_spill]] }
0x10b2   : > { %s12619_s19 = smov %s12632_s27  ;;  %s12621_s23 = smov %s12613_s20 }
0x10b3   : > { %s12623_s26 = smov %s12616_s9  ;;  %s12626_s30 = smov %s12619_s19 }
0x10b4   : > { %s12620_s22 = smov %s12612_s3  ;;  %41 = sbr.rel (!%p39_p3) target bundleno = 32 (0x20), region = 198 }
0x10b5   : > { %s12622_s24 = smov %s12614_s4 }
0x10b7   : > { %s12624_s27 = smov %s12617_s29  ;;  %s12625_s29 = smov %s12628_s16 }
0x10bb   :  { %6030 = vsyncpa [#allocation3], 1 }
0x10bc   :  { %6032 = vsyncpa [#allocation3 + $0x1], 1 }
0x10bd   :  { %6033 = vsyncpa [#allocation6], 1 }
0x10be   :  { %6035 = vsyncpa [#allocation6 + $0x1], 1 }
0x10bf   :  { %6036 = vsyncpa [#allocation9], 1 }
0x10c0   :  { %6037 = vsyncpa [#allocation12], 1 }
0x10c1   :  { %6038 = vsyncpa [#allocation15], 1 }
0x10c2   :  { %6039 = vsyncpa [#allocation18], 1 }
0x10c3   :  { %6040 = vsyncpa [#allocation21], 1 }
0x10c4   :  { %6041 = vsyncpa [#allocation24], 1 }
0x10c5   :  { %6042 = vsyncpa [#allocation27], 1 }
0x10c6   :  { %6043 = vsyncpa [#allocation4], 1 }
0x10c7   :  { %6045 = vsyncpa [#allocation4 + $0x1], 1 }

</bundles_post_ra>
